<compile_context>
chip_gen: v6e
topology: v6e:2x2x1
jax: 0.10.0
libtpu: 0.0.40
codegen_flags: <defaults>
</compile_context>

<pallas_src>
import functools
import math

import numpy as np
import jax
import jax.numpy as jnp
from jax import lax
from jax.experimental import pallas as pl
from jax.experimental.pallas import tpu as pltpu


def _round_up(x, m):
    return ((x + m - 1) // m) * m


def _next_pow2(x):
    return 1 if x <= 1 else 1 << (int(x) - 1).bit_length()


# ---------------------------------------------------------------------------
# Fused batched kernel (one grid step == SENT_TILE sentences):
#   seg     = [subword t belongs to word slot r]            (on-device, from word-slot ids)
#   word    = (seg @ hidden) * (1 / count)                  (exact segment mean)
#   proj    = word @ W_1 + [b_1 + W_2(typ) + b_2]           (typ branch folded into bias)
#   e       = tanh(proj) . W_3
#   a       = per-sentence masked softmax(e) over word rows
#   out     = word * a
# ---------------------------------------------------------------------------
def lm_batched_kernel(nw_pad, gwid_ref, vld_ref, hid_ref, w1_ref, bias_ref, w3_ref, o_ref):
    m = o_ref.shape[0]            # SENT_TILE * NW_PAD word slots in this step
    k = hid_ref.shape[0]          # SENT_TILE * S_PAD  subword positions in this step

    # --- on-device block-diagonal segment matrix from per-subword word-slot ids -----------
    gwid = gwid_ref[0]                                               # (1, k) int32, -1 = pad
    slot = lax.broadcasted_iota(jnp.int32, (m, k), 0)                # word-slot id per row
    sel_f32 = jnp.where(slot == gwid, 1.0, 0.0)                      # (m, k) f32 0/1
    seg = sel_f32.astype(jnp.bfloat16)                               # exact 0/1 for the MXU

    # --- exact segment SUM on the MXU, exact f32 mean scaling on the VPU ------------------
    seg_sum = jnp.dot(seg, hid_ref[...], preferred_element_type=jnp.float32)    # (m, D) f32
    cnt = jnp.sum(sel_f32, axis=1, keepdims=True)                    # (m, 1) subwords / word
    word = seg_sum * (1.0 / jnp.maximum(cnt, 1.0))                   # segment mean, f32

    # --- additive attention scores ---------------------------------------------------------
    proj = jnp.dot(word.astype(jnp.bfloat16), w1_ref[...],
                   preferred_element_type=jnp.float32) + bias_ref[...]          # (m, D3P)
    t = jnp.tanh(proj)
    # lane-major scores (1, m): W_3 . t_r  via a transposed-RHS matmul (q @ k.T pattern)
    e_row = lax.dot_general(w3_ref[...], t, (((1,), (1,)), ((), ())),
                            preferred_element_type=jnp.float32)                 # (1, m)

    # --- per-sentence masked softmax over word slots (dim=0 within each sentence) ---------
    neg = jnp.float32(-1e30)
    valid = vld_ref[0] > 0                                           # (1, m) real-word mask
    e_row = jnp.where(valid, e_row, neg)
    r_i = lax.broadcasted_iota(jnp.int32, (m, m), 0)
    c_i = lax.broadcasted_iota(jnp.int32, (m, m), 1)
    blk = ~(nw_pad - 1)                                              # nw_pad is a power of 2
    same = (r_i & blk) == (c_i & blk)                                # same-sentence mask
    z = jnp.where(same, e_row, neg)                                  # (m, m): my sentence's scores
    m_col = jnp.max(z, axis=1, keepdims=True)                        # per-sentence max
    p = jnp.exp(z - m_col)                                           # (m, m)
    denom = jnp.sum(p, axis=1, keepdims=True)                        # per-sentence sum
    numer = jnp.sum(jnp.where(r_i == c_i, p, 0.0), axis=1, keepdims=True)  # diag = exp(e_r - max)
    a = numer * pl.reciprocal(denom, approx=True)                    # (m, 1) EUP reciprocal

    # --- weighted word embeddings (lane-dense 768-wide f32 store) --------------------------
    o_ref[...] = word * a


def lm_attention_batched(gwid, valid, hidden_flat, a_w1, att_bias, w3_row,
                         *, sent_tile, nw_pad, s_pad):
    num_tiles = gwid.shape[0]
    m_tile = sent_tile * nw_pad
    k_tile = sent_tile * s_pad
    d = hidden_flat.shape[1]
    d3p = a_w1.shape[1]
    kernel = functools.partial(lm_batched_kernel, nw_pad)
    return pl.pallas_call(
        kernel,
        out_shape=jax.ShapeDtypeStruct((num_tiles * m_tile, d), jnp.float32),
        grid=(num_tiles,),
        in_specs=[
            pl.BlockSpec((1, 1, k_tile), lambda s: (s, 0, 0)),   # per-subword word-slot ids
            pl.BlockSpec((1, 1, m_tile), lambda s: (s, 0, 0)),   # per-word-slot validity
            pl.BlockSpec((k_tile, d),    lambda s: (s, 0)),      # hidden slab   (streamed)
            pl.BlockSpec((d, d3p),       lambda s: (0, 0)),      # W_1           (VMEM-resident)
            pl.BlockSpec((1, d3p),       lambda s: (0, 0)),      # folded bias   (resident)
            pl.BlockSpec((1, d3p),       lambda s: (0, 0)),      # W_3 row       (resident)
        ],
        out_specs=pl.BlockSpec((m_tile, d), lambda s: (s, 0)),
        compiler_params=pltpu.CompilerParams(
            dimension_semantics=("parallel",),        # v7x: 2 TCs split the sentence tiles
            vmem_limit_bytes=32 * 1024 * 1024),
    )(gwid, valid, hidden_flat, a_w1, att_bias, w3_row)


# ---------------------------------------------------------------------------
# Host-side folding / per-language precompute (hoisted off the per-sentence path).
# ---------------------------------------------------------------------------
def fold_attention_params(params, d3_pad):
    """Per-model constants: pad D3 to a 128-multiple, bf16 for the big MXU weight."""
    d3 = params["a_w1"].shape[1]
    a_w1 = jnp.pad(params["a_w1"], ((0, 0), (0, d3_pad - d3))).astype(jnp.bfloat16)
    w3_row = jnp.pad(params["a_w3"][:, 0][None, :], ((0, 0), (0, d3_pad - d3)))
    return a_w1, w3_row


def precompute_att_bias(f_vec, params, d3_pad):
    """Per-language constant: fold the typological MLP (no nonlinearity between the two
    linears) plus the whole typ branch of AdditiveAttention into one bias row."""
    w12 = params["t_w1"] @ params["t_w2"]
    b12 = params["t_b1"] @ params["t_w2"] + params["t_b2"]
    typ = jnp.maximum(f_vec @ w12 + b12, 0.0)                        # ReLU (Dropout = id)
    att_bias = params["a_b1"] + typ @ params["a_w2"] + params["a_b2"]
    return jnp.pad(att_bias, ((0, 0), (0, d3_pad - att_bias.shape[1])))


# ---------------------------------------------------------------------------
# Host-side batch packing (tokenizer metadata -> small int arrays; hidden packed once).
# ---------------------------------------------------------------------------
def pack_word_metadata(subword_counts_list, sent_tile, nw_pad, s_pad):
    b = len(subword_counts_list)
    b_pad = _round_up(max(b, 1), sent_tile)
    num_tiles = b_pad // sent_tile
    m_tile, k_tile = sent_tile * nw_pad, sent_tile * s_pad
    gwid = np.full((num_tiles, 1, k_tile), -1, np.int32)
    valid = np.zeros((num_tiles, 1, m_tile), np.int32)
    for idx, counts in enumerate(subword_counts_list):
        tile, j = divmod(idx, sent_tile)
        counts = np.asarray(counts, np.int32)
        n_words, n_sub = len(counts), int(counts.sum())
        assert n_words <= nw_pad and n_sub <= s_pad
        ids = np.repeat(np.arange(n_words, dtype=np.int32), counts)
        gwid[tile, 0, j * s_pad: j * s_pad + n_sub] = ids + j * nw_pad
        valid[tile, 0, j * nw_pad: j * nw_pad + n_words] = 1
    return jnp.asarray(gwid), jnp.asarray(valid), b_pad, num_tiles


def pack_hidden_batch(hidden_states, sent_tile, s_pad):
    """ONE pad + cast + reshape for the whole batch (not per sentence)."""
    b, _, d = hidden_states.shape
    b_pad = _round_up(b, sent_tile)
    inner = hidden_states[:, 1:, :]          # drop [CLS]; [SEP]/pad rows are masked by gwid==-1
    if inner.shape[1] >= s_pad:
        inner = inner[:, :s_pad, :]
    else:
        inner = jnp.pad(inner, ((0, 0), (0, s_pad - inner.shape[1]), (0, 0)))
    inner = jnp.pad(inner, ((0, b_pad - b), (0, 0), (0, 0)))
    return inner.astype(jnp.bfloat16).reshape(b_pad * s_pad, d)


# ---------------------------------------------------------------------------
# Glue: batched LMEmbedding.forward ('bert' branch, add_att).  Final Dropout == identity.
# ---------------------------------------------------------------------------
def lm_embedding_forward_batched(hidden_states, subword_counts_list, f_vec, params,
                                 sent_tile=16):
    d = hidden_states.shape[-1]
    max_words = max(len(c) for c in subword_counts_list)
    max_sub = max(sum(c) for c in subword_counts_list)

    nw_pad = _next_pow2(max(max_words, 8))                           # power of 2 word bucket
    lane_q = max(8, 128 // math.gcd(sent_tile, 128))                 # keep K_TILE lane-aligned
    s_pad = _round_up(max(max_sub, 8), lane_q)
    d3p = _round_up(params["a_w1"].shape[1], 128)

    gwid, valid, b_pad, _ = pack_word_metadata(subword_counts_list, sent_tile, nw_pad, s_pad)
    hidden_flat = pack_hidden_batch(hidden_states, sent_tile, s_pad)

    a_w1, w3_row = fold_attention_params(params, d3p)     # per-model constant (cacheable)
    att_bias = precompute_att_bias(f_vec, params, d3p)    # per-language constant (cacheable)

    out_flat = lm_attention_batched(gwid, valid, hidden_flat, a_w1, att_bias, w3_row,
                                    sent_tile=sent_tile, nw_pad=nw_pad, s_pad=s_pad)
    out = out_flat.reshape(b_pad, nw_pad, d)[: len(subword_counts_list)]
    return out                                                       # (B, NW_PAD, D) f32


def lm_embedding_forward(hidden_state, subword_counts, f_vec, params):
    """Single-sentence wrapper mirroring the module's forward signature."""
    out = lm_embedding_forward_batched(hidden_state, [subword_counts], f_vec, params,
                                       sent_tile=1)
    return out[:1, : len(subword_counts), :]                         # (1, n_words, D)


# ---------------------------------------------------------------------------
# Pure-JAX f32 reference (mirrors the PyTorch code path) for correctness check.
# ---------------------------------------------------------------------------
def reference_forward(hidden_state_row, subword_counts, f_vec, params):
    counts = [int(c) for c in subword_counts]
    n_sub, n_words = sum(counts), len(counts)
    inner = hidden_state_row[1:1 + n_sub, :]                         # strip [CLS]; before [SEP]
    avg = np.zeros((n_words, n_sub), np.float32)
    idx = 0
    for w, c in enumerate(counts):
        avg[w, idx:idx + c] = 1.0 / float(c)
        idx += c
    word = jnp.asarray(avg) @ inner                                  # average_subwords
    h = f_vec @ params["t_w1"] + params["t_b1"]
    h = h @ params["t_w2"] + params["t_b2"]
    typ = jnp.maximum(h, 0.0)                                        # TypologicalLanguageEmbed
    typ_rep = jnp.repeat(typ, n_words, axis=0)
    weights = word @ params["a_w1"] + params["a_b1"] + typ_rep @ params["a_w2"] + params["a_b2"]
    e = (jnp.tanh(weights) @ params["a_w3"])[:, 0]
    a = jax.nn.softmax(e, axis=0)
    return (word.T * a).T                                            # (n_words, D)


if __name__ == "__main__":
    # Module default dims: bert_hidden=768, typ_embed_size=32, num_typ_features=289,
    # attention_hidden_size=200 (padded to 256 inside the wrapper).
    D, T, F, D3 = 768, 32, 289, 200
    SENT_TILE = 16          # sentences per grid step (review: 16 fits v5e/v6e/v7x VMEM)
    B = 20                  # sentences in the batch (pads to 32 -> grid of 2 tiles)
    S_MAX = 40              # [CLS] + up to 36 subwords + [SEP] (+ pad): fixed LM pad length

    # Host-side tokenizer metadata (deterministic): words per sentence, subwords per word.
    rs = np.random.RandomState(0)
    subword_counts = [[int(c) for c in rs.randint(1, 4, size=rs.randint(3, 13))]
                      for _ in range(B)]
    assert max(sum(c) for c in subword_counts) + 2 <= S_MAX

    key = jax.random.PRNGKey(0)
    ks = jax.random.split(key, 12)
    u = lambda k, shape, s=0.1: jax.random.uniform(k, shape, jnp.float32, -s, s)

    # Synthetic LM layer output for the padded batch (stands in for BERT hidden_states[4]).
    hidden_states = jax.random.normal(ks[0], (B, S_MAX, D), jnp.float32)
    f_vec = u(ks[1], (1, F), 1.0)                                    # lang2vec feature vector

    params = {
        # TypologicalLanguageEmbed: linear1 (F->F), linear2 (F->T); weights stored (in, out)
        "t_w1": u(ks[2], (F, F)), "t_b1": u(ks[3], (1, F)),
        "t_w2": u(ks[4], (F, T)), "t_b2": u(ks[5], (1, T)),
        # AdditiveAttention: W_1 (768->200), W_2 (32->200), W_3 (200,)
        "a_w1": u(ks[6], (D, D3)), "a_b1": u(ks[7], (1, D3)),
        "a_w2": u(ks[8], (T, D3)), "a_b2": u(ks[9], (1, D3)),
        "a_w3": u(ks[10], (D3, 1)),
    }

    out = lm_embedding_forward_batched(hidden_states, subword_counts, f_vec, params,
                                       sent_tile=SENT_TILE)
    out = jax.block_until_ready(out)
    assert out.shape[0] == B and out.shape[2] == D, out.shape

    # Per-sentence check against the pure-f32 PyTorch-equivalent path.  Tolerance covers
    # the bf16 MXU inputs (hidden, word->W_1) and the approx EUP reciprocal.
    for b, counts in enumerate(subword_counts):
        ref = reference_forward(hidden_states[b], counts, f_vec, params)
        got = out[b, :len(counts), :]
        np.testing.assert_allclose(np.asarray(got), np.asarray(ref), rtol=2e-2, atol=2e-3)

    print("KERNEL_OK")
</pallas_src>

<mosaic_0001>
module attributes {stable_mosaic.version = 11 : i64} {
  func.func @lm_batched_kernel(%arg0: i32, %arg1: memref<1x1x512xi32, #tpu.memory_space<vmem>>, %arg2: memref<1x1x256xi32, #tpu.memory_space<vmem>>, %arg3: memref<512x768xbf16, #tpu.memory_space<vmem>>, %arg4: memref<768x256xbf16, #tpu.memory_space<vmem>>, %arg5: memref<1x256xf32, #tpu.memory_space<vmem>>, %arg6: memref<1x256xf32, #tpu.memory_space<vmem>>, %arg7: memref<256x768xf32, #tpu.memory_space<vmem>>) attributes {dimension_semantics = [#tpu.dimension_semantics<parallel>], iteration_bounds = array<i64: 2>, scalar_prefetch = 0 : i64, scratch_operands = 0 : i64, tpu.core_type = #tpu.core_type<tc>, window_params = [{transform_indices = @transform_0, window_bounds = array<i64: 1, 1, 512>}, {transform_indices = @transform_1, window_bounds = array<i64: 1, 1, 256>}, {transform_indices = @transform_2, window_bounds = array<i64: 512, 768>}, {pipeline_mode = #tpu.pipeline_mode<synchronous>, transform_indices = @transform_3, window_bounds = array<i64: 768, 256>}, {pipeline_mode = #tpu.pipeline_mode<synchronous>, transform_indices = @transform_4, window_bounds = array<i64: 1, 256>}, {pipeline_mode = #tpu.pipeline_mode<synchronous>, transform_indices = @transform_5, window_bounds = array<i64: 1, 256>}, {transform_indices = @transform_6, window_bounds = array<i64: 256, 768>}]} {
    %c0 = arith.constant 0 : index
    %c0_0 = arith.constant 0 : index
    %c0_1 = arith.constant 0 : index
    %0 = vector.load %arg1[%c0, %c0_0, %c0_1] : memref<1x1x512xi32, #tpu.memory_space<vmem>>, vector<1x1x512xi32>
    %1 = vector.shape_cast %0 : vector<1x1x512xi32> to vector<1x512xi32>
    %2 = tpu.iota {dimensions = array<i32: 0>} : vector<256x512xi32>
    %3 = vector.broadcast %1 : vector<1x512xi32> to vector<256x512xi32>
    %4 = arith.cmpi eq, %2, %3 : vector<256x512xi32>
    %cst = arith.constant 1.000000e+00 : f32
    %cst_2 = arith.constant 0.000000e+00 : f32
    %5 = vector.broadcast %cst : f32 to vector<256x512xf32>
    %6 = vector.broadcast %cst_2 : f32 to vector<256x512xf32>
    %7 = arith.select %4, %5, %6 : vector<256x512xi1>, vector<256x512xf32>
    %8 = arith.truncf %7 : vector<256x512xf32> to vector<256x512xbf16>
    %c0_3 = arith.constant 0 : index
    %c0_4 = arith.constant 0 : index
    %9 = vector.load %arg3[%c0_3, %c0_4] : memref<512x768xbf16, #tpu.memory_space<vmem>>, vector<512x768xbf16>
    %cst_5 = arith.constant dense<0.000000e+00> : vector<256x768xf32>
    %10 = tpu.matmul %8, %9, %cst_5 {dimension_numbers = #tpu.dot_dimension_numbers<[1], [0], [0], [1], [0, 0, 1, 1], [], []>} : vector<256x512xbf16>, vector<512x768xbf16>, vector<256x768xf32> -> vector<256x768xf32>
    %cst_6 = arith.constant dense<0.000000e+00> : vector<256xf32>
    %11 = vector.multi_reduction <add>, %7, %cst_6 [1] : vector<256x512xf32> to vector<256xf32>
    %12 = vector.shape_cast %11 : vector<256xf32> to vector<256x1xf32>
    %cst_7 = arith.constant 1.000000e+00 : f32
    %13 = vector.broadcast %cst_7 : f32 to vector<256x1xf32>
    %14 = arith.maximumf %12, %13 : vector<256x1xf32>
    %cst_8 = arith.constant 1.000000e+00 : f32
    %15 = vector.broadcast %cst_8 : f32 to vector<256x1xf32>
    %16 = arith.divf %15, %14 : vector<256x1xf32>
    %17 = vector.broadcast %16 : vector<256x1xf32> to vector<256x768xf32>
    %18 = arith.mulf %10, %17 : vector<256x768xf32>
    %19 = arith.truncf %18 : vector<256x768xf32> to vector<256x768xbf16>
    %c0_9 = arith.constant 0 : index
    %c0_10 = arith.constant 0 : index
    %20 = vector.load %arg4[%c0_9, %c0_10] : memref<768x256xbf16, #tpu.memory_space<vmem>>, vector<768x256xbf16>
    %cst_11 = arith.constant dense<0.000000e+00> : vector<256x256xf32>
    %21 = tpu.matmul %19, %20, %cst_11 {dimension_numbers = #tpu.dot_dimension_numbers<[1], [0], [0], [1], [0, 0, 1, 1], [], []>} : vector<256x768xbf16>, vector<768x256xbf16>, vector<256x256xf32> -> vector<256x256xf32>
    %c0_12 = arith.constant 0 : index
    %c0_13 = arith.constant 0 : index
    %22 = vector.load %arg5[%c0_12, %c0_13] : memref<1x256xf32, #tpu.memory_space<vmem>>, vector<1x256xf32>
    %23 = vector.broadcast %22 : vector<1x256xf32> to vector<256x256xf32>
    %24 = arith.addf %21, %23 : vector<256x256xf32>
    %25 = math.tanh %24 : vector<256x256xf32>
    %c0_14 = arith.constant 0 : index
    %c0_15 = arith.constant 0 : index
    %26 = vector.load %arg6[%c0_14, %c0_15] : memref<1x256xf32, #tpu.memory_space<vmem>>, vector<1x256xf32>
    %cst_16 = arith.constant dense<0.000000e+00> : vector<1x256xf32>
    %27 = tpu.matmul %26, %25, %cst_16 {dimension_numbers = #tpu.dot_dimension_numbers<[1], [1], [0], [0], [0, 0, 1, 0], [], []>} : vector<1x256xf32>, vector<256x256xf32>, vector<1x256xf32> -> vector<1x256xf32>
    %c0_17 = arith.constant 0 : index
    %c0_18 = arith.constant 0 : index
    %c0_19 = arith.constant 0 : index
    %28 = vector.load %arg2[%c0_17, %c0_18, %c0_19] : memref<1x1x256xi32, #tpu.memory_space<vmem>>, vector<1x1x256xi32>
    %29 = vector.shape_cast %28 : vector<1x1x256xi32> to vector<1x256xi32>
    %c0_i32 = arith.constant 0 : i32
    %30 = vector.broadcast %c0_i32 : i32 to vector<1x256xi32>
    %31 = arith.cmpi sgt, %29, %30 : vector<1x256xi32>
    %cst_20 = arith.constant -1.000000e+30 : f32
    %32 = vector.broadcast %cst_20 : f32 to vector<1x256xf32>
    %33 = arith.select %31, %27, %32 : vector<1x256xi1>, vector<1x256xf32>
    %34 = tpu.iota {dimensions = array<i32: 0>} : vector<256x256xi32>
    %35 = tpu.iota {dimensions = array<i32: 1>} : vector<256x256xi32>
    %c-16_i32 = arith.constant -16 : i32
    %36 = vector.broadcast %c-16_i32 : i32 to vector<256x256xi32>
    %37 = arith.andi %34, %36 : vector<256x256xi32>
    %c-16_i32_21 = arith.constant -16 : i32
    %38 = vector.broadcast %c-16_i32_21 : i32 to vector<256x256xi32>
    %39 = arith.andi %35, %38 : vector<256x256xi32>
    %40 = arith.cmpi eq, %37, %39 : vector<256x256xi32>
    %cst_22 = arith.constant -1.000000e+30 : f32
    %41 = vector.shape_cast %33 : vector<1x256xf32> to vector<1x256xf32>
    %42 = vector.broadcast %41 : vector<1x256xf32> to vector<256x256xf32>
    %43 = vector.broadcast %cst_22 : f32 to vector<256x256xf32>
    %44 = arith.select %40, %42, %43 : vector<256x256xi1>, vector<256x256xf32>
    %cst_23 = arith.constant dense<0xFF800000> : vector<256xf32>
    %45 = vector.multi_reduction <maximumf>, %44, %cst_23 [1] : vector<256x256xf32> to vector<256xf32>
    %46 = vector.shape_cast %45 : vector<256xf32> to vector<256x1xf32>
    %47 = vector.broadcast %46 : vector<256x1xf32> to vector<256x256xf32>
    %48 = arith.subf %44, %47 : vector<256x256xf32>
    %49 = math.exp %48 : vector<256x256xf32>
    %cst_24 = arith.constant dense<0.000000e+00> : vector<256xf32>
    %50 = vector.multi_reduction <add>, %49, %cst_24 [1] : vector<256x256xf32> to vector<256xf32>
    %51 = vector.shape_cast %50 : vector<256xf32> to vector<256x1xf32>
    %52 = arith.cmpi eq, %34, %35 : vector<256x256xi32>
    %cst_25 = arith.constant 0.000000e+00 : f32
    %53 = vector.broadcast %cst_25 : f32 to vector<256x256xf32>
    %54 = arith.select %52, %49, %53 : vector<256x256xi1>, vector<256x256xf32>
    %cst_26 = arith.constant dense<0.000000e+00> : vector<256xf32>
    %55 = vector.multi_reduction <add>, %54, %cst_26 [1] : vector<256x256xf32> to vector<256xf32>
    %56 = vector.shape_cast %55 : vector<256xf32> to vector<256x1xf32>
    %57 = tpu.reciprocal %51 {approx = true} : vector<256x1xf32> -> vector<256x1xf32>
    %58 = arith.mulf %56, %57 : vector<256x1xf32>
    %59 = vector.broadcast %58 : vector<256x1xf32> to vector<256x768xf32>
    %60 = arith.mulf %18, %59 : vector<256x768xf32>
    %c0_27 = arith.constant 0 : index
    %c0_28 = arith.constant 0 : index
    %61 = vector.load %arg7[%c0_27, %c0_28] : memref<256x768xf32, #tpu.memory_space<vmem>>, vector<256x768xf32>
    tpu.vector_store %arg7[%c0_27, %c0_28], %60 {strides = array<i32>} : memref<256x768xf32, #tpu.memory_space<vmem>>, vector<256x768xf32>,
    return
  }
  func.func @transform_0(%arg0: i32) -> (i32, i32, i32) {
    %c0_i32 = arith.constant 0 : i32
    %c0_i32_0 = arith.constant 0 : i32
    %c0_i32_1 = arith.constant 0 : i32
    return %arg0, %c0_i32, %c0_i32_0 : i32, i32, i32
  }
  func.func @transform_1(%arg0: i32) -> (i32, i32, i32) {
    %c0_i32 = arith.constant 0 : i32
    %c0_i32_0 = arith.constant 0 : i32
    %c0_i32_1 = arith.constant 0 : i32
    return %arg0, %c0_i32, %c0_i32_0 : i32, i32, i32
  }
  func.func @transform_2(%arg0: i32) -> (i32, i32) {
    %c0_i32 = arith.constant 0 : i32
    %c0_i32_0 = arith.constant 0 : i32
    return %arg0, %c0_i32 : i32, i32
  }
  func.func @transform_3(%arg0: i32) -> (i32, i32) {
    %c0_i32 = arith.constant 0 : i32
    %c0_i32_0 = arith.constant 0 : i32
    %c0_i32_1 = arith.constant 0 : i32
    return %c0_i32, %c0_i32_0 : i32, i32
  }
  func.func @transform_4(%arg0: i32) -> (i32, i32) {
    %c0_i32 = arith.constant 0 : i32
    %c0_i32_0 = arith.constant 0 : i32
    %c0_i32_1 = arith.constant 0 : i32
    return %c0_i32, %c0_i32_0 : i32, i32
  }
  func.func @transform_5(%arg0: i32) -> (i32, i32) {
    %c0_i32 = arith.constant 0 : i32
    %c0_i32_0 = arith.constant 0 : i32
    %c0_i32_1 = arith.constant 0 : i32
    return %c0_i32, %c0_i32_0 : i32, i32
  }
  func.func @transform_6(%arg0: i32) -> (i32, i32) {
    %c0_i32 = arith.constant 0 : i32
    %c0_i32_0 = arith.constant 0 : i32
    return %arg0, %c0_i32 : i32, i32
  }
}

</mosaic_0001>

<bundles_post_ra>
// kernel: tpu_custom_call.1
= control target key start
LH: loop header
LB: loop body
LE: loop exit
PB: predicated region body
PF: predicated region fallthrough
CT: control target
= control target key end

     0   :  { %s14295_s0 = inlined_call_operand.hbm [shape: s32[2,1,512], index: 0, kind: input, shape index: {}]   ;;  %s14296_s1 = inlined_call_operand.hbm [shape: s32[2,1,256], index: 1, kind: input, shape index: {}]   ;;  %s14297_s2 = inlined_call_operand.hbm [shape: bf16[1024,768], index: 2, kind: input, shape index: {}]   ;;  %s14298_s3 = inlined_call_operand.hbm [shape: bf16[768,256], index: 3, kind: input, shape index: {}]   ;;  %s14299_s4 = inlined_call_operand.hbm [shape: f32[1,256], index: 4, kind: input, shape index: {}]   ;;  %s14300_s5 = inlined_call_operand.hbm [shape: f32[1,256], index: 5, kind: input, shape index: {}]   ;;  %s14301_s6 = inlined_call_operand.hbm [shape: f32[512,768], index: 6, kind: output, shape index: {}]  }
   0x1   :  { %14884 = sst [smem:[#allocation299_spill]] %s14298_s3 }
   0x2   :  { %11 = vsyncpa [#allocation3], 0 }
   0x3   :  { %13 = vsyncpa [#allocation3 + $0x1], 0 }
   0x4   :  { %14 = vsyncpa [#allocation6], 0 }
   0x5   :  { %16 = vsyncpa [#allocation6 + $0x1], 0 }
   0x6   :  { %17 = vsyncpa [#allocation9], 0 }
   0x7   :  { %18 = vsyncpa [#allocation12], 0 }
   0x8   :  { %19 = vsyncpa [#allocation4], 0 }
   0x9   :  { %21 = vsyncpa [#allocation4 + $0x1], 0  ;;  %s8276_s21 = smov 0   ;;  %s8278_s22 = smov 0  }
   0xa   :  { %s8280_s23 = smov 0   ;;  %s8282_s24 = smov 0  }
   0xb LB: > { %14885 = sst [smem:[#allocation19_spill]] %s8219_s23  ;;  %s8297_s25 = sadd.s32 4294967295, %s8223_s24   ;;  %s8223_s24 = sphi %s8282_s24, %s16443_s24   ;;  %s8219_s23 = sphi %s8280_s23, %s16445_s23   ;;  %s8215_s22 = sphi %s8278_s22, %s16447_s22   ;;  %s8211_s21 = sphi %s8276_s21, %s16446_s21  }
   0xc   : > { %s6337_s26 = sadd.s32 4294967294, %s8223_s24   ;;  %p47_p0 = scmp.ne.s32.totalorder %s8215_s22, %s8211_s21 }
   0xd   : > { %p14302_p1 = scmp.eq.s32.totalorder %s8297_s25, 0  ;;  %p186_p2 = scmp.eq.s32.totalorder %s8297_s25, 1 }
   0xe   : > { %p192_p3 = scmp.eq.s32.totalorder %s6337_s26, 1  ;;  %p6338_p5 = scmp.ge.s32.totalorder %s8223_s24, 1 }
   0xf   : > { %p8306_p4 = por %p14302_p1, %p47_p0  ;;  %p199_p7 = scmp.lt.s32.totalorder %s8223_s24, 3 }
  0x10   : > { %p8311_p6 = por %p192_p3, %p47_p0  ;;  %s8225_s30 = smov [#allocation8]  }
  0x11   : > { %s14886_s27 = scalar_select %p8306_p4, 1, 0 }
  0x12   : > { %s14887_s28 = scalar_select %p8311_p6, 1, 0 }
  0x13   : > { %p8316_p8 = pnand %p6338_p5, %p199_p7  ;;  %s211_s7 = sshll.u32 %s8225_s30, 4  ;;  %s212_s7 = int_to_ptr.vmem [resolvable:$true] %s211_s7 }
  0x14   : > { %s8330_s9 = sadd.s32 1, %s8223_s24   ;;  %s34_s10 = sadd.s32 1, %s8219_s23 }
  0x15   : > { %s14888_s29 = scalar_select %p8316_p8, 1, 0 }
  0x16   : > { %p7093_p9 = pneg %p8316_p8  ;;  %14890 = sst [smem:[#allocation20_spill]] %s8330_s9 }
  0x17   : > { %s31_s11 = ssub.s32 %s8223_s24, %s8330_s9  ;;  %s7996_s12 = scalar_lea.vmem %s212_s7, 12288 }
  0x18   : > { %p8325_p11 = pnand %p7093_p9, %p14302_p1  ;;  %p7997_p13 = scmp.ne.s32.totalorder %s212_s7, %s7996_s12 }
  0x19   : > { %p8004_p5 = scmp.lt.s32.totalorder %s212_s7, %s212_s7  ;;  %p8005_p7 = scmp.lt.s32.totalorder %s7996_s12, %s7996_s12 }
  0x1a   : > { %s14889_s8 = scalar_select %p8325_p11, 1, 0 }
  0x1b   : > { %p14303_p12 = pneg %p8325_p11  ;;  %p8006_p9 = por %p8005_p7, %p8004_p5 }
  0x1d   : > { %p7999_p0 = pnand %p7997_p13, %p14303_p12 }
  0x1f   : > { %p8000_p3 = pneg %p7999_p0 }
  0x21   : > { %p8007_p10 = pnand %p8006_p9, %p8000_p3 }
  0x23   : > { %8010 = shalt.err (!%p8007_p10)
}
  0x24   : > { %s8226_s13 = smov 128   ;;  %s8227_s14 = smov 8  }
  0x25   : > { %s14891_s3 = sld [smem:[#allocation299_spill]]  ;;  %p32_p13 = scmp.eq.s32.totalorder %s31_s11, 0 }
  0x26   : > { %p41_p0 = scmp.ne.s32.totalorder %s8219_s23, %s8215_s22  ;;  %p42_p10 = scmp.eq.s32.totalorder %s8223_s24, 0 }
  0x27   : > { %p7120_p3 = scmp.lt.s32.totalorder %s8223_s24, 2  ;;  %s8359_s19 = sand.u32 1, %s8219_s23  }
  0x28   : > { %s8350_s17 = scalar_select %p32_p13, %s8219_s23, %s34_s10  }
  0x29   : > { %p43_p5 = por %p42_p10, %p41_p0  ;;  %p8354_p7 = por %p186_p2, %p41_p0 }
  0x2a   : > { %14892 = sst [smem:[#allocation21_spill]] %s8350_s17  ;;  %s266_s20 = sand.u32 1, %s8223_s24  }
  0x2b   : > { %7096 = dma.hbm_to_vmem [thread:$0]  (!%p8325_p11), %s14891_s3, 12288, %s212_s7, [#allocation9], %s8226_s13, %s8226_s13, %s8227_s14  }
  0x2c   : > { %s14893_s18 = scalar_select %p8354_p7, 1, 0 }
  0x2d   : > { %p8362_p9 = pnand %p7120_p3, %p43_p5  ;;  %s6346_s30 = sshll.u32 %s8359_s19, 1 }
  0x2e   : > { %s7036_s7 = sshll.u32 %s8223_s24, 5  ;;  %s270_s13 = scalar_lea.vmem [#allocation5], %s6346_s30 }
  0x2f   : > { %s14894_s26 = scalar_select %p8362_p9, 1, 0 }
  0x30   : > { %s8371_s12 = scalar_lea.hbm %s14296_s1, %s7036_s7  ;;  %s278_s14 = sshll.u32 %s270_s13, 4  ;;  %s279_s14 = int_to_ptr.vmem [resolvable:$true] %s278_s14 }
  0x31   : > { %s8374_s16 = scalar_lea.sflag [#allocation6], %s266_s20  ;;  %s8011_s3 = scalar_lea.hbm %s8371_s12, 32 }
  0x32   : > { %p8012_p2 = scmp.ne.s32.totalorder %s8371_s12, %s8011_s3  ;;  %p8380_p13 = pneg %p8362_p9 }
  0x33   : > { %s8016_s30 = scalar_lea.hbm %s14296_s1, 64  ;;  %p8017_p3 = scmp.lt.s32.totalorder %s8371_s12, %s14296_s1 }
  0x34   : > { %s14895_s17 = scalar_select %p8380_p13, 1, 0 }
  0x35   : > { %p8014_p0 = pnand %p8380_p13, %p8012_p2  ;;  %p8018_p5 = scmp.lt.s32.totalorder %s8016_s30, %s8011_s3 }
  0x37   : > { %p8015_p10 = pneg %p8014_p0  ;;  %p8019_p1 = por %p8018_p5, %p8017_p3 }
  0x39   : > { %p8020_p12 = pnand %p8019_p1, %p8015_p10 }
  0x3b   : > { %8023 = shalt.err (!%p8020_p12)
}
  0x3c   : > { %s8024_s20 = scalar_lea.vmem %s279_s14, 32  ;;  %s8228_s15 = smov [#allocation5]  }
  0x3d   : > { %p8025_p6 = scmp.ne.s32.totalorder %s279_s14, %s8024_s20  ;;  %s8029_s23 = sshll.u32 %s8228_s15, 4  ;;  %s8030_s23 = int_to_ptr.vmem [resolvable:$false] %s8029_s23 }
  0x3e   : > { %s8031_s9 = scalar_lea.vmem %s8030_s23, 64  ;;  %p8032_p2 = scmp.lt.s32.totalorder %s279_s14, %s8030_s23 }
  0x3f   : > { %p8027_p7 = pnand %p8025_p6, %p8380_p13  ;;  %p8033_p0 = scmp.lt.s32.totalorder %s8031_s9, %s8024_s20 }
  0x41   : > { %p8028_p4 = pneg %p8027_p7  ;;  %p8034_p8 = por %p8033_p0, %p8032_p2 }
  0x43   : > { %p8035_p11 = pnand %p8034_p8, %p8028_p4 }
  0x45   : > { %8038 = shalt.err (!%p8035_p11)
}
  0x46   : > { %7109 = dma.hbm_to_vmem [thread:$0]  (!%p8362_p9), %s8371_s12, 32, %s279_s14, %s8374_s16  }
  0x47   : > { %s8229_s3 = smov [#allocation10]   ;;  %s8230_s10 = smov [#allocation11]  }
  0x48   : > { %s225_s7 = sshll.u32 %s8229_s3, 4  ;;  %s236_s30 = sshll.u32 %s8230_s10, 4  ;;  %s226_s7 = int_to_ptr.vmem [resolvable:$true] %s225_s7  ;;  %s237_s30 = int_to_ptr.vmem [resolvable:$true] %s236_s30 }
  0x49   : > { %s8050_s15 = scalar_lea.vmem %s226_s7, 32  ;;  %p14896_p6 = scmp.ne.s32.totalorder %s14889_s8, 0 }
  0x4a   : > { %p8051_p1 = scmp.ne.s32.totalorder %s226_s7, %s8050_s15  ;;  %p8058_p4 = scmp.lt.s32.totalorder %s226_s7, %s226_s7 }
  0x4b   : > { %p14897_p12 = pneg %p14896_p6  ;;  %p8059_p8 = scmp.lt.s32.totalorder %s8050_s15, %s8050_s15 }
  0x4d   : > { %p8053_p7 = pnand %p8051_p1, %p14897_p12  ;;  %p8060_p11 = por %p8059_p8, %p8058_p4 }
  0x4f   : > { %p8054_p10 = pneg %p8053_p7 }
  0x51   : > { %p8061_p3 = pnand %p8060_p11, %p8054_p10 }
  0x53   : > { %8064 = shalt.err (!%p8061_p3)
}
  0x54   : > { %7099 = dma.hbm_to_vmem [thread:$0]  (!%p14896_p6), %s14299_s4, 32, %s226_s7, [#allocation9]  }
  0x55   : > { %s8076_s12 = scalar_lea.vmem %s237_s30, 32  ;;  %p14898_p2 = pmov %p14897_p12 }
  0x56   : > { %p8077_p5 = scmp.ne.s32.totalorder %s237_s30, %s8076_s12  ;;  %p8084_p1 = scmp.lt.s32.totalorder %s237_s30, %s237_s30 }
  0x57   : > { %p8085_p12 = scmp.lt.s32.totalorder %s8076_s12, %s8076_s12 }
  0x58   : > { %p8079_p0 = pnand %p8077_p5, %p14898_p2 }
  0x59   : > { %p8086_p7 = por %p8085_p12, %p8084_p1 }
  0x5a   : > { %p8080_p9 = pneg %p8079_p0 }
  0x5c   : > { %p8087_p13 = pnand %p8086_p7, %p8080_p9 }
  0x5e   : > { %8090 = shalt.err (!%p8087_p13)
}
  0x5f   : > { %7102 = dma.hbm_to_vmem [thread:$0]  (!%p14896_p6), %s14300_s5, 32, %s237_s30, [#allocation12]  }
  0x60   : > { %s6343_s13 = sshll.u32 %s8359_s19, 2  ;;  %s7035_s20 = sshll.u32 %s8223_s24, 6 }
  0x61   : > { %s8420_s10 = scalar_lea.hbm %s14295_s0, %s7035_s20  ;;  %s251_s15 = scalar_lea.vmem [#allocation2], %s6343_s13 }
  0x62   : > { %s259_s8 = sshll.u32 %s251_s15, 4  ;;  %s248_s23 = scalar_lea.sflag [#allocation3], %s8359_s19  ;;  %s260_s8 = int_to_ptr.vmem [resolvable:$true] %s259_s8 }
  0x63   : > { %s8091_s9 = scalar_lea.hbm %s8420_s10, 64  ;;  %p14899_p13 = scmp.ne.s32.totalorder %s14895_s17, 0 }
  0x64   : > { %p8092_p9 = scmp.ne.s32.totalorder %s8420_s10, %s8091_s9  ;;  %s8096_s14 = scalar_lea.hbm %s14295_s0, 128 }
  0x65   : > { %p8097_p6 = scmp.lt.s32.totalorder %s8420_s10, %s14295_s0  ;;  %p8098_p8 = scmp.lt.s32.totalorder %s8096_s14, %s8091_s9 }
  0x66   : > { %p8094_p10 = pnand %p8092_p9, %p14899_p13 }
  0x67   : > { %p8099_p11 = por %p8098_p8, %p8097_p6 }
  0x68   : > { %p8095_p4 = pneg %p8094_p10 }
  0x6a   : > { %p8100_p3 = pnand %p8099_p11, %p8095_p4 }
  0x6c   : > { %8103 = shalt.err (!%p8100_p3)
}
  0x6d   : > { %s8104_s13 = scalar_lea.vmem %s260_s8, 64  ;;  %s8231_s20 = smov [#allocation2]  }
  0x6e   : > { %p8105_p5 = scmp.ne.s32.totalorder %s260_s8, %s8104_s13  ;;  %s8109_s7 = sshll.u32 %s8231_s20, 4  ;;  %s8110_s7 = int_to_ptr.vmem [resolvable:$false] %s8109_s7 }
  0x6f   : > { %s8111_s15 = scalar_lea.vmem %s8110_s7, 128  ;;  %p8112_p1 = scmp.lt.s32.totalorder %s260_s8, %s8110_s7 }
  0x70   : > { %p8107_p2 = pnand %p8105_p5, %p14899_p13  ;;  %p8113_p12 = scmp.lt.s32.totalorder %s8111_s15, %s8104_s13 }
  0x72   : > { %p8108_p0 = pneg %p8107_p2  ;;  %p8114_p7 = por %p8113_p12, %p8112_p1 }
  0x74   : > { %p8115_p9 = pnand %p8114_p7, %p8108_p0 }
  0x76   : > { %8118 = shalt.err (!%p8115_p9)
}
  0x77   : > { %p14900_p10 = scmp.ne.s32.totalorder %s14894_s26, 0  ;;  %s7070_s9 = smul.u32 24576, %s8223_s24 }
  0x78   : > { %s14901_s30 = smul.u32 1536, %s8359_s19  ;;  %s8124_s19 = scalar_lea.hbm %s14297_s2, 49152 }
  0x79   : > { %7106 = dma.hbm_to_vmem [thread:$0]  (!%p14900_p10), %s8420_s10, 64, %s260_s8, %s248_s23  }
  0x7a   : > { %s289_s12 = scalar_lea.vmem [#allocation7], %s14901_s30  ;;  %s8447_s13 = scalar_lea.hbm %s14297_s2, %s7070_s9 }
  0x7b   : > { %s297_s14 = sshll.u32 %s289_s12, 4  ;;  %s8119_s20 = scalar_lea.hbm %s8447_s13, 24576  ;;  %s8442_s14 = int_to_ptr.vmem [resolvable:$true] %s297_s14 }
  0x7c   : > { %p8120_p4 = scmp.ne.s32.totalorder %s8447_s13, %s8119_s20  ;;  %p8125_p11 = scmp.lt.s32.totalorder %s8447_s13, %s14297_s2 }
  0x7d   : > { %p8126_p3 = scmp.lt.s32.totalorder %s8124_s19, %s8119_s20 }
  0x7e   : > { %p8122_p6 = pnand %p8120_p4, %p14899_p13 }
  0x7f   : > { %p8127_p5 = por %p8126_p3, %p8125_p11 }
  0x80   : > { %p8123_p8 = pneg %p8122_p6 }
  0x82   : > { %p8128_p2 = pnand %p8127_p5, %p8123_p8 }
  0x84   : > { %8131 = shalt.err (!%p8128_p2)
}
  0x85   : > { %s8132_s15 = scalar_lea.vmem %s8442_s14, 24576  ;;  %s8232_s9 = smov [#allocation7]  }
  0x86   : > { %p8133_p0 = scmp.ne.s32.totalorder %s8442_s14, %s8132_s15  ;;  %s8137_s30 = sshll.u32 %s8232_s9, 4  ;;  %s8138_s30 = int_to_ptr.vmem [resolvable:$false] %s8137_s30 }
  0x87   : > { %s8139_s12 = scalar_lea.vmem %s8138_s30, 49152  ;;  %p8140_p7 = scmp.lt.s32.totalorder %s8442_s14, %s8138_s30 }
  0x88   : > { %p8135_p1 = pnand %p8133_p0, %p14899_p13  ;;  %p8141_p9 = scmp.lt.s32.totalorder %s8139_s12, %s8132_s15 }
  0x8a   : > { %p8136_p12 = pneg %p8135_p1  ;;  %p8142_p4 = por %p8141_p9, %p8140_p7 }
  0x8c   : > { %p8143_p6 = pnand %p8142_p4, %p8136_p12 }
  0x8e   : > { %8146 = shalt.err (!%p8143_p6)
}
  0x8f   : > { %s8233_s11 = smov 384   ;;  %s8234_s3 = smov 24  }
  0x90   : > { %7112 = dma.hbm_to_vmem [thread:$0]  (!%p14900_p10), %s8447_s13, 24576, %s8442_s14, %s8374_s16, %s8233_s11, %s8233_s11, %s8234_s3  }
  0x91   : > { %p14902_p13 = scmp.ne.s32.totalorder %s14888_s29, 0 }
  0x93   : > { %309 = sbr.rel (%p14902_p13) target bundleno = 1864 (0x748), region = 44 }
  0x98   : > { %s8473_s17 = sand.u32 1, %s8215_s22   ;;  %p14903_p8 = scmp.ne.s32.totalorder %s14886_s27, 0 }
  0x99   : > { %s6353_s20 = sshll.u32 %s8473_s17, 2  ;;  %s312_s10 = scalar_lea.sflag [#allocation3], %s8473_s17 }
  0x9a   : > { %s8477_s8 = scalar_lea.vmem [#allocation2], %s6353_s20 }
  0x9b   : > { %8190 = dma.done.wait (%p14903_p8), %s312_s10, 64  }
  0x9c   : > { %8192 = vsyncadd (%p14903_p8), %s312_s10, 4294967232  ;;  %s320_s29 = sand.u32 1, %s8297_s25   ;;  %s6354_s26 = sshll.u32 %s8473_s17, 1 }
  0x9d   : > { %s321_s16 = scalar_lea.sflag [#allocation6], %s320_s29  ;;  %s8485_s14 = scalar_lea.vmem [#allocation5], %s6354_s26 }
  0x9e   : > { %8194 = dma.done.wait (%p14903_p8), %s321_s16, 24608  }
  0x9f   : > { %8196 = vsyncadd (%p14903_p8), %s321_s16, 4294942688  ;;  %s7071_s13 = smul.u32 1536, %s8473_s17  ;;  %p14904_p10 = scmp.eq.s32.totalorder %s8297_s25, 0 }
  0xa1   : > { %s8494_s19 = scalar_lea.vmem [#allocation7], %s7071_s13 }
  0xa2   : > { %8198 = dma.done.wait (%p14904_p10), [#allocation9], 12320   ;;  %p14905_p11 = pmov %p14904_p10 }
  0xa3   : > { %p14906_p3 = pmov %p14904_p10 }
  0xa4   : > { %8200 = vsyncadd (%p14905_p11), [#allocation9], 4294954976 }
  0xa5   : > { %8202 = dma.done.wait (%p14906_p3), [#allocation12], 32   ;;  %p14907_p5 = pmov %p14906_p3 }
  0xa6   : > { %v7169_v0 = vld [vmem:[%s8494_s19 + $0x154] ss:$24 sps:$4 sm:$0xff]   ;;  %v7171_v1 = vld [vmem:[%s8494_s19 + $0x150] ss:$24 sps:$4 sm:$0xff]   ;;  %v7172_v2 = vld [vmem:[%s8494_s19 + $0x124] ss:$24 sps:$4 sm:$0xff]   ;;  %v14316_v7 = vlaneseq }
  0xa7   : > { %8204 = vsyncadd (%p14907_p5), [#allocation12], 4294967264  ;;  %1908 = vmatprep.subr.bf16.mxu0 %v7169_v0  ;;  %7037 = vmatprep.subr.bf16.mxu1 %v7169_v0  ;;  %v7174_v3 = vld [vmem:[%s8494_s19 + $0x120] ss:$24 sps:$4 sm:$0xff]   ;;  %v7175_v4 = vld [vmem:[%s8494_s19 + $0xf4] ss:$24 sps:$4 sm:$0xff]  }
  0xa8   : > { %1909 = vmatpush1.bf16.msra.mxu0 %v7171_v1  ;;  %7053 = vmatpush1.bf16.msra.mxu1 %v7171_v1  ;;  %v7177_v5 = vld [vmem:[%s8494_s19 + $0xf0] ss:$24 sps:$4 sm:$0xff]   ;;  %v7178_v6 = vld [vmem:[%s8494_s19 + $0xc4] ss:$24 sps:$4 sm:$0xff]   ;;  %v7180_v8 = vld [vmem:[%s8494_s19 + $0xc0] ss:$24 sps:$4 sm:$0xff]  }
  0xa9   : > { %1910 = vmatprep.subr.bf16.mxu0 %v7172_v2  ;;  %7038 = vmatprep.subr.bf16.mxu1 %v7172_v2  ;;  %v7181_v9 = vld [vmem:[%s8494_s19 + $0x94] ss:$24 sps:$4 sm:$0xff]   ;;  %v8514_v10 = vshrl.u32 %v14316_v7, 7  ;;  %v7183_v11 = vld [vmem:[%s8494_s19 + $0x90] ss:$24 sps:$4 sm:$0xff]   ;;  %v14913_v23 = vmov 0 }
  0xaa   : > { %v7184_v12 = vld [vmem:[%s8494_s19 + $0x64] ss:$24 sps:$4 sm:$0xff]   ;;  %v7186_v14 = vld [vmem:[%s8494_s19 + $0x60] ss:$24 sps:$4 sm:$0xff]   ;;  %v7187_v15 = vld [vmem:[%s8494_s19 + $0x34] ss:$24 sps:$4 sm:$0xff]  }
  0xab   : > { %14908 = vst [vmem:[#allocation22_spill] sm:$0xff] %v8514_v10  ;;  %v8519_v13 = vsub.s32 1, %v8514_v10  ;;  %v8524_v16 = vadd.s32 8, %v8514_v10  ;;  %v8527_v17 = vadd.s32 128, %v8514_v10  ;;  %v8530_v18 = vld [vmem:[%s8477_s8] sm:$0xf] }
  0xac   : > { %1911 = vmatpush1.bf16.msra.mxu0 %v7174_v3  ;;  %7054 = vmatpush1.bf16.msra.mxu1 %v7174_v3  ;;  %v8533_v19 = vadd.s32 136, %v8514_v10  ;;  %v7189_v21 = vld [vmem:[%s8494_s19 + $0x30] ss:$24 sps:$4 sm:$0xff]   ;;  %v7190_v22 = vld [vmem:[%s8494_s19 + $0x4] ss:$24 sps:$4 sm:$0xff]   ;;  %v14916_v25 = vmov 0 }
  0xad   : > { %1912 = vmatprep.subr.bf16.mxu0 %v7175_v4  ;;  %7039 = vmatprep.subr.bf16.mxu1 %v7175_v4  ;;  %14909 = vst [vmem:[#allocation23_spill] sm:$0xff] %v8519_v13  ;;  %14910 = vst [vmem:[#allocation24_spill] sm:$0xff] %v8524_v16  ;;  %v8537_v20 = vrot.slane %v8530_v18, %v8519_v13  ;;  %v14321_v24 = vmov 1.0|1.0   ;;  %v7192_v26 = vld [vmem:[%s8494_s19] ss:$24 sps:$4 sm:$0xff]  }
  0xae   : > { %14911 = vst [vmem:[#allocation25_spill] sm:$0xff] %v8527_v17  ;;  %14912 = vst [vmem:[#allocation26_spill] sm:$0xff] %v8533_v19  ;;  %v7193_v27 = vld [vmem:[%s8494_s19 + $0x2d4] ss:$24 sps:$4 sm:$0xff]   ;;  %v7195_v28 = vld [vmem:[%s8494_s19 + $0x2d0] ss:$24 sps:$4 sm:$0xff]  }
  0xaf   : > { %vm437_vm0 = vcmp.eq.s32.totalorder %v8514_v10, %v8537_v20  ;;  %vm441_vm1 = vcmp.eq.s32.totalorder %v8524_v16, %v8537_v20  ;;  %vm501_vm2 = vcmp.eq.s32.totalorder %v8527_v17, %v8537_v20  ;;  %vm505_vm4 = vcmp.eq.s32.totalorder %v8533_v19, %v8537_v20  ;;  %v7196_v29 = vld [vmem:[%s8494_s19 + $0x2a4] ss:$24 sps:$4 sm:$0xff]   ;;  %v7198_v30 = vld [vmem:[%s8494_s19 + $0x2a0] ss:$24 sps:$4 sm:$0xff]   ;;  %v7199_v31 = vld [vmem:[%s8494_s19 + $0x274] ss:$24 sps:$4 sm:$0xff]  }
  0xb0   : > { %1913 = vmatpush1.bf16.msra.mxu0 %v7177_v5  ;;  %7055 = vmatpush1.bf16.msra.mxu1 %v7177_v5  ;;  %vm8553_vm3 = vmpackc.low %vm441_vm1, %vm437_vm0  ;;  %v7201_v32 = vld [vmem:[%s8494_s19 + $0x270] ss:$24 sps:$4 sm:$0xff]   ;;  %v7202_v33 = vld [vmem:[%s8494_s19 + $0x244] ss:$24 sps:$4 sm:$0xff]   ;;  %v8586_v36 = vsub.s32 0, %v8514_v10  ;;  %v8589_v37 = vadd.s32 16, %v8514_v10 }
  0xb1   : > { %1914 = vmatprep.subr.bf16.mxu0 %v7178_v6  ;;  %7040 = vmatprep.subr.bf16.mxu1 %v7178_v6  ;;  %v14914_v23 = vsel %vm8553_vm3, 4294967295, %v14913_v23  ;;  %vm8568_vm5 = vmpackc.low %vm505_vm4, %vm501_vm2  ;;  %v7204_v34 = vld [vmem:[%s8494_s19 + $0x240] ss:$24 sps:$4 sm:$0xff]   ;;  %v7205_v35 = vld [vmem:[%s8494_s19 + $0x214] ss:$24 sps:$4 sm:$0xff]   ;;  %v8593_v39 = vadd.s32 24, %v8514_v10 }
  0xb2   : > { %14915 = vst [vmem:[#allocation27_spill] sm:$0xff] %v14914_v23  ;;  %6551 = vmatprep.mubr.msk.bf16.mxu0 %vm8553_vm3, %v14321_v24  ;;  %v14917_v25 = vsel %vm8568_vm5, 4294967295, %v14916_v25  ;;  %6583 = vmatprep.mubr.msk.bf16.mxu1 %vm8568_vm5, %v14321_v24  ;;  %14919 = vst [vmem:[#allocation29_spill] sm:$0xff] %v8586_v36  ;;  %v7207_v38 = vld [vmem:[%s8494_s19 + $0x210] ss:$24 sps:$4 sm:$0xff]   ;;  %v8596_v40 = vadd.s32 144, %v8514_v10  ;;  %v8647_v60 = vrot.slane %v8530_v18, %v8586_v36 }
  0xb3   : > { %14918 = vst [vmem:[#allocation28_spill] sm:$0xff] %v14917_v25  ;;  %14920 = vst [vmem:[#allocation30_spill] sm:$0xff] %v8589_v37  ;;  %v7208_v41 = vld [vmem:[%s8494_s19 + $0x1e4] ss:$24 sps:$4 sm:$0xff]   ;;  %v8600_v42 = vadd.s32 152, %v8514_v10  ;;  %v8603_v43 = vadd.s32 32, %v8514_v10  ;;  %vm445_vm10 = vcmp.eq.s32.totalorder %v8589_v37, %v8537_v20  ;;  %vm449_vm11 = vcmp.eq.s32.totalorder %v8593_v39, %v8537_v20 }
  0xb4   : > { %1915 = vmatpush1.bf16.msra.mxu0 %v7180_v8  ;;  %7056 = vmatpush1.bf16.msra.mxu1 %v7180_v8  ;;  %14921 = vst [vmem:[#allocation31_spill] sm:$0xff] %v8593_v39  ;;  %14922 = vst [vmem:[#allocation32_spill] sm:$0xff] %v8596_v40  ;;  %v8606_v44 = vadd.s32 40, %v8514_v10  ;;  %v8609_v45 = vadd.s32 160, %v8514_v10  ;;  %v8612_v46 = vadd.s32 168, %v8514_v10  ;;  %v8615_v47 = vadd.s32 48, %v8514_v10 }
  0xb5   : > { %1916 = vmatprep.subr.bf16.mxu0 %v7181_v9  ;;  %7041 = vmatprep.subr.bf16.mxu1 %v7181_v9  ;;  %14923 = vst [vmem:[#allocation33_spill] sm:$0xff] %v8600_v42  ;;  %14924 = vst [vmem:[#allocation34_spill] sm:$0xff] %v8603_v43  ;;  %v8618_v48 = vadd.s32 56, %v8514_v10  ;;  %v8621_v49 = vadd.s32 176, %v8514_v10  ;;  %v8624_v50 = vadd.s32 184, %v8514_v10  ;;  %v8627_v51 = vadd.s32 64, %v8514_v10 }
  0xb6   : > { %14925 = vst [vmem:[#allocation35_spill] sm:$0xff] %v8606_v44  ;;  %14926 = vst [vmem:[#allocation36_spill] sm:$0xff] %v8609_v45  ;;  %v8630_v52 = vadd.s32 72, %v8514_v10  ;;  %v7210_v53 = vld [vmem:[%s8494_s19 + $0x1e0] ss:$24 sps:$4 sm:$0xff]   ;;  %v8634_v54 = vadd.s32 192, %v8514_v10  ;;  %vm440_vm6 = vcmp.eq.s32.totalorder %v8524_v16, %v8647_v60  ;;  %vm436_vm7 = vcmp.eq.s32.totalorder %v8514_v10, %v8647_v60 }
  0xb7   : > { %14927 = vst [vmem:[#allocation37_spill] sm:$0xff] %v8612_v46  ;;  %14928 = vst [vmem:[#allocation38_spill] sm:$0xff] %v8615_v47  ;;  %v8637_v55 = vadd.s32 200, %v8514_v10  ;;  %v8640_v56 = vadd.s32 80, %v8514_v10  ;;  %v7211_v57 = vld [vmem:[%s8494_s19 + $0x1b4] ss:$24 sps:$4 sm:$0xff]   ;;  %vm500_vm8 = vcmp.eq.s32.totalorder %v8527_v17, %v8647_v60  ;;  %vm504_vm9 = vcmp.eq.s32.totalorder %v8533_v19, %v8647_v60 }
  0xb8   : > { %1917 = vmatpush1.bf16.msra.mxu0 %v7183_v11  ;;  %7057 = vmatpush1.bf16.msra.mxu1 %v7183_v11  ;;  %14929 = vst [vmem:[#allocation39_spill] sm:$0xff] %v8618_v48  ;;  %14930 = vst [vmem:[#allocation40_spill] sm:$0xff] %v8621_v49  ;;  %v434_v58 = vsub.s32 3, %v8514_v10  ;;  %v430_v59 = vsub.s32 2, %v8514_v10  ;;  %v8650_v61 = vadd.s32 88, %v8514_v10  ;;  %v8653_v62 = vadd.s32 208, %v8514_v10 }
  0xb9   : > { %1918 = vmatprep.subr.bf16.mxu0 %v7184_v12  ;;  %7042 = vmatprep.subr.bf16.mxu1 %v7184_v12  ;;  %14931 = vst [vmem:[#allocation41_spill] sm:$0xff] %v8624_v50  ;;  %14932 = vst [vmem:[#allocation42_spill] sm:$0xff] %v8627_v51  ;;  %v8656_v63 = vadd.s32 216, %v8514_v10  ;;  %v8659_v0 = vadd.s32 96, %v8514_v10  ;;  %v8662_v1 = vadd.s32 104, %v8514_v10  ;;  %v8665_v2 = vadd.s32 224, %v8514_v10 }
  0xba   : > { %14933 = vst [vmem:[#allocation43_spill] sm:$0xff] %v8630_v52  ;;  %14934 = vst [vmem:[#allocation44_spill] sm:$0xff] %v8634_v54  ;;  %v8668_v3 = vadd.s32 232, %v8514_v10  ;;  %v7213_v4 = vld [vmem:[%s8494_s19 + $0x1b0] ss:$24 sps:$4 sm:$0xff]   ;;  %v8672_v5 = vadd.s32 112, %v8514_v10  ;;  %v8685_v12 = vrot.slane %v8530_v18, %v434_v58  ;;  %vm509_vm12 = vcmp.eq.s32.totalorder %v8596_v40, %v8537_v20 }
  0xbb   : > { %14935 = vst [vmem:[#allocation45_spill] sm:$0xff] %v8637_v55  ;;  %14936 = vst [vmem:[#allocation46_spill] sm:$0xff] %v8640_v56  ;;  %v8675_v6 = vadd.s32 120, %v8514_v10  ;;  %v7214_v8 = vld [vmem:[%s8494_s19 + $0x184] ss:$24 sps:$4 sm:$0xff]   ;;  %v8679_v9 = vadd.s32 240, %v8514_v10  ;;  %vm14328_vm14 = vcmp.eq.s32.totalorder %v8600_v42, %v8537_v20  ;;  %vm444_vm15 = vcmp.eq.s32.totalorder %v8589_v37, %v8647_v60 }
  0xbc   : > { %1919 = vmatpush1.bf16.msra.mxu0 %v7186_v14  ;;  %7058 = vmatpush1.bf16.msra.mxu1 %v7186_v14  ;;  %14937 = vst [vmem:[#allocation47_spill] sm:$0xff] %v8650_v61  ;;  %14938 = vst [vmem:[#allocation48_spill] sm:$0xff] %v8653_v62  ;;  %v8682_v11 = vadd.s32 248, %v8514_v10  ;;  %v8688_v14 = vrot.slane %v8530_v18, %v430_v59  ;;  %v7216_v18 = vld [vmem:[%s8494_s19 + $0x180] ss:$24 sps:$4 sm:$0xff]   ;;  %v14951_v58 = vmov 0  ;;  %vm15006_vm5 = vcmp.eq.s32.totalorder %v8621_v49, %v8537_v20 }
  0xbd   : > { %1920 = vmatprep.subr.bf16.mxu0 %v7187_v15  ;;  %7043 = vmatprep.subr.bf16.mxu1 %v7187_v15  ;;  %14939 = vst [vmem:[#allocation49_spill] sm:$0xff] %v8656_v63  ;;  %14940 = vst [vmem:[#allocation50_spill] sm:$0xff] %v8659_v0  ;;  %v14345_v15 = vmov 0.0   ;;  %v7225_v59 = vld [vmem:[%s8494_s19 + $0x424] ss:$24 sps:$4 sm:$0xff]   ;;  %s13817_s27 = scalar_lea.vmem [#allocation13], %s7071_s13 }
  0xbe   : > { %14941 = vst [vmem:[#allocation51_spill] sm:$0xff] %v8662_v1  ;;  %14942 = vst [vmem:[#allocation52_spill] sm:$0xff] %v8665_v2  ;;  %vm14317_vm13 = vcmp.eq.s32.totalorder %v8514_v10, %v8688_v14  ;;  %v573_v7 = vsel %vm445_vm10, 1.0, %v14345_v15  ;;  %v7223_v13 = vld [vmem:[%s8494_s19 + $0x420] ss:$24 sps:$4 sm:$0xff]   ;;  %s7072_s23 = smul.u32 24576, %s8297_s25 }
  0xbf   : > { %14943 = vst [vmem:[#allocation53_spill] sm:$0xff] %v8668_v3  ;;  %14944 = vst [vmem:[#allocation54_spill] sm:$0xff] %v8672_v5  ;;  %v7226_v36 = vld [vmem:[%s8494_s19 + $0x128] ss:$24 sps:$4 sm:$0xff]   ;;  %v7240_v25 = vld [vmem:[%s8494_s19 + $0xcc] ss:$24 sps:$4 sm:$0xff]  }
  0xc0   : > { %1921 = vmatpush1.bf16.msra.mxu0 %v7189_v21  ;;  %7059 = vmatpush1.bf16.msra.mxu1 %v7189_v21  ;;  %14945 = vst [vmem:[#allocation55_spill] sm:$0xff] %v8675_v6  ;;  %14946 = vst [vmem:[#allocation56_spill] sm:$0xff] %v8679_v9  ;;  %v565_v21 = vsel %vm437_vm0, 1.0, %v14345_v15  ;;  %v7238_v23 = vld [vmem:[%s8494_s19 + $0xc8] ss:$24 sps:$4 sm:$0xff]   ;;  %s6192_s7 = sshll.u32 %s13817_s27, 4  ;;  %s14234_s9 = scalar_lea.hbm %s14301_s6, %s7072_s23  ;;  %s14244_s7 = int_to_ptr.vmem [resolvable:$true] %s6192_s7 }
  0xc1   : > { %1922 = vmatprep.subr.bf16.mxu0 %v7190_v22  ;;  %7044 = vmatprep.subr.bf16.mxu1 %v7190_v22  ;;  %14947 = vst [vmem:[#allocation57_spill] sm:$0xff] %v8682_v11  ;;  %v569_v22 = vsel %vm441_vm1, 1.0, %v14345_v15  ;;  %vm8769_vm0 = vmpackc.low %vm440_vm6, %vm436_vm7  ;;  %vm448_vm1 = vcmp.eq.s32.totalorder %v8593_v39, %v8647_v60  ;;  %s6178_s30 = scalar_lea.sflag [#allocation4], %s8473_s17  ;;  %s8147_s12 = scalar_lea.vmem %s14244_s7, 24576 }
  0xc2   : > { %p8148_p2 = scmp.ne.s32.totalorder %s14244_s7, %s8147_s12  ;;  %p16440_p0 = scmp.ne.s32.totalorder %s14893_s18, 0 }
  0xc3   : > { %s8238_s11 = smov [#allocation13]  }
  0xc4   : > { %1923 = vmatpush1.bf16.msra.mxu0 %v7192_v26  ;;  %7060 = vmatpush1.bf16.msra.mxu1 %v7192_v26  ;;  %v8702_v26 = vsel %vm501_vm2, 1.0, %v14345_v15  ;;  %vm508_vm2 = vcmp.eq.s32.totalorder %v8596_v40, %v8647_v60  ;;  %p8149_p1 = pnand %p8148_p2, %p16440_p0  ;;  %s8151_s3 = sshll.u32 %s8238_s11, 4  ;;  %s8152_s3 = int_to_ptr.vmem [resolvable:$false] %s8151_s3 }
  0xc5   : > { %1924 = vmatprep.subr.bf16.mxu0 %v7193_v27  ;;  %7045 = vmatprep.subr.bf16.mxu1 %v7193_v27  ;;  %v8711_v27 = vsel %vm505_vm4, 1.0, %v14345_v15  ;;  %vm14318_vm4 = vcmp.eq.s32.totalorder %v8514_v10, %v8685_v12  ;;  %s8153_s20 = scalar_lea.vmem %s8152_s3, 49152  ;;  %p8154_p7 = scmp.lt.s32.totalorder %s14244_s7, %s8152_s3 }
  0xc6   : > { %p8150_p12 = pneg %p8149_p1  ;;  %p8155_p9 = scmp.lt.s32.totalorder %s8153_s20, %s8147_s12 }
  0xc8   : > { %1925 = vmatpush2.bf16.msra.mxu0 %v7195_v28  ;;  %7061 = vmatpush2.bf16.msra.mxu1 %v7195_v28  ;;  %v568_v28 = vsel %vm440_vm6, 1.0, %v14345_v15  ;;  %vm8785_vm6 = vmpackc.low %vm504_vm9, %vm500_vm8  ;;  %p8156_p4 = por %p8155_p9, %p8154_p7 }
  0xc9   : > { %1926 = vmatprep.subr.bf16.mxu0 %v7196_v29  ;;  %7046 = vmatprep.subr.bf16.mxu1 %v7196_v29  ;;  %v8727_v29 = vsel %vm500_vm8, 1.0, %v14345_v15  ;;  %v14952_v58 = vsel %vm8785_vm6, 4294967295, %v14951_v58  ;;  %vm14326_vm8 = vcmp.eq.s32.totalorder %v8589_v37, %v8685_v12 }
  0xca   : > { %14953 = vst [vmem:[#allocation59_spill] sm:$0xff] %v14952_v58  ;;  %v7232_v58 = vld [vmem:[%s8494_s19 + $0xf8] ss:$24 sps:$4 sm:$0xff]   ;;  %p8157_p6 = pnand %p8156_p4, %p8150_p12 }
  0xcc   : > { %1927 = vmatpush2.bf16.msra.mxu0 %v7198_v30  ;;  %7062 = vmatpush2.bf16.msra.mxu1 %v7198_v30  ;;  %v7219_v30 = vld [vmem:[%s8494_s19 + $0x454] ss:$24 sps:$4 sm:$0xff]  }
  0xcd   : > { %1928 = vmatprep.subr.bf16.mxu0 %v7199_v31  ;;  %7047 = vmatprep.subr.bf16.mxu1 %v7199_v31  ;;  %v564_v31 = vsel %vm436_vm7, 1.0, %v14345_v15  ;;  %vm14327_vm7 = vcmp.eq.s32.totalorder %v8524_v16, %v8688_v14 }
  0xd0   : > { %1929 = vmatpush2.bf16.msra.mxu0 %v7201_v32  ;;  %7063 = vmatpush2.bf16.msra.mxu1 %v7201_v32  ;;  %v8740_v32 = vsel %vm504_vm9, 1.0, %v14345_v15  ;;  %vm14325_vm9 = vcmp.eq.s32.totalorder %v8589_v37, %v8688_v14 }
  0xd1   : > { %1930 = vmatprep.subr.bf16.mxu0 %v7202_v33  ;;  %7048 = vmatprep.subr.bf16.mxu1 %v7202_v33  ;;  %v7222_v33 = vld [vmem:[%s8494_s19 + $0x15c] ss:$24 sps:$4 sm:$0xff]  }
  0xd4   : > { %1931 = vmatpush2.bf16.msra.mxu0 %v7204_v34  ;;  %7064 = vmatpush2.bf16.msra.mxu1 %v7204_v34  ;;  %v7217_v34 = vld [vmem:[%s8494_s19 + $0x450] ss:$24 sps:$4 sm:$0xff]  }
  0xd5   : > { %1932 = vmatprep.subr.bf16.mxu0 %v7205_v35  ;;  %7049 = vmatprep.subr.bf16.mxu1 %v7205_v35  ;;  %v7220_v35 = vld [vmem:[%s8494_s19 + $0x158] ss:$24 sps:$4 sm:$0xff]  }
  0xd8   : > { %1933 = vmatpush2.bf16.msra.mxu0 %v7207_v38  ;;  %7065 = vmatpush2.bf16.msra.mxu1 %v7207_v38  ;;  %v577_v38 = vsel %vm449_vm11, 1.0, %v14345_v15 }
  0xd9   : > { %1934 = vmatprep.subr.bf16.mxu0 %v7208_v41  ;;  %7050 = vmatprep.subr.bf16.mxu1 %v7208_v41  ;;  %v566_v41 = vsel %vm14317_vm13, 1.0, %v14345_v15  ;;  %vm8819_vm13 = vmpackc.low %vm449_vm11, %vm445_vm10  ;;  %vm14339_vm11 = vcmp.eq.s32.totalorder %v8600_v42, %v8647_v60 }
  0xda   : > { %vm8842_vm10 = vmpackc.low %vm14328_vm14, %vm509_vm12  ;;  %vm14344_vm14 = vcmp.eq.s32.totalorder %v8603_v43, %v8647_v60 }
  0xdc   : > { %1935 = vmatpush2.bf16.msra.mxu0 %v7210_v53  ;;  %7066 = vmatpush2.bf16.msra.mxu1 %v7210_v53  ;;  %v14948_v53 = vmov 0 }
  0xdd   : > { %1936 = vmatprep.subr.bf16.mxu0 %v7211_v57  ;;  %7051 = vmatprep.subr.bf16.mxu1 %v7211_v57  ;;  %v14949_v53 = vsel %vm8769_vm0, 4294967295, %v14948_v53  ;;  %v3066_v57 = vadd.f32 %v565_v21, %v564_v31  ;;  %v572_v21 = vsel %vm444_vm15, 1.0, %v14345_v15 }
  0xde   : > { %14950 = vst [vmem:[#allocation58_spill] sm:$0xff] %v14949_v53 }
  0xdf   : > { %v3067_v31 = vadd.f32 %v3066_v57, %v566_v41  ;;  %v574_v41 = vsel %vm14325_vm9, 1.0, %v14345_v15  ;;  %v3076_v57 = vadd.f32 %v573_v7, %v572_v21  ;;  %v575_v21 = vsel %vm14326_vm8, 1.0, %v14345_v15 }
  0xe0   : > { %1937 = vmatpush2.bf16.msra.mxu0 %v7213_v4  ;;  %7067 = vmatpush2.bf16.msra.mxu1 %v7213_v4  ;;  %v576_v4 = vsel %vm448_vm1, 1.0, %v14345_v15  ;;  %vm14334_vm9 = vcmp.eq.s32.totalorder %v8603_v43, %v8537_v20  ;;  %vm14335_vm8 = vcmp.eq.s32.totalorder %v8606_v44, %v8537_v20 }
  0xe1   : > { %1938 = vmatprep.subr.bf16.mxu0 %v7214_v8  ;;  %7052 = vmatprep.subr.bf16.mxu1 %v7214_v8  ;;  %v567_v8 = vsel %vm14318_vm4, 1.0, %v14345_v15  ;;  %vm14329_vm4 = vcmp.eq.s32.totalorder %v8593_v39, %v8688_v14 }
  0xe2   : > { %v3068_v7 = vadd.f32 %v3067_v31, %v567_v8  ;;  %v3077_v8 = vadd.f32 %v3076_v57, %v574_v41  ;;  %v578_v31 = vsel %vm14329_vm4, 1.0, %v14345_v15  ;;  %vm14336_vm4 = vcmp.eq.s32.totalorder %v8524_v16, %v8685_v12 }
  0xe4   : > { %1939 = vmatpush2.bf16.msra.mxu0 %v7216_v18  ;;  %7068 = vmatpush2.bf16.msra.mxu1 %v7216_v18  ;;  %v7228_v18 = vld [vmem:[%s8494_s19 + $0x12c] ss:$24 sps:$4 sm:$0xff]   ;;  %v3078_v57 = vadd.f32 %v3077_v8, %v575_v21  ;;  %v14964_v21 = vmov 0  ;;  %v8936_v8 = vsel %vm509_vm12, 1.0, %v14345_v15  ;;  %vm14968_vm12 = vcmp.eq.s32.totalorder %v8603_v43, %v8537_v20 }
  0xe5   : > { %2101 = vmatprep.subr.bf16.mxu1 %v7219_v30  ;;  %2294 = vmatprep.subr.bf16.mxu0 %v7222_v33  ;;  %v14954_v30 = vmov 0  ;;  %v3071_v33 = vadd.f32 %v569_v22, %v568_v28  ;;  %v14957_v22 = vmov 0  ;;  %v570_v28 = vsel %vm14327_vm7, 1.0, %v14345_v15  ;;  %vm8894_vm7 = vmpackc.low %vm448_vm1, %vm444_vm15 }
  0xe6   : > { %v14955_v30 = vsel %vm8819_vm13, 4294967295, %v14954_v30  ;;  %v14958_v22 = vsel %vm8842_vm10, 4294967295, %v14957_v22  ;;  %3069 = vadd.xlane.f32.xlu0 %v3068_v7  ;;  %vm8913_vm15 = vmpackc.low %vm14339_vm11, %vm508_vm2  ;;  %v7237_v7 = vld [vmem:[%s8494_s19 + $0x3c4] ss:$24 sps:$4 sm:$0xff]   ;;  %vm14357_vm1 = vcmp.eq.s32.totalorder %v8612_v46, %v8537_v20  ;;  %vm14360_vm11 = vcmp.eq.s32.totalorder %v8603_v43, %v8688_v14  ;;  %3079 = vadd.xlane.f32.xlu1 %v3078_v57 }
  0xe7   : > { %14956 = vst [vmem:[#allocation60_spill] sm:$0xff] %v14955_v30  ;;  %6553 = vmatmul.mubr.msk.bf16.vlgmr.msra.gmra.mxu0 %vm8769_vm0, %v14321_v24  ;;  %6585 = vmatmul.mubr.msk.bf16.vlgmr.msra.gmra.mxu1 %vm8785_vm6, %v14321_v24  ;;  %14959 = vst [vmem:[#allocation61_spill] sm:$0xff] %v14958_v22  ;;  %v3081_v24 = vadd.f32 %v577_v38, %v576_v4  ;;  %v7231_v38 = vld [vmem:[%s8494_s19 + $0x3f4] ss:$24 sps:$4 sm:$0xff]   ;;  %v14960_v4 = vmov 1.0|1.0   ;;  %v3072_v41 = vadd.f32 %v3071_v33, %v570_v28 }
  0xe8   : > { %2102 = vmatpush1.bf16.msra.mxu1 %v7217_v34  ;;  %2295 = vmatpush1.bf16.msra.mxu0 %v7220_v35  ;;  %v7234_v34 = vld [vmem:[%s8494_s19 + $0xfc] ss:$24 sps:$4 sm:$0xff]   ;;  %v581_v35 = vsel %vm14334_vm9, 1.0, %v14345_v15  ;;  %v14961_v22 = vmov 0  ;;  %vm14343_vm9 = vcmp.eq.s32.totalorder %v8606_v44, %v8647_v60  ;;  %v571_v33 = vsel %vm14336_vm4, 1.0, %v14345_v15 }
  0xe9   : > { %2103 = vmatprep.subr.bf16.mxu1 %v7225_v59  ;;  %2296 = vmatprep.subr.bf16.mxu0 %v7228_v18  ;;  %v7229_v59 = vld [vmem:[%s8494_s19 + $0x3f0] ss:$24 sps:$4 sm:$0xff]   ;;  %v585_v18 = vsel %vm14335_vm8, 1.0, %v14345_v15  ;;  %v14962_v22 = vsel %vm8894_vm7, 4294967295, %v14961_v22  ;;  %vm14340_vm8 = vcmp.eq.s32.totalorder %v8593_v39, %v8685_v12  ;;  %v3082_v28 = vadd.f32 %v3081_v24, %v578_v31  ;;  %v7235_v30 = vld [vmem:[%s8494_s19 + $0x3c0] ss:$24 sps:$4 sm:$0xff]  }
  0xea   : > { %6555 = vmatprep.mubr.msk.bf16.mxu0 %vm8819_vm13, %v14960_v4  ;;  %6587 = vmatprep.mubr.msk.bf16.mxu1 %vm8842_vm10, %v14960_v4  ;;  %14963 = vst [vmem:[#allocation62_spill] sm:$0xff] %v14962_v22  ;;  %v14965_v21 = vsel %vm8913_vm15, 4294967295, %v14964_v21  ;;  %v584_v24 = vsel %vm14343_vm9, 1.0, %v14345_v15  ;;  %vm14967_vm4 = vcmp.eq.s32.totalorder %v8600_v42, %v8537_v20  ;;  %vm14969_vm9 = vcmp.eq.s32.totalorder %v8606_v44, %v8537_v20 }
  0xeb   : > { %14966 = vst [vmem:[#allocation63_spill] sm:$0xff] %v14965_v21  ;;  %v8942_v31 = vsel %vm14967_vm4, 1.0, %v14345_v15  ;;  %vm14358_vm4 = vcmp.eq.s32.totalorder %v8615_v47, %v8537_v20  ;;  %v3091_v22 = vadd.f32 %v585_v18, %v584_v24  ;;  %v7246_v18 = vld [vmem:[%s8494_s19 + $0x9c] ss:$24 sps:$4 sm:$0xff]   ;;  %v7244_v24 = vld [vmem:[%s8494_s19 + $0x98] ss:$24 sps:$4 sm:$0xff]   ;;  %vm14998_vm10 = vcmp.eq.s32.totalorder %v8603_v43, %v8685_v12 }
  0xec   : > { %2104 = vmatpush1.bf16.msra.mxu1 %v7223_v13  ;;  %2297 = vmatpush1.bf16.msra.mxu0 %v7226_v36  ;;  %v580_v13 = vsel %vm14344_vm14, 1.0, %v14345_v15  ;;  %v579_v36 = vsel %vm14340_vm8, 1.0, %v14345_v15  ;;  %vm8956_vm14 = vmpackc.low %vm14969_vm9, %vm14968_vm12  ;;  %v14970_v15 = vmov 0  ;;  %vm14359_vm8 = vcmp.eq.s32.totalorder %v8606_v44, %v8688_v14 }
  0xed   : > { %2105 = vmatprep.subr.bf16.mxu1 %v7231_v38  ;;  %2298 = vmatprep.subr.bf16.mxu0 %v7234_v34  ;;  %v14971_v15 = vsel %vm8956_vm14, 4294967295, %v14970_v15  ;;  %v3073_v38 = vadd.f32 %v3072_v41, %v571_v33  ;;  %v14973_v34 = vmov 0.0   ;;  %vm14974_vm9 = vcmp.eq.s32.totalorder %v8609_v45, %v8537_v20 }
  0xee   : > { %14972 = vst [vmem:[#allocation64_spill] sm:$0xff] %v14971_v15  ;;  %v8973_v53 = vsel %vm508_vm2, 1.0, %v14973_v34  ;;  %vm8985_vm12 = vmpackc.low %vm14357_vm1, %vm14974_vm9  ;;  %v14975_v41 = vmov 0  ;;  %v3083_v57 = vadd.f32 %v3082_v28, %v579_v36  ;;  %v3086_v33 = vadd.f32 %v581_v35, %v580_v13  ;;  %v7241_v13 = vld [vmem:[%s8494_s19 + $0x390] ss:$24 sps:$4 sm:$0xff]  }
  0xef   : > { %6557 = vmatmul.mubr.msk.bf16.gmra.mxu0 %vm8894_vm7, %v14960_v4  ;;  %6589 = vmatmul.mubr.msk.bf16.gmra.mxu1 %vm8913_vm15, %v14960_v4  ;;  %v14976_v41 = vsel %vm8985_vm12, 4294967295, %v14975_v41  ;;  %vm14363_vm2 = vcmp.eq.s32.totalorder %v8618_v48, %v8537_v20  ;;  %v589_v21 = vsel %vm14358_vm4, 1.0, %v14973_v34  ;;  %v582_v16 = vsel %vm14360_vm11, 1.0, %v14973_v34 }
  0xf0   : > { %14977 = vst [vmem:[#allocation65_spill] sm:$0xff] %v14976_v41  ;;  %2106 = vmatpush1.bf16.msra.mxu1 %v7229_v59  ;;  %2299 = vmatpush1.bf16.msra.mxu0 %v7232_v58  ;;  %v586_v35 = vsel %vm14359_vm8, 1.0, %v14973_v34  ;;  %vm14978_vm9 = vcmp.eq.s32.totalorder %v8603_v43, %v8647_v60  ;;  %vm14979_vm1 = vcmp.eq.s32.totalorder %v8606_v44, %v8647_v60  ;;  %v14980_v58 = vmov 0  ;;  %v7243_v59 = vld [vmem:[%s8494_s19 + $0x394] ss:$24 sps:$4 sm:$0xff]  }
  0xf1   : > { %2107 = vmatprep.subr.bf16.mxu1 %v7237_v7  ;;  %2300 = vmatprep.subr.bf16.mxu0 %v7240_v25  ;;  %vm9009_vm4 = vmpackc.low %vm14979_vm1, %vm14978_vm9  ;;  %v593_v28 = vsel %vm14363_vm2, 1.0, %v14973_v34  ;;  %vm14366_vm15 = vcmp.eq.s32.totalorder %v8615_v47, %v8647_v60  ;;  %vm14983_vm1 = vcmp.eq.s32.totalorder %v8609_v45, %v8647_v60  ;;  %vm14984_vm9 = vcmp.eq.s32.totalorder %v8612_v46, %v8647_v60 }
  0xf2   : > { %v14981_v58 = vsel %vm9009_vm4, 4294967295, %v14980_v58  ;;  %6559 = vmatprep.mubr.msk.bf16.mxu0 %vm8956_vm14, %v14960_v4  ;;  %6591 = vmatprep.mubr.msk.bf16.mxu1 %vm8985_vm12, %v14960_v4  ;;  %vm9037_vm8 = vmpackc.low %vm14984_vm9, %vm14983_vm1  ;;  %v14985_v25 = vmov 0  ;;  %vm14373_vm11 = vcmp.eq.s32.totalorder %v8618_v48, %v8647_v60  ;;  %v588_v7 = vsel %vm14366_vm15, 1.0, %v14973_v34 }
  0xf3   : > { %14982 = vst [vmem:[#allocation66_spill] sm:$0xff] %v14981_v58  ;;  %v14986_v25 = vsel %vm9037_vm8, 4294967295, %v14985_v25  ;;  %v592_v36 = vsel %vm14373_vm11, 1.0, %v14973_v34  ;;  %vm14988_vm1 = vcmp.eq.s32.totalorder %v8589_v37, %v8688_v14  ;;  %vm14989_vm9 = vcmp.eq.s32.totalorder %v8593_v39, %v8688_v14  ;;  %3074 = vadd.xlane.f32.xlu0 %v3073_v38  ;;  %3084 = vadd.xlane.f32.xlu1 %v3083_v57  ;;  %v7252_v38 = vld [vmem:[%s8494_s19 + $0x6c] ss:$24 sps:$4 sm:$0xff]  }
  0xf4   : > { %14987 = vst [vmem:[#allocation67_spill] sm:$0xff] %v14986_v25  ;;  %vm9063_vm15 = vmpackc.low %vm14989_vm9, %vm14988_vm1  ;;  %v14990_v41 = vmov 0  ;;  %v3087_v15 = vadd.f32 %v3086_v33, %v582_v16  ;;  %v3092_v10 = vadd.f32 %v3091_v22, %v586_v35  ;;  %2108 = vmatpush1.bf16.msra.mxu1 %v7235_v30  ;;  %2301 = vmatpush1.bf16.msra.mxu0 %v7238_v23  ;;  %v14995_v39 = vmov 0  ;;  %v7249_v22 = vld [vmem:[%s8494_s19 + $0x364] ss:$24 sps:$4 sm:$0xff]  }
  0xf5   : > { %v14991_v41 = vsel %vm9063_vm15, 4294967295, %v14990_v41  ;;  %vm14993_vm11 = vcmp.eq.s32.totalorder %v8615_v47, %v8537_v20  ;;  %vm14994_vm1 = vcmp.eq.s32.totalorder %v8618_v48, %v8537_v20  ;;  %v583_v16 = vsel %vm14998_vm10, 1.0, %v14973_v34  ;;  %2109 = vmatprep.subr.bf16.mxu1 %v7243_v59  ;;  %2302 = vmatprep.subr.bf16.mxu0 %v7246_v18  ;;  %v7247_v59 = vld [vmem:[%s8494_s19 + $0x360] ss:$24 sps:$4 sm:$0xff]  }
  0xf6   : > { %14992 = vst [vmem:[#allocation68_spill] sm:$0xff] %v14991_v41  ;;  %vm9075_vm9 = vmpackc.low %vm14994_vm1, %vm14993_vm11  ;;  %vm14999_vm6 = vcmp.eq.s32.totalorder %v8606_v44, %v8685_v12  ;;  %vm15000_vm11 = vcmp.eq.s32.totalorder %v8600_v42, %v8647_v60  ;;  %vm15001_vm12 = vcmp.eq.s32.totalorder %v8603_v43, %v8688_v14  ;;  %v15003_v57 = vmov 0  ;;  %v7250_v18 = vld [vmem:[%s8494_s19 + $0x68] ss:$24 sps:$4 sm:$0xff]  }
  0xf7   : > { %v14996_v39 = vsel %vm9075_vm9, 4294967295, %v14995_v39  ;;  %v587_v23 = vsel %vm14999_vm6, 1.0, %v14973_v34  ;;  %v9095_v30 = vsel %vm15000_vm11, 1.0, %v14973_v34  ;;  %vm15002_vm11 = vcmp.eq.s32.totalorder %v8606_v44, %v8688_v14  ;;  %6561 = vmatmul.mubr.msk.bf16.gmra.mxu0 %vm9009_vm4, %v14960_v4  ;;  %6593 = vmatmul.mubr.msk.bf16.gmra.mxu1 %vm9037_vm8, %v14960_v4 }
  0xf8   : > { %14997 = vst [vmem:[#allocation69_spill] sm:$0xff] %v14996_v39  ;;  %vm9111_vm2 = vmpackc.low %vm15002_vm11, %vm15001_vm12  ;;  %vm15007_vm10 = vcmp.eq.s32.totalorder %v8624_v50, %v8537_v20  ;;  %v15008_v33 = vmov 0  ;;  %v3096_v35 = vadd.f32 %v589_v21, %v588_v7  ;;  %v15013_v21 = vmov 0  ;;  %2110 = vmatpush1.bf16.msra.mxu1 %v7241_v13  ;;  %2303 = vmatpush1.bf16.msra.mxu0 %v7244_v24  ;;  %v7262_v39 = vld [vmem:[%s8494_s19 + $0x8] ss:$24 sps:$4 sm:$0xff]  }
  0xf9   : > { %v15004_v57 = vsel %vm9111_vm2, 4294967295, %v15003_v57  ;;  %vm9121_vm1 = vmpackc.low %vm15007_vm10, %vm15006_vm5  ;;  %vm15011_vm5 = vcmp.eq.s32.totalorder %v8615_v47, %v8688_v14  ;;  %vm15012_vm10 = vcmp.eq.s32.totalorder %v8618_v48, %v8688_v14  ;;  %v3088_v7 = vadd.f32 %v3087_v15, %v583_v16  ;;  %2111 = vmatprep.subr.bf16.mxu1 %v7249_v22  ;;  %2304 = vmatprep.subr.bf16.mxu0 %v7252_v38  ;;  %v7255_v15 = vld [vmem:[%s8494_s19 + $0x334] ss:$24 sps:$4 sm:$0xff]   ;;  %v7253_v22 = vld [vmem:[%s8494_s19 + $0x330] ss:$24 sps:$4 sm:$0xff]  }
  0xfa   : > { %15005 = vst [vmem:[#allocation70_spill] sm:$0xff] %v15004_v57  ;;  %v15009_v33 = vsel %vm9121_vm1, 4294967295, %v15008_v33  ;;  %vm9145_vm11 = vmpackc.low %vm15012_vm10, %vm15011_vm5  ;;  %v3093_v58 = vadd.f32 %v3092_v10, %v587_v23  ;;  %v3101_v57 = vadd.f32 %v593_v28, %v592_v36  ;;  %vm15017_vm12 = vcmp.eq.s32.totalorder %v8615_v47, %v8647_v60  ;;  %v7258_v28 = vld [vmem:[%s8494_s19 + $0x3c] ss:$24 sps:$4 sm:$0xff]   ;;  %6563 = vmatprep.mubr.msk.bf16.mxu0 %vm9075_vm9, %v14960_v4  ;;  %v7256_v38 = vld [vmem:[%s8494_s19 + $0x38] ss:$24 sps:$4 sm:$0xff]  }
  0xfb   : > { %15010 = vst [vmem:[#allocation71_spill] sm:$0xff] %v15009_v33  ;;  %v15014_v21 = vsel %vm9145_vm11, 4294967295, %v15013_v21  ;;  %vm15016_vm6 = vmmov %vm15011_vm5  ;;  %vm15018_vm14 = vcmp.eq.s32.totalorder %v8618_v48, %v8647_v60  ;;  %v15019_v41 = vmov 0  ;;  %vm15025_vm8 = vcmp.eq.s32.totalorder %v8630_v52, %v8688_v14  ;;  %6595 = vmatprep.mubr.msk.bf16.mxu1 %vm9121_vm1, %v14960_v4  ;;  %3089 = vadd.xlane.f32.xlu0 %v3088_v7  ;;  %v7264_v7 = vld [vmem:[%s8494_s19 + $0xc] ss:$24 sps:$4 sm:$0xff]  }
  0xfc   : > { %15015 = vst [vmem:[#allocation72_spill] sm:$0xff] %v15014_v21  ;;  %v590_v25 = vsel %vm15016_vm6, 1.0, %v14973_v34  ;;  %vm9159_vm5 = vmpackc.low %vm15018_vm14, %vm15017_vm12  ;;  %vm15023_vm14 = vcmp.eq.s32.totalorder %v8627_v51, %v8537_v20  ;;  %vm15024_vm6 = vcmp.eq.s32.totalorder %v8627_v51, %v8688_v14  ;;  %v15026_v24 = vmov 0  ;;  %3094 = vadd.xlane.f32.xlu1 %v3093_v58  ;;  %2112 = vmatpush1.bf16.msra.mxu1 %v7247_v59 }
  0xfd   : > { %v15020_v41 = vsel %vm9159_vm5, 4294967295, %v15019_v41  ;;  %vm15022_vm11 = vmmov %vm15012_vm10  ;;  %v597_v13 = vsel %vm15023_vm14, 1.0, %v14973_v34  ;;  %vm15029_vm14 = vcmp.eq.s32.totalorder %v8621_v49, %v8647_v60  ;;  %vm15030_vm10 = vcmp.eq.s32.totalorder %v8624_v50, %v8647_v60  ;;  %2305 = vmatpush1.bf16.msra.mxu0 %v7250_v18  ;;  %2113 = vmatprep.subr.bf16.mxu1 %v7255_v15  ;;  %v7261_v18 = vld [vmem:[%s8494_s19 + $0x304] ss:$24 sps:$4 sm:$0xff]  }
  0xfe   : > { %15021 = vst [vmem:[#allocation73_spill] sm:$0xff] %v15020_v41  ;;  %v594_v10 = vsel %vm15022_vm11, 1.0, %v14973_v34  ;;  %vm9191_vm4 = vmpackc.low %vm15025_vm8, %vm15024_vm6  ;;  %v15031_v36 = vmov 0  ;;  %vm15034_vm8 = vcmp.eq.s32.totalorder %v8630_v52, %v8537_v20  ;;  %v3097_v23 = vadd.f32 %v3096_v35, %v590_v25  ;;  %2306 = vmatprep.subr.bf16.mxu0 %v7258_v28 }
  0xff   : > { %v15027_v24 = vsel %vm9191_vm4, 4294967295, %v15026_v24  ;;  %vm9207_vm11 = vmpackc.low %vm15030_vm10, %vm15029_vm14  ;;  %v601_v16 = vsel %vm15034_vm8, 1.0, %v14973_v34  ;;  %vm15035_vm10 = vcmp.eq.s32.totalorder %v8627_v51, %v8647_v60  ;;  %vm15036_vm8 = vcmp.eq.s32.totalorder %v8640_v56, %v8688_v14  ;;  %6565 = vmatmul.mubr.msk.bf16.gmra.mxu0 %vm9159_vm5, %v14960_v4 }
 0x100   : > { %15028 = vst [vmem:[#allocation74_spill] sm:$0xff] %v15027_v24  ;;  %v15032_v36 = vsel %vm9207_vm11, 4294967295, %v15031_v36  ;;  %v596_v33 = vsel %vm15035_vm10, 1.0, %v14973_v34  ;;  %vm15037_vm6 = vcmp.eq.s32.totalorder %v8650_v61, %v8688_v14  ;;  %v15038_v24 = vmov 0  ;;  %6597 = vmatmul.mubr.msk.bf16.gmra.mxu1 %vm9207_vm11, %v14960_v4 }
 0x101   : > { %15033 = vst [vmem:[#allocation75_spill] sm:$0xff] %v15032_v36  ;;  %vm9233_vm1 = vmpackc.low %vm15037_vm6, %vm15036_vm8  ;;  %vm15041_vm10 = vcmp.eq.s32.totalorder %v8615_v47, %v8685_v12  ;;  %v3102_v35 = vadd.f32 %v3101_v57, %v594_v10  ;;  %vm15042_vm12 = vcmp.eq.s32.totalorder %v8627_v51, %v8537_v20  ;;  %vm15043_vm6 = vcmp.eq.s32.totalorder %v8630_v52, %v8537_v20  ;;  %v7276_v47 = vld [vmem:[%s8494_s19 + $0x2ac] ss:$24 sps:$4 sm:$0xff]  }
 0x102   : > { %v15039_v24 = vsel %vm9233_vm1, 4294967295, %v15038_v24  ;;  %v591_v25 = vsel %vm15041_vm10, 1.0, %v14973_v34  ;;  %vm9247_vm8 = vmpackc.low %vm15043_vm6, %vm15042_vm12  ;;  %v15044_v21 = vmov 0  ;;  %vm15047_vm14 = vcmp.eq.s32.totalorder %v8630_v52, %v8647_v60  ;;  %2114 = vmatpush1.bf16.msra.mxu1 %v7253_v22  ;;  %2307 = vmatpush1.bf16.msra.mxu0 %v7256_v38 }
 0x103   : > { %15040 = vst [vmem:[#allocation76_spill] sm:$0xff] %v15039_v24  ;;  %v15045_v21 = vsel %vm9247_vm8, 4294967295, %v15044_v21  ;;  %v600_v58 = vsel %vm15047_vm14, 1.0, %v14973_v34  ;;  %vm15048_vm4 = vcmp.eq.s32.totalorder %v8618_v48, %v8685_v12  ;;  %vm15049_vm12 = vcmp.eq.s32.totalorder %v8609_v45, %v8537_v20  ;;  %2115 = vmatprep.subr.bf16.mxu1 %v7261_v18  ;;  %2308 = vmatprep.subr.bf16.mxu0 %v7264_v7  ;;  %v7268_v18 = vld [vmem:[%s8494_s19 + $0x2d8] ss:$24 sps:$4 sm:$0xff]  }
 0x104   : > { %15046 = vst [vmem:[#allocation77_spill] sm:$0xff] %v15045_v21  ;;  %v595_v57 = vsel %vm15048_vm4, 1.0, %v14973_v34  ;;  %v9267_v59 = vsel %vm15049_vm12, 1.0, %v14973_v34  ;;  %vm15050_vm1 = vcmp.eq.s32.totalorder %v8659_v0, %v8688_v14  ;;  %vm15051_vm12 = vcmp.eq.s32.totalorder %v8662_v1, %v8688_v14  ;;  %6567 = vmatprep.mubr.msk.bf16.mxu0 %vm9247_vm8, %v14960_v4  ;;  %v7273_v21 = vld [vmem:[%s8494_s19 + $0x5a4] ss:$24 sps:$4 sm:$0xff]  }
 0x105   : > { %vm9283_vm10 = vmpackc.low %vm15051_vm12, %vm15050_vm1  ;;  %v15052_v10 = vmov 0  ;;  %vm15055_vm9 = vcmp.eq.s32.totalorder %v8634_v54, %v8537_v20  ;;  %vm15056_vm14 = vcmp.eq.s32.totalorder %v8637_v55, %v8537_v20  ;;  %v15057_v15 = vmov 0 }
 0x106   : > { %v15053_v10 = vsel %vm9283_vm10, 4294967295, %v15052_v10  ;;  %vm9293_vm6 = vmpackc.low %vm15056_vm14, %vm15055_vm9  ;;  %v3098_v28 = vadd.f32 %v3097_v23, %v591_v25  ;;  %vm15060_vm9 = vcmp.eq.s32.totalorder %v8640_v56, %v8537_v20  ;;  %vm15061_vm14 = vcmp.eq.s32.totalorder %v8672_v5, %v8688_v14  ;;  %2309 = vmatpush1.bf16.msra.mxu0 %v7262_v39 }
 0x107   : > { %15054 = vst [vmem:[#allocation78_spill] sm:$0xff] %v15053_v10  ;;  %v15058_v15 = vsel %vm9293_vm6, 4294967295, %v15057_v15  ;;  %v7259_v10 = vld [vmem:[%s8494_s19 + $0x300] ss:$24 sps:$4 sm:$0xff]   ;;  %v605_v24 = vsel %vm15060_vm9, 1.0, %v14973_v34  ;;  %vm15062_vm12 = vcmp.eq.s32.totalorder %v8675_v6, %v8688_v14  ;;  %v15063_v23 = vmov 0  ;;  %6599 = vmatprep.mubr.msk.bf16.mxu1 %vm9293_vm6, %v14960_v4 }
 0x108   : > { %15059 = vst [vmem:[#allocation79_spill] sm:$0xff] %v15058_v15  ;;  %vm9320_vm1 = vmpackc.low %vm15062_vm12, %vm15061_vm14  ;;  %v3103_v25 = vadd.f32 %v3102_v35, %v595_v57  ;;  %v3106_v36 = vadd.f32 %v597_v13, %v596_v33  ;;  %v3111_v41 = vadd.f32 %v601_v16, %v600_v58  ;;  %vm15066_vm12 = vcmp.eq.s32.totalorder %v8627_v51, %v8688_v14  ;;  %v7267_v13 = vld [vmem:[%s8494_s19 + $0x5d4] ss:$24 sps:$4 sm:$0xff]   ;;  %v7265_v58 = vld [vmem:[%s8494_s19 + $0x5d0] ss:$24 sps:$4 sm:$0xff]  }
 0x109   : > { %v15064_v23 = vsel %vm9320_vm1, 4294967295, %v15063_v23  ;;  %v598_v48 = vsel %vm15066_vm12, 1.0, %v14973_v34  ;;  %vm15067_vm14 = vcmp.eq.s32.totalorder %v8630_v52, %v8688_v14  ;;  %v7270_v16 = vld [vmem:[%s8494_s19 + $0x2dc] ss:$24 sps:$4 sm:$0xff]   ;;  %vm15068_vm4 = vcmp.eq.s32.totalorder %v8650_v61, %v8537_v20  ;;  %3099 = vadd.xlane.f32.xlu0 %v3098_v28  ;;  %2116 = vmatpush1.bf16.msra.mxu1 %v7259_v10  ;;  %v7271_v28 = vld [vmem:[%s8494_s19 + $0x5a0] ss:$24 sps:$4 sm:$0xff]  }
 0x10a   : > { %15065 = vst [vmem:[#allocation80_spill] sm:$0xff] %v15064_v23  ;;  %v602_v33 = vsel %vm15067_vm14, 1.0, %v14973_v34  ;;  %v609_v22 = vsel %vm15068_vm4, 1.0, %v14973_v34  ;;  %vm14431_vm9 = vcmp.eq.s32.totalorder %v8640_v56, %v8647_v60  ;;  %vm15069_vm14 = vcmp.eq.s32.totalorder %v8527_v17, %v8688_v14  ;;  %3104 = vadd.xlane.f32.xlu1 %v3103_v25  ;;  %2117 = vmatprep.subr.bf16.mxu1 %v7267_v13 }
 0x10b   : > { %vm15070_vm1 = vcmp.eq.s32.totalorder %v8533_v19, %v8688_v14  ;;  %v15071_v38 = vmov 0  ;;  %vm15074_vm4 = vcmp.eq.s32.totalorder %v8627_v51, %v8647_v60  ;;  %vm15075_vm11 = vcmp.eq.s32.totalorder %v8630_v52, %v8647_v60  ;;  %2310 = vmatprep.subr.bf16.mxu0 %v7270_v16 }
 0x10c   : > { %vm9355_vm10 = vmpackc.low %vm15070_vm1, %vm15069_vm14  ;;  %v15076_v35 = vmov 0  ;;  %v604_v57 = vsel %vm14431_vm9, 1.0, %v14973_v34  ;;  %vm14438_vm1 = vcmp.eq.s32.totalorder %v8627_v51, %v8685_v12  ;;  %v3107_v15 = vadd.f32 %v3106_v36, %v598_v48  ;;  %2311 = vmatpush2.bf16.msra.mxu0 %v7268_v18 }
 0x10d   : > { %v15072_v38 = vsel %vm9355_vm10, 4294967295, %v15071_v38  ;;  %vm9371_vm12 = vmpackc.low %vm15075_vm11, %vm15074_vm4  ;;  %vm15079_vm4 = vcmp.eq.s32.totalorder %v8650_v61, %v8647_v60  ;;  %vm15080_vm9 = vcmp.eq.s32.totalorder %v8634_v54, %v8647_v60  ;;  %vm15081_vm11 = vcmp.eq.s32.totalorder %v8637_v55, %v8647_v60  ;;  %2118 = vmatpush2.bf16.msra.mxu1 %v7265_v58  ;;  %2312 = vmatprep.subr.bf16.mxu0 %v7276_v47 }
 0x10e   : > { %15073 = vst [vmem:[#allocation81_spill] sm:$0xff] %v15072_v38  ;;  %v15077_v35 = vsel %vm9371_vm12, 4294967295, %v15076_v35  ;;  %v608_v7 = vsel %vm15079_vm4, 1.0, %v14973_v34  ;;  %v3112_v38 = vadd.f32 %v3111_v41, %v602_v33  ;;  %vm9399_vm14 = vmpackc.low %vm15081_vm11, %vm15080_vm9  ;;  %v15082_v23 = vmov 0  ;;  %6569 = vmatmul.mubr.msk.bf16.gmra.mxu0 %vm9371_vm12, %v14960_v4  ;;  %v7274_v33 = vld [vmem:[%s8494_s19 + $0x2a8] ss:$24 sps:$4 sm:$0xff]   ;;  %2119 = vmatprep.subr.bf16.mxu1 %v7273_v21 }
 0x10f   : > { %15078 = vst [vmem:[#allocation82_spill] sm:$0xff] %v15077_v35  ;;  %v15083_v23 = vsel %vm9399_vm14, 4294967295, %v15082_v23  ;;  %vm14440_vm6 = vcmp.eq.s32.totalorder %v8659_v0, %v8537_v20  ;;  %v599_v39 = vsel %vm14438_vm1, 1.0, %v14973_v34  ;;  %vm15085_vm9 = vcmp.eq.s32.totalorder %v8630_v52, %v8685_v12  ;;  %6601 = vmatmul.mubr.msk.bf16.gmra.mxu1 %vm9399_vm14, %v14960_v4  ;;  %v7279_v35 = vld [vmem:[%s8494_s19 + $0x574] ss:$24 sps:$4 sm:$0xff]  }
 0x110   : > { %15084 = vst [vmem:[#allocation83_spill] sm:$0xff] %v15083_v23  ;;  %v603_v48 = vsel %vm15085_vm9, 1.0, %v14973_v34  ;;  %v9423_v41 = vsel %vm14440_vm6, 1.0, %v14973_v34  ;;  %vm15086_vm4 = vcmp.eq.s32.totalorder %v8596_v40, %v8688_v14  ;;  %vm15087_vm9 = vcmp.eq.s32.totalorder %v8600_v42, %v8688_v14  ;;  %v7277_v21 = vld [vmem:[%s8494_s19 + $0x570] ss:$24 sps:$4 sm:$0xff]   ;;  %2313 = vmatpush2.bf16.msra.mxu0 %v7274_v33 }
 0x111   : > { %vm9433_vm10 = vmpackc.low %vm15087_vm9, %vm15086_vm4  ;;  %v15088_v36 = vmov 0  ;;  %v3116_v10 = vadd.f32 %v605_v24, %v604_v57  ;;  %vm15091_vm11 = vcmp.eq.s32.totalorder %v8640_v56, %v8537_v20  ;;  %vm15092_vm6 = vcmp.eq.s32.totalorder %v8650_v61, %v8537_v20  ;;  %2120 = vmatpush2.bf16.msra.mxu1 %v7271_v28  ;;  %v7288_v28 = vld [vmem:[%s8494_s19 + $0x24c] ss:$24 sps:$4 sm:$0xff]  }
 0x112   : > { %v15089_v36 = vsel %vm9433_vm10, 4294967295, %v15088_v36  ;;  %vm9444_vm1 = vmpackc.low %vm15092_vm6, %vm15091_vm11  ;;  %v15093_v25 = vmov 0  ;;  %vm14454_vm8 = vcmp.eq.s32.totalorder %v8659_v0, %v8647_v60  ;;  %vm15095_vm10 = vcmp.eq.s32.totalorder %v8640_v56, %v8688_v14  ;;  %2121 = vmatprep.subr.bf16.mxu1 %v7279_v35 }
 0x113   : > { %15090 = vst [vmem:[#allocation84_spill] sm:$0xff] %v15089_v36  ;;  %v15094_v25 = vsel %vm9444_vm1, 4294967295, %v15093_v25  ;;  %v606_v24 = vsel %vm15095_vm10, 1.0, %v14973_v34  ;;  %vm15096_vm6 = vcmp.eq.s32.totalorder %v8653_v62, %v8537_v20  ;;  %vm15097_vm11 = vcmp.eq.s32.totalorder %v8656_v63, %v8537_v20  ;;  %6571 = vmatprep.mubr.msk.bf16.mxu0 %vm9444_vm1, %v14960_v4 }
 0x114   : > { %vm9471_vm9 = vmpackc.low %vm15097_vm11, %vm15096_vm6  ;;  %v15098_v13 = vmov 0  ;;  %vm15101_vm10 = vcmp.eq.s32.totalorder %v8662_v1, %v8537_v20  ;;  %v3108_v57 = vadd.f32 %v3107_v15, %v599_v39  ;;  %v3113_v23 = vadd.f32 %v3112_v38, %v603_v48  ;;  %v7282_v38 = vld [vmem:[%s8494_s19 + $0x27c] ss:$24 sps:$4 sm:$0xff]  }
 0x115   : > { %v15099_v13 = vsel %vm9471_vm9, 4294967295, %v15098_v13  ;;  %v617_v16 = vsel %vm15101_vm10, 1.0, %v14973_v34  ;;  %v3121_v36 = vadd.f32 %v609_v22, %v608_v7  ;;  %vm14457_vm6 = vcmp.eq.s32.totalorder %v8662_v1, %v8647_v60  ;;  %6603 = vmatprep.mubr.msk.bf16.mxu1 %vm9471_vm9, %v14960_v4  ;;  %2314 = vmatprep.subr.bf16.mxu0 %v7282_v38  ;;  %v7283_v38 = vld [vmem:[%s8494_s19 + $0x540] ss:$24 sps:$4 sm:$0xff]  }
 0x116   : > { %15100 = vst [vmem:[#allocation85_spill] sm:$0xff] %v15099_v13  ;;  %v612_v52 = vsel %vm14454_vm8, 1.0, %v14973_v34  ;;  %vm15102_vm11 = vcmp.eq.s32.totalorder %v8650_v61, %v8688_v14  ;;  %vm15103_vm10 = vcmp.eq.s32.totalorder %v8640_v56, %v8647_v60  ;;  %vm15104_vm4 = vcmp.eq.s32.totalorder %v8650_v61, %v8647_v60  ;;  %3109 = vadd.xlane.f32.xlu0 %v3108_v57 }
 0x117   : > { %v610_v15 = vsel %vm15102_vm11, 1.0, %v14973_v34  ;;  %vm9498_vm14 = vmpackc.low %vm15104_vm4, %vm15103_vm10  ;;  %v15105_v22 = vmov 0  ;;  %v616_v58 = vsel %vm14457_vm6, 1.0, %v14973_v34  ;;  %vm14460_vm12 = vcmp.eq.s32.totalorder %v8640_v56, %v8685_v12  ;;  %3114 = vadd.xlane.f32.xlu1 %v3113_v23  ;;  %2122 = vmatpush2.bf16.msra.mxu1 %v7277_v21 }
 0x118   : > { %v15106_v22 = vsel %vm9498_vm14, 4294967295, %v15105_v22  ;;  %v3117_v47 = vadd.f32 %v3116_v10, %v606_v24  ;;  %vm15107_vm8 = vcmp.eq.s32.totalorder %v8609_v45, %v8688_v14  ;;  %vm15108_vm11 = vcmp.eq.s32.totalorder %v8612_v46, %v8688_v14  ;;  %v7280_v10 = vld [vmem:[%s8494_s19 + $0x278] ss:$24 sps:$4 sm:$0xff]   ;;  %v7285_v24 = vld [vmem:[%s8494_s19 + $0x544] ss:$24 sps:$4 sm:$0xff]   ;;  %6573 = vmatmul.mubr.msk.bf16.gmra.mxu0 %vm9498_vm14, %v14960_v4 }
 0x119   : > { %vm9530_vm6 = vmpackc.low %vm15108_vm11, %vm15107_vm8  ;;  %v15109_v18 = vmov 0  ;;  %v607_v7 = vsel %vm14460_vm12, 1.0, %v14973_v34  ;;  %v3146_v39 = vadd.f32 %v8702_v26, %v8727_v29  ;;  %vm15112_vm10 = vcmp.eq.s32.totalorder %v8653_v62, %v8647_v60  ;;  %2315 = vmatpush2.bf16.msra.mxu0 %v7280_v10  ;;  %2123 = vmatprep.subr.bf16.mxu1 %v7285_v24  ;;  %v7289_v24 = vld [vmem:[%s8494_s19 + $0x510] ss:$24 sps:$4 sm:$0xff]  }
 0x11a   : > { %v15110_v18 = vsel %vm9530_vm6, 4294967295, %v15109_v18  ;;  %vm15113_vm4 = vcmp.eq.s32.totalorder %v8656_v63, %v8647_v60  ;;  %v15114_v48 = vmov 0  ;;  %vm14462_vm12 = vcmp.eq.s32.totalorder %v8650_v61, %v8685_v12  ;;  %2316 = vmatprep.subr.bf16.mxu0 %v7288_v28 }
 0x11b   : > { %15111 = vst [vmem:[#allocation86_spill] sm:$0xff] %v15110_v18  ;;  %vm9546_vm9 = vmpackc.low %vm15113_vm4, %vm15112_vm10  ;;  %v3122_v26 = vadd.f32 %v3121_v36, %v610_v15  ;;  %vm15117_vm4 = vcmp.eq.s32.totalorder %v8527_v17, %v8688_v14  ;;  %v611_v23 = vsel %vm14462_vm12, 1.0, %v14973_v34  ;;  %vm15118_vm10 = vcmp.eq.s32.totalorder %v8659_v0, %v8537_v20  ;;  %2124 = vmatpush2.bf16.msra.mxu1 %v7283_v38  ;;  %v7298_v18 = vld [vmem:[%s8494_s19 + $0x1e8] ss:$24 sps:$4 sm:$0xff]  }
 0x11c   : > { %v15115_v48 = vsel %vm9546_vm9, 4294967295, %v15114_v48  ;;  %v630_v29 = vsel %vm15117_vm4, 1.0, %v14973_v34  ;;  %vm15119_vm11 = vcmp.eq.s32.totalorder %v8662_v1, %v8537_v20  ;;  %v15120_v33 = vmov 0  ;;  %6605 = vmatmul.mubr.msk.bf16.gmra.mxu1 %vm9546_vm9, %v14960_v4 }
 0x11d   : > { %15116 = vst [vmem:[#allocation87_spill] sm:$0xff] %v15115_v48  ;;  %v3147_v36 = vadd.f32 %v3146_v39, %v630_v29  ;;  %vm9583_vm6 = vmpackc.low %vm15119_vm11, %vm15118_vm10  ;;  %v3118_v57 = vadd.f32 %v3117_v47, %v607_v7  ;;  %v3126_v15 = vadd.f32 %v9423_v41, %v612_v52  ;;  %vm15122_vm4 = vcmp.eq.s32.totalorder %v8527_v17, %v8685_v12  ;;  %v7286_v29 = vld [vmem:[%s8494_s19 + $0x248] ss:$24 sps:$4 sm:$0xff]  }
 0x11e   : > { %v15121_v33 = vsel %vm9583_vm6, 4294967295, %v15120_v33  ;;  %v631_v35 = vsel %vm15122_vm4, 1.0, %v14973_v34  ;;  %vm15123_vm8 = vcmp.eq.s32.totalorder %v8665_v2, %v8537_v20  ;;  %vm15124_vm11 = vcmp.eq.s32.totalorder %v8668_v3, %v8537_v20  ;;  %6575 = vmatprep.mubr.msk.bf16.mxu0 %vm9583_vm6, %v14960_v4  ;;  %2317 = vmatpush2.bf16.msra.mxu0 %v7286_v29 }
 0x11f   : > { %vm9601_vm10 = vmpackc.low %vm15124_vm11, %vm15123_vm8  ;;  %v15125_v39 = vmov 0  ;;  %vm15128_vm12 = vcmp.eq.s32.totalorder %v8659_v0, %v8688_v14  ;;  %v3131_v41 = vadd.f32 %v617_v16, %v616_v58  ;;  %v9609_v47 = vadd.f32 %v3147_v36, %v631_v35  ;;  %v7294_v35 = vld [vmem:[%s8494_s19 + $0x21c] ss:$24 sps:$4 sm:$0xff]   ;;  %3119 = vadd.xlane.f32.xlu0 %v3118_v57  ;;  %v7292_v57 = vld [vmem:[%s8494_s19 + $0x218] ss:$24 sps:$4 sm:$0xff]  }
 0x120   : > { %v15126_v39 = vsel %vm9601_vm10, 4294967295, %v15125_v39  ;;  %v614_v52 = vsel %vm15128_vm12, 1.0, %v14973_v34  ;;  %v3151_v7 = vadd.f32 %v8711_v27, %v8740_v32  ;;  %v3123_v13 = vadd.f32 %v3122_v26, %v611_v23  ;;  %v7291_v23 = vld [vmem:[%s8494_s19 + $0x514] ss:$24 sps:$4 sm:$0xff]   ;;  %6607 = vmatprep.mubr.msk.bf16.mxu1 %vm9601_vm10, %v14960_v4  ;;  %2318 = vmatprep.subr.bf16.mxu0 %v7294_v35 }
 0x121   : > { %15127 = vst [vmem:[#allocation88_spill] sm:$0xff] %v15126_v39  ;;  %vm15129_vm12 = vcmp.eq.s32.totalorder %v8621_v49, %v8688_v14  ;;  %vm15130_vm8 = vcmp.eq.s32.totalorder %v8624_v50, %v8688_v14  ;;  %v15131_v16 = vmov 0  ;;  %vm15134_vm11 = vcmp.eq.s32.totalorder %v8662_v1, %v8688_v14  ;;  %2125 = vmatprep.subr.bf16.mxu1 %v7291_v23 }
 0x122   : > { %vm9626_vm4 = vmpackc.low %vm15130_vm8, %vm15129_vm12  ;;  %v618_v27 = vsel %vm15134_vm11, 1.0, %v14973_v34  ;;  %vm15135_vm9 = vcmp.eq.s32.totalorder %v8533_v19, %v8688_v14  ;;  %vm15136_vm14 = vcmp.eq.s32.totalorder %v8533_v19, %v8685_v12  ;;  %vm15137_vm12 = vcmp.eq.s32.totalorder %v8609_v45, %v8647_v60  ;;  %3124 = vadd.xlane.f32.xlu1 %v3123_v13  ;;  %2126 = vmatpush2.bf16.msra.mxu1 %v7289_v24 }
 0x123   : > { %v15132_v16 = vsel %vm9626_vm4, 4294967295, %v15131_v16  ;;  %v634_v32 = vsel %vm15135_vm9, 1.0, %v14973_v34  ;;  %v635_v58 = vsel %vm15136_vm14, 1.0, %v14973_v34  ;;  %v9646_v26 = vsel %vm15137_vm12, 1.0, %v14973_v34  ;;  %2319 = vmatpush2.bf16.msra.mxu0 %v7292_v57 }
 0x124   : > { %15133 = vst [vmem:[#allocation89_spill] sm:$0xff] %v15132_v16  ;;  %v3152_v36 = vadd.f32 %v3151_v7, %v634_v32  ;;  %vm15138_vm14 = vcmp.eq.s32.totalorder %v8672_v5, %v8537_v20  ;;  %v3127_v21 = vadd.f32 %v3126_v15, %v614_v52  ;;  %vm15139_vm9 = vcmp.eq.s32.totalorder %v8659_v0, %v8647_v60 }
 0x125   : > { %v621_v48 = vsel %vm15138_vm14, 1.0, %v14973_v34  ;;  %vm15140_vm14 = vcmp.eq.s32.totalorder %v8662_v1, %v8647_v60  ;;  %v15141_v10 = vmov 0  ;;  %vm15143_vm12 = vcmp.eq.s32.totalorder %v8675_v6, %v8537_v20 }
 0x126   : > { %vm9674_vm8 = vmpackc.low %vm15140_vm14, %vm15139_vm9  ;;  %v625_v28 = vsel %vm15143_vm12, 1.0, %v14973_v34  ;;  %v3132_v15 = vadd.f32 %v3131_v41, %v618_v27  ;;  %v9683_v52 = vadd.f32 %v3152_v36, %v635_v58  ;;  %v3156_v7 = vadd.f32 %v8936_v8, %v8973_v53  ;;  %v7297_v58 = vld [vmem:[%s8494_s19 + $0x4e4] ss:$24 sps:$4 sm:$0xff]  }
 0x127   : > { %v15142_v10 = vsel %vm9674_vm8, 4294967295, %v15141_v10  ;;  %vm15144_vm9 = vcmp.eq.s32.totalorder %v8659_v0, %v8685_v12  ;;  %vm15145_vm12 = vcmp.eq.s32.totalorder %v8662_v1, %v8685_v12  ;;  %vm15146_vm14 = vcmp.eq.s32.totalorder %v8634_v54, %v8688_v14  ;;  %v7300_v36 = vld [vmem:[%s8494_s19 + $0x1ec] ss:$24 sps:$4 sm:$0xff]   ;;  %6577 = vmatmul.mubr.msk.bf16.gmra.mxu0 %vm9674_vm8, %v14960_v4  ;;  %2127 = vmatprep.subr.bf16.mxu1 %v7297_v58 }
 0x128   : > { %v615_v32 = vsel %vm15144_vm9, 1.0, %v14973_v34  ;;  %v619_v41 = vsel %vm15145_vm12, 1.0, %v14973_v34  ;;  %vm15147_vm11 = vcmp.eq.s32.totalorder %v8637_v55, %v8688_v14  ;;  %v15148_v53 = vmov 0  ;;  %2320 = vmatprep.subr.bf16.mxu0 %v7300_v36 }
 0x129   : > { %vm9703_vm10 = vmpackc.low %vm15147_vm11, %vm15146_vm14  ;;  %vm15151_vm4 = vcmp.eq.s32.totalorder %v8596_v40, %v8688_v14  ;;  %vm15152_vm9 = vcmp.eq.s32.totalorder %v8665_v2, %v8647_v60  ;;  %vm15153_vm12 = vcmp.eq.s32.totalorder %v8668_v3, %v8647_v60  ;;  %v15154_v13 = vmov 0  ;;  %2321 = vmatpush2.bf16.msra.mxu0 %v7298_v18 }
 0x12a   : > { %v15149_v53 = vsel %vm9703_vm10, 4294967295, %v15148_v53  ;;  %v638_v8 = vsel %vm15151_vm4, 1.0, %v14973_v34  ;;  %vm9717_vm6 = vmpackc.low %vm15153_vm12, %vm15152_vm9  ;;  %vm15157_vm11 = vcmp.eq.s32.totalorder %v8672_v5, %v8647_v60  ;;  %vm15158_vm4 = vcmp.eq.s32.totalorder %v8675_v6, %v8647_v60 }
 0x12b   : > { %15150 = vst [vmem:[#allocation90_spill] sm:$0xff] %v15149_v53  ;;  %v15155_v13 = vsel %vm9717_vm6, 4294967295, %v15154_v13  ;;  %v620_v27 = vsel %vm15157_vm11, 1.0, %v14973_v34  ;;  %v624_v38 = vsel %vm15158_vm4, 1.0, %v14973_v34  ;;  %vm14487_vm14 = vcmp.eq.s32.totalorder %v8596_v40, %v8685_v12  ;;  %6609 = vmatmul.mubr.msk.bf16.gmra.mxu1 %vm9717_vm6, %v14960_v4 }
 0x12c   : > { %15156 = vst [vmem:[#allocation91_spill] sm:$0xff] %v15155_v13  ;;  %v3157_v29 = vadd.f32 %v3156_v7, %v638_v8  ;;  %vm14488_vm9 = vcmp.eq.s32.totalorder %v8600_v42, %v8685_v12  ;;  %vm14491_vm12 = vcmp.eq.s32.totalorder %v8653_v62, %v8688_v14  ;;  %v639_v39 = vsel %vm14487_vm14, 1.0, %v14973_v34  ;;  %v7295_v7 = vld [vmem:[%s8494_s19 + $0x4e0] ss:$24 sps:$4 sm:$0xff]  }
 0x12d   : > { %vm15159_vm4 = vcmp.eq.s32.totalorder %v8672_v5, %v8537_v20  ;;  %vm15160_vm10 = vcmp.eq.s32.totalorder %v8675_v6, %v8537_v20  ;;  %v15161_v23 = vmov 0  ;;  %v3128_v35 = vadd.f32 %v3127_v21, %v615_v32  ;;  %v7303_v32 = vld [vmem:[%s8494_s19 + $0x4b4] ss:$24 sps:$4 sm:$0xff]   ;;  %2128 = vmatpush2.bf16.msra.mxu1 %v7295_v7  ;;  %v7309_v7 = vld [vmem:[%s8494_s19 + $0x484] ss:$24 sps:$4 sm:$0xff]  }
 0x12e   : > { %vm9751_vm1 = vmpackc.low %vm15160_vm10, %vm15159_vm4  ;;  %v3133_v8 = vadd.f32 %v3132_v15, %v619_v41  ;;  %v9755_v53 = vadd.f32 %v3157_v29, %v639_v39  ;;  %v3161_v16 = vadd.f32 %v8942_v31, %v9095_v30  ;;  %vm15163_vm10 = vcmp.eq.s32.totalorder %v8679_v9, %v8537_v20  ;;  %2129 = vmatprep.subr.bf16.mxu1 %v7303_v32  ;;  %v15197_v13 = vld [vmem:[#allocation24_spill] sm:$0xff] }
 0x12f   : > { %v15162_v23 = vsel %vm9751_vm1, 4294967295, %v15161_v23  ;;  %vm15164_vm4 = vcmp.eq.s32.totalorder %v8682_v11, %v8537_v20  ;;  %v15165_v39 = vmov 0  ;;  %v3136_v31 = vadd.f32 %v621_v48, %v620_v27  ;;  %6579 = vmatprep.mubr.msk.bf16.mxu0 %vm9751_vm1, %v14960_v4  ;;  %3129 = vadd.xlane.f32.xlu0 %v3128_v35 }
 0x130   : > { %vm9772_vm14 = vmpackc.low %vm15164_vm4, %vm15163_vm10  ;;  %v3141_v30 = vadd.f32 %v625_v28, %v624_v38  ;;  %vm15168_vm11 = vcmp.eq.s32.totalorder %v8600_v42, %v8688_v14  ;;  %v643_v15 = vsel %vm14488_vm9, 1.0, %v14973_v34  ;;  %vm15169_vm4 = vcmp.eq.s32.totalorder %v8672_v5, %v8688_v14  ;;  %v7306_v38 = vld [vmem:[%s8494_s19 + $0x1bc] ss:$24 sps:$4 sm:$0xff]   ;;  %3134 = vadd.xlane.f32.xlu1 %v3133_v8 }
 0x131   : > { %v15166_v39 = vsel %vm9772_vm14, 4294967295, %v15165_v39  ;;  %v642_v21 = vsel %vm15168_vm11, 1.0, %v14973_v34  ;;  %v622_v48 = vsel %vm15169_vm4, 1.0, %v14973_v34  ;;  %vm15170_vm11 = vcmp.eq.s32.totalorder %v8675_v6, %v8688_v14  ;;  %6611 = vmatprep.mubr.msk.bf16.mxu1 %vm9772_vm14, %v14960_v4  ;;  %2322 = vmatprep.subr.bf16.mxu0 %v7306_v38 }
 0x132   : > { %15167 = vst [vmem:[#allocation92_spill] sm:$0xff] %v15166_v39  ;;  %v626_v28 = vsel %vm15170_vm11, 1.0, %v14973_v34  ;;  %vm15171_vm9 = vcmp.eq.s32.totalorder %v8656_v63, %v8688_v14  ;;  %v15172_v24 = vmov 0  ;;  %v3162_v41 = vadd.f32 %v3161_v16, %v642_v21  ;;  %v7301_v39 = vld [vmem:[%s8494_s19 + $0x4b0] ss:$24 sps:$4 sm:$0xff]  }
 0x133   : > { %vm9801_vm6 = vmpackc.low %vm15171_vm9, %vm14491_vm12  ;;  %vm15175_vm4 = vcmp.eq.s32.totalorder %v8612_v46, %v8537_v20  ;;  %vm15176_vm11 = vcmp.eq.s32.totalorder %v8612_v46, %v8647_v60  ;;  %vm15177_vm10 = vcmp.eq.s32.totalorder %v8621_v49, %v8537_v20  ;;  %v15180_v29 = vmov 0  ;;  %2130 = vmatpush2.bf16.msra.mxu1 %v7301_v39  ;;  %v15209_v39 = vld [vmem:[#allocation27_spill] sm:$0xff] }
 0x134   : > { %v15173_v24 = vsel %vm9801_vm6, 4294967295, %v15172_v24  ;;  %v649_v57 = vsel %vm15175_vm4, 1.0, %v14973_v34  ;;  %v648_v27 = vsel %vm15176_vm11, 1.0, %v14973_v34  ;;  %v653_v16 = vsel %vm15177_vm10, 1.0, %v14973_v34  ;;  %2131 = vmatprep.subr.bf16.mxu1 %v7309_v7 }
 0x135   : > { %15174 = vst [vmem:[#allocation93_spill] sm:$0xff] %v15173_v24  ;;  %vm15178_vm4 = vcmp.eq.s32.totalorder %v8672_v5, %v8647_v60  ;;  %vm15179_vm11 = vcmp.eq.s32.totalorder %v8675_v6, %v8647_v60  ;;  %vm14502_vm10 = vcmp.eq.s32.totalorder %v8668_v3, %v8688_v14  ;;  %v9840_v58 = vadd.f32 %v3162_v41, %v643_v15  ;;  %v7304_v41 = vld [vmem:[%s8494_s19 + $0x1b8] ss:$24 sps:$4 sm:$0xff]   ;;  %v7315_v24 = vld [vmem:[%s8494_s19 + $0x45c] ss:$24 sps:$4 sm:$0xff]  }
 0x136   : > { %vm9834_vm12 = vmpackc.low %vm15179_vm11, %vm15178_vm4  ;;  %v3166_v36 = vadd.f32 %v9267_v59, %v9646_v26  ;;  %vm15182_vm9 = vcmp.eq.s32.totalorder %v8679_v9, %v8647_v60  ;;  %vm15183_vm14 = vcmp.eq.s32.totalorder %v8682_v11, %v8647_v60  ;;  %v15184_v21 = vmov 0  ;;  %2323 = vmatpush2.bf16.msra.mxu0 %v7304_v41 }
 0x137   : > { %v15181_v29 = vsel %vm9834_vm12, 4294967295, %v15180_v29  ;;  %vm9850_vm6 = vmpackc.low %vm15183_vm14, %vm15182_vm9  ;;  %vm14497_vm4 = vcmp.eq.s32.totalorder %v8675_v6, %v8685_v12  ;;  %v3137_v15 = vadd.f32 %v3136_v31, %v622_v48  ;;  %v3142_v59 = vadd.f32 %v3141_v30, %v626_v28  ;;  %v7312_v30 = vld [vmem:[%s8494_s19 + $0x18c] ss:$24 sps:$4 sm:$0xff]   ;;  %v7307_v28 = vld [vmem:[%s8494_s19 + $0x480] ss:$24 sps:$4 sm:$0xff]   ;;  %6581 = vmatmul.mubr.msk.bf16.gmra.mxu0 %vm9834_vm12, %v14960_v4 }
 0x138   : > { %v15185_v21 = vsel %vm9850_vm6, 4294967295, %v15184_v21  ;;  %vm15187_vm11 = vcmp.eq.s32.totalorder %v8609_v45, %v8688_v14  ;;  %vm15188_vm9 = vcmp.eq.s32.totalorder %v8672_v5, %v8685_v12  ;;  %v627_v8 = vsel %vm14497_vm4, 1.0, %v14973_v34  ;;  %6613 = vmatmul.mubr.msk.bf16.gmra.mxu1 %vm9850_vm6, %v14960_v4  ;;  %2324 = vmatprep.subr.bf16.mxu0 %v7312_v30  ;;  %v7313_v30 = vld [vmem:[%s8494_s19 + $0x458] ss:$24 sps:$4 sm:$0xff]  }
 0x139   : > { %15186 = vst [vmem:[#allocation94_spill] sm:$0xff] %v15185_v21  ;;  %v646_v26 = vsel %vm15187_vm11, 1.0, %v14973_v34  ;;  %v623_v35 = vsel %vm15188_vm9, 1.0, %v14973_v34  ;;  %vm15189_vm11 = vcmp.eq.s32.totalorder %v8621_v49, %v8647_v60  ;;  %vm15190_vm9 = vcmp.eq.s32.totalorder %v8665_v2, %v8688_v14  ;;  %v7310_v21 = vld [vmem:[%s8494_s19 + $0x188] ss:$24 sps:$4 sm:$0xff]   ;;  %6679 = vmatprep.mubr.msk.bf16.mxu0 %vm8553_vm3, %v14960_v4  ;;  %2132 = vmatpush2.bf16.msra.mxu1 %v7307_v28 }
 0x13a   : > { %v3167_v31 = vadd.f32 %v3166_v36, %v646_v26  ;;  %v652_v18 = vsel %vm15189_vm11, 1.0, %v14973_v34  ;;  %vm9886_vm4 = vmpackc.low %vm14502_vm10, %vm15190_vm9  ;;  %v15191_v48 = vmov 0  ;;  %vm15194_vm11 = vcmp.eq.s32.totalorder %v8609_v45, %v8685_v12  ;;  %v15195_v26 = vld [vmem:[#allocation22_spill] sm:$0xff]  ;;  %2325 = vmatpush2.bf16.msra.mxu0 %v7310_v21  ;;  %2487 = vmatprep.subr.bf16.mxu1 %v7315_v24  ;;  %v7340_v21 = vld [vmem:[%s8494_s19 + $0x160] ss:$24 sps:$4 sm:$0xff]  }
 0x13b   : > { %v15192_v48 = vsel %vm9886_vm4, 4294967295, %v15191_v48  ;;  %v647_v32 = vsel %vm15194_vm11, 1.0, %v14973_v34  ;;  %v3171_v36 = vadd.f32 %v649_v57, %v648_v27  ;;  %vm15196_vm9 = vcmp.eq.s32.totalorder %v15195_v26, %v8685_v12  ;;  %v7342_v45 = vld [vmem:[%s8494_s19 + $0x164] ss:$24 sps:$4 sm:$0xff]  }
 0x13c   : > { %15193 = vst [vmem:[#allocation95_spill] sm:$0xff] %v15192_v48  ;;  %v9899_v38 = vadd.f32 %v3167_v31, %v647_v32  ;;  %vm15198_vm11 = vcmp.eq.s32.totalorder %v15197_v13, %v8685_v12  ;;  %v15199_v48 = vmov 0  ;;  %v3138_v31 = vadd.f32 %v3137_v15, %v623_v35  ;;  %2680 = vmatprep.subr.bf16.mxu0 %v7342_v45  ;;  %v7417_v45 = vld [vmem:[%s8494_s19 + $0x404] ss:$24 sps:$4 sm:$0xff]  }
 0x13d   : > { %vm9913_vm10 = vmpackc.low %vm15198_vm11, %vm15196_vm9  ;;  %v3143_v57 = vadd.f32 %v3142_v59, %v627_v8  ;;  %vm15202_vm1 = vcmp.eq.s32.totalorder %v8612_v46, %v8688_v14  ;;  %vm15203_vm14 = vcmp.eq.s32.totalorder %v8612_v46, %v8685_v12  ;;  %vm15204_vm9 = vcmp.eq.s32.totalorder %v8679_v9, %v8688_v14 }
 0x13e   : > { %v15200_v48 = vsel %vm9913_vm10, 4294967295, %v15199_v48  ;;  %v650_v27 = vsel %vm15202_vm1, 1.0, %v14973_v34  ;;  %v651_v32 = vsel %vm15203_vm14, 1.0, %v14973_v34  ;;  %vm15205_vm1 = vcmp.eq.s32.totalorder %v8682_v11, %v8688_v14  ;;  %6615 = vmatprep.mubr.msk.bf16.mxu1 %vm9913_vm10, %v14960_v4  ;;  %3139 = vadd.xlane.f32.xlu0 %v3138_v31 }
 0x13f   : > { %15201 = vst [vmem:[#allocation96_spill] sm:$0xff] %v15200_v48  ;;  %v3172_v42 = vadd.f32 %v3171_v36, %v650_v27  ;;  %vm9934_vm11 = vmpackc.low %vm15205_vm1, %vm15204_vm9  ;;  %v15206_v15 = vmov 0  ;;  %vm15210_vm14 = vcmp.eq.s32.totalorder %v15195_v26, %v8688_v14  ;;  %vm15211_vm6 = vcmp.eq.s32.totalorder %v15197_v13, %v8688_v14  ;;  %v15218_v36 = vld [vmem:[#allocation31_spill] sm:$0xff]  ;;  %3144 = vadd.xlane.f32.xlu1 %v3143_v57  ;;  %v7351_v13 = vld [vmem:[%s8494_s19 + $0x104] ss:$24 sps:$4 sm:$0xff]  }
 0x140   : > { %v15207_v15 = vsel %vm9934_vm11, 4294967295, %v15206_v15  ;;  %vm9950_vm4 = vmpackc.low %vm15211_vm6, %vm15210_vm14  ;;  %v15212_v59 = vmov 0  ;;  %v3176_v35 = vadd.f32 %v653_v16, %v652_v18  ;;  %vm15215_vm9 = vcmp.eq.s32.totalorder %v8624_v50, %v8537_v20  ;;  %v7318_v18 = vld [vmem:[%s8494_s19 + $0x42c] ss:$24 sps:$4 sm:$0xff]   ;;  %6681 = vmatmul.mubr.msk.bf16.vlgmr.msra.gmra.mxu0 %vm8769_vm0, %v14960_v4  ;;  %v7322_v26 = vld [vmem:[%s8494_s19 + $0x3c8] ss:$24 sps:$4 sm:$0xff]  }
 0x141   : > { %15208 = vst [vmem:[#allocation97_spill] sm:$0xff] %v15207_v15  ;;  %v15213_v59 = vsel %vm9950_vm4, 4294967295, %v15212_v59  ;;  %v9954_v41 = vadd.f32 %v3172_v42, %v651_v32  ;;  %v657_v8 = vsel %vm15215_vm9, 1.0, %v14973_v34  ;;  %vm15216_vm1 = vcmp.eq.s32.totalorder %v8624_v50, %v8647_v60  ;;  %v7316_v32 = vld [vmem:[%s8494_s19 + $0x428] ss:$24 sps:$4 sm:$0xff]   ;;  %6617 = vmatmul.mubr.msk.bf16.vlgmr.msra.gmra.mxu1 %vm9950_vm4, %v14960_v4  ;;  %6683 = vmatprep.mubr.msk.bf16.mxu0 %vm8819_vm13, %v14960_v4 }
 0x142   : > { %15214 = vst [vmem:[#allocation27_spill] sm:$0xff] %v15213_v59  ;;  %v656_v7 = vsel %vm15216_vm1, 1.0, %v14973_v34  ;;  %vm15217_vm6 = vcmp.eq.s32.totalorder %v8589_v37, %v8685_v12  ;;  %vm15219_vm14 = vcmp.eq.s32.totalorder %v15218_v36, %v8685_v12  ;;  %v15220_v42 = vmov 0  ;;  %2488 = vmatpush1.bf16.msra.mxu1 %v7313_v30  ;;  %2681 = vmatpush1.bf16.msra.mxu0 %v7340_v21  ;;  %v7324_v21 = vld [vmem:[%s8494_s19 + $0x3cc] ss:$24 sps:$4 sm:$0xff]  }
 0x143   : > { %vm9971_vm3 = vmpackc.low %vm15219_vm14, %vm15217_vm6  ;;  %vm15223_vm9 = vcmp.eq.s32.totalorder %v8621_v49, %v8688_v14  ;;  %vm14527_vm1 = vcmp.eq.s32.totalorder %v8621_v49, %v8685_v12  ;;  %vm15224_vm6 = vcmp.eq.s32.totalorder %v8603_v43, %v8685_v12  ;;  %vm15225_vm14 = vcmp.eq.s32.totalorder %v8606_v44, %v8685_v12  ;;  %v7321_v43 = vld [vmem:[%s8494_s19 + $0x3fc] ss:$24 sps:$4 sm:$0xff]   ;;  %2489 = vmatprep.subr.bf16.mxu1 %v7318_v18  ;;  %v7439_v59 = vld [vmem:[#allocation8 + $0x60] ss:$8 sps:$4 sm:$0xff]  }
 0x144   : > { %v15221_v42 = vsel %vm9971_vm3, 4294967295, %v15220_v42  ;;  %v654_v16 = vsel %vm15223_vm9, 1.0, %v14973_v34  ;;  %vm9988_vm10 = vmpackc.low %vm15225_vm14, %vm15224_vm6  ;;  %v15226_v31 = vmov 0  ;;  %v655_v28 = vsel %vm14527_vm1, 1.0, %v14973_v34  ;;  %v7345_v44 = vld [vmem:[%s8494_s19 + $0x134] ss:$24 sps:$4 sm:$0xff]   ;;  %6619 = vmatprep.mubr.msk.bf16.mxu1 %vm9971_vm3, %v14960_v4  ;;  %3149 = vadd.xlane.f32.xlu0 %v9609_v47 }
 0x145   : > { %15222 = vst [vmem:[#allocation98_spill] sm:$0xff] %v15221_v42  ;;  %v3177_v27 = vadd.f32 %v3176_v35, %v654_v16  ;;  %v15227_v31 = vsel %vm9988_vm10, 4294967295, %v15226_v31  ;;  %vm15229_vm9 = vcmp.eq.s32.totalorder %v8634_v54, %v8537_v20  ;;  %vm15230_vm6 = vcmp.eq.s32.totalorder %v8634_v54, %v8647_v60  ;;  %2682 = vmatprep.subr.bf16.mxu0 %v7345_v44  ;;  %v15239_v44 = vld [vmem:[#allocation39_spill] sm:$0xff]  ;;  %v7415_v15 = vld [vmem:[%s8494_s19 + $0x400] ss:$24 sps:$4 sm:$0xff]  }
 0x146   : > { %15228 = vst [vmem:[#allocation99_spill] sm:$0xff] %v15227_v31  ;;  %v661_v24 = vsel %vm15229_vm9, 1.0, %v14973_v34  ;;  %v660_v57 = vsel %vm15230_vm6, 1.0, %v14973_v34  ;;  %v3181_v16 = vadd.f32 %v657_v8, %v656_v7  ;;  %vm15232_vm14 = vcmp.eq.s32.totalorder %v8624_v50, %v8688_v14  ;;  %v7343_v8 = vld [vmem:[%s8494_s19 + $0x130] ss:$24 sps:$4 sm:$0xff]   ;;  %3154 = vadd.xlane.f32.xlu1 %v9683_v52  ;;  %2490 = vmatpush1.bf16.msra.mxu1 %v7316_v32 }
 0x147   : > { %v10006_v35 = vadd.f32 %v3177_v27, %v655_v28  ;;  %v658_v37 = vsel %vm15232_vm14, 1.0, %v14973_v34  ;;  %vm14526_vm9 = vcmp.eq.s32.totalorder %v8624_v50, %v8685_v12  ;;  %v3186_v36 = vadd.f32 %v661_v24, %v660_v57  ;;  %v7349_v24 = vld [vmem:[%s8494_s19 + $0x100] ss:$24 sps:$4 sm:$0xff]   ;;  %2491 = vmatprep.subr.bf16.mxu1 %v7321_v43  ;;  %2683 = vmatpush1.bf16.msra.mxu0 %v7343_v8  ;;  %v7354_v27 = vld [vmem:[%s8494_s19 + $0xd4] ss:$24 sps:$4 sm:$0xff]  }
 0x148   : > { %v3182_v7 = vadd.f32 %v3181_v16, %v658_v37  ;;  %v659_v30 = vsel %vm14526_vm9, 1.0, %v14973_v34  ;;  %vm15234_vm6 = vcmp.eq.s32.totalorder %v8637_v55, %v8537_v20  ;;  %vm15235_vm14 = vcmp.eq.s32.totalorder %v8637_v55, %v8647_v60  ;;  %v7319_v16 = vld [vmem:[%s8494_s19 + $0x3f8] ss:$24 sps:$4 sm:$0xff]   ;;  %3159 = vadd.xlane.f32.xlu0 %v9755_v53  ;;  %6685 = vmatmul.mubr.msk.bf16.gmra.mxu0 %vm8894_vm7, %v14960_v4 }
 0x149   : > { %v665_v37 = vsel %vm15234_vm6, 1.0, %v14973_v34  ;;  %v664_v18 = vsel %vm15235_vm14, 1.0, %v14973_v34  ;;  %vm15236_vm9 = vcmp.eq.s32.totalorder %v8634_v54, %v8688_v14  ;;  %vm14535_vm6 = vcmp.eq.s32.totalorder %v8634_v54, %v8685_v12  ;;  %6621 = vmatmul.mubr.msk.bf16.gmra.mxu1 %vm9063_vm15, %v14960_v4  ;;  %v15249_v53 = vld [vmem:[#allocation64_spill] sm:$0xff]  ;;  %2684 = vmatprep.subr.bf16.mxu0 %v7351_v13 }
 0x14a   : > { %v10034_v28 = vadd.f32 %v3182_v7, %v659_v30  ;;  %v662_v47 = vsel %vm15236_vm9, 1.0, %v14973_v34  ;;  %v15237_v7 = vld [vmem:[#allocation38_spill] sm:$0xff]  ;;  %vm15240_vm1 = vcmp.eq.s32.totalorder %v15239_v44, %v8685_v12  ;;  %v15241_v52 = vmov 0  ;;  %6623 = vmatprep.mubr.msk.bf16.mxu1 %vm9988_vm10, %v14960_v4  ;;  %2492 = vmatpush1.bf16.msra.mxu1 %v7319_v16  ;;  %v7325_v16 = vld [vmem:[%s8494_s19 + $0x398] ss:$24 sps:$4 sm:$0xff]  }
 0x14b   : > { %v3187_v57 = vadd.f32 %v3186_v36, %v662_v47  ;;  %vm15238_vm14 = vcmp.eq.s32.totalorder %v15237_v7, %v8685_v12  ;;  %v663_v32 = vsel %vm14535_vm6, 1.0, %v14973_v34  ;;  %vm15244_vm9 = vcmp.eq.s32.totalorder %v8653_v62, %v8537_v20  ;;  %2493 = vmatprep.subr.bf16.mxu1 %v7324_v21  ;;  %2685 = vmatpush1.bf16.msra.mxu0 %v7349_v24  ;;  %v7330_v24 = vld [vmem:[%s8494_s19 + $0x36c] ss:$24 sps:$4 sm:$0xff]  }
 0x14c   : > { %vm10061_vm13 = vmpackc.low %vm15240_vm1, %vm15238_vm14  ;;  %v669_v43 = vsel %vm15244_vm9, 1.0, %v14973_v34  ;;  %vm15245_vm3 = vcmp.eq.s32.totalorder %v8653_v62, %v8647_v60  ;;  %v3191_v47 = vadd.f32 %v665_v37, %v664_v18  ;;  %vm15250_vm1 = vnez %v15249_v53  ;;  %v7327_v37 = vld [vmem:[%s8494_s19 + $0x39c] ss:$24 sps:$4 sm:$0xff]   ;;  %v7352_v18 = vld [vmem:[%s8494_s19 + $0xd0] ss:$24 sps:$4 sm:$0xff]   ;;  %2686 = vmatprep.subr.bf16.mxu0 %v7354_v27  ;;  %3164 = vadd.xlane.f32.xlu1 %v9840_v58 }
 0x14d   : > { %v15242_v52 = vsel %vm10061_vm13, 4294967295, %v15241_v52  ;;  %v668_v36 = vsel %vm15245_vm3, 1.0, %v14973_v34  ;;  %v10078_v30 = vadd.f32 %v3187_v57, %v663_v32  ;;  %vm15248_vm3 = vcmp.eq.s32.totalorder %v8637_v55, %v8688_v14  ;;  %6687 = vmatprep.mubr.msk.bf16.mxu0 %vm15250_vm1, %v14960_v4  ;;  %3169 = vadd.xlane.f32.xlu0 %v9899_v38  ;;  %v15255_v58 = vld [vmem:[#allocation43_spill] sm:$0xff] }
 0x14e   : > { %15243 = vst [vmem:[#allocation58_spill] sm:$0xff] %v15242_v52  ;;  %v666_v8 = vsel %vm15248_vm3, 1.0, %v14973_v34  ;;  %vm14534_vm14 = vcmp.eq.s32.totalorder %v8637_v55, %v8685_v12  ;;  %v3196_v31 = vadd.f32 %v669_v43, %v668_v36  ;;  %vm15251_vm9 = vcmp.eq.s32.totalorder %v8656_v63, %v8537_v20  ;;  %v7358_v43 = vld [vmem:[%s8494_s19 + $0xa0] ss:$24 sps:$4 sm:$0xff]   ;;  %2494 = vmatpush1.bf16.msra.mxu1 %v7322_v26 }
 0x14f   : > { %v3192_v57 = vadd.f32 %v3191_v47, %v666_v8  ;;  %v667_v32 = vsel %vm14534_vm14, 1.0, %v14973_v34  ;;  %v673_v44 = vsel %vm15251_vm9, 1.0, %v14973_v34  ;;  %vm15252_vm3 = vcmp.eq.s32.totalorder %v8656_v63, %v8647_v60  ;;  %v7360_v47 = vld [vmem:[%s8494_s19 + $0xa4] ss:$24 sps:$4 sm:$0xff]   ;;  %2495 = vmatprep.subr.bf16.mxu1 %v7327_v37  ;;  %2687 = vmatpush1.bf16.msra.mxu0 %v7352_v18  ;;  %v7361_v18 = vld [vmem:[%s8494_s19 + $0x70] ss:$24 sps:$4 sm:$0xff]  }
 0x150   : > { %v672_v13 = vsel %vm15252_vm3, 1.0, %v14973_v34  ;;  %vm15253_vm14 = vcmp.eq.s32.totalorder %v8653_v62, %v8688_v14  ;;  %vm14542_vm9 = vcmp.eq.s32.totalorder %v8653_v62, %v8685_v12  ;;  %vm15254_vm3 = vcmp.eq.s32.totalorder %v8627_v51, %v8685_v12  ;;  %v7328_v51 = vld [vmem:[%s8494_s19 + $0x368] ss:$24 sps:$4 sm:$0xff]   ;;  %v7333_v37 = vld [vmem:[%s8494_s19 + $0x33c] ss:$24 sps:$4 sm:$0xff]   ;;  %2688 = vmatprep.subr.bf16.mxu0 %v7360_v47  ;;  %3174 = vadd.xlane.f32.xlu1 %v9954_v41 }
 0x151   : > { %v10106_v53 = vadd.f32 %v3192_v57, %v667_v32  ;;  %v670_v21 = vsel %vm15253_vm14, 1.0, %v14973_v34  ;;  %vm15256_vm6 = vcmp.eq.s32.totalorder %v15255_v58, %v8685_v12  ;;  %v15257_v27 = vmov 0  ;;  %6625 = vmatmul.mubr.msk.bf16.gmra.mxu1 %vm9111_vm2, %v14960_v4  ;;  %v7363_v58 = vld [vmem:[%s8494_s19 + $0x74] ss:$24 sps:$4 sm:$0xff]   ;;  %v7369_v47 = vld [vmem:[%s8494_s19 + $0x44] ss:$24 sps:$4 sm:$0xff]   ;;  %3179 = vadd.xlane.f32.xlu0 %v10006_v35 }
 0x152   : > { %v3197_v36 = vadd.f32 %v3196_v31, %v670_v21  ;;  %vm10134_vm1 = vmpackc.low %vm15256_vm6, %vm15254_vm3  ;;  %v671_v8 = vsel %vm14542_vm9, 1.0, %v14973_v34  ;;  %vm15260_vm14 = vcmp.eq.s32.totalorder %v8665_v2, %v8537_v20  ;;  %vm15261_vm10 = vcmp.eq.s32.totalorder %v8665_v2, %v8647_v60  ;;  %v15263_v21 = vld [vmem:[#allocation66_spill] sm:$0xff]  ;;  %6627 = vmatprep.mubr.msk.bf16.mxu1 %vm10061_vm13, %v14960_v4  ;;  %2496 = vmatpush1.bf16.msra.mxu1 %v7325_v16  ;;  %v7331_v16 = vld [vmem:[%s8494_s19 + $0x338] ss:$24 sps:$4 sm:$0xff]  }
 0x153   : > { %v15258_v27 = vsel %vm10134_vm1, 4294967295, %v15257_v27  ;;  %v677_v38 = vsel %vm15260_vm14, 1.0, %v14973_v34  ;;  %v676_v26 = vsel %vm15261_vm10, 1.0, %v14973_v34  ;;  %v3201_v57 = vadd.f32 %v673_v44, %v672_v13  ;;  %v15266_v44 = vld [vmem:[#allocation69_spill] sm:$0xff]  ;;  %2497 = vmatprep.subr.bf16.mxu1 %v7330_v24  ;;  %2689 = vmatpush1.bf16.msra.mxu0 %v7358_v43  ;;  %v7336_v43 = vld [vmem:[%s8494_s19 + $0x30c] ss:$24 sps:$4 sm:$0xff]  }
 0x154   : > { %15259 = vst [vmem:[#allocation100_spill] sm:$0xff] %v15258_v27  ;;  %v10150_v31 = vadd.f32 %v3197_v36, %v671_v8  ;;  %vm15264_vm6 = vnez %v15263_v21  ;;  %vm15265_vm3 = vcmp.eq.s32.totalorder %v8656_v63, %v8688_v14  ;;  %vm15267_vm10 = vnez %v15266_v44  ;;  %2690 = vmatprep.subr.bf16.mxu0 %v7363_v58  ;;  %v7429_v21 = vld [vmem:[%s8494_s19 + $0x344] ss:$24 sps:$4 sm:$0xff]  }
 0x155   : > { %6689 = vmatmul.mubr.msk.bf16.gmra.mxu0 %vm15264_vm6, %v14960_v4  ;;  %v674_v7 = vsel %vm15265_vm3, 1.0, %v14973_v34  ;;  %vm14543_vm14 = vcmp.eq.s32.totalorder %v8656_v63, %v8685_v12  ;;  %v3206_v44 = vadd.f32 %v677_v38, %v676_v26  ;;  %vm15268_vm3 = vcmp.eq.s32.totalorder %v8668_v3, %v8537_v20  ;;  %v7367_v38 = vld [vmem:[%s8494_s19 + $0x40] ss:$24 sps:$4 sm:$0xff]   ;;  %3184 = vadd.xlane.f32.xlu1 %v10034_v28 }
 0x156   : > { %6691 = vmatprep.mubr.msk.bf16.mxu0 %vm15267_vm10, %v14960_v4  ;;  %v3202_v13 = vadd.f32 %v3201_v57, %v674_v7  ;;  %v675_v36 = vsel %vm14543_vm14, 1.0, %v14973_v34  ;;  %v681_v52 = vsel %vm15268_vm3, 1.0, %v14973_v34  ;;  %vm15269_vm9 = vcmp.eq.s32.totalorder %v8668_v3, %v8647_v60  ;;  %2498 = vmatpush1.bf16.msra.mxu1 %v7328_v51 }
 0x157   : > { %v680_v7 = vsel %vm15269_vm9, 1.0, %v14973_v34  ;;  %vm15270_vm14 = vcmp.eq.s32.totalorder %v8665_v2, %v8688_v14  ;;  %vm14550_vm3 = vcmp.eq.s32.totalorder %v8665_v2, %v8685_v12  ;;  %vm15271_vm9 = vcmp.eq.s32.totalorder %v8640_v56, %v8685_v12  ;;  %2499 = vmatprep.subr.bf16.mxu1 %v7333_v37  ;;  %2691 = vmatpush1.bf16.msra.mxu0 %v7361_v18  ;;  %v7372_v56 = vld [vmem:[%s8494_s19 + $0x14] ss:$24 sps:$4 sm:$0xff]   ;;  %v7370_v18 = vld [vmem:[%s8494_s19 + $0x10] ss:$24 sps:$4 sm:$0xff]  }
 0x158   : > { %v10178_v8 = vadd.f32 %v3202_v13, %v675_v36  ;;  %v678_v24 = vsel %vm15270_vm14, 1.0, %v14973_v34  ;;  %vm15272_vm10 = vcmp.eq.s32.totalorder %v8650_v61, %v8685_v12  ;;  %v15273_v41 = vmov 0  ;;  %v15278_v13 = vld [vmem:[#allocation72_spill] sm:$0xff]  ;;  %v15280_v36 = vld [vmem:[#allocation73_spill] sm:$0xff]  ;;  %2692 = vmatprep.subr.bf16.mxu0 %v7369_v47  ;;  %3189 = vadd.xlane.f32.xlu0 %v10078_v30 }
 0x159   : > { %v3207_v26 = vadd.f32 %v3206_v44, %v678_v24  ;;  %vm10206_vm13 = vmpackc.low %vm15272_vm10, %vm15271_vm9  ;;  %v679_v58 = vsel %vm14550_vm3, 1.0, %v14973_v34  ;;  %vm15276_vm14 = vcmp.eq.s32.totalorder %v8679_v9, %v8537_v20  ;;  %vm15277_vm10 = vcmp.eq.s32.totalorder %v8679_v9, %v8647_v60  ;;  %v7334_v24 = vld [vmem:[%s8494_s19 + $0x308] ss:$24 sps:$4 sm:$0xff]   ;;  %v7339_v37 = vld [vmem:[%s8494_s19 + $0x5dc] ss:$24 sps:$4 sm:$0xff]   ;;  %3194 = vadd.xlane.f32.xlu1 %v10106_v53 }
 0x15a   : > { %v15274_v41 = vsel %vm10206_vm13, 4294967295, %v15273_v41  ;;  %v685_v35 = vsel %vm15276_vm14, 1.0, %v14973_v34  ;;  %v684_v57 = vsel %vm15277_vm10, 1.0, %v14973_v34  ;;  %v3211_v51 = vadd.f32 %v681_v52, %v680_v7  ;;  %v15282_v52 = vld [vmem:[#allocation77_spill] sm:$0xff]  ;;  %2500 = vmatpush1.bf16.msra.mxu1 %v7331_v16  ;;  %v7337_v16 = vld [vmem:[%s8494_s19 + $0x5d8] ss:$24 sps:$4 sm:$0xff]  }
 0x15b   : > { %15275 = vst [vmem:[#allocation66_spill] sm:$0xff] %v15274_v41  ;;  %v10222_v44 = vadd.f32 %v3207_v26, %v679_v58  ;;  %vm15279_vm9 = vnez %v15278_v13  ;;  %vm15281_vm14 = vcmp.eq.s32.totalorder %v8668_v3, %v8688_v14  ;;  %vm15283_vm10 = vnez %v15282_v52  ;;  %2501 = vmatprep.subr.bf16.mxu1 %v7336_v43  ;;  %v7378_v47 = vld [vmem:[%s8494_s19 + $0x2e4] ss:$24 sps:$4 sm:$0xff]  }
 0x15c   : > { %6629 = vmatmul.mubr.msk.bf16.gmra.mxu1 %vm15279_vm9, %v14960_v4  ;;  %v682_v61 = vsel %vm15281_vm14, 1.0, %v14973_v34  ;;  %vm14553_vm3 = vcmp.eq.s32.totalorder %v8668_v3, %v8685_v12  ;;  %2693 = vmatpush1.bf16.msra.mxu0 %v7367_v38  ;;  %v3216_v52 = vadd.f32 %v685_v35, %v684_v57  ;;  %vm15284_vm14 = vcmp.eq.s32.totalorder %v8682_v11, %v8537_v20  ;;  %v7348_v38 = vld [vmem:[%s8494_s19 + $0x5ac] ss:$24 sps:$4 sm:$0xff]   ;;  %v7376_v20 = vld [vmem:[%s8494_s19 + $0x2e0] ss:$24 sps:$4 sm:$0xff]  }
 0x15d   : > { %6693 = vmatmul.mubr.msk.bf16.gmra.mxu0 %vm9159_vm5, %v14960_v4  ;;  %6631 = vmatprep.mubr.msk.bf16.mxu1 %vm10134_vm1, %v14960_v4  ;;  %v3212_v7 = vadd.f32 %v3211_v51, %v682_v61  ;;  %v683_v26 = vsel %vm14553_vm3, 1.0, %v14973_v34  ;;  %v689_v27 = vsel %vm15284_vm14, 1.0, %v14973_v34  ;;  %vm15286_vm3 = vcmp.eq.s32.totalorder %v8679_v9, %v8688_v14  ;;  %v15292_v57 = vld [vmem:[#allocation74_spill] sm:$0xff]  ;;  %v7375_v53 = vld [vmem:[%s8494_s19 + $0x51c] ss:$24 sps:$4 sm:$0xff]  }
 0x15e   : > { %6695 = vmatprep.mubr.msk.bf16.mxu0 %vm15283_vm10, %v14960_v4  ;;  %vm15285_vm10 = vcmp.eq.s32.totalorder %v8682_v11, %v8647_v60  ;;  %2694 = vmatprep.subr.bf16.mxu0 %v7372_v56  ;;  %v686_v43 = vsel %vm15286_vm3, 1.0, %v14973_v34  ;;  %vm14557_vm14 = vcmp.eq.s32.totalorder %v8679_v9, %v8685_v12  ;;  %vm15288_vm1 = vcmp.eq.s32.totalorder %v8662_v1, %v8685_v12  ;;  %v15294_v51 = vld [vmem:[#allocation82_spill] sm:$0xff] }
 0x15f   : > { %v10250_v58 = vadd.f32 %v3212_v7, %v683_v26  ;;  %v688_v61 = vsel %vm15285_vm10, 1.0, %v14973_v34  ;;  %v3217_v60 = vadd.f32 %v3216_v52, %v686_v43  ;;  %vm15287_vm10 = vcmp.eq.s32.totalorder %v8659_v0, %v8685_v12  ;;  %2502 = vmatpush1.bf16.msra.mxu1 %v7334_v24  ;;  %v7346_v24 = vld [vmem:[%s8494_s19 + $0x5a8] ss:$24 sps:$4 sm:$0xff]   ;;  %v7381_v52 = vld [vmem:[%s8494_s19 + $0x2b4] ss:$24 sps:$4 sm:$0xff]   ;;  %3199 = vadd.xlane.f32.xlu0 %v10150_v31 }
 0x160   : > { %vm10278_vm5 = vmpackc.low %vm15288_vm1, %vm15287_vm10  ;;  %v15289_v56 = vmov 0  ;;  %v687_v28 = vsel %vm14557_vm14, 1.0, %v14973_v34  ;;  %2503 = vmatprep.subr.bf16.mxu1 %v7339_v37  ;;  %2695 = vmatpush1.bf16.msra.mxu0 %v7370_v18  ;;  %v3221_v35 = vadd.f32 %v689_v27, %v688_v61  ;;  %vm15293_vm3 = vnez %v15292_v57  ;;  %v7357_v27 = vld [vmem:[%s8494_s19 + $0x57c] ss:$24 sps:$4 sm:$0xff]   ;;  %v7379_v18 = vld [vmem:[%s8494_s19 + $0x2b0] ss:$24 sps:$4 sm:$0xff]  }
 0x161   : > { %v15290_v56 = vsel %vm10278_vm5, 4294967295, %v15289_v56  ;;  %v10286_v30 = vadd.f32 %v3217_v60, %v687_v28  ;;  %vm15295_vm1 = vnez %v15294_v51  ;;  %vm15296_vm10 = vcmp.eq.s32.totalorder %v8682_v11, %v8688_v14  ;;  %2696 = vmatprep.subr.bf16.mxu0 %v7378_v47  ;;  %v7355_v61 = vld [vmem:[%s8494_s19 + $0x578] ss:$24 sps:$4 sm:$0xff]   ;;  %v7387_v43 = vld [vmem:[%s8494_s19 + $0x284] ss:$24 sps:$4 sm:$0xff]   ;;  %3204 = vadd.xlane.f32.xlu1 %v10178_v8 }
 0x162   : > { %15291 = vst [vmem:[#allocation73_spill] sm:$0xff] %v15290_v56  ;;  %v690_v37 = vsel %vm15296_vm10, 1.0, %v14973_v34  ;;  %vm15297_vm14 = vnez %v15094_v25  ;;  %v7385_v47 = vld [vmem:[%s8494_s19 + $0x280] ss:$24 sps:$4 sm:$0xff]   ;;  %v7388_v31 = vld [vmem:[%s8494_s19 + $0x250] ss:$24 sps:$4 sm:$0xff]  }
 0x163   : > { %v3222_v7 = vadd.f32 %v3221_v35, %v690_v37  ;;  %2504 = vmatpush2.bf16.msra.mxu1 %v7337_v16  ;;  %v7366_v16 = vld [vmem:[%s8494_s19 + $0x54c] ss:$24 sps:$4 sm:$0xff]   ;;  %3209 = vadd.xlane.f32.xlu0 %v10222_v44  ;;  %v15304_v60 = vmov 0  ;;  %v7373_v28 = vld [vmem:[%s8494_s19 + $0x518] ss:$24 sps:$4 sm:$0xff]  }
 0x164   : > { %6633 = vmatmul.mubr.msk.bf16.gmra.mxu1 %vm15293_vm3, %v14960_v4  ;;  %2505 = vmatprep.subr.bf16.mxu1 %v7348_v38  ;;  %v7364_v38 = vld [vmem:[%s8494_s19 + $0x548] ss:$24 sps:$4 sm:$0xff]   ;;  %v7396_v35 = vld [vmem:[%s8494_s19 + $0x224] ss:$24 sps:$4 sm:$0xff]  }
 0x165   : > { %6697 = vmatmul.mubr.msk.bf16.gmra.mxu0 %vm15295_vm1, %v14960_v4  ;;  %6635 = vmatprep.mubr.msk.bf16.mxu1 %vm10206_vm13, %v14960_v4  ;;  %vm14558_vm1 = vcmp.eq.s32.totalorder %v8682_v11, %v8685_v12  ;;  %v7384_v8 = vld [vmem:[%s8494_s19 + $0x4ec] ss:$24 sps:$4 sm:$0xff]   ;;  %v7382_v37 = vld [vmem:[%s8494_s19 + $0x4e8] ss:$24 sps:$4 sm:$0xff]  }
 0x166   : > { %6699 = vmatprep.mubr.msk.bf16.mxu0 %vm15297_vm14, %v14960_v4  ;;  %v691_v14 = vsel %vm14558_vm1, 1.0, %v14973_v34  ;;  %2697 = vmatpush2.bf16.msra.mxu0 %v7376_v20  ;;  %v15298_v34 = vld [vmem:[#allocation76_spill] sm:$0xff]  ;;  %vm15300_vm1 = vnez %v15106_v22  ;;  %vm15301_vm14 = vnez %v15121_v33  ;;  %v15307_v44 = vld [vmem:[#allocation78_spill] sm:$0xff] }
 0x167   : > { %v10314_v26 = vadd.f32 %v3222_v7, %v691_v14  ;;  %2698 = vmatprep.subr.bf16.mxu0 %v7381_v52  ;;  %2506 = vmatpush2.bf16.msra.mxu1 %v7346_v24  ;;  %vm15299_vm10 = vnez %v15298_v34  ;;  %v7390_v20 = vld [vmem:[%s8494_s19 + $0x254] ss:$24 sps:$4 sm:$0xff]   ;;  %v7394_v24 = vld [vmem:[%s8494_s19 + $0x220] ss:$24 sps:$4 sm:$0xff]   ;;  %v15312_v7 = vmov 0 }
 0x168   : > { %2507 = vmatprep.subr.bf16.mxu1 %v7357_v27  ;;  %v7399_v52 = vld [vmem:[%s8494_s19 + $0x1f4] ss:$24 sps:$4 sm:$0xff]   ;;  %3214 = vadd.xlane.f32.xlu1 %v10250_v58  ;;  %v7391_v14 = vld [vmem:[%s8494_s19 + $0x4b8] ss:$24 sps:$4 sm:$0xff]  }
 0x169   : > { %v7393_v27 = vld [vmem:[%s8494_s19 + $0x4bc] ss:$24 sps:$4 sm:$0xff]   ;;  %3219 = vadd.xlane.f32.xlu0 %v10286_v30  ;;  %v7402_v58 = vld [vmem:[%s8494_s19 + $0x48c] ss:$24 sps:$4 sm:$0xff]   ;;  %v7451_v57 = vld [vmem:[%s8494_s19 + $0x580] ss:$24 sps:$4 sm:$0xff]  }
 0x16a   : > { %2699 = vmatpush2.bf16.msra.mxu0 %v7379_v18  ;;  %v7397_v18 = vld [vmem:[%s8494_s19 + $0x1f0] ss:$24 sps:$4 sm:$0xff]   ;;  %v15315_v30 = vld [vmem:[#allocation80_spill] sm:$0xff] }
 0x16b   : > { %2508 = vmatpush2.bf16.msra.mxu1 %v7355_v61  ;;  %2700 = vmatprep.subr.bf16.mxu0 %v7387_v43  ;;  %v7405_v61 = vld [vmem:[%s8494_s19 + $0x1c4] ss:$24 sps:$4 sm:$0xff]   ;;  %v7403_v43 = vld [vmem:[%s8494_s19 + $0x1c0] ss:$24 sps:$4 sm:$0xff]  }
 0x16c   : > { %6637 = vmatmul.mubr.msk.bf16.gmra.mxu1 %vm15299_vm10, %v14960_v4  ;;  %2509 = vmatprep.subr.bf16.mxu1 %v7366_v16  ;;  %vm15308_vm10 = vnez %v15307_v44  ;;  %v7408_v16 = vld [vmem:[%s8494_s19 + $0x194] ss:$24 sps:$4 sm:$0xff]  }
 0x16d   : > { %6701 = vmatmul.mubr.msk.bf16.gmra.mxu0 %vm15300_vm1, %v14960_v4  ;;  %6639 = vmatprep.mubr.msk.bf16.mxu1 %vm10278_vm5, %v14960_v4  ;;  %vm15302_vm5 = vcmp.eq.s32.totalorder %v8672_v5, %v8685_v12 }
 0x16e   : > { %6703 = vmatprep.mubr.msk.bf16.mxu0 %vm15301_vm14, %v14960_v4  ;;  %2701 = vmatpush2.bf16.msra.mxu0 %v7385_v47  ;;  %vm15303_vm14 = vcmp.eq.s32.totalorder %v8675_v6, %v8685_v12  ;;  %v15317_v47 = vld [vmem:[#allocation28_spill] sm:$0xff]  ;;  %v7441_v6 = vld [vmem:[#allocation8 + $0x64] ss:$8 sps:$4 sm:$0xff]  }
 0x16f   : > { %2702 = vmatprep.subr.bf16.mxu0 %v7390_v20  ;;  %vm10346_vm1 = vmpackc.low %vm15303_vm14, %vm15302_vm5  ;;  %2510 = vmatpush2.bf16.msra.mxu1 %v7364_v38  ;;  %vm15309_vm5 = vnez %v15162_v23  ;;  %vm15310_vm14 = vcmp.eq.s32.totalorder %v8527_v17, %v8685_v12  ;;  %v7400_v38 = vld [vmem:[%s8494_s19 + $0x488] ss:$24 sps:$4 sm:$0xff]   ;;  %v7436_v17 = vld [vmem:[#allocation8 + $0x70] ss:$8 sps:$4 sm:$0xff]  }
 0x170   : > { %v15305_v60 = vsel %vm10346_vm1, 4294967295, %v15304_v60  ;;  %2511 = vmatprep.subr.bf16.mxu1 %v7375_v53  ;;  %v7406_v20 = vld [vmem:[%s8494_s19 + $0x190] ss:$24 sps:$4 sm:$0xff]   ;;  %v7411_v53 = vld [vmem:[%s8494_s19 + $0x464] ss:$24 sps:$4 sm:$0xff]   ;;  %3224 = vadd.xlane.f32.xlu1 %v10314_v26 }
 0x171   : > { %15306 = vst [vmem:[#allocation82_spill] sm:$0xff] %v15305_v60  ;;  %v15327_v26 = vld [vmem:[#allocation59_spill] sm:$0xff] }
 0x172   : > { %2703 = vmatpush2.bf16.msra.mxu0 %v7388_v31  ;;  %v15320_v31 = vld [vmem:[#allocation33_spill] sm:$0xff] }
 0x173   : > { %2512 = vmatpush2.bf16.msra.mxu1 %v7373_v28  ;;  %2704 = vmatprep.subr.bf16.mxu0 %v7396_v35  ;;  %v15322_v28 = vmov 0  ;;  %v7438_v35 = vld [vmem:[#allocation8 + $0x74] ss:$8 sps:$4 sm:$0xff]  }
 0x174   : > { %6641 = vmatmul.mubr.msk.bf16.gmra.mxu1 %vm15308_vm10, %v14960_v4  ;;  %2513 = vmatprep.subr.bf16.mxu1 %v7384_v8  ;;  %v15325_v8 = vld [vmem:[#allocation81_spill] sm:$0xff]  ;;  %vm15333_vm10 = vcmp.eq.s32.totalorder %v8612_v46, %v8685_v12  ;;  %v15392_v46 = vld [vmem:[#allocation95_spill] sm:$0xff] }
 0x175   : > { %6705 = vmatmul.mubr.msk.bf16.gmra.mxu0 %vm9674_vm8, %v14960_v4  ;;  %6643 = vmatprep.mubr.msk.bf16.mxu1 %vm10346_vm1, %v14960_v4  ;;  %vm15316_vm8 = vnez %v15315_v30 }
 0x176   : > { %6707 = vmatprep.mubr.msk.bf16.mxu0 %vm15309_vm5, %v14960_v4  ;;  %2705 = vmatpush2.bf16.msra.mxu0 %v7394_v24  ;;  %vm15311_vm5 = vcmp.eq.s32.totalorder %v8533_v19, %v8685_v12  ;;  %v15329_v24 = vld [vmem:[#allocation61_spill] sm:$0xff] }
 0x177   : > { %2706 = vmatprep.subr.bf16.mxu0 %v7399_v52  ;;  %vm10378_vm1 = vmpackc.low %vm15311_vm5, %vm15310_vm14  ;;  %2514 = vmatpush2.bf16.msra.mxu1 %v7382_v37  ;;  %vm15318_vm5 = vnez %v15317_v47  ;;  %vm15319_vm14 = vcmp.eq.s32.totalorder %v8596_v40, %v8685_v12  ;;  %v15331_v52 = vld [vmem:[#allocation36_spill] sm:$0xff]  ;;  %v15334_v37 = vmov 0  ;;  %v15394_v40 = vld [vmem:[#allocation91_spill] sm:$0xff] }
 0x178   : > { %v15313_v7 = vsel %vm10378_vm1, 4294967295, %v15312_v7  ;;  %2515 = vmatprep.subr.bf16.mxu1 %v7393_v27  ;;  %v15337_v27 = vld [vmem:[#allocation84_spill] sm:$0xff] }
 0x179   : > { %15314 = vst [vmem:[#allocation101_spill] sm:$0xff] %v15313_v7 }
 0x17a   : > { %2707 = vmatpush2.bf16.msra.mxu0 %v7397_v18  ;;  %v15339_v18 = vld [vmem:[#allocation63_spill] sm:$0xff] }
 0x17b   : > { %2516 = vmatpush2.bf16.msra.mxu1 %v7391_v14  ;;  %2708 = vmatprep.subr.bf16.mxu0 %v7405_v61  ;;  %v15341_v14 = vld [vmem:[#allocation65_spill] sm:$0xff]  ;;  %v15345_v61 = vmov 0 }
 0x17c   : > { %6645 = vmatmul.mubr.msk.bf16.gmra.mxu1 %vm15316_vm8, %v14960_v4  ;;  %2517 = vmatprep.subr.bf16.mxu1 %v7402_v58  ;;  %vm15328_vm8 = vnez %v15327_v26  ;;  %v15348_v58 = vld [vmem:[#allocation86_spill] sm:$0xff] }
 0x17d   : > { %6709 = vmatmul.mubr.msk.bf16.gmra.mxu0 %vm9834_vm12, %v14960_v4  ;;  %6647 = vmatprep.mubr.msk.bf16.mxu1 %vm10378_vm1, %v14960_v4  ;;  %vm15321_vm1 = vcmp.eq.s32.totalorder %v15320_v31, %v8685_v12  ;;  %v7414_v31 = vld [vmem:[%s8494_s19 + $0x434] ss:$24 sps:$4 sm:$0xff]  }
 0x17e   : > { %6711 = vmatprep.mubr.msk.bf16.mxu0 %vm15318_vm5, %v14960_v4  ;;  %2709 = vmatpush2.bf16.msra.mxu0 %v7403_v43  ;;  %vm10409_vm12 = vmpackc.low %vm15321_vm1, %vm15319_vm14  ;;  %vm15326_vm5 = vnez %v15325_v8  ;;  %vm15330_vm1 = vnez %v15329_v24  ;;  %vm15332_vm14 = vcmp.eq.s32.totalorder %v15331_v52, %v8685_v12  ;;  %v15350_v43 = vld [vmem:[#allocation67_spill] sm:$0xff] }
 0x17f   : > { %2710 = vmatprep.subr.bf16.mxu0 %v7408_v16  ;;  %v15323_v28 = vsel %vm10409_vm12, 4294967295, %v15322_v28  ;;  %2518 = vmatpush2.bf16.msra.mxu1 %v7400_v38  ;;  %v15352_v16 = vld [vmem:[#allocation71_spill] sm:$0xff]  ;;  %v15356_v38 = vmov 0 }
 0x180   : > { %15324 = vst [vmem:[#allocation28_spill] sm:$0xff] %v15323_v28  ;;  %2873 = vmatprep.subr.bf16.mxu1 %v7411_v53  ;;  %v15361_v53 = vld [vmem:[#allocation75_spill] sm:$0xff] }
 0x181   : > { %v15383_v52 = vld [vmem:[#allocation87_spill] sm:$0xff] }
 0x182   : > { %2711 = vmatpush2.bf16.msra.mxu0 %v7406_v20  ;;  %v15359_v20 = vld [vmem:[#allocation89_spill] sm:$0xff] }
 0x183   : > { %4198 = vmatprep.subr.bf16.mxu0 %v7438_v35  ;;  %v15363_v35 = vld [vmem:[#allocation79_spill] sm:$0xff] }
 0x184   : > { %6649 = vmatmul.mubr.msk.bf16.gmra.mxu1 %vm15326_vm5, %v14960_v4  ;;  %vm10431_vm5 = vmpackc.low %vm15333_vm10, %vm15332_vm14  ;;  %vm15343_vm10 = vcmp.eq.s32.totalorder %v8621_v49, %v8685_v12  ;;  %vm15344_vm14 = vcmp.eq.s32.totalorder %v8624_v50, %v8685_v12  ;;  %v15372_v49 = vld [vmem:[#allocation83_spill] sm:$0xff]  ;;  %v15381_v50 = vld [vmem:[#allocation93_spill] sm:$0xff] }
 0x185   : > { %6713 = vmatmul.mubr.msk.bf16.gmra.mxu0 %vm15328_vm8, %v14960_v4  ;;  %6651 = vmatprep.mubr.msk.bf16.mxu1 %vm10409_vm12, %v14960_v4  ;;  %v15335_v37 = vsel %vm10431_vm5, 4294967295, %v15334_v37  ;;  %vm15338_vm8 = vnez %v15337_v27  ;;  %vm15340_vm12 = vnez %v15339_v18  ;;  %vm10453_vm13 = vmpackc.low %vm15344_vm14, %vm15343_vm10  ;;  %vm15354_vm10 = vcmp.eq.s32.totalorder %v8634_v54, %v8685_v12 }
 0x186   : > { %6715 = vmatprep.mubr.msk.bf16.mxu0 %vm15330_vm1, %v14960_v4  ;;  %15336 = vst [vmem:[#allocation59_spill] sm:$0xff] %v15335_v37  ;;  %vm15342_vm1 = vnez %v15341_v14  ;;  %v15346_v61 = vsel %vm10453_vm13, 4294967295, %v15345_v61  ;;  %vm15355_vm14 = vcmp.eq.s32.totalorder %v8637_v55, %v8685_v12  ;;  %v15367_v54 = vmov 0  ;;  %v15370_v55 = vld [vmem:[#allocation90_spill] sm:$0xff] }
 0x187   : > { %15347 = vst [vmem:[#allocation61_spill] sm:$0xff] %v15346_v61 }
 0x18c   : > { %6653 = vmatmul.mubr.msk.bf16.gmra.mxu1 %vm15338_vm8, %v14960_v4  ;;  %vm10475_vm8 = vmpackc.low %vm15355_vm14, %vm15354_vm10  ;;  %vm15365_vm10 = vcmp.eq.s32.totalorder %v8653_v62, %v8685_v12  ;;  %vm15366_vm14 = vcmp.eq.s32.totalorder %v8656_v63, %v8685_v12  ;;  %v15374_v62 = vld [vmem:[#allocation85_spill] sm:$0xff]  ;;  %v15378_v63 = vmov 0 }
 0x18d   : > { %6717 = vmatmul.mubr.msk.bf16.gmra.mxu0 %vm15340_vm12, %v14960_v4  ;;  %6655 = vmatprep.mubr.msk.bf16.mxu1 %vm10431_vm5, %v14960_v4  ;;  %vm15349_vm12 = vnez %v15348_v58  ;;  %vm15351_vm5 = vnez %v15350_v43  ;;  %v15357_v38 = vsel %vm10475_vm8, 4294967295, %v15356_v38 }
 0x18e   : > { %6719 = vmatprep.mubr.msk.bf16.mxu0 %vm15342_vm1, %v14960_v4  ;;  %vm15353_vm1 = vnez %v15352_v16  ;;  %15358 = vst [vmem:[#allocation63_spill] sm:$0xff] %v15357_v38 }
 0x194   : > { %6657 = vmatmul.mubr.msk.bf16.gmra.mxu1 %vm15349_vm12, %v14960_v4  ;;  %vm10497_vm12 = vmpackc.low %vm15366_vm14, %vm15365_vm10  ;;  %vm15376_vm10 = vcmp.eq.s32.totalorder %v8665_v2, %v8685_v12  ;;  %vm15377_vm14 = vcmp.eq.s32.totalorder %v8668_v3, %v8685_v12  ;;  %v15385_v2 = vld [vmem:[#allocation88_spill] sm:$0xff]  ;;  %v15389_v3 = vmov 0 }
 0x195   : > { %6721 = vmatmul.mubr.msk.bf16.gmra.mxu0 %vm15351_vm5, %v14960_v4  ;;  %6659 = vmatprep.mubr.msk.bf16.mxu1 %vm10453_vm13, %v14960_v4  ;;  %vm15360_vm5 = vnez %v15359_v20  ;;  %vm15362_vm13 = vnez %v15361_v53  ;;  %v15368_v54 = vsel %vm10497_vm12, 4294967295, %v15367_v54 }
 0x196   : > { %6723 = vmatprep.mubr.msk.bf16.mxu0 %vm15353_vm1, %v14960_v4  ;;  %vm15364_vm1 = vnez %v15363_v35  ;;  %15369 = vst [vmem:[#allocation65_spill] sm:$0xff] %v15368_v54 }
 0x19c   : > { %6661 = vmatmul.mubr.msk.bf16.gmra.mxu1 %vm15360_vm5, %v14960_v4 }
 0x19d   : > { %6725 = vmatmul.mubr.msk.bf16.gmra.mxu0 %vm15362_vm13, %v14960_v4  ;;  %6663 = vmatprep.mubr.msk.bf16.mxu1 %vm10475_vm8, %v14960_v4  ;;  %vm15371_vm13 = vnez %v15370_v55  ;;  %vm15373_vm8 = vnez %v15372_v49 }
 0x19e   : > { %6727 = vmatprep.mubr.msk.bf16.mxu0 %vm15364_vm1, %v14960_v4  ;;  %vm15375_vm1 = vnez %v15374_v62 }
 0x1a4   : > { %6665 = vmatmul.mubr.msk.bf16.gmra.mxu1 %vm15371_vm13, %v14960_v4  ;;  %vm10519_vm13 = vmpackc.low %vm15377_vm14, %vm15376_vm10  ;;  %vm15387_vm10 = vcmp.eq.s32.totalorder %v8679_v9, %v8685_v12  ;;  %vm15388_vm14 = vcmp.eq.s32.totalorder %v8682_v11, %v8685_v12  ;;  %v15396_v9 = vld [vmem:[#allocation92_spill] sm:$0xff]  ;;  %v15398_v12 = vld [vmem:[#allocation94_spill] sm:$0xff] }
 0x1a5   : > { %6729 = vmatmul.mubr.msk.bf16.gmra.mxu0 %vm15373_vm8, %v14960_v4  ;;  %6667 = vmatprep.mubr.msk.bf16.mxu1 %vm10497_vm12, %v14960_v4  ;;  %v15379_v63 = vsel %vm10519_vm13, 4294967295, %v15378_v63  ;;  %vm15382_vm8 = vnez %v15381_v50  ;;  %vm15384_vm12 = vnez %v15383_v52  ;;  %vm10541_vm5 = vmpackc.low %vm15388_vm14, %vm15387_vm10  ;;  %vm15399_vm10 = vnez %v15398_v12  ;;  %v7409_v11 = vld [vmem:[%s8494_s19 + $0x460] ss:$24 sps:$4 sm:$0xff]  }
 0x1a6   : > { %6731 = vmatprep.mubr.msk.bf16.mxu0 %vm15375_vm1, %v14960_v4  ;;  %15380 = vst [vmem:[#allocation67_spill] sm:$0xff] %v15379_v63  ;;  %vm15386_vm1 = vnez %v15385_v2  ;;  %v15390_v3 = vsel %vm10541_vm5, 4294967295, %v15389_v3  ;;  %vm15400_vm14 = vnez %v15200_v48 }
 0x1a7   : > { %15391 = vst [vmem:[#allocation71_spill] sm:$0xff] %v15390_v3  ;;  %v10571_v19 = vpop.f32.mrf.mxu0  ;;  %v10573_v5 = vpop.f32.mrf.mxu1 }
 0x1a8   : > { %15402 = vst [vmem:[#allocation75_spill] sm:$0xff] %v10571_v19  ;;  %15403 = vst [vmem:[#allocation79_spill] sm:$0xff] %v10573_v5  ;;  %v15406_v5 = vld [vmem:[#allocation60_spill] sm:$0xff] }
 0x1a9   : > { %v10585_v0 = vpop.f32.mrf.mxu0  ;;  %v10587_v1 = vpop.f32.mrf.mxu1 }
 0x1aa   : > { %15405 = vst [vmem:[#allocation83_spill] sm:$0xff] %v10587_v1  ;;  %v7447_v1 = vld [vmem:[#allocation8 + $0x54] ss:$8 sps:$4 sm:$0xff]  }
 0x1ab   : > { %v10595_v48 = vpop.f32.mrf.mxu1 }
 0x1ac   : > { %6669 = vmatmul.mubr.msk.bf16.gmra.mxu1 %vm15382_vm8, %v14960_v4  ;;  %15409 = vst [vmem:[#allocation87_spill] sm:$0xff] %v10595_v48  ;;  %v7418_v48 = vld [vmem:[%s8494_s19 + $0x3d0] ss:$24 sps:$4 sm:$0xff]  }
 0x1ad   : > { %6733 = vmatmul.mubr.msk.bf16.gmra.mxu0 %vm15384_vm12, %v14960_v4  ;;  %6671 = vmatprep.mubr.msk.bf16.mxu1 %vm10519_vm13, %v14960_v4  ;;  %vm15393_vm12 = vnez %v15392_v46  ;;  %vm15395_vm13 = vnez %v15394_v40  ;;  %v10599_v12 = vpop.f32.mrf.mxu1 }
 0x1ae   : > { %6735 = vmatprep.mubr.msk.bf16.mxu0 %vm15386_vm1, %v14960_v4  ;;  %vm15397_vm1 = vnez %v15396_v9  ;;  %15410 = vst [vmem:[#allocation88_spill] sm:$0xff] %v10599_v12 }
 0x1af   : > { %v10605_v19 = vpop.f32.mrf.mxu1 }
 0x1b0   : > { %15412 = vst [vmem:[#allocation60_spill] sm:$0xff] %v10605_v19 }
 0x1b1   : > { %v10621_v19 = vpop.f32.mrf.mxu1 }
 0x1b4   : > { %6673 = vmatmul.mubr.msk.bf16.gmra.mxu1 %vm15393_vm12, %v14960_v4 }
 0x1b5   : > { %6737 = vmatmul.mubr.msk.bf16.gmra.mxu0 %vm15395_vm13, %v14960_v4  ;;  %6675 = vmatprep.mubr.msk.bf16.mxu1 %vm10541_vm5, %v14960_v4  ;;  %vm15401_vm5 = vnez %v15209_v39  ;;  %v7412_v39 = vld [vmem:[%s8494_s19 + $0x430] ss:$24 sps:$4 sm:$0xff]  }
 0x1b6   : > { %6739 = vmatprep.mubr.msk.bf16.mxu0 %vm15397_vm1, %v14960_v4 }
 0x1bc   : > { %6677 = vmatmul.mubr.msk.bf16.gmra.mxu1 %vm9934_vm11, %v14960_v4 }
 0x1bd   : > { %6741 = vmatmul.mubr.msk.bf16.gmra.mxu0 %vm15399_vm10, %v14960_v4  ;;  %6743 = vmatprep.mubr.msk.bf16.mxu1 %vm15400_vm14, %v14960_v4 }
 0x1be   : > { %6807 = vmatprep.mubr.msk.bf16.mxu0 %vm15401_vm5, %v14960_v4  ;;  %vm15404_vm5 = vnez %v15221_v42 }
 0x1c4   : > { %6745 = vmatmul.mubr.msk.bf16.vlgmr.msra.gmra.mxu1 %vm9950_vm4, %v14960_v4  ;;  %vm15407_vm4 = vnez %v15406_v5  ;;  %v7420_v5 = vld [vmem:[%s8494_s19 + $0x3d4] ss:$24 sps:$4 sm:$0xff]  }
 0x1c5   : > { %6809 = vmatmul.mubr.msk.bf16.vlgmr.msra.gmra.mxu0 %vm8769_vm0, %v14960_v4  ;;  %2874 = vmatpush1.bf16.msra.mxu1 %v7409_v11  ;;  %v10593_v11 = vpop.f32.mrf.mxu0 }
 0x1c6   : > { %6747 = vmatprep.mubr.msk.bf16.mxu1 %vm15404_vm5, %v14960_v4  ;;  %6811 = vmatprep.mubr.msk.bf16.mxu0 %vm15407_vm4, %v14960_v4  ;;  %15408 = vst [vmem:[#allocation85_spill] sm:$0xff] %v10593_v11 }
 0x1c7   : > { %2875 = vmatprep.subr.bf16.mxu1 %v7414_v31  ;;  %4199 = vmatpush1.bf16.msra.mxu0 %v7436_v17  ;;  %v10597_v42 = vpop.f32.mrf.mxu0  ;;  %v7445_v31 = vld [vmem:[#allocation8 + $0x50] ss:$8 sps:$4 sm:$0xff]  }
 0x1c8   : > { %4200 = vmatprep.subr.bf16.mxu0 %v7441_v6  ;;  %v7423_v6 = vld [vmem:[%s8494_s19 + $0x3a4] ss:$24 sps:$4 sm:$0xff]  }
 0x1c9   : > { %2876 = vmatpush1.bf16.msra.mxu1 %v7412_v39  ;;  %v10603_v17 = vpop.f32.mrf.mxu0  ;;  %v7450_v39 = vld [vmem:[#allocation8 + $0x44] ss:$8 sps:$4 sm:$0xff]  }
 0x1ca   : > { %2877 = vmatprep.subr.bf16.mxu1 %v7417_v45  ;;  %15411 = vst [vmem:[#allocation91_spill] sm:$0xff] %v10603_v17  ;;  %v15415_v45 = vld [vmem:[#allocation99_spill] sm:$0xff]  ;;  %v7448_v17 = vld [vmem:[#allocation8 + $0x40] ss:$8 sps:$4 sm:$0xff]  }
 0x1cb   : > { %4201 = vmatpush1.bf16.msra.mxu0 %v7439_v59  ;;  %vm15416_vm0 = vnez %v15415_v45  ;;  %v15417_v59 = vld [vmem:[#allocation64_spill] sm:$0xff]  ;;  %v10619_v12 = vpop.f32.mrf.mxu0  ;;  %v10627_v45 = vpop.f32.mrf.mxu1 }
 0x1cc   : > { %6749 = vmatmul.mubr.msk.bf16.gmra.mxu1 %vm9063_vm15, %v14960_v4  ;;  %vm15418_vm4 = vnez %v15417_v59  ;;  %15419 = vst [vmem:[#allocation62_spill] sm:$0xff] %v10619_v12  ;;  %15420 = vst [vmem:[#allocation64_spill] sm:$0xff] %v10621_v19  ;;  %4202 = vmatprep.subr.bf16.mxu0 %v7447_v1  ;;  %v7421_v12 = vld [vmem:[%s8494_s19 + $0x3a0] ss:$24 sps:$4 sm:$0xff]   ;;  %v7426_v19 = vld [vmem:[%s8494_s19 + $0x374] ss:$24 sps:$4 sm:$0xff]  }
 0x1cd   : > { %6813 = vmatmul.mubr.msk.bf16.gmra.mxu0 %vm8894_vm7, %v14960_v4  ;;  %6751 = vmatprep.mubr.msk.bf16.mxu1 %vm15416_vm0, %v14960_v4  ;;  %v10625_v11 = vpop.f32.mrf.mxu0  ;;  %15421 = vst [vmem:[#allocation102_spill] sm:$0xff] %v10627_v45  ;;  %v10631_v9 = vpop.f32.mrf.mxu1  ;;  %v7454_v1 = vld [vmem:[#allocation8 + $0x30] ss:$8 sps:$4 sm:$0xff]  }
 0x1ce   : > { %6815 = vmatprep.mubr.msk.bf16.mxu0 %vm15418_vm4, %v14960_v4  ;;  %2878 = vmatpush1.bf16.msra.mxu1 %v7415_v15  ;;  %15422 = vst [vmem:[#allocation103_spill] sm:$0xff] %v10631_v9  ;;  %v7456_v15 = vld [vmem:[#allocation8 + $0x34] ss:$8 sps:$4 sm:$0xff]   ;;  %v7424_v45 = vld [vmem:[%s8494_s19 + $0x370] ss:$24 sps:$4 sm:$0xff]  }
 0x1cf   : > { %2879 = vmatprep.subr.bf16.mxu1 %v7420_v5  ;;  %4203 = vmatpush1.bf16.msra.mxu0 %v7445_v31  ;;  %v10629_v59 = vpop.f32.mrf.mxu0  ;;  %v10637_v31 = vpop.f32.mrf.mxu1  ;;  %v7457_v9 = vld [vmem:[#allocation8 + $0x20] ss:$8 sps:$4 sm:$0xff]  }
 0x1d0   : > { %4204 = vmatprep.subr.bf16.mxu0 %v7450_v39  ;;  %15424 = vst [vmem:[#allocation105_spill] sm:$0xff] %v10637_v31  ;;  %v15425_v39 = vld [vmem:[#allocation58_spill] sm:$0xff] }
 0x1d1   : > { %v10635_v5 = vpop.f32.mrf.mxu0  ;;  %vm15426_vm7 = vnez %v15425_v39  ;;  %v10653_v31 = vpop.f32.mrf.mxu1 }
 0x1d2   : > { %2880 = vmatpush1.bf16.msra.mxu1 %v7418_v48  ;;  %15423 = vst [vmem:[#allocation104_spill] sm:$0xff] %v10635_v5  ;;  %v7459_v48 = vld [vmem:[#allocation8 + $0x24] ss:$8 sps:$4 sm:$0xff]   ;;  %15430 = vst [vmem:[#allocation106_spill] sm:$0xff] %v10653_v31 }
 0x1d3   : > { %2881 = vmatprep.subr.bf16.mxu1 %v7423_v6  ;;  %4205 = vmatpush1.bf16.msra.mxu0 %v7448_v17  ;;  %v15427_v17 = vld [vmem:[#allocation69_spill] sm:$0xff]  ;;  %v10651_v6 = vpop.f32.mrf.mxu0  ;;  %v10659_v39 = vpop.f32.mrf.mxu1  ;;  %v7432_v31 = vld [vmem:[%s8494_s19 + $0x314] ss:$24 sps:$4 sm:$0xff]  }
 0x1d4   : > { %6753 = vmatmul.mubr.msk.bf16.gmra.mxu1 %vm9111_vm2, %v14960_v4  ;;  %vm15428_vm4 = vnez %v15427_v17  ;;  %15429 = vst [vmem:[#allocation69_spill] sm:$0xff] %v10651_v6  ;;  %4206 = vmatprep.subr.bf16.mxu0 %v7456_v15  ;;  %15431 = vst [vmem:[#allocation107_spill] sm:$0xff] %v10659_v39  ;;  %v7427_v6 = vld [vmem:[%s8494_s19 + $0x340] ss:$24 sps:$4 sm:$0xff]   ;;  %v7430_v39 = vld [vmem:[%s8494_s19 + $0x310] ss:$24 sps:$4 sm:$0xff]  }
 0x1d5   : > { %6817 = vmatmul.mubr.msk.bf16.gmra.mxu0 %vm15264_vm6, %v14960_v4  ;;  %6755 = vmatprep.mubr.msk.bf16.mxu1 %vm15426_vm7, %v14960_v4  ;;  %v10657_v32 = vpop.f32.mrf.mxu0  ;;  %v10663_v5 = vpop.f32.mrf.mxu1  ;;  %vm15435_vm6 = vnez %v15280_v36  ;;  %v7435_v36 = vld [vmem:[%s8494_s19 + $0x5e4] ss:$24 sps:$4 sm:$0xff]  }
 0x1d6   : > { %6819 = vmatprep.mubr.msk.bf16.mxu0 %vm15428_vm4, %v14960_v4  ;;  %2882 = vmatpush1.bf16.msra.mxu1 %v7421_v12  ;;  %15432 = vst [vmem:[#allocation108_spill] sm:$0xff] %v10663_v5  ;;  %v7465_v12 = vld [vmem:[#allocation8 + $0x14] ss:$8 sps:$4 sm:$0xff]   ;;  %v7466_v5 = vld [vmem:[#allocation8] ss:$8 sps:$4 sm:$0xff]  }
 0x1d7   : > { %2883 = vmatprep.subr.bf16.mxu1 %v7426_v19  ;;  %4207 = vmatpush1.bf16.msra.mxu0 %v7454_v1  ;;  %v10661_v17 = vpop.f32.mrf.mxu0  ;;  %v7463_v19 = vld [vmem:[#allocation8 + $0x10] ss:$8 sps:$4 sm:$0xff]   ;;  %v10669_v1 = vpop.f32.mrf.mxu1 }
 0x1d8   : > { %4208 = vmatprep.subr.bf16.mxu0 %v7459_v48  ;;  %15434 = vst [vmem:[#allocation110_spill] sm:$0xff] %v10669_v1  ;;  %v15436_v48 = vld [vmem:[#allocation100_spill] sm:$0xff] }
 0x1d9   : > { %v10667_v15 = vpop.f32.mrf.mxu0  ;;  %vm15437_vm4 = vnez %v15436_v48  ;;  %v10685_v1 = vpop.f32.mrf.mxu1 }
 0x1da   : > { %2884 = vmatpush1.bf16.msra.mxu1 %v7424_v45  ;;  %15433 = vst [vmem:[#allocation109_spill] sm:$0xff] %v10667_v15  ;;  %v7468_v45 = vld [vmem:[#allocation8 + $0x4] ss:$8 sps:$4 sm:$0xff]   ;;  %15441 = vst [vmem:[#allocation111_spill] sm:$0xff] %v10685_v1 }
 0x1db   : > { %2885 = vmatprep.subr.bf16.mxu1 %v7429_v21  ;;  %4209 = vmatpush1.bf16.msra.mxu0 %v7457_v9  ;;  %v15438_v9 = vld [vmem:[#allocation77_spill] sm:$0xff]  ;;  %v10683_v21 = vpop.f32.mrf.mxu0  ;;  %v10691_v48 = vpop.f32.mrf.mxu1  ;;  %v7444_v1 = vld [vmem:[%s8494_s19 + $0x5b4] ss:$24 sps:$4 sm:$0xff]  }
 0x1dc   : > { %6757 = vmatmul.mubr.msk.bf16.gmra.mxu1 %vm15279_vm9, %v14960_v4  ;;  %vm15439_vm7 = vnez %v15438_v9  ;;  %15440 = vst [vmem:[#allocation77_spill] sm:$0xff] %v10683_v21  ;;  %4210 = vmatprep.subr.bf16.mxu0 %v7465_v12  ;;  %15442 = vst [vmem:[#allocation112_spill] sm:$0xff] %v10691_v48  ;;  %v7433_v21 = vld [vmem:[%s8494_s19 + $0x5e0] ss:$24 sps:$4 sm:$0xff]  }
 0x1dd   : > { %6821 = vmatmul.mubr.msk.bf16.gmra.mxu0 %vm15435_vm6, %v14960_v4  ;;  %6759 = vmatprep.mubr.msk.bf16.mxu1 %vm15437_vm4, %v14960_v4  ;;  %v10689_v13 = vpop.f32.mrf.mxu0  ;;  %v10695_v15 = vpop.f32.mrf.mxu1  ;;  %vm15446_vm6 = vnez %v15274_v41  ;;  %vm15447_vm4 = vnez %v15094_v25 }
 0x1de   : > { %6823 = vmatprep.mubr.msk.bf16.mxu0 %vm15439_vm7, %v14960_v4  ;;  %2886 = vmatpush1.bf16.msra.mxu1 %v7427_v6  ;;  %15443 = vst [vmem:[#allocation113_spill] sm:$0xff] %v10695_v15  ;;  %v7474_v6 = vld [vmem:[#allocation8 + $0xf4] ss:$8 sps:$4 sm:$0xff]   ;;  %vm15445_vm7 = vnez %v15294_v51 }
 0x1df   : > { %2887 = vmatprep.subr.bf16.mxu1 %v7432_v31  ;;  %4211 = vmatpush1.bf16.msra.mxu0 %v7463_v19  ;;  %v10693_v9 = vpop.f32.mrf.mxu0  ;;  %v7472_v31 = vld [vmem:[#allocation8 + $0xf0] ss:$8 sps:$4 sm:$0xff]   ;;  %v10701_v19 = vpop.f32.mrf.mxu1  ;;  %v7453_v51 = vld [vmem:[%s8494_s19 + $0x584] ss:$24 sps:$4 sm:$0xff]  }
 0x1e0   : > { %4212 = vmatprep.subr.bf16.mxu0 %v7468_v45  ;;  %15444 = vst [vmem:[#allocation114_spill] sm:$0xff] %v10701_v19  ;;  %v7475_v19 = vld [vmem:[#allocation8 + $0xe0] ss:$8 sps:$4 sm:$0xff]  }
 0x1e1   : > { %v10699_v12 = vpop.f32.mrf.mxu0  ;;  %v10717_v45 = vpop.f32.mrf.mxu1 }
 0x1e2   : > { %2888 = vmatpush1.bf16.msra.mxu1 %v7430_v39  ;;  %v7477_v39 = vld [vmem:[#allocation8 + $0xe4] ss:$8 sps:$4 sm:$0xff]   ;;  %15448 = vst [vmem:[#allocation115_spill] sm:$0xff] %v10717_v45 }
 0x1e3   : > { %2889 = vmatprep.subr.bf16.mxu1 %v7435_v36  ;;  %4213 = vmatpush1.bf16.msra.mxu0 %v7466_v5  ;;  %v10715_v5 = vpop.f32.mrf.mxu0  ;;  %v7442_v36 = vld [vmem:[%s8494_s19 + $0x5b0] ss:$24 sps:$4 sm:$0xff]   ;;  %v10723_v15 = vpop.f32.mrf.mxu1  ;;  %v7462_v45 = vld [vmem:[%s8494_s19 + $0x554] ss:$24 sps:$4 sm:$0xff]  }
 0x1e4   : > { %6761 = vmatmul.mubr.msk.bf16.gmra.mxu1 %vm15293_vm3, %v14960_v4  ;;  %4214 = vmatprep.subr.bf16.mxu0 %v7474_v6  ;;  %15449 = vst [vmem:[#allocation116_spill] sm:$0xff] %v10723_v15  ;;  %vm15455_vm3 = vnez %v15121_v33 }
 0x1e5   : > { %6825 = vmatmul.mubr.msk.bf16.gmra.mxu0 %vm15445_vm7, %v14960_v4  ;;  %6763 = vmatprep.mubr.msk.bf16.mxu1 %vm15446_vm6, %v14960_v4  ;;  %v10721_v48 = vpop.f32.mrf.mxu0  ;;  %v10727_v41 = vpop.f32.mrf.mxu1  ;;  %vm15453_vm7 = vnez %v15106_v22  ;;  %vm15454_vm6 = vnez %v15290_v56  ;;  %v7471_v22 = vld [vmem:[%s8494_s19 + $0x524] ss:$24 sps:$4 sm:$0xff]  }
 0x1e6   : > { %6827 = vmatprep.mubr.msk.bf16.mxu0 %vm15447_vm4, %v14960_v4  ;;  %2890 = vmatpush2.bf16.msra.mxu1 %v7433_v21  ;;  %15450 = vst [vmem:[#allocation117_spill] sm:$0xff] %v10727_v41  ;;  %v7483_v21 = vld [vmem:[#allocation8 + $0xd4] ss:$8 sps:$4 sm:$0xff]   ;;  %vm15452_vm4 = vnez %v15298_v34  ;;  %v7469_v34 = vld [vmem:[%s8494_s19 + $0x520] ss:$24 sps:$4 sm:$0xff]  }
 0x1e7   : > { %2891 = vmatprep.subr.bf16.mxu1 %v7444_v1  ;;  %4215 = vmatpush2.bf16.msra.mxu0 %v7472_v31  ;;  %v10725_v25 = vpop.f32.mrf.mxu0  ;;  %v7481_v1 = vld [vmem:[#allocation8 + $0xd0] ss:$8 sps:$4 sm:$0xff]   ;;  %v10733_v31 = vpop.f32.mrf.mxu1 }
 0x1e8   : > { %4216 = vmatprep.subr.bf16.mxu0 %v7477_v39  ;;  %15451 = vst [vmem:[#allocation118_spill] sm:$0xff] %v10733_v31  ;;  %v7486_v39 = vld [vmem:[#allocation8 + $0xc4] ss:$8 sps:$4 sm:$0xff]   ;;  %v7484_v31 = vld [vmem:[#allocation8 + $0xc0] ss:$8 sps:$4 sm:$0xff]  }
 0x1e9   : > { %v10731_v6 = vpop.f32.mrf.mxu0 }
 0x1ea   : > { %2892 = vmatpush2.bf16.msra.mxu1 %v7442_v36  ;;  %v10749_v36 = vpop.f32.mrf.mxu1 }
 0x1eb   : > { %2893 = vmatprep.subr.bf16.mxu1 %v7453_v51  ;;  %4217 = vmatpush2.bf16.msra.mxu0 %v7475_v19  ;;  %v10747_v19 = vpop.f32.mrf.mxu0  ;;  %15456 = vst [vmem:[#allocation119_spill] sm:$0xff] %v10749_v36  ;;  %v7460_v51 = vld [vmem:[%s8494_s19 + $0x550] ss:$24 sps:$4 sm:$0xff]   ;;  %v7480_v36 = vld [vmem:[%s8494_s19 + $0x4f4] ss:$24 sps:$4 sm:$0xff]  }
 0x1ec   : > { %6765 = vmatmul.mubr.msk.bf16.gmra.mxu1 %vm15452_vm4, %v14960_v4  ;;  %4218 = vmatprep.subr.bf16.mxu0 %v7483_v21  ;;  %v10755_v41 = vpop.f32.mrf.mxu1  ;;  %vm15463_vm4 = vnez %v15162_v23 }
 0x1ed   : > { %6829 = vmatmul.mubr.msk.bf16.gmra.mxu0 %vm15453_vm7, %v14960_v4  ;;  %6767 = vmatprep.mubr.msk.bf16.mxu1 %vm15454_vm6, %v14960_v4  ;;  %v10753_v15 = vpop.f32.mrf.mxu0  ;;  %15457 = vst [vmem:[#allocation120_spill] sm:$0xff] %v10755_v41  ;;  %vm15461_vm7 = vnez %v15142_v10  ;;  %vm15462_vm6 = vnez %v15305_v60  ;;  %v7489_v10 = vld [vmem:[%s8494_s19 + $0x4c4] ss:$24 sps:$4 sm:$0xff]  }
 0x1ee   : > { %6831 = vmatprep.mubr.msk.bf16.mxu0 %vm15455_vm3, %v14960_v4  ;;  %2894 = vmatpush2.bf16.msra.mxu1 %v7451_v57  ;;  %v10759_v56 = vpop.f32.mrf.mxu1  ;;  %v7492_v57 = vld [vmem:[#allocation8 + $0xb4] ss:$8 sps:$4 sm:$0xff]   ;;  %vm15460_vm3 = vnez %v15307_v44  ;;  %v7487_v44 = vld [vmem:[%s8494_s19 + $0x4c0] ss:$24 sps:$4 sm:$0xff]  }
 0x1ef   : > { %2895 = vmatprep.subr.bf16.mxu1 %v7462_v45  ;;  %4219 = vmatpush2.bf16.msra.mxu0 %v7481_v1  ;;  %v10757_v33 = vpop.f32.mrf.mxu0  ;;  %15458 = vst [vmem:[#allocation121_spill] sm:$0xff] %v10759_v56  ;;  %v7490_v45 = vld [vmem:[#allocation8 + $0xb0] ss:$8 sps:$4 sm:$0xff]  }
 0x1f0   : > { %4220 = vmatprep.subr.bf16.mxu0 %v7486_v39  ;;  %v10765_v1 = vpop.f32.mrf.mxu1  ;;  %v7495_v39 = vld [vmem:[#allocation8 + $0xa4] ss:$8 sps:$4 sm:$0xff]  }
 0x1f1   : > { %v10763_v21 = vpop.f32.mrf.mxu0  ;;  %15459 = vst [vmem:[#allocation122_spill] sm:$0xff] %v10765_v1  ;;  %v7493_v1 = vld [vmem:[#allocation8 + $0xa0] ss:$8 sps:$4 sm:$0xff]  }
 0x1f2   : > { %2896 = vmatpush2.bf16.msra.mxu1 %v7460_v51  ;;  %v10781_v51 = vpop.f32.mrf.mxu1 }
 0x1f3   : > { %2897 = vmatprep.subr.bf16.mxu1 %v7471_v22  ;;  %4221 = vmatpush2.bf16.msra.mxu0 %v7484_v31  ;;  %v10779_v31 = vpop.f32.mrf.mxu0  ;;  %15464 = vst [vmem:[#allocation123_spill] sm:$0xff] %v10781_v51  ;;  %v7478_v22 = vld [vmem:[%s8494_s19 + $0x4f0] ss:$24 sps:$4 sm:$0xff]  }
 0x1f4   : > { %6769 = vmatmul.mubr.msk.bf16.gmra.mxu1 %vm15460_vm3, %v14960_v4  ;;  %4222 = vmatprep.subr.bf16.mxu0 %v7492_v57  ;;  %v10787_v56 = vpop.f32.mrf.mxu1  ;;  %v7498_v57 = vld [vmem:[%s8494_s19 + $0x494] ss:$24 sps:$4 sm:$0xff]   ;;  %vm15472_vm3 = vnez %v15317_v47 }
 0x1f5   : > { %6833 = vmatmul.mubr.msk.bf16.gmra.mxu0 %vm15461_vm7, %v14960_v4  ;;  %6771 = vmatprep.mubr.msk.bf16.mxu1 %vm15462_vm6, %v14960_v4  ;;  %v10785_v41 = vpop.f32.mrf.mxu0  ;;  %15465 = vst [vmem:[#allocation124_spill] sm:$0xff] %v10787_v56  ;;  %vm15470_vm7 = vnez %v15181_v29  ;;  %vm15471_vm6 = vnez %v15313_v7  ;;  %v7502_v29 = vld [vmem:[#allocation8 + $0x80] ss:$8 sps:$4 sm:$0xff]   ;;  %v7507_v47 = vld [vmem:[#allocation8 + $0x174] ss:$8 sps:$4 sm:$0xff]  }
 0x1f6   : > { %6835 = vmatprep.mubr.msk.bf16.mxu0 %vm15463_vm4, %v14960_v4  ;;  %2898 = vmatpush2.bf16.msra.mxu1 %v7469_v34  ;;  %v10791_v60 = vpop.f32.mrf.mxu1  ;;  %v7501_v34 = vld [vmem:[#allocation8 + $0x94] ss:$8 sps:$4 sm:$0xff]   ;;  %vm15469_vm4 = vnez %v15315_v30  ;;  %v15534_v30 = vld [vmem:[#allocation75_spill] sm:$0xff] }
 0x1f7   : > { %2899 = vmatprep.subr.bf16.mxu1 %v7480_v36  ;;  %4223 = vmatpush2.bf16.msra.mxu0 %v7490_v45  ;;  %v10789_v23 = vpop.f32.mrf.mxu0  ;;  %15466 = vst [vmem:[#allocation125_spill] sm:$0xff] %v10791_v60  ;;  %v7499_v36 = vld [vmem:[#allocation8 + $0x90] ss:$8 sps:$4 sm:$0xff]  }
 0x1f8   : > { %4224 = vmatprep.subr.bf16.mxu0 %v7495_v39  ;;  %v10797_v45 = vpop.f32.mrf.mxu1  ;;  %v7504_v39 = vld [vmem:[#allocation8 + $0x84] ss:$8 sps:$4 sm:$0xff]  }
 0x1f9   : > { %v10795_v51 = vpop.f32.mrf.mxu0  ;;  %15468 = vst [vmem:[#allocation127_spill] sm:$0xff] %v10797_v45 }
 0x1fa   : > { %2900 = vmatpush2.bf16.msra.mxu1 %v7478_v22  ;;  %15467 = vst [vmem:[#allocation126_spill] sm:$0xff] %v10795_v51 }
 0x1fb   : > { %2901 = vmatprep.subr.bf16.mxu1 %v7489_v10  ;;  %4225 = vmatpush2.bf16.msra.mxu0 %v7493_v1  ;;  %v10811_v1 = vpop.f32.mrf.mxu1  ;;  %v10813_v22 = vpop.f32.mrf.mxu0  ;;  %v7496_v10 = vld [vmem:[%s8494_s19 + $0x490] ss:$24 sps:$4 sm:$0xff]  }
 0x1fc   : > { %6773 = vmatmul.mubr.msk.bf16.gmra.mxu1 %vm15469_vm4, %v14960_v4  ;;  %15473 = vst [vmem:[#allocation128_spill] sm:$0xff] %v10811_v1  ;;  %4226 = vmatprep.subr.bf16.mxu0 %v7501_v34  ;;  %vm15480_vm4 = vnez %v15329_v24 }
 0x1fd   : > { %6837 = vmatmul.mubr.msk.bf16.gmra.mxu0 %vm15470_vm7, %v14960_v4  ;;  %6775 = vmatprep.mubr.msk.bf16.mxu1 %vm15471_vm6, %v14960_v4  ;;  %v10816_v45 = vpop.f32.mrf.mxu0  ;;  %v10818_v56 = vpop.f32.mrf.mxu1  ;;  %vm15478_vm7 = vnez %v15327_v26  ;;  %vm15479_vm6 = vnez %v15323_v28 }
 0x1fe   : > { %6839 = vmatprep.mubr.msk.bf16.mxu0 %vm15472_vm3, %v14960_v4  ;;  %2902 = vmatpush2.bf16.msra.mxu1 %v7487_v44  ;;  %15474 = vst [vmem:[#allocation129_spill] sm:$0xff] %v10818_v56  ;;  %vm15477_vm3 = vnez %v15325_v8 }
 0x1ff   : > { %2903 = vmatprep.subr.bf16.mxu1 %v7498_v57  ;;  %4227 = vmatpush2.bf16.msra.mxu0 %v7499_v36  ;;  %v10820_v60 = vpop.f32.mrf.mxu1  ;;  %v10822_v7 = vpop.f32.mrf.mxu0 }
 0x200   : > { %4228 = vmatprep.subr.bf16.mxu0 %v7504_v39  ;;  %15475 = vst [vmem:[#allocation130_spill] sm:$0xff] %v10820_v60 }
 0x201   : > { %v10824_v1 = vpop.f32.mrf.mxu1  ;;  %v10826_v44 = vpop.f32.mrf.mxu0 }
 0x202   : > { %2904 = vmatpush2.bf16.msra.mxu1 %v7496_v10  ;;  %15476 = vst [vmem:[#allocation131_spill] sm:$0xff] %v10826_v44 }
 0x203   : > { %4229 = vmatpush2.bf16.msra.mxu0 %v7502_v29  ;;  %v10840_v34 = vpop.f32.mrf.mxu1  ;;  %v10842_v57 = vpop.f32.mrf.mxu0  ;;  %4391 = vmatprep.subr.bf16.mxu1 %v7507_v47 }
 0x204   : > { %6777 = vmatmul.mubr.msk.bf16.gmra.mxu1 %vm15477_vm3, %v14960_v4  ;;  %15481 = vst [vmem:[#allocation132_spill] sm:$0xff] %v10842_v57  ;;  %vm15488_vm3 = vnez %v15341_v14  ;;  %v7519_v14 = vld [vmem:[#allocation8 + $0x274] ss:$8 sps:$4 sm:$0xff]  }
 0x205   : > { %6841 = vmatmul.mubr.msk.bf16.gmra.mxu0 %vm15478_vm7, %v14960_v4  ;;  %6779 = vmatprep.mubr.msk.bf16.mxu1 %vm15479_vm6, %v14960_v4  ;;  %v10844_v36 = vpop.f32.mrf.mxu1  ;;  %v10846_v39 = vpop.f32.mrf.mxu0  ;;  %vm15486_vm7 = vnez %v15339_v18  ;;  %vm15487_vm6 = vnez %v15335_v37 }
 0x206   : > { %6843 = vmatprep.mubr.msk.bf16.mxu0 %vm15480_vm4, %v14960_v4  ;;  %15482 = vst [vmem:[#allocation133_spill] sm:$0xff] %v10846_v39  ;;  %vm15485_vm4 = vnez %v15337_v27  ;;  %4584 = vmatprep.subr.bf16.mxu0 %v7519_v14 }
 0x207   : > { %v10848_v10 = vpop.f32.mrf.mxu1  ;;  %v10850_v26 = vpop.f32.mrf.mxu0 }
 0x208   : > { %15483 = vst [vmem:[#allocation134_spill] sm:$0xff] %v10850_v26 }
 0x209   : > { %v10852_v29 = vpop.f32.mrf.mxu1  ;;  %v10854_v44 = vpop.f32.mrf.mxu0 }
 0x20a   : > { %15484 = vst [vmem:[#allocation135_spill] sm:$0xff] %v10854_v44 }
 0x20b   : > { %v10868_v24 = vpop.f32.mrf.mxu1  ;;  %v10870_v47 = vpop.f32.mrf.mxu0 }
 0x20c   : > { %6781 = vmatmul.mubr.msk.bf16.gmra.mxu1 %vm15485_vm4, %v14960_v4  ;;  %15489 = vst [vmem:[#allocation136_spill] sm:$0xff] %v10870_v47  ;;  %vm15496_vm4 = vnez %v15352_v16 }
 0x20d   : > { %6845 = vmatmul.mubr.msk.bf16.gmra.mxu0 %vm15486_vm7, %v14960_v4  ;;  %6783 = vmatprep.mubr.msk.bf16.mxu1 %vm15487_vm6, %v14960_v4  ;;  %v10872_v44 = vpop.f32.mrf.mxu1  ;;  %v10874_v39 = vpop.f32.mrf.mxu0  ;;  %vm15493_vm7 = vnez %v15348_v58  ;;  %vm15495_vm6 = vnez %v15346_v61 }
 0x20e   : > { %6847 = vmatprep.mubr.msk.bf16.mxu0 %vm15488_vm3, %v14960_v4  ;;  %15490 = vst [vmem:[#allocation137_spill] sm:$0xff] %v10874_v39  ;;  %vm15494_vm3 = vnez %v15350_v43  ;;  %v3070_v61 = vpop.xlane.xlu0 %3069 }
 0x20f   : > { %v10876_v57 = vpop.f32.mrf.mxu1  ;;  %v10878_v18 = vpop.f32.mrf.mxu0 }
 0x210   : > { %15491 = vst [vmem:[#allocation138_spill] sm:$0xff] %v10878_v18 }
 0x211   : > { %v10880_v26 = vpop.f32.mrf.mxu1 }
 0x213   : > { %v10896_v39 = vpop.f32.mrf.mxu1 }
 0x214   : > { %6785 = vmatmul.mubr.msk.bf16.gmra.mxu1 %vm15493_vm7, %v14960_v4  ;;  %vm15504_vm7 = vnez %v15363_v35 }
 0x215   : > { %v10882_v56 = vpop.f32.mrf.mxu0  ;;  %6849 = vmatmul.mubr.msk.bf16.gmra.mxu0 %vm15494_vm3, %v14960_v4  ;;  %6787 = vmatprep.mubr.msk.bf16.mxu1 %vm15495_vm6, %v14960_v4  ;;  %v10900_v47 = vpop.f32.mrf.mxu1  ;;  %vm15502_vm3 = vnez %v15361_v53  ;;  %vm15503_vm6 = vnez %v15357_v38 }
 0x216   : > { %15492 = vst [vmem:[#allocation139_spill] sm:$0xff] %v10882_v56  ;;  %6851 = vmatprep.mubr.msk.bf16.mxu0 %vm15496_vm4, %v14960_v4  ;;  %vm15501_vm4 = vnez %v15359_v20  ;;  %v3080_v20 = vpop.xlane.xlu1 %3079 }
 0x217   : > { %v10898_v56 = vpop.f32.mrf.mxu0  ;;  %v10904_v43 = vpop.f32.mrf.mxu1 }
 0x218   : > { %15497 = vst [vmem:[#allocation140_spill] sm:$0xff] %v10898_v56  ;;  %v3075_v56 = vpop.xlane.xlu0 %3074 }
 0x219   : > { %v10902_v18 = vpop.f32.mrf.mxu0  ;;  %v3227_v35 = vmax.f32 %v3075_v56, 1.0 }
 0x21a   : > { %15498 = vst [vmem:[#allocation141_spill] sm:$0xff] %v10902_v18 }
 0x21b   : > { %v10906_v60 = vpop.f32.mrf.mxu0  ;;  %7601 = vrcp.f32 %v3227_v35 }
 0x21c   : > { %15499 = vst [vmem:[#allocation142_spill] sm:$0xff] %v10906_v60  ;;  %v10908_v58 = vpop.f32.mrf.mxu1  ;;  %6789 = vmatmul.mubr.msk.bf16.gmra.mxu1 %vm15501_vm4, %v14960_v4  ;;  %vm15512_vm4 = vnez %v15374_v62 }
 0x21d   : > { %v10910_v37 = vpop.f32.mrf.mxu0  ;;  %6853 = vmatmul.mubr.msk.bf16.gmra.mxu0 %vm15502_vm3, %v14960_v4  ;;  %6791 = vmatprep.mubr.msk.bf16.mxu1 %vm15503_vm6, %v14960_v4  ;;  %vm15510_vm3 = vnez %v15372_v49  ;;  %vm15511_vm6 = vnez %v15368_v54  ;;  %v3085_v49 = vpop.xlane.xlu1 %3084 }
 0x21e   : > { %15500 = vst [vmem:[#allocation143_spill] sm:$0xff] %v10910_v37  ;;  %6855 = vmatprep.mubr.msk.bf16.mxu0 %vm15504_vm7, %v14960_v4  ;;  %v10924_v16 = vpop.f32.mrf.mxu1  ;;  %vm15509_vm7 = vnez %v15370_v55 }
 0x21f   : > { %v10926_v14 = vpop.f32.mrf.mxu0 }
 0x220   : > { %15505 = vst [vmem:[#allocation144_spill] sm:$0xff] %v10926_v14  ;;  %v10928_v37 = vpop.f32.mrf.mxu1  ;;  %v3226_v14 = vmax.f32 %v3070_v61, 1.0  ;;  %v3229_v61 = vmax.f32 %v3085_v49, 1.0 }
 0x221   : > { %v10930_v18 = vpop.f32.mrf.mxu0 }
 0x222   : > { %15506 = vst [vmem:[#allocation145_spill] sm:$0xff] %v10930_v18  ;;  %v10932_v60 = vpop.f32.mrf.mxu1  ;;  %7603 = vrcp.f32 %v3226_v14 }
 0x223   : > { %v10934_v53 = vpop.f32.mrf.mxu0  ;;  %7605 = vrcp.f32 %v3229_v61 }
 0x224   : > { %15507 = vst [vmem:[#allocation146_spill] sm:$0xff] %v10934_v53  ;;  %v10936_v38 = vpop.f32.mrf.mxu1  ;;  %6793 = vmatmul.mubr.msk.bf16.gmra.mxu1 %vm15509_vm7, %v14960_v4 }
 0x225   : > { %v10938_v27 = vpop.f32.mrf.mxu0  ;;  %6857 = vmatmul.mubr.msk.bf16.gmra.mxu0 %vm15510_vm3, %v14960_v4  ;;  %6795 = vmatprep.mubr.msk.bf16.mxu1 %vm15511_vm6, %v14960_v4  ;;  %vm15518_vm3 = vnez %v15379_v63  ;;  %vm15519_vm6 = vnez %v15385_v2  ;;  %v3090_v63 = vpop.xlane.xlu0 %3089  ;;  %v2142_v2 = vadd.f32 %v10848_v10, %v10597_v42 }
 0x226   : > { %15508 = vst [vmem:[#allocation147_spill] sm:$0xff] %v10938_v27  ;;  %6859 = vmatprep.mubr.msk.bf16.mxu0 %vm15512_vm4, %v14960_v4  ;;  %v10952_v18 = vpop.f32.mrf.mxu1  ;;  %vm15517_vm4 = vnez %v15383_v52  ;;  %v3095_v52 = vpop.xlane.xlu1 %3094  ;;  %v3230_v40 = vmax.f32 %v3090_v63, 1.0 }
 0x227   : > { %v10954_v27 = vpop.f32.mrf.mxu0 }
 0x228   : > { %15513 = vst [vmem:[#allocation148_spill] sm:$0xff] %v10954_v27  ;;  %v10956_v53 = vpop.f32.mrf.mxu1  ;;  %v11012_v10 = vpop.eup %7601 }
 0x229   : > { %v10958_v55 = vpop.f32.mrf.mxu0  ;;  %15526 = vst [vmem:[#allocation92_spill] sm:$0xff] %v11012_v10 }
 0x22a   : > { %15514 = vst [vmem:[#allocation149_spill] sm:$0xff] %v10958_v55  ;;  %v10960_v56 = vpop.f32.mrf.mxu1  ;;  %v3105_v42 = vpop.xlane.xlu1 %3104 }
 0x22b   : > { %v10962_v28 = vpop.f32.mrf.mxu0 }
 0x22c   : > { %15515 = vst [vmem:[#allocation150_spill] sm:$0xff] %v10962_v28  ;;  %v10964_v54 = vpop.f32.mrf.mxu1  ;;  %6797 = vmatmul.mubr.msk.bf16.gmra.mxu1 %vm15382_vm8, %v14960_v4 }
 0x22d   : > { %v10966_v62 = vpop.f32.mrf.mxu0  ;;  %6861 = vmatmul.mubr.msk.bf16.gmra.mxu0 %vm15517_vm4, %v14960_v4  ;;  %6799 = vmatprep.mubr.msk.bf16.mxu1 %vm15518_vm3, %v14960_v4 }
 0x22e   : > { %15516 = vst [vmem:[#allocation151_spill] sm:$0xff] %v10966_v62  ;;  %6863 = vmatprep.mubr.msk.bf16.mxu0 %vm15519_vm6, %v14960_v4  ;;  %v10980_v14 = vpop.f32.mrf.mxu1  ;;  %v3228_v62 = vmax.f32 %v3080_v20, 1.0  ;;  %v2138_v20 = vadd.f32 %v10840_v34, %v10585_v0  ;;  %vm15524_vm6 = vnez %v15390_v3 }
 0x22f   : > { %v10982_v35 = vpop.f32.mrf.mxu0  ;;  %v11021_v0 = vpop.eup %7603 }
 0x230   : > { %15520 = vst [vmem:[#allocation152_spill] sm:$0xff] %v10982_v35  ;;  %v10984_v55 = vpop.f32.mrf.mxu1  ;;  %7607 = vrcp.f32 %v3228_v62  ;;  %v3231_v62 = vmax.f32 %v3095_v52, 1.0  ;;  %15529 = vst [vmem:[#allocation158_spill] sm:$0xff] %v11021_v0  ;;  %v11028_v35 = vmul.f32 %v11021_v0, %v2138_v20  ;;  %v2136_v20 = vadd.f32 %v10824_v1, %v15534_v30  ;;  %v11057_v30 = vpop.eup %7605 }
 0x231   : > { %v10986_v27 = vpop.f32.mrf.mxu0  ;;  %15541 = vst [vmem:[#allocation94_spill] sm:$0xff] %v11057_v30 }
 0x232   : > { %15521 = vst [vmem:[#allocation153_spill] sm:$0xff] %v10986_v27  ;;  %v10988_v49 = vpop.f32.mrf.mxu1  ;;  %v11019_v27 = vmul.f32 %v11012_v10, %v2142_v2  ;;  %15531 = vst [vmem:[#allocation160_spill] sm:$0xff] %v11028_v35  ;;  %7609 = vrcp.f32 %v3231_v62  ;;  %v3100_v2 = vpop.xlane.xlu0 %3099 }
 0x233   : > { %v10990_v28 = vpop.f32.mrf.mxu0  ;;  %7611 = vrcp.f32 %v3230_v40  ;;  %v15539_v40 = vld [vmem:[#allocation62_spill] sm:$0xff] }
 0x234   : > { %15522 = vst [vmem:[#allocation154_spill] sm:$0xff] %v10990_v28  ;;  %v10994_v50 = vpop.f32.mrf.mxu1  ;;  %6801 = vmatmul.mubr.msk.bf16.gmra.mxu1 %vm15393_vm12, %v14960_v4  ;;  %15528 = vst [vmem:[#allocation157_spill] sm:$0xff] %v11019_v27  ;;  %v15532_v28 = vld [vmem:[#allocation85_spill] sm:$0xff] }
 0x235   : > { %v10996_v8 = vpop.f32.mrf.mxu0  ;;  %6865 = vmatmul.mubr.msk.bf16.gmra.mxu0 %vm15395_vm13, %v14960_v4  ;;  %6803 = vmatprep.mubr.msk.bf16.mxu1 %vm15524_vm6, %v14960_v4  ;;  %v2140_v3 = vadd.f32 %v10844_v36, %v15532_v28  ;;  %v3232_v36 = vmax.f32 %v3100_v2, 1.0 }
 0x236   : > { %15523 = vst [vmem:[#allocation155_spill] sm:$0xff] %v10996_v8  ;;  %6867 = vmatprep.mubr.msk.bf16.mxu0 %vm15397_vm1, %v14960_v4  ;;  %v11014_v61 = vpop.f32.mrf.mxu1 }
 0x237   : > { %v11016_v8 = vpop.f32.mrf.mxu0  ;;  %v11060_v1 = vmul.f32 %v11012_v10, %v2140_v3  ;;  %v3110_v10 = vpop.xlane.xlu0 %3109 }
 0x238   : > { %15527 = vst [vmem:[#allocation156_spill] sm:$0xff] %v11016_v8  ;;  %v11023_v34 = vpop.f32.mrf.mxu1  ;;  %v2152_v8 = vadd.f32 %v10876_v57, %v10629_v59  ;;  %v2148_v59 = vadd.f32 %v10868_v24, %v15539_v40  ;;  %v3233_v57 = vmax.f32 %v3105_v42, 1.0  ;;  %v3115_v40 = vpop.xlane.xlu1 %3114 }
 0x239   : > { %v11025_v52 = vpop.f32.mrf.mxu0  ;;  %15542 = vst [vmem:[#allocation62_spill] sm:$0xff] %v11060_v1 }
 0x23a   : > { %15530 = vst [vmem:[#allocation159_spill] sm:$0xff] %v11025_v52  ;;  %v11032_v46 = vpop.f32.mrf.mxu1  ;;  %v3515_v52 = vpack.c.bf16 %v11019_v27, %v11028_v35  ;;  %7613 = vrcp.f32 %v3233_v57 }
 0x23b   : > { %v11034_v63 = vpop.f32.mrf.mxu0  ;;  %7615 = vrcp.f32 %v3232_v36  ;;  %v15554_v36 = vld [vmem:[#allocation69_spill] sm:$0xff] }
 0x23c   : > { %15533 = vst [vmem:[#allocation85_spill] sm:$0xff] %v11034_v63  ;;  %v11042_v62 = vpop.f32.mrf.mxu1  ;;  %6805 = vmatmul.mubr.msk.bf16.gmra.mxu1 %vm9934_vm11, %v14960_v4  ;;  %v11067_v63 = vmul.f32 %v11057_v30, %v2152_v8  ;;  %v2150_v8 = vadd.f32 %v10872_v44, %v10625_v11 }
 0x23d   : > { %15535 = vst [vmem:[#allocation75_spill] sm:$0xff] %v11042_v62  ;;  %v11044_v51 = vpop.f32.mrf.mxu0  ;;  %6869 = vmatmul.mubr.msk.bf16.gmra.mxu0 %vm15399_vm10, %v14960_v4  ;;  %6871 = vmatprep.mubr.msk.bf16.mxu1 %vm15400_vm14, %v14960_v4  ;;  %v11069_v24 = vpop.eup %7607  ;;  %v7528_v62 = vld [vmem:[#allocation8 + $0x264] ss:$8 sps:$4 sm:$0xff]  }
 0x23e   : > { %15536 = vst [vmem:[#allocation161_spill] sm:$0xff] %v11044_v51  ;;  %4230 = vmatprep.mubr.bf16.mxu0 %v3515_v52  ;;  %v11062_v27 = vpop.f32.mrf.mxu1  ;;  %15544 = vst [vmem:[#allocation162_spill] sm:$0xff] %v11067_v63  ;;  %v11072_v52 = vmul.f32 %v11021_v0, %v2136_v20  ;;  %v11079_v3 = vmul.f32 %v11069_v24, %v2148_v59  ;;  %v7505_v20 = vld [vmem:[#allocation8 + $0x170] ss:$8 sps:$4 sm:$0xff]   ;;  %v2162_v59 = vadd.f32 %v10904_v43, %v10661_v17 }
 0x23f   : > { %v11064_v51 = vpop.f32.mrf.mxu0  ;;  %15545 = vst [vmem:[#allocation163_spill] sm:$0xff] %v11069_v24  ;;  %v7517_v0 = vld [vmem:[#allocation8 + $0x270] ss:$8 sps:$4 sm:$0xff]   ;;  %v2158_v17 = vadd.f32 %v10896_v39, %v15554_v36  ;;  %v3235_v43 = vmax.f32 %v3115_v40, 1.0  ;;  %v3234_v39 = vmax.f32 %v3110_v10, 1.0  ;;  %v3125_v10 = vpop.xlane.xlu1 %3124 }
 0x240   : > { %15543 = vst [vmem:[#allocation96_spill] sm:$0xff] %v11064_v51  ;;  %15546 = vst [vmem:[#allocation164_spill] sm:$0xff] %v11072_v52  ;;  %v11074_v35 = vpop.f32.mrf.mxu1  ;;  %v3514_v2 = vpack.c.bf16 %v11060_v1, %v11072_v52  ;;  %v3521_v57 = vpack.c.bf16 %v11067_v63, %v11079_v3  ;;  %v15550_v52 = vld [vmem:[#allocation91_spill] sm:$0xff]  ;;  %v11107_v63 = vpop.eup %7609 }
 0x241   : > { %v11076_v42 = vpop.f32.mrf.mxu0  ;;  %15548 = vst [vmem:[#allocation166_spill] sm:$0xff] %v11079_v3  ;;  %v2146_v1 = vadd.f32 %v10852_v29, %v15550_v52  ;;  %v11110_v29 = vmul.f32 %v11057_v30, %v2150_v8  ;;  %v11117_v40 = vmul.f32 %v11107_v63, %v2162_v59  ;;  %v7513_v3 = vld [vmem:[#allocation8 + $0x154] ss:$8 sps:$4 sm:$0xff]   ;;  %v11119_v36 = vpop.eup %7611  ;;  %7617 = vrcp.f32 %v3235_v43 }
 0x242   : > { %15547 = vst [vmem:[#allocation165_spill] sm:$0xff] %v11076_v42  ;;  %v11085_v51 = vpop.f32.mrf.mxu1  ;;  %v7510_v42 = vld [vmem:[#allocation8 + $0x164] ss:$8 sps:$4 sm:$0xff]   ;;  %7619 = vrcp.f32 %v3234_v39  ;;  %v3237_v39 = vmax.f32 %v3125_v10, 1.0 }
 0x243   : > { %v11087_v28 = vpop.f32.mrf.mxu0  ;;  %15558 = vst [vmem:[#allocation98_spill] sm:$0xff] %v11117_v40  ;;  %v11122_v8 = vmul.f32 %v11069_v24, %v2146_v1  ;;  %v7511_v1 = vld [vmem:[#allocation8 + $0x150] ss:$8 sps:$4 sm:$0xff]  }
 0x244   : > { %15549 = vst [vmem:[#allocation167_spill] sm:$0xff] %v11087_v28  ;;  %v11095_v11 = vpop.f32.mrf.mxu1  ;;  %v15552_v28 = vld [vmem:[#allocation27_spill] sm:$0xff]  ;;  %7621 = vrcp.f32 %v3237_v39 }
 0x245   : > { %v11097_v44 = vpop.f32.mrf.mxu0  ;;  %vm15553_vm13 = vnez %v15552_v28  ;;  %4231 = vmatmul.mubr.bf16.vlgmr.msra.gmra.mxu0 %v3514_v2  ;;  %15556 = vst [vmem:[#allocation27_spill] sm:$0xff] %v11110_v29  ;;  %v7508_v28 = vld [vmem:[#allocation8 + $0x160] ss:$8 sps:$4 sm:$0xff]   ;;  %15559 = vst [vmem:[#allocation168_spill] sm:$0xff] %v11122_v8  ;;  %v7535_v24 = vld [vmem:[#allocation8 + $0x250] ss:$8 sps:$4 sm:$0xff]  }
 0x246   : > { %15551 = vst [vmem:[#allocation91_spill] sm:$0xff] %v11097_v44  ;;  %6873 = vmatmul.mubr.msk.bf16.vlgmr.msra.gmra.mxu1 %vm15553_vm13, %v14960_v4  ;;  %4240 = vmatprep.mubr.bf16.mxu0 %v3521_v57  ;;  %v11112_v52 = vpop.f32.mrf.mxu1  ;;  %v7526_v2 = vld [vmem:[#allocation8 + $0x260] ss:$8 sps:$4 sm:$0xff]   ;;  %v7537_v57 = vld [vmem:[#allocation8 + $0x254] ss:$8 sps:$4 sm:$0xff]  }
 0x247   : > { %6875 = vmatprep.mubr.msk.bf16.mxu1 %vm15404_vm5, %v14960_v4  ;;  %v11114_v44 = vpop.f32.mrf.mxu0  ;;  %4392 = vmatpush1.bf16.msra.mxu1 %v7505_v20 }
 0x248   : > { %15557 = vst [vmem:[#allocation69_spill] sm:$0xff] %v11114_v44  ;;  %4585 = vmatpush1.bf16.msra.mxu0 %v7517_v0  ;;  %4393 = vmatprep.subr.bf16.mxu1 %v7510_v42  ;;  %v11124_v30 = vpop.f32.mrf.mxu1  ;;  %v11129_v0 = vmul.f32 %v11119_v36, %v2158_v17  ;;  %v3520_v42 = vpack.c.bf16 %v11110_v29, %v11122_v8  ;;  %v7516_v8 = vld [vmem:[#allocation8 + $0x144] ss:$8 sps:$4 sm:$0xff]  }
 0x249   : > { %4586 = vmatprep.subr.bf16.mxu0 %v7528_v62  ;;  %v11126_v44 = vpop.f32.mrf.mxu0  ;;  %v2160_v62 = vadd.f32 %v10900_v47, %v10657_v32  ;;  %v2172_v17 = vadd.f32 %v10932_v60, %v10693_v9  ;;  %v7546_v32 = vld [vmem:[#allocation8 + $0x244] ss:$8 sps:$4 sm:$0xff]   ;;  %v15563_v47 = vld [vmem:[#allocation104_spill] sm:$0xff]  ;;  %v15566_v60 = vld [vmem:[#allocation77_spill] sm:$0xff] }
 0x24a   : > { %15560 = vst [vmem:[#allocation169_spill] sm:$0xff] %v11126_v44  ;;  %15561 = vst [vmem:[#allocation170_spill] sm:$0xff] %v11129_v0  ;;  %v11135_v20 = vpop.f32.mrf.mxu1  ;;  %v3120_v44 = vpop.xlane.xlu0 %3119  ;;  %v3527_v43 = vpack.c.bf16 %v11117_v40, %v11129_v0  ;;  %v2156_v29 = vadd.f32 %v10880_v26, %v15563_v47  ;;  %v2168_v9 = vadd.f32 %v10924_v16, %v15566_v60  ;;  %v7555_v60 = vld [vmem:[#allocation8 + $0x234] ss:$8 sps:$4 sm:$0xff]  }
 0x24b   : > { %v11137_v59 = vpop.f32.mrf.mxu0  ;;  %4394 = vmatpush1.bf16.msra.mxu1 %v7508_v28  ;;  %v11160_v26 = vmul.f32 %v11107_v63, %v2160_v62  ;;  %v3236_v16 = vmax.f32 %v3120_v44, 1.0  ;;  %v3135_v44 = vpop.xlane.xlu1 %3134 }
 0x24c   : > { %15562 = vst [vmem:[#allocation171_spill] sm:$0xff] %v11137_v59  ;;  %4587 = vmatpush1.bf16.msra.mxu0 %v7526_v2  ;;  %4395 = vmatprep.subr.bf16.mxu1 %v7513_v3  ;;  %v11145_v59 = vpop.f32.mrf.mxu1  ;;  %v7544_v2 = vld [vmem:[#allocation8 + $0x240] ss:$8 sps:$4 sm:$0xff]   ;;  %v11172_v62 = vmul.f32 %v11119_v36, %v2156_v29  ;;  %v7520_v29 = vld [vmem:[#allocation8 + $0x130] ss:$8 sps:$4 sm:$0xff]  }
 0x24d   : > { %4588 = vmatprep.subr.bf16.mxu0 %v7537_v57  ;;  %v11147_v28 = vpop.f32.mrf.mxu0  ;;  %4241 = vmatmul.mubr.bf16.gmra.mxu0 %v3520_v42  ;;  %v11157_v57 = vpop.eup %7613  ;;  %15568 = vst [vmem:[#allocation68_spill] sm:$0xff] %v11160_v26  ;;  %v7514_v42 = vld [vmem:[#allocation8 + $0x140] ss:$8 sps:$4 sm:$0xff]   ;;  %7623 = vrcp.f32 %v3236_v16 }
 0x24e   : > { %15564 = vst [vmem:[#allocation104_spill] sm:$0xff] %v11147_v28  ;;  %6877 = vmatmul.mubr.msk.bf16.gmra.mxu1 %vm9063_vm15, %v14960_v4  ;;  %4250 = vmatprep.mubr.bf16.mxu0 %v3527_v43  ;;  %v11162_v47 = vpop.f32.mrf.mxu1  ;;  %v11167_v10 = vmul.f32 %v11157_v57, %v2172_v17  ;;  %v7522_v43 = vld [vmem:[#allocation8 + $0x134] ss:$8 sps:$4 sm:$0xff]   ;;  %v11169_v3 = vpop.eup %7615  ;;  %15571 = vst [vmem:[#allocation172_spill] sm:$0xff] %v11172_v62  ;;  %v15578_v16 = vld [vmem:[#allocation58_spill] sm:$0xff] }
 0x24f   : > { %6879 = vmatprep.mubr.msk.bf16.mxu1 %vm15416_vm0, %v14960_v4  ;;  %v11164_v0 = vpop.f32.mrf.mxu0  ;;  %4396 = vmatpush1.bf16.msra.mxu1 %v7511_v1  ;;  %v2170_v1 = vadd.f32 %v10928_v37, %v10689_v13  ;;  %v7564_v13 = vld [vmem:[#allocation8 + $0x224] ss:$8 sps:$4 sm:$0xff]   ;;  %v15575_v37 = vld [vmem:[#allocation109_spill] sm:$0xff]  ;;  %vm15579_vm15 = vnez %v15578_v16 }
 0x250   : > { %15569 = vst [vmem:[#allocation77_spill] sm:$0xff] %v11164_v0  ;;  %4589 = vmatpush1.bf16.msra.mxu0 %v7535_v24  ;;  %15570 = vst [vmem:[#allocation99_spill] sm:$0xff] %v11167_v10  ;;  %4397 = vmatprep.subr.bf16.mxu1 %v7516_v8  ;;  %v11174_v40 = vpop.f32.mrf.mxu1  ;;  %v11179_v24 = vmul.f32 %v11169_v3, %v2168_v9  ;;  %v3526_v8 = vpack.c.bf16 %v11160_v26, %v11172_v62  ;;  %v7553_v0 = vld [vmem:[#allocation8 + $0x230] ss:$8 sps:$4 sm:$0xff]   ;;  %v7525_v62 = vld [vmem:[#allocation8 + $0x124] ss:$8 sps:$4 sm:$0xff]  }
 0x251   : > { %4590 = vmatprep.subr.bf16.mxu0 %v7546_v32  ;;  %v11176_v28 = vpop.f32.mrf.mxu0  ;;  %v2182_v9 = vadd.f32 %v10960_v56, %v10725_v25  ;;  %v2166_v26 = vadd.f32 %v10908_v58, %v15575_v37  ;;  %v2178_v25 = vadd.f32 %v10952_v18, %v10715_v5  ;;  %v3239_v56 = vmax.f32 %v3135_v44, 1.0  ;;  %v7531_v44 = vld [vmem:[#allocation8 + $0x114] ss:$8 sps:$4 sm:$0xff]  }
 0x252   : > { %15572 = vst [vmem:[#allocation173_spill] sm:$0xff] %v11176_v28  ;;  %15573 = vst [vmem:[#allocation174_spill] sm:$0xff] %v11179_v24  ;;  %v11185_v17 = vpop.f32.mrf.mxu1  ;;  %v3130_v28 = vpop.xlane.xlu0 %3129  ;;  %v3533_v39 = vpack.c.bf16 %v11167_v10, %v11179_v24  ;;  %v11210_v58 = vmul.f32 %v11157_v57, %v2170_v1 }
 0x253   : > { %v11187_v32 = vpop.f32.mrf.mxu0  ;;  %4398 = vmatpush1.bf16.msra.mxu1 %v7514_v42  ;;  %v3238_v5 = vmax.f32 %v3130_v28, 1.0  ;;  %v11222_v1 = vmul.f32 %v11169_v3, %v2166_v26  ;;  %7625 = vrcp.f32 %v3239_v56  ;;  %v3145_v28 = vpop.xlane.xlu1 %3144  ;;  %v7529_v26 = vld [vmem:[#allocation8 + $0x110] ss:$8 sps:$4 sm:$0xff]  }
 0x254   : > { %15574 = vst [vmem:[#allocation175_spill] sm:$0xff] %v11187_v32  ;;  %4591 = vmatpush1.bf16.msra.mxu0 %v7544_v2  ;;  %4399 = vmatprep.subr.bf16.mxu1 %v7522_v43  ;;  %v11195_v32 = vpop.f32.mrf.mxu1  ;;  %v11207_v43 = vpop.eup %7617  ;;  %15580 = vst [vmem:[#allocation70_spill] sm:$0xff] %v11210_v58  ;;  %v7562_v2 = vld [vmem:[#allocation8 + $0x220] ss:$8 sps:$4 sm:$0xff]  }
 0x255   : > { %4592 = vmatprep.subr.bf16.mxu0 %v7555_v60  ;;  %v11197_v42 = vpop.f32.mrf.mxu0  ;;  %4251 = vmatmul.mubr.bf16.gmra.mxu0 %v3526_v8  ;;  %v7523_v8 = vld [vmem:[#allocation8 + $0x120] ss:$8 sps:$4 sm:$0xff]   ;;  %v11217_v18 = vmul.f32 %v11207_v43, %v2182_v9  ;;  %v11219_v16 = vpop.eup %7619  ;;  %15582 = vst [vmem:[#allocation176_spill] sm:$0xff] %v11222_v1  ;;  %7627 = vrcp.f32 %v3238_v5  ;;  %v15587_v5 = vld [vmem:[#allocation100_spill] sm:$0xff] }
 0x256   : > { %15576 = vst [vmem:[#allocation109_spill] sm:$0xff] %v11197_v42  ;;  %6881 = vmatmul.mubr.msk.bf16.gmra.mxu1 %vm9111_vm2, %v14960_v4  ;;  %4260 = vmatprep.mubr.bf16.mxu0 %v3533_v39  ;;  %v11212_v60 = vpop.f32.mrf.mxu1  ;;  %v7573_v39 = vld [vmem:[#allocation8 + $0x214] ss:$8 sps:$4 sm:$0xff]   ;;  %v7571_v42 = vld [vmem:[#allocation8 + $0x210] ss:$8 sps:$4 sm:$0xff]   ;;  %vm15588_vm2 = vnez %v15587_v5 }
 0x257   : > { %6883 = vmatprep.mubr.msk.bf16.mxu1 %vm15579_vm15, %v14960_v4  ;;  %v11214_v37 = vpop.f32.mrf.mxu0  ;;  %4400 = vmatpush1.bf16.msra.mxu1 %v7520_v29  ;;  %15581 = vst [vmem:[#allocation58_spill] sm:$0xff] %v11217_v18  ;;  %v2180_v29 = vadd.f32 %v10956_v53, %v10721_v48  ;;  %v7576_v48 = vld [vmem:[#allocation8 + $0x204] ss:$8 sps:$4 sm:$0xff]   ;;  %v2176_v53 = vadd.f32 %v10936_v38, %v10699_v12 }
 0x258   : > { %4593 = vmatpush1.bf16.msra.mxu0 %v7553_v0  ;;  %4401 = vmatprep.subr.bf16.mxu1 %v7525_v62  ;;  %v11224_v24 = vpop.f32.mrf.mxu1  ;;  %v11229_v0 = vmul.f32 %v11219_v16, %v2178_v25  ;;  %v3532_v62 = vpack.c.bf16 %v11210_v58, %v11222_v1  ;;  %v2192_v25 = vadd.f32 %v10988_v49, %v10757_v33  ;;  %v7534_v1 = vld [vmem:[#allocation8 + $0x104] ss:$8 sps:$4 sm:$0xff]   ;;  %v3241_v49 = vmax.f32 %v3145_v28, 1.0  ;;  %v7540_v28 = vld [vmem:[#allocation8 + $0x1f4] ss:$8 sps:$4 sm:$0xff]  }
 0x259   : > { %4594 = vmatprep.subr.bf16.mxu0 %v7564_v13  ;;  %v11226_v10 = vpop.f32.mrf.mxu0  ;;  %v2188_v33 = vadd.f32 %v10980_v14, %v10747_v19  ;;  %v11260_v38 = vmul.f32 %v11207_v43, %v2180_v29  ;;  %v11272_v29 = vmul.f32 %v11219_v16, %v2176_v53  ;;  %v7538_v53 = vld [vmem:[#allocation8 + $0x1f0] ss:$8 sps:$4 sm:$0xff]  }
 0x25a   : > { %15583 = vst [vmem:[#allocation177_spill] sm:$0xff] %v11226_v10  ;;  %15584 = vst [vmem:[#allocation178_spill] sm:$0xff] %v11229_v0  ;;  %v11235_v9 = vpop.f32.mrf.mxu1  ;;  %v3140_v10 = vpop.xlane.xlu0 %3139  ;;  %v3539_v56 = vpack.c.bf16 %v11217_v18, %v11229_v0  ;;  %7629 = vrcp.f32 %v3241_v49 }
 0x25b   : > { %v11237_v13 = vpop.f32.mrf.mxu0  ;;  %4402 = vmatpush1.bf16.msra.mxu1 %v7523_v8  ;;  %15589 = vst [vmem:[#allocation72_spill] sm:$0xff] %v11260_v38  ;;  %v3240_v19 = vmax.f32 %v3140_v10, 1.0  ;;  %15592 = vst [vmem:[#allocation181_spill] sm:$0xff] %v11272_v29  ;;  %v3155_v10 = vpop.xlane.xlu1 %3154 }
 0x25c   : > { %4595 = vmatpush1.bf16.msra.mxu0 %v7562_v2  ;;  %4403 = vmatprep.subr.bf16.mxu1 %v7531_v44  ;;  %v11245_v58 = vpop.f32.mrf.mxu1  ;;  %v11257_v44 = vpop.eup %7621  ;;  %v7574_v2 = vld [vmem:[#allocation8 + $0x200] ss:$8 sps:$4 sm:$0xff]  }
 0x25d   : > { %4596 = vmatprep.subr.bf16.mxu0 %v7573_v39  ;;  %v11247_v8 = vpop.f32.mrf.mxu0  ;;  %4261 = vmatmul.mubr.bf16.gmra.mxu0 %v3532_v62  ;;  %v7532_v62 = vld [vmem:[#allocation8 + $0x100] ss:$8 sps:$4 sm:$0xff]   ;;  %v11267_v14 = vmul.f32 %v11257_v44, %v2192_v25  ;;  %v11269_v5 = vpop.eup %7623  ;;  %7631 = vrcp.f32 %v3240_v19 }
 0x25e   : > { %15585 = vst [vmem:[#allocation179_spill] sm:$0xff] %v11247_v8  ;;  %6885 = vmatmul.mubr.msk.bf16.gmra.mxu1 %vm15279_vm9, %v14960_v4  ;;  %4270 = vmatprep.mubr.bf16.mxu0 %v3539_v56  ;;  %v11262_v12 = vpop.f32.mrf.mxu1  ;;  %v7579_v56 = vld [vmem:[#allocation8 + $0x2f4] ss:$8 sps:$4 sm:$0xff]   ;;  %v7577_v8 = vld [vmem:[#allocation8 + $0x2f0] ss:$8 sps:$4 sm:$0xff]   ;;  %v15599_v19 = vld [vmem:[#allocation66_spill] sm:$0xff] }
 0x25f   : > { %6887 = vmatprep.mubr.msk.bf16.mxu1 %vm15588_vm2, %v14960_v4  ;;  %v11264_v39 = vpop.f32.mrf.mxu0  ;;  %4404 = vmatpush1.bf16.msra.mxu1 %v7529_v26  ;;  %15591 = vst [vmem:[#allocation180_spill] sm:$0xff] %v11267_v14  ;;  %v2190_v26 = vadd.f32 %v10984_v55, %v10753_v15  ;;  %v7582_v55 = vld [vmem:[#allocation8 + $0x2e4] ss:$8 sps:$4 sm:$0xff]   ;;  %v2186_v15 = vadd.f32 %v10964_v54, %v10731_v6  ;;  %vm15600_vm1 = vnez %v15599_v19 }
 0x260   : > { %15590 = vst [vmem:[#allocation100_spill] sm:$0xff] %v11264_v39  ;;  %4597 = vmatpush1.bf16.msra.mxu0 %v7571_v42  ;;  %4405 = vmatprep.subr.bf16.mxu1 %v7534_v1  ;;  %v11274_v0 = vpop.f32.mrf.mxu1  ;;  %v11279_v42 = vmul.f32 %v11269_v5, %v2188_v33  ;;  %v3538_v1 = vpack.c.bf16 %v11260_v38, %v11272_v29  ;;  %v7543_v29 = vld [vmem:[#allocation8 + $0x1e4] ss:$8 sps:$4 sm:$0xff]  }
 0x261   : > { %4598 = vmatprep.subr.bf16.mxu0 %v7576_v48  ;;  %v11276_v18 = vpop.f32.mrf.mxu0  ;;  %v2202_v33 = vadd.f32 %v11032_v46, %v10789_v23  ;;  %v2198_v46 = vadd.f32 %v11014_v61, %v10779_v31  ;;  %v3243_v23 = vmax.f32 %v3155_v10, 1.0  ;;  %v11310_v54 = vmul.f32 %v11257_v44, %v2190_v26  ;;  %v7549_v10 = vld [vmem:[#allocation8 + $0x1d4] ss:$8 sps:$4 sm:$0xff]  }
 0x262   : > { %15593 = vst [vmem:[#allocation182_spill] sm:$0xff] %v11276_v18  ;;  %15594 = vst [vmem:[#allocation183_spill] sm:$0xff] %v11279_v42  ;;  %v11285_v25 = vpop.f32.mrf.mxu1  ;;  %v3150_v18 = vpop.xlane.xlu0 %3149  ;;  %v3545_v49 = vpack.c.bf16 %v11267_v14, %v11279_v42  ;;  %v11322_v26 = vmul.f32 %v11269_v5, %v2186_v15  ;;  %v7547_v15 = vld [vmem:[#allocation8 + $0x1d0] ss:$8 sps:$4 sm:$0xff]  }
 0x263   : > { %v11287_v48 = vpop.f32.mrf.mxu0  ;;  %4406 = vmatpush1.bf16.msra.mxu1 %v7532_v62  ;;  %v3242_v31 = vmax.f32 %v3150_v18, 1.0  ;;  %7633 = vrcp.f32 %v3243_v23  ;;  %v3165_v18 = vpop.xlane.xlu1 %3164 }
 0x264   : > { %15595 = vst [vmem:[#allocation184_spill] sm:$0xff] %v11287_v48  ;;  %4599 = vmatpush1.bf16.msra.mxu0 %v7574_v2  ;;  %4407 = vmatprep.subr.bf16.mxu1 %v7540_v28  ;;  %v11295_v38 = vpop.f32.mrf.mxu1  ;;  %v15597_v2 = vld [vmem:[#allocation74_spill] sm:$0xff]  ;;  %v11307_v28 = vpop.eup %7625  ;;  %15604 = vst [vmem:[#allocation187_spill] sm:$0xff] %v11322_v26 }
 0x265   : > { %4600 = vmatprep.subr.bf16.mxu0 %v7579_v56  ;;  %v11297_v62 = vpop.f32.mrf.mxu0  ;;  %vm15598_vm9 = vnez %v15597_v2  ;;  %4271 = vmatmul.mubr.bf16.gmra.mxu0 %v3538_v1  ;;  %15601 = vst [vmem:[#allocation74_spill] sm:$0xff] %v11310_v54  ;;  %v7541_v1 = vld [vmem:[#allocation8 + $0x1e0] ss:$8 sps:$4 sm:$0xff]   ;;  %v11317_v61 = vmul.f32 %v11307_v28, %v2202_v33  ;;  %v11319_v19 = vpop.eup %7627  ;;  %7635 = vrcp.f32 %v3242_v31 }
 0x266   : > { %15596 = vst [vmem:[#allocation185_spill] sm:$0xff] %v11297_v62  ;;  %6889 = vmatmul.mubr.msk.bf16.gmra.mxu1 %vm15598_vm9, %v14960_v4  ;;  %4280 = vmatprep.mubr.bf16.mxu0 %v3545_v49  ;;  %v11312_v6 = vpop.f32.mrf.mxu1  ;;  %v7580_v2 = vld [vmem:[#allocation8 + $0x2e0] ss:$8 sps:$4 sm:$0xff]   ;;  %v7585_v49 = vld [vmem:[#allocation8 + $0x2d4] ss:$8 sps:$4 sm:$0xff]  }
 0x267   : > { %6891 = vmatprep.mubr.msk.bf16.mxu1 %vm15600_vm1, %v14960_v4  ;;  %v11314_v56 = vpop.f32.mrf.mxu0  ;;  %4408 = vmatpush2.bf16.msra.mxu1 %v7538_v53  ;;  %15603 = vst [vmem:[#allocation186_spill] sm:$0xff] %v11317_v61  ;;  %v2200_v53 = vadd.f32 %v11023_v34, %v10785_v41  ;;  %v7583_v62 = vld [vmem:[#allocation8 + $0x2d0] ss:$8 sps:$4 sm:$0xff]   ;;  %v2196_v41 = vadd.f32 %v10994_v50, %v10763_v21  ;;  %v15611_v31 = vld [vmem:[#allocation73_spill] sm:$0xff]  ;;  %v11357_v50 = vpop.eup %7629 }
 0x268   : > { %15602 = vst [vmem:[#allocation66_spill] sm:$0xff] %v11314_v56  ;;  %4601 = vmatpush2.bf16.msra.mxu0 %v7577_v8  ;;  %4409 = vmatprep.subr.bf16.mxu1 %v7543_v29  ;;  %v11324_v42 = vpop.f32.mrf.mxu1  ;;  %v11329_v8 = vmul.f32 %v11319_v19, %v2198_v46  ;;  %v3544_v29 = vpack.c.bf16 %v11310_v54, %v11322_v26  ;;  %v7552_v26 = vld [vmem:[#allocation8 + $0x1c4] ss:$8 sps:$4 sm:$0xff]   ;;  %vm15612_vm14 = vnez %v15611_v31 }
 0x269   : > { %4602 = vmatprep.subr.bf16.mxu0 %v7582_v55  ;;  %v11326_v14 = vpop.f32.mrf.mxu0  ;;  %v2212_v46 = vadd.f32 %v11085_v51, %v10822_v7  ;;  %v2208_v7 = vadd.f32 %v11062_v27, %v10813_v22  ;;  %v3245_v51 = vmax.f32 %v3165_v18, 1.0  ;;  %v11360_v21 = vmul.f32 %v11307_v28, %v2200_v53  ;;  %v7586_v27 = vld [vmem:[#allocation8 + $0x2c0] ss:$8 sps:$4 sm:$0xff]   ;;  %v7570_v56 = vld [vmem:[#allocation8 + $0x184] ss:$8 sps:$4 sm:$0xff]  }
 0x26a   : > { %15605 = vst [vmem:[#allocation188_spill] sm:$0xff] %v11326_v14  ;;  %15606 = vst [vmem:[#allocation189_spill] sm:$0xff] %v11329_v8  ;;  %v11335_v33 = vpop.f32.mrf.mxu1  ;;  %v3160_v14 = vpop.xlane.xlu0 %3159  ;;  %v3551_v23 = vpack.c.bf16 %v11317_v61, %v11329_v8  ;;  %v11372_v53 = vmul.f32 %v11319_v19, %v2196_v41  ;;  %v7556_v41 = vld [vmem:[#allocation8 + $0x1b0] ss:$8 sps:$4 sm:$0xff]  }
 0x26b   : > { %v11337_v55 = vpop.f32.mrf.mxu0  ;;  %4410 = vmatpush2.bf16.msra.mxu1 %v7541_v1  ;;  %v3244_v22 = vmax.f32 %v3160_v14, 1.0  ;;  %v11367_v18 = vmul.f32 %v11357_v50, %v2212_v46  ;;  %v11369_v31 = vpop.eup %7631  ;;  %7637 = vrcp.f32 %v3245_v51 }
 0x26c   : > { %15607 = vst [vmem:[#allocation190_spill] sm:$0xff] %v11337_v55  ;;  %4603 = vmatpush2.bf16.msra.mxu0 %v7580_v2  ;;  %4411 = vmatprep.subr.bf16.mxu1 %v7549_v10  ;;  %v11345_v34 = vpop.f32.mrf.mxu1  ;;  %v15609_v2 = vld [vmem:[#allocation76_spill] sm:$0xff]  ;;  %v7588_v10 = vld [vmem:[#allocation8 + $0x2c4] ss:$8 sps:$4 sm:$0xff]   ;;  %15616 = vst [vmem:[#allocation193_spill] sm:$0xff] %v11372_v53  ;;  %v3175_v14 = vpop.xlane.xlu1 %3174 }
 0x26d   : > { %4604 = vmatprep.subr.bf16.mxu0 %v7585_v49  ;;  %v11347_v1 = vpop.f32.mrf.mxu0  ;;  %vm15610_vm10 = vnez %v15609_v2  ;;  %4281 = vmatmul.mubr.bf16.gmra.mxu0 %v3544_v29  ;;  %15613 = vst [vmem:[#allocation76_spill] sm:$0xff] %v11360_v21  ;;  %v7550_v29 = vld [vmem:[#allocation8 + $0x1c0] ss:$8 sps:$4 sm:$0xff]   ;;  %15615 = vst [vmem:[#allocation192_spill] sm:$0xff] %v11367_v18  ;;  %7639 = vrcp.f32 %v3244_v22 }
 0x26e   : > { %15608 = vst [vmem:[#allocation191_spill] sm:$0xff] %v11347_v1  ;;  %6893 = vmatmul.mubr.msk.bf16.gmra.mxu1 %vm15610_vm10, %v14960_v4  ;;  %4290 = vmatprep.mubr.bf16.mxu0 %v3551_v23  ;;  %v11362_v49 = vpop.f32.mrf.mxu1  ;;  %v7558_v23 = vld [vmem:[#allocation8 + $0x1b4] ss:$8 sps:$4 sm:$0xff]   ;;  %v3170_v54 = vpop.xlane.xlu0 %3169  ;;  %v15627_v22 = vld [vmem:[#allocation82_spill] sm:$0xff] }
 0x26f   : > { %6895 = vmatprep.mubr.msk.bf16.mxu1 %vm15612_vm14, %v14960_v4  ;;  %v11364_v2 = vpop.f32.mrf.mxu0  ;;  %4412 = vmatpush2.bf16.msra.mxu1 %v7547_v15  ;;  %v11379_v15 = vmul.f32 %v11369_v31, %v2208_v7  ;;  %v15620_v1 = vld [vmem:[#allocation88_spill] sm:$0xff]  ;;  %vm15628_vm0 = vnez %v15627_v22 }
 0x270   : > { %15614 = vst [vmem:[#allocation73_spill] sm:$0xff] %v11364_v2  ;;  %4605 = vmatpush2.bf16.msra.mxu0 %v7583_v62  ;;  %4413 = vmatprep.subr.bf16.mxu1 %v7552_v26  ;;  %v11374_v8 = vpop.f32.mrf.mxu1  ;;  %v3550_v62 = vpack.c.bf16 %v11360_v21, %v11372_v53  ;;  %v2210_v26 = vadd.f32 %v11074_v35, %v10816_v45  ;;  %v7561_v53 = vld [vmem:[#allocation8 + $0x1a4] ss:$8 sps:$4 sm:$0xff]  }
 0x271   : > { %4606 = vmatprep.subr.bf16.mxu0 %v7588_v10  ;;  %v11376_v61 = vpop.f32.mrf.mxu0  ;;  %15618 = vst [vmem:[#allocation195_spill] sm:$0xff] %v11379_v15  ;;  %v2222_v7 = vadd.f32 %v11135_v20, %v15620_v1  ;;  %v3557_v51 = vpack.c.bf16 %v11367_v18, %v11379_v15  ;;  %v15621_v21 = vld [vmem:[#allocation126_spill] sm:$0xff]  ;;  %v3247_v1 = vmax.f32 %v3175_v14, 1.0 }
 0x272   : > { %15617 = vst [vmem:[#allocation194_spill] sm:$0xff] %v11376_v61  ;;  %v11385_v46 = vpop.f32.mrf.mxu1  ;;  %v15622_v61 = vld [vmem:[#allocation75_spill] sm:$0xff]  ;;  %v11410_v15 = vmul.f32 %v11357_v50, %v2210_v26 }
 0x273   : > { %v11387_v10 = vpop.f32.mrf.mxu0  ;;  %4414 = vmatpush2.bf16.msra.mxu1 %v7550_v29  ;;  %v2206_v45 = vadd.f32 %v15622_v61, %v15621_v21  ;;  %v15624_v29 = vld [vmem:[#allocation78_spill] sm:$0xff]  ;;  %v7591_v61 = vld [vmem:[#allocation8 + $0x2b4] ss:$8 sps:$4 sm:$0xff]   ;;  %v11407_v21 = vpop.eup %7633  ;;  %7641 = vrcp.f32 %v3247_v1 }
 0x274   : > { %15619 = vst [vmem:[#allocation196_spill] sm:$0xff] %v11387_v10  ;;  %4607 = vmatpush2.bf16.msra.mxu0 %v7586_v27  ;;  %4415 = vmatprep.subr.bf16.mxu1 %v7558_v23  ;;  %v11395_v35 = vpop.f32.mrf.mxu1  ;;  %vm15625_vm5 = vnez %v15624_v29  ;;  %v15626_v27 = vld [vmem:[#allocation83_spill] sm:$0xff]  ;;  %15629 = vst [vmem:[#allocation126_spill] sm:$0xff] %v11410_v15  ;;  %v11417_v14 = vmul.f32 %v11407_v21, %v2222_v7 }
 0x275   : > { %v11397_v2 = vpop.f32.mrf.mxu0  ;;  %4291 = vmatmul.mubr.bf16.gmra.mxu0 %v3550_v62  ;;  %v2218_v20 = vadd.f32 %v11112_v52, %v15626_v27  ;;  %v7589_v23 = vld [vmem:[#allocation8 + $0x2b0] ss:$8 sps:$4 sm:$0xff]   ;;  %v7559_v62 = vld [vmem:[#allocation8 + $0x1a0] ss:$8 sps:$4 sm:$0xff]   ;;  %v3246_v52 = vmax.f32 %v3170_v54, 1.0  ;;  %4608 = vmatprep.subr.bf16.mxu0 %v7591_v61  ;;  %v11419_v27 = vpop.eup %7635  ;;  %v11422_v22 = vmul.f32 %v11369_v31, %v2206_v45 }
 0x276   : > { %15623 = vst [vmem:[#allocation88_spill] sm:$0xff] %v11397_v2  ;;  %6897 = vmatmul.mubr.msk.bf16.gmra.mxu1 %vm15625_vm5, %v14960_v4  ;;  %4300 = vmatprep.mubr.bf16.mxu0 %v3557_v51  ;;  %v11412_v18 = vpop.f32.mrf.mxu1  ;;  %15631 = vst [vmem:[#allocation78_spill] sm:$0xff] %v11417_v14  ;;  %v7567_v51 = vld [vmem:[#allocation8 + $0x194] ss:$8 sps:$4 sm:$0xff]   ;;  %v3185_v54 = vpop.xlane.xlu1 %3184  ;;  %v15636_v7 = vld [vmem:[#allocation87_spill] sm:$0xff] }
 0x277   : > { %6899 = vmatprep.mubr.msk.bf16.mxu1 %vm15628_vm0, %v14960_v4  ;;  %v11414_v29 = vpop.f32.mrf.mxu0  ;;  %4416 = vmatpush2.bf16.msra.mxu1 %v7556_v41  ;;  %15632 = vst [vmem:[#allocation83_spill] sm:$0xff] %v11419_v27  ;;  %15633 = vst [vmem:[#allocation82_spill] sm:$0xff] %v11422_v22  ;;  %v11429_v41 = vmul.f32 %v11419_v27, %v2218_v20  ;;  %v2220_v61 = vadd.f32 %v11124_v30, %v15636_v7  ;;  %v7565_v10 = vld [vmem:[#allocation8 + $0x190] ss:$8 sps:$4 sm:$0xff]   ;;  %7643 = vrcp.f32 %v3246_v52 }
 0x278   : > { %15630 = vst [vmem:[#allocation75_spill] sm:$0xff] %v11414_v29  ;;  %4417 = vmatprep.subr.bf16.mxu1 %v7561_v53  ;;  %v11424_v26 = vpop.f32.mrf.mxu1  ;;  %4609 = vmatpush2.bf16.msra.mxu0 %v7589_v23  ;;  %v3556_v53 = vpack.c.bf16 %v11410_v15, %v11422_v22  ;;  %v15638_v23 = vld [vmem:[#allocation103_spill] sm:$0xff]  ;;  %v15643_v52 = vld [vmem:[#allocation64_spill] sm:$0xff] }
 0x279   : > { %v11426_v2 = vpop.f32.mrf.mxu0  ;;  %15635 = vst [vmem:[#allocation198_spill] sm:$0xff] %v11429_v41  ;;  %v2232_v20 = vadd.f32 %v11185_v17, %v15638_v23  ;;  %v3563_v1 = vpack.c.bf16 %v11417_v14, %v11429_v41  ;;  %v15639_v22 = vld [vmem:[#allocation79_spill] sm:$0xff]  ;;  %v2228_v17 = vadd.f32 %v11162_v47, %v15643_v52  ;;  %v3249_v23 = vmax.f32 %v3185_v54, 1.0  ;;  %v7592_v41 = vld [vmem:[#allocation8 + $0x2a0] ss:$8 sps:$4 sm:$0xff]  }
 0x27a   : > { %15634 = vst [vmem:[#allocation197_spill] sm:$0xff] %v11426_v2  ;;  %v11435_v29 = vpop.f32.mrf.mxu1  ;;  %v3180_v2 = vpop.xlane.xlu0 %3179  ;;  %v2216_v15 = vadd.f32 %v11095_v11, %v15639_v22  ;;  %v7594_v11 = vld [vmem:[#allocation8 + $0x2a4] ss:$8 sps:$4 sm:$0xff]   ;;  %v11460_v14 = vmul.f32 %v11407_v21, %v2220_v61 }
 0x27b   : > { %v11437_v45 = vpop.f32.mrf.mxu0  ;;  %4418 = vmatpush2.bf16.msra.mxu1 %v7559_v62  ;;  %v15641_v62 = vld [vmem:[#allocation80_spill] sm:$0xff]  ;;  %v11457_v22 = vpop.eup %7637  ;;  %v3248_v47 = vmax.f32 %v3180_v2, 1.0  ;;  %4610 = vmatprep.subr.bf16.mxu0 %v7594_v11  ;;  %7645 = vrcp.f32 %v3249_v23 }
 0x27c   : > { %15637 = vst [vmem:[#allocation87_spill] sm:$0xff] %v11437_v45  ;;  %4419 = vmatprep.subr.bf16.mxu1 %v7567_v51  ;;  %v11445_v30 = vpop.f32.mrf.mxu1  ;;  %vm15642_vm4 = vnez %v15641_v62  ;;  %v15644_v51 = vld [vmem:[#allocation101_spill] sm:$0xff]  ;;  %15646 = vst [vmem:[#allocation79_spill] sm:$0xff] %v11457_v22  ;;  %v11467_v54 = vmul.f32 %v11457_v22, %v2232_v20  ;;  %v11472_v52 = vmul.f32 %v11419_v27, %v2216_v15  ;;  %4611 = vmatpush2.bf16.msra.mxu0 %v7592_v41  ;;  %v3195_v2 = vpop.xlane.xlu1 %3194  ;;  %v15657_v23 = vld [vmem:[#allocation60_spill] sm:$0xff] }
 0x27d   : > { %v11447_v7 = vpop.f32.mrf.mxu0  ;;  %4301 = vmatmul.mubr.bf16.gmra.mxu0 %v3556_v53  ;;  %vm15645_vm13 = vnez %v15644_v51  ;;  %15647 = vst [vmem:[#allocation80_spill] sm:$0xff] %v11460_v14  ;;  %v7568_v53 = vld [vmem:[#allocation8 + $0x180] ss:$8 sps:$4 sm:$0xff]   ;;  %7647 = vrcp.f32 %v3248_v47  ;;  %v2226_v55 = vadd.f32 %v11145_v59, %v15657_v23  ;;  %v7597_v59 = vld [vmem:[#allocation8 + $0x294] ss:$8 sps:$4 sm:$0xff]  }
 0x27e   : > { %15640 = vst [vmem:[#allocation103_spill] sm:$0xff] %v11447_v7  ;;  %6901 = vmatmul.mubr.msk.bf16.gmra.mxu1 %vm15642_vm4, %v14960_v4  ;;  %4310 = vmatprep.mubr.bf16.mxu0 %v3563_v1  ;;  %v11462_v7 = vpop.f32.mrf.mxu1  ;;  %15649 = vst [vmem:[#allocation101_spill] sm:$0xff] %v11467_v54  ;;  %v11469_v1 = vpop.eup %7639 }
 0x27f   : > { %6903 = vmatprep.mubr.msk.bf16.mxu1 %vm15645_vm13, %v14960_v4  ;;  %v11464_v62 = vpop.f32.mrf.mxu0  ;;  %4420 = vmatpush2.bf16.msra.mxu1 %v7565_v10  ;;  %15650 = vst [vmem:[#allocation199_spill] sm:$0xff] %v11469_v1  ;;  %15651 = vst [vmem:[#allocation200_spill] sm:$0xff] %v11472_v52  ;;  %v3562_v10 = vpack.c.bf16 %v11460_v14, %v11472_v52  ;;  %v3190_v45 = vpop.xlane.xlu0 %3189 }
 0x280   : > { %15648 = vst [vmem:[#allocation64_spill] sm:$0xff] %v11464_v62  ;;  %4421 = vmatprep.subr.bf16.mxu1 %v7570_v56  ;;  %v11474_v51 = vpop.f32.mrf.mxu1  ;;  %v11479_v62 = vmul.f32 %v11469_v1, %v2228_v17  ;;  %v15654_v56 = vld [vmem:[#allocation102_spill] sm:$0xff]  ;;  %v11507_v23 = vpop.eup %7641  ;;  %4612 = vmatprep.subr.bf16.mxu0 %v7597_v59 }
 0x281   : > { %v11476_v61 = vpop.f32.mrf.mxu0  ;;  %v2230_v20 = vadd.f32 %v11174_v40, %v15654_v56  ;;  %v15659_v40 = vld [vmem:[#allocation81_spill] sm:$0xff]  ;;  %v3251_v56 = vmax.f32 %v3195_v2, 1.0  ;;  %15664 = vst [vmem:[#allocation60_spill] sm:$0xff] %v11507_v23 }
 0x282   : > { %15652 = vst [vmem:[#allocation201_spill] sm:$0xff] %v11476_v61  ;;  %15653 = vst [vmem:[#allocation202_spill] sm:$0xff] %v11479_v62  ;;  %v11485_v11 = vpop.f32.mrf.mxu1  ;;  %v15656_v61 = vld [vmem:[#allocation108_spill] sm:$0xff]  ;;  %v3569_v17 = vpack.c.bf16 %v11467_v54, %v11479_v62  ;;  %vm15660_vm15 = vnez %v15659_v40 }
 0x283   : > { %v11487_v15 = vpop.f32.mrf.mxu0  ;;  %4422 = vmatpush2.bf16.msra.mxu1 %v7568_v53  ;;  %v2242_v41 = vadd.f32 %v11235_v9, %v15656_v61  ;;  %v15661_v53 = vld [vmem:[#allocation106_spill] sm:$0xff]  ;;  %v15662_v9 = vld [vmem:[#allocation28_spill] sm:$0xff]  ;;  %v11510_v62 = vmul.f32 %v11457_v22, %v2230_v20  ;;  %7649 = vrcp.f32 %v3251_v56  ;;  %v3200_v48 = vpop.xlane.xlu0 %3199  ;;  %v15675_v56 = vld [vmem:[#allocation105_spill] sm:$0xff] }
 0x284   : > { %15655 = vst [vmem:[#allocation102_spill] sm:$0xff] %v11487_v15  ;;  %v11495_v52 = vpop.f32.mrf.mxu1  ;;  %v2238_v47 = vadd.f32 %v11212_v60, %v15661_v53  ;;  %vm15663_vm2 = vnez %v15662_v9  ;;  %v7595_v61 = vld [vmem:[#allocation8 + $0x290] ss:$8 sps:$4 sm:$0xff]   ;;  %v11519_v2 = vpop.eup %7643 }
 0x285   : > { %v11497_v14 = vpop.f32.mrf.mxu0  ;;  %4311 = vmatmul.mubr.bf16.gmra.mxu0 %v3562_v10  ;;  %15665 = vst [vmem:[#allocation81_spill] sm:$0xff] %v11510_v62  ;;  %v3250_v10 = vmax.f32 %v3190_v45, 1.0  ;;  %v11517_v60 = vmul.f32 %v11507_v23, %v2242_v41  ;;  %15668 = vst [vmem:[#allocation203_spill] sm:$0xff] %v11519_v2  ;;  %v3205_v15 = vpop.xlane.xlu1 %3204  ;;  %v15672_v41 = vld [vmem:[#allocation107_spill] sm:$0xff] }
 0x286   : > { %15658 = vst [vmem:[#allocation108_spill] sm:$0xff] %v11497_v14  ;;  %6905 = vmatmul.mubr.msk.bf16.gmra.mxu1 %vm15660_vm15, %v14960_v4  ;;  %4320 = vmatprep.mubr.bf16.mxu0 %v3569_v17  ;;  %v11512_v54 = vpop.f32.mrf.mxu1  ;;  %v11522_v17 = vmul.f32 %v11469_v1, %v2226_v55  ;;  %v11529_v20 = vmul.f32 %v11519_v2, %v2238_v47  ;;  %v15674_v14 = vld [vmem:[#allocation113_spill] sm:$0xff] }
 0x287   : > { %6907 = vmatprep.mubr.msk.bf16.mxu1 %vm15663_vm2, %v14960_v4  ;;  %v11514_v40 = vpop.f32.mrf.mxu0  ;;  %15667 = vst [vmem:[#allocation28_spill] sm:$0xff] %v11517_v60  ;;  %4613 = vmatpush2.bf16.msra.mxu0 %v7595_v61  ;;  %v2240_v59 = vadd.f32 %v11224_v24, %v15672_v41  ;;  %7651 = vrcp.f32 %v3250_v10  ;;  %v2252_v61 = vadd.f32 %v11285_v25, %v15674_v14  ;;  %v15677_v24 = vld [vmem:[#allocation84_spill] sm:$0xff]  ;;  %v7600_v10 = vld [vmem:[#allocation8 + $0x284] ss:$8 sps:$4 sm:$0xff]   ;;  %v3253_v25 = vmax.f32 %v3205_v15, 1.0 }
 0x288   : > { %15666 = vst [vmem:[#allocation106_spill] sm:$0xff] %v11514_v40  ;;  %15669 = vst [vmem:[#allocation204_spill] sm:$0xff] %v11522_v17  ;;  %v11524_v53 = vpop.f32.mrf.mxu1  ;;  %v3568_v45 = vpack.c.bf16 %v11510_v62, %v11522_v17  ;;  %v3575_v47 = vpack.c.bf16 %v11517_v60, %v11529_v20  ;;  %vm15678_vm9 = vnez %v15677_v24  ;;  %v15679_v41 = vld [vmem:[#allocation111_spill] sm:$0xff]  ;;  %4614 = vmatprep.subr.bf16.mxu0 %v7600_v10 }
 0x289   : > { %v11526_v9 = vpop.f32.mrf.mxu0  ;;  %15671 = vst [vmem:[#allocation206_spill] sm:$0xff] %v11529_v20  ;;  %v2248_v62 = vadd.f32 %v11262_v12, %v15679_v41  ;;  %v15680_v14 = vld [vmem:[#allocation59_spill] sm:$0xff]  ;;  %v11560_v20 = vmul.f32 %v11507_v23, %v2240_v59  ;;  %7653 = vrcp.f32 %v3253_v25  ;;  %v15693_v25 = vld [vmem:[#allocation110_spill] sm:$0xff] }
 0x28a   : > { %15670 = vst [vmem:[#allocation205_spill] sm:$0xff] %v11526_v9  ;;  %v11535_v39 = vpop.f32.mrf.mxu1  ;;  %v2236_v9 = vadd.f32 %v11195_v32, %v15675_v56  ;;  %vm15681_vm1 = vnez %v15680_v14  ;;  %v7598_v32 = vld [vmem:[#allocation8 + $0x280] ss:$8 sps:$4 sm:$0xff]   ;;  %v11557_v56 = vpop.eup %7645 }
 0x28b   : > { %v11537_v55 = vpop.f32.mrf.mxu0  ;;  %15682 = vst [vmem:[#allocation105_spill] sm:$0xff] %v11557_v56  ;;  %15683 = vst [vmem:[#allocation84_spill] sm:$0xff] %v11560_v20  ;;  %v11567_v12 = vmul.f32 %v11557_v56, %v2252_v61  ;;  %4615 = vmatpush2.bf16.msra.mxu0 %v7598_v32  ;;  %v11569_v15 = vpop.eup %7647  ;;  %v15690_v61 = vld [vmem:[#allocation112_spill] sm:$0xff] }
 0x28c   : > { %15673 = vst [vmem:[#allocation107_spill] sm:$0xff] %v11537_v55  ;;  %v11545_v40 = vpop.f32.mrf.mxu1  ;;  %15686 = vst [vmem:[#allocation207_spill] sm:$0xff] %v11569_v15  ;;  %v11579_v59 = vmul.f32 %v11569_v15, %v2248_v62  ;;  %v2250_v10 = vadd.f32 %v11274_v0, %v15690_v61  ;;  %v15692_v55 = vld [vmem:[#allocation117_spill] sm:$0xff]  ;;  %v15695_v0 = vld [vmem:[#allocation86_spill] sm:$0xff] }
 0x28d   : > { %v11547_v17 = vpop.f32.mrf.mxu0  ;;  %4321 = vmatmul.mubr.bf16.gmra.mxu0 %v3568_v45  ;;  %v3252_v45 = vmax.f32 %v3200_v48, 1.0  ;;  %15685 = vst [vmem:[#allocation59_spill] sm:$0xff] %v11567_v12  ;;  %vm15696_vm10 = vnez %v15695_v0 }
 0x28e   : > { %15676 = vst [vmem:[#allocation113_spill] sm:$0xff] %v11547_v17  ;;  %6909 = vmatmul.mubr.msk.bf16.gmra.mxu1 %vm15678_vm9, %v14960_v4  ;;  %4330 = vmatprep.mubr.bf16.mxu0 %v3575_v47  ;;  %v11562_v60 = vpop.f32.mrf.mxu1  ;;  %v11572_v47 = vmul.f32 %v11519_v2, %v2236_v9  ;;  %15689 = vst [vmem:[#allocation210_spill] sm:$0xff] %v11579_v59  ;;  %v3215_v17 = vpop.xlane.xlu1 %3214  ;;  %v3581_v62 = vpack.c.bf16 %v11567_v12, %v11579_v59  ;;  %v15707_v12 = vld [vmem:[#allocation116_spill] sm:$0xff] }
 0x28f   : > { %6911 = vmatprep.mubr.msk.bf16.mxu1 %vm15681_vm1, %v14960_v4  ;;  %v11564_v24 = vpop.f32.mrf.mxu0  ;;  %7655 = vrcp.f32 %v3252_v45  ;;  %v3210_v9 = vpop.xlane.xlu0 %3209  ;;  %v2246_v2 = vadd.f32 %v11245_v58, %v15693_v25  ;;  %v15697_v45 = vld [vmem:[#allocation115_spill] sm:$0xff]  ;;  %v11610_v58 = vmul.f32 %v11557_v56, %v2250_v10 }
 0x290   : > { %15684 = vst [vmem:[#allocation111_spill] sm:$0xff] %v11564_v24  ;;  %15687 = vst [vmem:[#allocation208_spill] sm:$0xff] %v11572_v47  ;;  %v11574_v41 = vpop.f32.mrf.mxu1  ;;  %v3574_v48 = vpack.c.bf16 %v11560_v20, %v11572_v47  ;;  %v2258_v61 = vadd.f32 %v11312_v6, %v15697_v45  ;;  %v3255_v20 = vmax.f32 %v3215_v17, 1.0  ;;  %v3254_v0 = vmax.f32 %v3210_v9, 1.0 }
 0x291   : > { %v11576_v14 = vpop.f32.mrf.mxu0  ;;  %15700 = vst [vmem:[#allocation110_spill] sm:$0xff] %v11610_v58  ;;  %v11622_v17 = vmul.f32 %v11569_v15, %v2246_v2 }
 0x292   : > { %15688 = vst [vmem:[#allocation209_spill] sm:$0xff] %v11576_v14  ;;  %v11585_v32 = vpop.f32.mrf.mxu1  ;;  %v2262_v14 = vadd.f32 %v11335_v33, %v15692_v55  ;;  %v15698_v33 = vld [vmem:[#allocation61_spill] sm:$0xff]  ;;  %v11607_v55 = vpop.eup %7649  ;;  %7657 = vrcp.f32 %v3255_v20  ;;  %v15710_v20 = vld [vmem:[#allocation114_spill] sm:$0xff] }
 0x293   : > { %v11587_v24 = vpop.f32.mrf.mxu0  ;;  %vm15699_vm14 = vnez %v15698_v33  ;;  %15704 = vst [vmem:[#allocation211_spill] sm:$0xff] %v11622_v17  ;;  %v3225_v33 = vpop.xlane.xlu1 %3224  ;;  %v3580_v9 = vpack.c.bf16 %v11610_v58, %v11622_v17  ;;  %7659 = vrcp.f32 %v3254_v0  ;;  %v2256_v15 = vadd.f32 %v11295_v38, %v15710_v20 }
 0x294   : > { %15691 = vst [vmem:[#allocation112_spill] sm:$0xff] %v11587_v24  ;;  %v11595_v23 = vpop.f32.mrf.mxu1  ;;  %v11619_v6 = vpop.eup %7651  ;;  %v15709_v24 = vld [vmem:[#allocation121_spill] sm:$0xff]  ;;  %v3257_v58 = vmax.f32 %v3225_v33, 1.0 }
 0x295   : > { %v11597_v47 = vpop.f32.mrf.mxu0  ;;  %4331 = vmatmul.mubr.bf16.gmra.mxu0 %v3574_v48  ;;  %v11617_v48 = vmul.f32 %v11607_v55, %v2262_v14  ;;  %15703 = vst [vmem:[#allocation61_spill] sm:$0xff] %v11619_v6  ;;  %v11629_v10 = vmul.f32 %v11619_v6, %v2258_v61  ;;  %v2260_v14 = vadd.f32 %v11324_v42, %v15707_v12  ;;  %v3220_v2 = vpop.xlane.xlu0 %3219  ;;  %v15712_v42 = vld [vmem:[#allocation89_spill] sm:$0xff]  ;;  %v15714_v12 = vld [vmem:[#allocation119_spill] sm:$0xff] }
 0x296   : > { %15694 = vst [vmem:[#allocation117_spill] sm:$0xff] %v11597_v47  ;;  %6913 = vmatmul.mubr.msk.bf16.gmra.mxu1 %vm15696_vm10, %v14960_v4  ;;  %4340 = vmatprep.mubr.bf16.mxu0 %v3581_v62  ;;  %v11612_v25 = vpop.f32.mrf.mxu1  ;;  %vm15713_vm5 = vnez %v15712_v42  ;;  %v2268_v0 = vadd.f32 %v11362_v49, %v15714_v12  ;;  %v3256_v42 = vmax.f32 %v3220_v2, 1.0  ;;  %v11672_v33 = vmul.f32 %v11619_v6, %v2256_v15  ;;  %v15725_v2 = vld [vmem:[#allocation120_spill] sm:$0xff]  ;;  %v15727_v15 = vld [vmem:[#allocation125_spill] sm:$0xff] }
 0x297   : > { %6915 = vmatprep.mubr.msk.bf16.mxu1 %vm15699_vm14, %v14960_v4  ;;  %v11614_v59 = vpop.f32.mrf.mxu0  ;;  %15702 = vst [vmem:[#allocation115_spill] sm:$0xff] %v11617_v48  ;;  %15706 = vst [vmem:[#allocation213_spill] sm:$0xff] %v11629_v10  ;;  %v3587_v61 = vpack.c.bf16 %v11617_v48, %v11629_v10  ;;  %v11660_v38 = vmul.f32 %v11607_v55, %v2260_v14  ;;  %7661 = vrcp.f32 %v3257_v58 }
 0x298   : > { %15701 = vst [vmem:[#allocation86_spill] sm:$0xff] %v11614_v59  ;;  %v11624_v62 = vpop.f32.mrf.mxu1  ;;  %15722 = vst [vmem:[#allocation215_spill] sm:$0xff] %v11672_v33  ;;  %7663 = vrcp.f32 %v3256_v42 }
 0x299   : > { %v11626_v45 = vpop.f32.mrf.mxu0  ;;  %15718 = vst [vmem:[#allocation89_spill] sm:$0xff] %v11660_v38 }
 0x29a   : > { %15705 = vst [vmem:[#allocation212_spill] sm:$0xff] %v11626_v45  ;;  %v11635_v47 = vpop.f32.mrf.mxu1  ;;  %v2272_v45 = vadd.f32 %v11385_v46, %v15709_v24  ;;  %v15715_v46 = vld [vmem:[#allocation63_spill] sm:$0xff]  ;;  %v11657_v24 = vpop.eup %7653 }
 0x29b   : > { %v11637_v59 = vpop.f32.mrf.mxu0  ;;  %vm15716_vm0 = vnez %v15715_v46  ;;  %15717 = vst [vmem:[#allocation114_spill] sm:$0xff] %v11657_v24  ;;  %v3586_v46 = vpack.c.bf16 %v11660_v38, %v11672_v33 }
 0x29c   : > { %15708 = vst [vmem:[#allocation116_spill] sm:$0xff] %v11637_v59  ;;  %v11645_v56 = vpop.f32.mrf.mxu1  ;;  %v11669_v49 = vpop.eup %7655 }
 0x29d   : > { %v11647_v17 = vpop.f32.mrf.mxu0  ;;  %4341 = vmatmul.mubr.bf16.gmra.mxu0 %v3580_v9  ;;  %v11667_v9 = vmul.f32 %v11657_v24, %v2272_v45  ;;  %15721 = vst [vmem:[#allocation214_spill] sm:$0xff] %v11669_v49  ;;  %v11679_v14 = vmul.f32 %v11669_v49, %v2268_v0  ;;  %v2270_v45 = vadd.f32 %v11374_v8, %v15725_v2  ;;  %v15728_v0 = vld [vmem:[#allocation118_spill] sm:$0xff]  ;;  %v15731_v2 = vld [vmem:[#allocation123_spill] sm:$0xff] }
 0x29e   : > { %15711 = vst [vmem:[#allocation121_spill] sm:$0xff] %v11647_v17  ;;  %6917 = vmatmul.mubr.msk.bf16.gmra.mxu1 %vm15713_vm5, %v14960_v4  ;;  %4350 = vmatprep.mubr.bf16.mxu0 %v3587_v61  ;;  %v11662_v20 = vpop.f32.mrf.mxu1  ;;  %v2266_v58 = vadd.f32 %v11345_v34, %v15728_v0  ;;  %v2278_v42 = vadd.f32 %v11412_v18, %v15731_v2 }
 0x29f   : > { %6919 = vmatprep.mubr.msk.bf16.mxu1 %vm15716_vm0, %v14960_v4  ;;  %v11664_v10 = vpop.f32.mrf.mxu0  ;;  %15720 = vst [vmem:[#allocation63_spill] sm:$0xff] %v11667_v9  ;;  %15724 = vst [vmem:[#allocation217_spill] sm:$0xff] %v11679_v14  ;;  %v11710_v34 = vmul.f32 %v11657_v24, %v2270_v45 }
 0x2a0   : > { %15719 = vst [vmem:[#allocation119_spill] sm:$0xff] %v11664_v10  ;;  %v11674_v61 = vpop.f32.mrf.mxu1  ;;  %v2282_v10 = vadd.f32 %v11435_v29, %v15727_v15  ;;  %v15732_v29 = vld [vmem:[#allocation65_spill] sm:$0xff]  ;;  %v11707_v15 = vpop.eup %7657  ;;  %v11722_v18 = vmul.f32 %v11669_v49, %v2266_v58 }
 0x2a1   : > { %v11676_v12 = vpop.f32.mrf.mxu0  ;;  %vm15733_vm4 = vnez %v15732_v29  ;;  %15734 = vst [vmem:[#allocation118_spill] sm:$0xff] %v11707_v15  ;;  %15735 = vst [vmem:[#allocation90_spill] sm:$0xff] %v11710_v34 }
 0x2a2   : > { %15723 = vst [vmem:[#allocation216_spill] sm:$0xff] %v11676_v12  ;;  %v11685_v48 = vpop.f32.mrf.mxu1  ;;  %v3593_v12 = vpack.c.bf16 %v11667_v9, %v11679_v14  ;;  %v11717_v8 = vmul.f32 %v11707_v15, %v2282_v10  ;;  %15739 = vst [vmem:[#allocation219_spill] sm:$0xff] %v11722_v18  ;;  %v3592_v45 = vpack.c.bf16 %v11710_v34, %v11722_v18  ;;  %v15742_v9 = vld [vmem:[#allocation124_spill] sm:$0xff] }
 0x2a3   : > { %v11687_v17 = vpop.f32.mrf.mxu0  ;;  %v2280_v38 = vadd.f32 %v11424_v26, %v15742_v9  ;;  %v15748_v26 = vld [vmem:[#allocation128_spill] sm:$0xff] }
 0x2a4   : > { %15726 = vst [vmem:[#allocation120_spill] sm:$0xff] %v11687_v17  ;;  %v11695_v59 = vpop.f32.mrf.mxu1  ;;  %15737 = vst [vmem:[#allocation65_spill] sm:$0xff] %v11717_v8  ;;  %v2288_v9 = vadd.f32 %v11462_v7, %v15748_v26 }
 0x2a5   : > { %v11697_v33 = vpop.f32.mrf.mxu0  ;;  %4351 = vmatmul.mubr.bf16.gmra.mxu0 %v3586_v46  ;;  %v11719_v46 = vpop.eup %7659 }
 0x2a6   : > { %15729 = vst [vmem:[#allocation125_spill] sm:$0xff] %v11697_v33  ;;  %6921 = vmatmul.mubr.msk.bf16.gmra.mxu1 %vm15509_vm7, %v14960_v4  ;;  %4360 = vmatprep.mubr.bf16.mxu0 %v3593_v12  ;;  %v11712_v0 = vpop.f32.mrf.mxu1  ;;  %15738 = vst [vmem:[#allocation218_spill] sm:$0xff] %v11719_v46  ;;  %v11729_v29 = vmul.f32 %v11719_v46, %v2278_v42 }
 0x2a7   : > { %6923 = vmatprep.mubr.msk.bf16.mxu1 %vm15733_vm4, %v14960_v4  ;;  %v11714_v14 = vpop.f32.mrf.mxu0 }
 0x2a8   : > { %15736 = vst [vmem:[#allocation123_spill] sm:$0xff] %v11714_v14  ;;  %v11724_v12 = vpop.f32.mrf.mxu1  ;;  %15741 = vst [vmem:[#allocation221_spill] sm:$0xff] %v11729_v29  ;;  %v15744_v14 = vld [vmem:[#allocation130_spill] sm:$0xff]  ;;  %v3599_v17 = vpack.c.bf16 %v11717_v8, %v11729_v29  ;;  %v15758_v8 = vld [vmem:[#allocation129_spill] sm:$0xff] }
 0x2a9   : > { %v11726_v2 = vpop.f32.mrf.mxu0  ;;  %v2292_v58 = vadd.f32 %v11485_v11, %v15744_v14  ;;  %v11757_v14 = vpop.eup %7661  ;;  %v2290_v34 = vadd.f32 %v11474_v51, %v15758_v8  ;;  %v15764_v51 = vld [vmem:[#allocation132_spill] sm:$0xff] }
 0x2aa   : > { %15740 = vst [vmem:[#allocation220_spill] sm:$0xff] %v11726_v2  ;;  %v11735_v10 = vpop.f32.mrf.mxu1  ;;  %v15745_v2 = vld [vmem:[#allocation122_spill] sm:$0xff]  ;;  %v2524_v8 = vadd.f32 %v11512_v54, %v15764_v51 }
 0x2ab   : > { %v11737_v33 = vpop.f32.mrf.mxu0  ;;  %v2276_v42 = vadd.f32 %v11395_v35, %v15745_v2  ;;  %15750 = vst [vmem:[#allocation122_spill] sm:$0xff] %v11757_v14  ;;  %v11760_v35 = vmul.f32 %v11707_v15, %v2280_v38  ;;  %v11767_v18 = vmul.f32 %v11757_v14, %v2292_v58 }
 0x2ac   : > { %15743 = vst [vmem:[#allocation124_spill] sm:$0xff] %v11737_v33  ;;  %v11745_v49 = vpop.f32.mrf.mxu1 }
 0x2ad   : > { %v11747_v24 = vpop.f32.mrf.mxu0  ;;  %4361 = vmatmul.mubr.bf16.gmra.mxu0 %v3592_v45  ;;  %15751 = vst [vmem:[#allocation93_spill] sm:$0xff] %v11760_v35  ;;  %15753 = vst [vmem:[#allocation67_spill] sm:$0xff] %v11767_v18  ;;  %v11769_v45 = vpop.eup %7663  ;;  %v11772_v7 = vmul.f32 %v11719_v46, %v2276_v42 }
 0x2ae   : > { %15746 = vst [vmem:[#allocation130_spill] sm:$0xff] %v11747_v24  ;;  %6925 = vmatmul.mubr.msk.bf16.gmra.mxu1 %vm15382_vm8, %v14960_v4  ;;  %4370 = vmatprep.mubr.bf16.mxu0 %v3599_v17  ;;  %v11762_v2 = vpop.f32.mrf.mxu1  ;;  %15754 = vst [vmem:[#allocation222_spill] sm:$0xff] %v11769_v45  ;;  %v11779_v11 = vmul.f32 %v11769_v45, %v2288_v9 }
 0x2af   : > { %6927 = vmatprep.mubr.msk.bf16.mxu1 %vm15518_vm3, %v14960_v4  ;;  %v11764_v29 = vpop.f32.mrf.mxu0  ;;  %15755 = vst [vmem:[#allocation223_spill] sm:$0xff] %v11772_v7  ;;  %v3598_v38 = vpack.c.bf16 %v11760_v35, %v11772_v7 }
 0x2b0   : > { %15752 = vst [vmem:[#allocation128_spill] sm:$0xff] %v11764_v29  ;;  %v11774_v17 = vpop.f32.mrf.mxu1  ;;  %15757 = vst [vmem:[#allocation225_spill] sm:$0xff] %v11779_v11  ;;  %v15760_v29 = vld [vmem:[#allocation134_spill] sm:$0xff]  ;;  %v3605_v33 = vpack.c.bf16 %v11767_v18, %v11779_v11  ;;  %v15768_v11 = vld [vmem:[#allocation92_spill] sm:$0xff] }
 0x2b1   : > { %v11776_v26 = vpop.f32.mrf.mxu0  ;;  %v2528_v42 = vadd.f32 %v11535_v39, %v15760_v29  ;;  %v11808_v29 = vmul.f32 %v11757_v14, %v2290_v34  ;;  %v15774_v39 = vld [vmem:[#allocation133_spill] sm:$0xff] }
 0x2b2   : > { %15756 = vst [vmem:[#allocation224_spill] sm:$0xff] %v11776_v26  ;;  %v11785_v58 = vpop.f32.mrf.mxu1  ;;  %v15761_v26 = vld [vmem:[#allocation127_spill] sm:$0xff]  ;;  %v2526_v35 = vadd.f32 %v11524_v53, %v15774_v39  ;;  %v15780_v53 = vld [vmem:[#allocation136_spill] sm:$0xff] }
 0x2b3   : > { %v11787_v24 = vpop.f32.mrf.mxu0  ;;  %v2286_v9 = vadd.f32 %v11445_v30, %v15761_v26  ;;  %15766 = vst [vmem:[#allocation127_spill] sm:$0xff] %v11808_v29  ;;  %v11815_v18 = vmul.f32 %v15768_v11, %v2528_v42  ;;  %v2534_v39 = vadd.f32 %v11562_v60, %v15780_v53 }
 0x2b4   : > { %15759 = vst [vmem:[#allocation129_spill] sm:$0xff] %v11787_v24  ;;  %v11795_v46 = vpop.f32.mrf.mxu1 }
 0x2b5   : > { %v11797_v15 = vpop.f32.mrf.mxu0  ;;  %4371 = vmatmul.mubr.bf16.gmra.mxu0 %v3598_v38  ;;  %15769 = vst [vmem:[#allocation132_spill] sm:$0xff] %v11815_v18  ;;  %v11818_v7 = vmul.f32 %v11769_v45, %v2286_v9 }
 0x2b6   : > { %15762 = vst [vmem:[#allocation134_spill] sm:$0xff] %v11797_v15  ;;  %6929 = vmatmul.mubr.msk.bf16.gmra.mxu1 %vm15393_vm12, %v14960_v4  ;;  %4380 = vmatprep.mubr.bf16.mxu0 %v3605_v33  ;;  %v11810_v30 = vpop.f32.mrf.mxu1  ;;  %v15772_v33 = vld [vmem:[#allocation158_spill] sm:$0xff] }
 0x2b7   : > { %6931 = vmatprep.mubr.msk.bf16.mxu1 %vm15524_vm6, %v14960_v4  ;;  %v11812_v26 = vpop.f32.mrf.mxu0  ;;  %15770 = vst [vmem:[#allocation71_spill] sm:$0xff] %v11818_v7  ;;  %v11825_v51 = vmul.f32 %v15772_v33, %v2524_v8  ;;  %v3604_v34 = vpack.c.bf16 %v11808_v29, %v11818_v7 }
 0x2b8   : > { %15767 = vst [vmem:[#allocation95_spill] sm:$0xff] %v11812_v26  ;;  %v11820_v38 = vpop.f32.mrf.mxu1  ;;  %v15776_v26 = vld [vmem:[#allocation138_spill] sm:$0xff] }
 0x2b9   : > { %v11822_v54 = vpop.f32.mrf.mxu0  ;;  %15773 = vst [vmem:[#allocation158_spill] sm:$0xff] %v11825_v51  ;;  %v2538_v9 = vadd.f32 %v11585_v32, %v15776_v26  ;;  %v3517_v24 = vpack.c.bf16 %v11815_v18, %v11825_v51  ;;  %v11851_v32 = vmul.f32 %v15768_v11, %v2526_v35  ;;  %v15789_v35 = vld [vmem:[#allocation137_spill] sm:$0xff] }
 0x2ba   : > { %15771 = vst [vmem:[#allocation92_spill] sm:$0xff] %v11822_v54  ;;  %v11831_v15 = vpop.f32.mrf.mxu1  ;;  %v15777_v54 = vld [vmem:[#allocation131_spill] sm:$0xff]  ;;  %v2536_v53 = vadd.f32 %v11574_v41, %v15789_v35 }
 0x2bb   : > { %v11833_v42 = vpop.f32.mrf.mxu0  ;;  %v2522_v8 = vadd.f32 %v11495_v52, %v15777_v54  ;;  %15781 = vst [vmem:[#allocation131_spill] sm:$0xff] %v11851_v32  ;;  %v15783_v52 = vld [vmem:[#allocation94_spill] sm:$0xff] }
 0x2bc   : > { %15775 = vst [vmem:[#allocation133_spill] sm:$0xff] %v11833_v42  ;;  %v11841_v45 = vpop.f32.mrf.mxu1  ;;  %v11858_v54 = vmul.f32 %v15783_v52, %v2538_v9  ;;  %v11891_v35 = vmul.f32 %v15783_v52, %v2536_v53 }
 0x2bd   : > { %v11843_v14 = vpop.f32.mrf.mxu0  ;;  %4381 = vmatmul.mubr.bf16.gmra.mxu0 %v3604_v34  ;;  %v11861_v51 = vmul.f32 %v15772_v33, %v2522_v8  ;;  %v15787_v34 = vld [vmem:[#allocation163_spill] sm:$0xff] }
 0x2be   : > { %15778 = vst [vmem:[#allocation138_spill] sm:$0xff] %v11843_v14  ;;  %6933 = vmatmul.mubr.msk.bf16.gmra.mxu1 %vm9934_vm11, %v14960_v4  ;;  %v11853_v26 = vpop.f32.mrf.mxu1  ;;  %15784 = vst [vmem:[#allocation136_spill] sm:$0xff] %v11858_v54  ;;  %v11868_v60 = vmul.f32 %v15787_v34, %v2534_v39  ;;  %v15791_v14 = vld [vmem:[#allocation142_spill] sm:$0xff] }
 0x2bf   : > { %4423 = vmatprep.mubr.bf16.mxu1 %v3517_v24  ;;  %v11855_v29 = vpop.f32.mrf.mxu0  ;;  %15785 = vst [vmem:[#allocation94_spill] sm:$0xff] %v11861_v51  ;;  %v3516_v24 = vpack.c.bf16 %v11851_v32, %v11861_v51  ;;  %v2548_v8 = vadd.f32 %v11635_v47, %v15791_v14  ;;  %v15794_v51 = vld [vmem:[#allocation140_spill] sm:$0xff] }
 0x2c0   : > { %15782 = vst [vmem:[#allocation97_spill] sm:$0xff] %v11855_v29  ;;  %v11863_v7 = vpop.f32.mrf.mxu1  ;;  %15788 = vst [vmem:[#allocation163_spill] sm:$0xff] %v11868_v60  ;;  %v3523_v29 = vpack.c.bf16 %v11858_v54, %v11868_v60  ;;  %v2544_v41 = vadd.f32 %v11612_v25, %v15794_v51  ;;  %v15801_v51 = vld [vmem:[#allocation141_spill] sm:$0xff]  ;;  %v15803_v54 = vld [vmem:[#allocation146_spill] sm:$0xff] }
 0x2c1   : > { %v11865_v4 = vpop.f32.mrf.mxu0  ;;  %v11898_v14 = vmul.f32 %v11107_v63, %v2548_v8  ;;  %v2546_v53 = vadd.f32 %v11624_v62, %v15801_v51 }
 0x2c2   : > { %15786 = vst [vmem:[#allocation226_spill] sm:$0xff] %v11865_v4  ;;  %v11874_v18 = vpop.f32.mrf.mxu1  ;;  %v15792_v4 = vld [vmem:[#allocation135_spill] sm:$0xff]  ;;  %v11908_v25 = vmul.f32 %v11119_v36, %v2544_v41 }
 0x2c3   : > { %v11876_v9 = vpop.f32.mrf.mxu0  ;;  %v2532_v39 = vadd.f32 %v11545_v40, %v15792_v4  ;;  %15795 = vst [vmem:[#allocation135_spill] sm:$0xff] %v11891_v35  ;;  %15797 = vst [vmem:[#allocation227_spill] sm:$0xff] %v11898_v14  ;;  %v11931_v51 = vmul.f32 %v11107_v63, %v2546_v53 }
 0x2c4   : > { %15790 = vst [vmem:[#allocation137_spill] sm:$0xff] %v11876_v9  ;;  %v11884_v42 = vpop.f32.mrf.mxu1  ;;  %15800 = vst [vmem:[#allocation230_spill] sm:$0xff] %v11908_v25 }
 0x2c5   : > { %v11886_v6 = vpop.f32.mrf.mxu0  ;;  %v11901_v40 = vmul.f32 %v15787_v34, %v2532_v39  ;;  %v2558_v39 = vadd.f32 %v11685_v48, %v15803_v54 }
 0x2c6   : > { %15793 = vst [vmem:[#allocation142_spill] sm:$0xff] %v11886_v6  ;;  %4424 = vmatmul.mubr.bf16.vlgmr.msra.gmra.mxu1 %v3516_v24  ;;  %v11893_v32 = vpop.f32.mrf.mxu1  ;;  %v3529_v6 = vpack.c.bf16 %v11898_v14, %v11908_v25  ;;  %v15815_v14 = vld [vmem:[#allocation150_spill] sm:$0xff] }
 0x2c7   : > { %4433 = vmatprep.mubr.bf16.mxu1 %v3523_v29  ;;  %v11895_v47 = vpop.f32.mrf.mxu0  ;;  %15798 = vst [vmem:[#allocation228_spill] sm:$0xff] %v11901_v40  ;;  %v3522_v29 = vpack.c.bf16 %v11891_v35, %v11901_v40  ;;  %v15806_v40 = vld [vmem:[#allocation144_spill] sm:$0xff]  ;;  %v11938_v54 = vmul.f32 %v11157_v57, %v2558_v39 }
 0x2c8   : > { %15796 = vst [vmem:[#allocation140_spill] sm:$0xff] %v11895_v47  ;;  %v11903_v4 = vpop.f32.mrf.mxu1  ;;  %v2554_v62 = vadd.f32 %v11662_v20, %v15806_v40  ;;  %v15813_v40 = vld [vmem:[#allocation145_spill] sm:$0xff] }
 0x2c9   : > { %v11905_v24 = vpop.f32.mrf.mxu0  ;;  %15809 = vst [vmem:[#allocation231_spill] sm:$0xff] %v11938_v54  ;;  %v2556_v53 = vadd.f32 %v11674_v61, %v15813_v40 }
 0x2ca   : > { %15799 = vst [vmem:[#allocation229_spill] sm:$0xff] %v11905_v24  ;;  %v11914_v60 = vpop.f32.mrf.mxu1  ;;  %v15804_v24 = vld [vmem:[#allocation139_spill] sm:$0xff]  ;;  %v11948_v20 = vmul.f32 %v11169_v3, %v2554_v62 }
 0x2cb   : > { %v11916_v8 = vpop.f32.mrf.mxu0  ;;  %v2542_v41 = vadd.f32 %v11595_v23, %v15804_v24  ;;  %15807 = vst [vmem:[#allocation139_spill] sm:$0xff] %v11931_v51  ;;  %v11971_v40 = vmul.f32 %v11157_v57, %v2556_v53 }
 0x2cc   : > { %15802 = vst [vmem:[#allocation141_spill] sm:$0xff] %v11916_v8  ;;  %v11924_v47 = vpop.f32.mrf.mxu1  ;;  %15812 = vst [vmem:[#allocation234_spill] sm:$0xff] %v11948_v20 }
 0x2cd   : > { %v11926_v9 = vpop.f32.mrf.mxu0  ;;  %v11941_v23 = vmul.f32 %v11119_v36, %v2542_v41  ;;  %v2568_v41 = vadd.f32 %v11735_v10, %v15815_v14 }
 0x2ce   : > { %15805 = vst [vmem:[#allocation146_spill] sm:$0xff] %v11926_v9  ;;  %4434 = vmatmul.mubr.bf16.gmra.mxu1 %v3522_v29  ;;  %v11933_v35 = vpop.f32.mrf.mxu1  ;;  %v3535_v9 = vpack.c.bf16 %v11938_v54, %v11948_v20  ;;  %v15827_v54 = vld [vmem:[#allocation154_spill] sm:$0xff] }
 0x2cf   : > { %4443 = vmatprep.mubr.bf16.mxu1 %v3529_v6  ;;  %v11935_v48 = vpop.f32.mrf.mxu0  ;;  %15810 = vst [vmem:[#allocation232_spill] sm:$0xff] %v11941_v23  ;;  %v3528_v6 = vpack.c.bf16 %v11931_v51, %v11941_v23  ;;  %v15818_v23 = vld [vmem:[#allocation148_spill] sm:$0xff]  ;;  %v11978_v14 = vmul.f32 %v11207_v43, %v2568_v41 }
 0x2d0   : > { %15808 = vst [vmem:[#allocation144_spill] sm:$0xff] %v11935_v48  ;;  %v11943_v24 = vpop.f32.mrf.mxu1  ;;  %v2564_v61 = vadd.f32 %v11712_v0, %v15818_v23  ;;  %v15825_v23 = vld [vmem:[#allocation149_spill] sm:$0xff] }
 0x2d1   : > { %v11945_v29 = vpop.f32.mrf.mxu0  ;;  %15821 = vst [vmem:[#allocation235_spill] sm:$0xff] %v11978_v14  ;;  %v2566_v53 = vadd.f32 %v11724_v12, %v15825_v23 }
 0x2d2   : > { %15811 = vst [vmem:[#allocation233_spill] sm:$0xff] %v11945_v29  ;;  %v11954_v25 = vpop.f32.mrf.mxu1  ;;  %v15816_v29 = vld [vmem:[#allocation143_spill] sm:$0xff]  ;;  %v11988_v0 = vmul.f32 %v11219_v16, %v2564_v61 }
 0x2d3   : > { %v11956_v39 = vpop.f32.mrf.mxu0  ;;  %v2552_v62 = vadd.f32 %v11645_v56, %v15816_v29  ;;  %15819 = vst [vmem:[#allocation143_spill] sm:$0xff] %v11971_v40  ;;  %v12011_v23 = vmul.f32 %v11207_v43, %v2566_v53 }
 0x2d4   : > { %15814 = vst [vmem:[#allocation145_spill] sm:$0xff] %v11956_v39  ;;  %v11964_v48 = vpop.f32.mrf.mxu1  ;;  %15824 = vst [vmem:[#allocation238_spill] sm:$0xff] %v11988_v0 }
 0x2d5   : > { %v11966_v8 = vpop.f32.mrf.mxu0  ;;  %v11981_v56 = vmul.f32 %v11169_v3, %v2552_v62  ;;  %v2578_v62 = vadd.f32 %v11785_v58, %v15827_v54 }
 0x2d6   : > { %15817 = vst [vmem:[#allocation150_spill] sm:$0xff] %v11966_v8  ;;  %4444 = vmatmul.mubr.bf16.gmra.mxu1 %v3528_v6  ;;  %v11973_v51 = vpop.f32.mrf.mxu1  ;;  %v3541_v8 = vpack.c.bf16 %v11978_v14, %v11988_v0  ;;  %v15839_v14 = vld [vmem:[#allocation85_spill] sm:$0xff] }
 0x2d7   : > { %4453 = vmatprep.mubr.bf16.mxu1 %v3535_v9  ;;  %v11975_v10 = vpop.f32.mrf.mxu0  ;;  %15822 = vst [vmem:[#allocation236_spill] sm:$0xff] %v11981_v56  ;;  %v3534_v9 = vpack.c.bf16 %v11971_v40, %v11981_v56  ;;  %v15830_v56 = vld [vmem:[#allocation152_spill] sm:$0xff]  ;;  %v12018_v54 = vmul.f32 %v11257_v44, %v2578_v62 }
 0x2d8   : > { %15820 = vst [vmem:[#allocation148_spill] sm:$0xff] %v11975_v10  ;;  %v11983_v29 = vpop.f32.mrf.mxu1  ;;  %v2574_v12 = vadd.f32 %v11762_v2, %v15830_v56  ;;  %v15837_v56 = vld [vmem:[#allocation153_spill] sm:$0xff] }
 0x2d9   : > { %v11985_v6 = vpop.f32.mrf.mxu0  ;;  %15833 = vst [vmem:[#allocation239_spill] sm:$0xff] %v12018_v54  ;;  %v2576_v53 = vadd.f32 %v11774_v17, %v15837_v56 }
 0x2da   : > { %15823 = vst [vmem:[#allocation237_spill] sm:$0xff] %v11985_v6  ;;  %v11994_v20 = vpop.f32.mrf.mxu1  ;;  %v15828_v6 = vld [vmem:[#allocation147_spill] sm:$0xff]  ;;  %v12028_v2 = vmul.f32 %v11269_v5, %v2574_v12 }
 0x2db   : > { %v11996_v41 = vpop.f32.mrf.mxu0  ;;  %v2562_v61 = vadd.f32 %v11695_v59, %v15828_v6  ;;  %15831 = vst [vmem:[#allocation147_spill] sm:$0xff] %v12011_v23  ;;  %v12051_v56 = vmul.f32 %v11257_v44, %v2576_v53 }
 0x2dc   : > { %15826 = vst [vmem:[#allocation149_spill] sm:$0xff] %v11996_v41  ;;  %v12004_v10 = vpop.f32.mrf.mxu1  ;;  %15836 = vst [vmem:[#allocation242_spill] sm:$0xff] %v12028_v2 }
 0x2dd   : > { %v12006_v39 = vpop.f32.mrf.mxu0  ;;  %v12021_v59 = vmul.f32 %v11219_v16, %v2562_v61  ;;  %v2588_v61 = vadd.f32 %v11831_v15, %v15839_v14 }
 0x2de   : > { %15829 = vst [vmem:[#allocation154_spill] sm:$0xff] %v12006_v39  ;;  %4454 = vmatmul.mubr.bf16.gmra.mxu1 %v3534_v9  ;;  %v12013_v40 = vpop.f32.mrf.mxu1  ;;  %v3547_v39 = vpack.c.bf16 %v12018_v54, %v12028_v2  ;;  %v15851_v54 = vld [vmem:[#allocation167_spill] sm:$0xff] }
 0x2df   : > { %4463 = vmatprep.mubr.bf16.mxu1 %v3541_v8  ;;  %v12015_v58 = vpop.f32.mrf.mxu0  ;;  %15834 = vst [vmem:[#allocation240_spill] sm:$0xff] %v12021_v59  ;;  %v3540_v8 = vpack.c.bf16 %v12011_v23, %v12021_v59  ;;  %v15842_v59 = vld [vmem:[#allocation156_spill] sm:$0xff]  ;;  %v12058_v14 = vmul.f32 %v11307_v28, %v2588_v61 }
 0x2e0   : > { %15832 = vst [vmem:[#allocation152_spill] sm:$0xff] %v12015_v58  ;;  %v12023_v6 = vpop.f32.mrf.mxu1  ;;  %v2584_v17 = vadd.f32 %v11810_v30, %v15842_v59  ;;  %v15849_v59 = vld [vmem:[#allocation159_spill] sm:$0xff] }
 0x2e1   : > { %v12025_v9 = vpop.f32.mrf.mxu0  ;;  %15845 = vst [vmem:[#allocation243_spill] sm:$0xff] %v12058_v14  ;;  %v2586_v53 = vadd.f32 %v11820_v38, %v15849_v59 }
 0x2e2   : > { %15835 = vst [vmem:[#allocation241_spill] sm:$0xff] %v12025_v9  ;;  %v12034_v0 = vpop.f32.mrf.mxu1  ;;  %v15840_v9 = vld [vmem:[#allocation151_spill] sm:$0xff]  ;;  %v12068_v30 = vmul.f32 %v11319_v19, %v2584_v17 }
 0x2e3   : > { %v12036_v62 = vpop.f32.mrf.mxu0  ;;  %v2572_v12 = vadd.f32 %v11745_v49, %v15840_v9  ;;  %15843 = vst [vmem:[#allocation151_spill] sm:$0xff] %v12051_v56  ;;  %v12091_v59 = vmul.f32 %v11307_v28, %v2586_v53 }
 0x2e4   : > { %15838 = vst [vmem:[#allocation153_spill] sm:$0xff] %v12036_v62  ;;  %v12044_v58 = vpop.f32.mrf.mxu1  ;;  %15848 = vst [vmem:[#allocation246_spill] sm:$0xff] %v12068_v30 }
 0x2e5   : > { %v12046_v41 = vpop.f32.mrf.mxu0  ;;  %v12061_v49 = vmul.f32 %v11269_v5, %v2572_v12  ;;  %v2598_v12 = vadd.f32 %v11874_v18, %v15851_v54 }
 0x2e6   : > { %15841 = vst [vmem:[#allocation85_spill] sm:$0xff] %v12046_v41  ;;  %4464 = vmatmul.mubr.bf16.gmra.mxu1 %v3540_v8  ;;  %v12053_v23 = vpop.f32.mrf.mxu1  ;;  %v3553_v41 = vpack.c.bf16 %v12058_v14, %v12068_v30  ;;  %v15863_v14 = vld [vmem:[#allocation171_spill] sm:$0xff] }
 0x2e7   : > { %4473 = vmatprep.mubr.bf16.mxu1 %v3547_v39  ;;  %v12055_v15 = vpop.f32.mrf.mxu0  ;;  %15846 = vst [vmem:[#allocation244_spill] sm:$0xff] %v12061_v49  ;;  %v3546_v39 = vpack.c.bf16 %v12051_v56, %v12061_v49  ;;  %v15854_v49 = vld [vmem:[#allocation96_spill] sm:$0xff]  ;;  %v12098_v54 = vmul.f32 %v11357_v50, %v2598_v12 }
 0x2e8   : > { %15844 = vst [vmem:[#allocation156_spill] sm:$0xff] %v12055_v15  ;;  %v12063_v9 = vpop.f32.mrf.mxu1  ;;  %v2594_v38 = vadd.f32 %v11853_v26, %v15854_v49  ;;  %v15861_v49 = vld [vmem:[#allocation165_spill] sm:$0xff] }
 0x2e9   : > { %v12065_v8 = vpop.f32.mrf.mxu0  ;;  %15857 = vst [vmem:[#allocation247_spill] sm:$0xff] %v12098_v54  ;;  %v2596_v53 = vadd.f32 %v11863_v7, %v15861_v49 }
 0x2ea   : > { %15847 = vst [vmem:[#allocation245_spill] sm:$0xff] %v12065_v8  ;;  %v12074_v2 = vpop.f32.mrf.mxu1  ;;  %v15852_v8 = vld [vmem:[#allocation155_spill] sm:$0xff]  ;;  %v12108_v26 = vmul.f32 %v11369_v31, %v2594_v38 }
 0x2eb   : > { %v12076_v61 = vpop.f32.mrf.mxu0  ;;  %v2582_v17 = vadd.f32 %v11795_v46, %v15852_v8  ;;  %15855 = vst [vmem:[#allocation155_spill] sm:$0xff] %v12091_v59  ;;  %v12131_v49 = vmul.f32 %v11357_v50, %v2596_v53 }
 0x2ec   : > { %15850 = vst [vmem:[#allocation159_spill] sm:$0xff] %v12076_v61  ;;  %v12084_v15 = vpop.f32.mrf.mxu1  ;;  %15860 = vst [vmem:[#allocation250_spill] sm:$0xff] %v12108_v26 }
 0x2ed   : > { %v12086_v62 = vpop.f32.mrf.mxu0  ;;  %v12101_v46 = vmul.f32 %v11319_v19, %v2582_v17  ;;  %v2608_v17 = vadd.f32 %v11914_v60, %v15863_v14 }
 0x2ee   : > { %15853 = vst [vmem:[#allocation167_spill] sm:$0xff] %v12086_v62  ;;  %4474 = vmatmul.mubr.bf16.gmra.mxu1 %v3546_v39  ;;  %v12093_v56 = vpop.f32.mrf.mxu1  ;;  %v3559_v62 = vpack.c.bf16 %v12098_v54, %v12108_v26  ;;  %v15875_v54 = vld [vmem:[#allocation175_spill] sm:$0xff] }
 0x2ef   : > { %4483 = vmatprep.mubr.bf16.mxu1 %v3553_v41  ;;  %v12095_v18 = vpop.f32.mrf.mxu0  ;;  %15858 = vst [vmem:[#allocation248_spill] sm:$0xff] %v12101_v46  ;;  %v3552_v41 = vpack.c.bf16 %v12091_v59, %v12101_v46  ;;  %v15866_v46 = vld [vmem:[#allocation69_spill] sm:$0xff]  ;;  %v12138_v14 = vmul.f32 %v11407_v21, %v2608_v17 }
 0x2f0   : > { %15856 = vst [vmem:[#allocation96_spill] sm:$0xff] %v12095_v18  ;;  %v12103_v8 = vpop.f32.mrf.mxu1  ;;  %v2604_v7 = vadd.f32 %v11893_v32, %v15866_v46  ;;  %v15873_v46 = vld [vmem:[#allocation169_spill] sm:$0xff] }
 0x2f1   : > { %v12105_v39 = vpop.f32.mrf.mxu0  ;;  %15869 = vst [vmem:[#allocation251_spill] sm:$0xff] %v12138_v14  ;;  %v2606_v53 = vadd.f32 %v11903_v4, %v15873_v46 }
 0x2f2   : > { %15859 = vst [vmem:[#allocation249_spill] sm:$0xff] %v12105_v39  ;;  %v12114_v30 = vpop.f32.mrf.mxu1  ;;  %v15864_v39 = vld [vmem:[#allocation161_spill] sm:$0xff]  ;;  %v12148_v32 = vmul.f32 %v11419_v27, %v2604_v7 }
 0x2f3   : > { %v12116_v12 = vpop.f32.mrf.mxu0  ;;  %v2592_v38 = vadd.f32 %v11841_v45, %v15864_v39  ;;  %15867 = vst [vmem:[#allocation161_spill] sm:$0xff] %v12131_v49  ;;  %v12171_v46 = vmul.f32 %v11407_v21, %v2606_v53 }
 0x2f4   : > { %15862 = vst [vmem:[#allocation165_spill] sm:$0xff] %v12116_v12  ;;  %v12124_v18 = vpop.f32.mrf.mxu1  ;;  %15872 = vst [vmem:[#allocation254_spill] sm:$0xff] %v12148_v32 }
 0x2f5   : > { %v12126_v61 = vpop.f32.mrf.mxu0  ;;  %v12141_v45 = vmul.f32 %v11369_v31, %v2592_v38  ;;  %v2618_v38 = vadd.f32 %v11954_v25, %v15875_v54 }
 0x2f6   : > { %15865 = vst [vmem:[#allocation171_spill] sm:$0xff] %v12126_v61  ;;  %4484 = vmatmul.mubr.bf16.gmra.mxu1 %v3552_v41  ;;  %v12133_v59 = vpop.f32.mrf.mxu1  ;;  %v3565_v61 = vpack.c.bf16 %v12138_v14, %v12148_v32 }
 0x2f7   : > { %4493 = vmatprep.mubr.bf16.mxu1 %v3559_v62  ;;  %v12135_v60 = vpop.f32.mrf.mxu0  ;;  %15870 = vst [vmem:[#allocation252_spill] sm:$0xff] %v12141_v45  ;;  %v3558_v62 = vpack.c.bf16 %v12131_v49, %v12141_v45  ;;  %v15878_v45 = vld [vmem:[#allocation77_spill] sm:$0xff]  ;;  %v12178_v54 = vmul.f32 %v11457_v22, %v2618_v38 }
 0x2f8   : > { %15868 = vst [vmem:[#allocation69_spill] sm:$0xff] %v12135_v60  ;;  %v12143_v39 = vpop.f32.mrf.mxu1  ;;  %v2614_v4 = vadd.f32 %v11933_v35, %v15878_v45  ;;  %v15885_v45 = vld [vmem:[#allocation173_spill] sm:$0xff] }
 0x2f9   : > { %v12145_v41 = vpop.f32.mrf.mxu0  ;;  %15881 = vst [vmem:[#allocation255_spill] sm:$0xff] %v12178_v54  ;;  %v2616_v53 = vadd.f32 %v11943_v24, %v15885_v45  ;;  %v2624_v24 = vadd.f32 %v11973_v51, %v11214_v37  ;;  %v15897_v37 = vld [vmem:[#allocation106_spill] sm:$0xff] }
 0x2fa   : > { %15871 = vst [vmem:[#allocation253_spill] sm:$0xff] %v12145_v41  ;;  %v12154_v26 = vpop.f32.mrf.mxu1  ;;  %v15876_v41 = vld [vmem:[#allocation91_spill] sm:$0xff]  ;;  %v12188_v35 = vmul.f32 %v11469_v1, %v2614_v4 }
 0x2fb   : > { %v12156_v17 = vpop.f32.mrf.mxu0  ;;  %v2602_v7 = vadd.f32 %v11884_v42, %v15876_v41  ;;  %15879 = vst [vmem:[#allocation91_spill] sm:$0xff] %v12171_v46  ;;  %v12209_v45 = vmul.f32 %v11457_v22, %v2616_v53  ;;  %v15902_v22 = vld [vmem:[#allocation184_spill] sm:$0xff] }
 0x2fc   : > { %15874 = vst [vmem:[#allocation169_spill] sm:$0xff] %v12156_v17  ;;  %v12164_v60 = vpop.f32.mrf.mxu1  ;;  %15884 = vst [vmem:[#allocation258_spill] sm:$0xff] %v12188_v35  ;;  %v3571_v14 = vpack.c.bf16 %v12178_v54, %v12188_v35 }
 0x2fd   : > { %v12166_v12 = vpop.f32.mrf.mxu0  ;;  %v12181_v42 = vmul.f32 %v11419_v27, %v2602_v7  ;;  %v2628_v7 = vadd.f32 %v11994_v20, %v11237_v13  ;;  %15889 = vst [vmem:[#allocation259_spill] sm:$0xff] %v12209_v45  ;;  %v15891_v13 = vld [vmem:[#allocation60_spill] sm:$0xff] }
 0x2fe   : > { %15877 = vst [vmem:[#allocation175_spill] sm:$0xff] %v12166_v12  ;;  %4494 = vmatmul.mubr.bf16.gmra.mxu1 %v3558_v62  ;;  %v12173_v49 = vpop.f32.mrf.mxu1  ;;  %v15887_v12 = vld [vmem:[#allocation104_spill] sm:$0xff] }
 0x2ff   : > { %4503 = vmatprep.mubr.bf16.mxu1 %v3565_v61  ;;  %v12175_v25 = vpop.f32.mrf.mxu0  ;;  %15882 = vst [vmem:[#allocation256_spill] sm:$0xff] %v12181_v42  ;;  %v3564_v61 = vpack.c.bf16 %v12171_v46, %v12181_v42  ;;  %v2612_v4 = vadd.f32 %v11924_v47, %v15887_v12  ;;  %v12214_v20 = vmul.f32 %v15891_v13, %v2628_v7 }
 0x300   : > { %15880 = vst [vmem:[#allocation77_spill] sm:$0xff] %v12175_v25  ;;  %v12183_v41 = vpop.f32.mrf.mxu1 }
 0x301   : > { %v12185_v62 = vpop.f32.mrf.mxu0  ;;  %15892 = vst [vmem:[#allocation60_spill] sm:$0xff] %v12214_v20  ;;  %v12217_v35 = vmul.f32 %v11469_v1, %v2612_v4 }
 0x302   : > { %15883 = vst [vmem:[#allocation257_spill] sm:$0xff] %v12185_v62  ;;  %v12194_v32 = vpop.f32.mrf.mxu1 }
 0x303   : > { %v12196_v38 = vpop.f32.mrf.mxu0  ;;  %15893 = vst [vmem:[#allocation261_spill] sm:$0xff] %v12217_v35 }
 0x304   : > { %15886 = vst [vmem:[#allocation173_spill] sm:$0xff] %v12196_v38  ;;  %v3570_v38 = vpack.c.bf16 %v12209_v45, %v12217_v35  ;;  %v15918_v35 = vld [vmem:[#allocation182_spill] sm:$0xff]  ;;  %v15919_v45 = vld [vmem:[#allocation113_spill] sm:$0xff] }
 0x305   : > { %v12204_v25 = vpop.f32.mrf.mxu0 }
 0x306   : > { %v2907_v62 = vpop.f32.mrf.mxu1  ;;  %15888 = vst [vmem:[#allocation104_spill] sm:$0xff] %v12204_v25  ;;  %4504 = vmatmul.mubr.bf16.gmra.mxu1 %v3564_v61  ;;  %v15895_v61 = vld [vmem:[#allocation203_spill] sm:$0xff]  ;;  %v15900_v25 = vld [vmem:[#allocation108_spill] sm:$0xff] }
 0x307   : > { %4513 = vmatprep.mubr.bf16.mxu1 %v3571_v14  ;;  %v12211_v46 = vpop.f32.mrf.mxu0  ;;  %v12222_v54 = vmul.f32 %v15895_v61, %v2624_v24  ;;  %v15898_v14 = vld [vmem:[#allocation205_spill] sm:$0xff]  ;;  %v2908_v17 = vadd.f32 %v2907_v62, %v15900_v25  ;;  %v15903_v24 = vld [vmem:[#allocation107_spill] sm:$0xff]  ;;  %v15906_v25 = vld [vmem:[#allocation100_spill] sm:$0xff] }
 0x308   : > { %v2909_v42 = vpop.f32.mrf.mxu1  ;;  %15890 = vst [vmem:[#allocation260_spill] sm:$0xff] %v12211_v46  ;;  %v15899_v46 = vld [vmem:[#allocation177_spill] sm:$0xff]  ;;  %v2634_v62 = vadd.f32 %v12013_v40, %v15906_v25 }
 0x309   : > { %v12219_v12 = vpop.f32.mrf.mxu0  ;;  %15896 = vst [vmem:[#allocation203_spill] sm:$0xff] %v12222_v54  ;;  %v2910_v51 = vadd.f32 %v2909_v42, %v15897_v37  ;;  %v2626_v7 = vadd.f32 %v11983_v29, %v15899_v46  ;;  %v3577_v42 = vpack.c.bf16 %v12214_v20, %v12222_v54  ;;  %v15917_v54 = vld [vmem:[#allocation209_spill] sm:$0xff] }
 0x30a   : > { %v2911_v47 = vpop.f32.mrf.mxu1  ;;  %15894 = vst [vmem:[#allocation262_spill] sm:$0xff] %v12219_v12  ;;  %v2638_v12 = vadd.f32 %v12034_v0, %v15902_v22 }
 0x30b   : > { %v2912_v53 = vadd.f32 %v2911_v47, %v15898_v14  ;;  %v12231_v1 = vpop.f32.mrf.mxu0  ;;  %v15904_v47 = vld [vmem:[#allocation109_spill] sm:$0xff]  ;;  %v12248_v22 = vmul.f32 %v15772_v33, %v2910_v51 }
 0x30c   : > { %v2913_v4 = vpop.f32.mrf.mxu1  ;;  %15901 = vst [vmem:[#allocation106_spill] sm:$0xff] %v12231_v1  ;;  %v2622_v37 = vadd.f32 %v11964_v48, %v15904_v47  ;;  %v12257_v48 = vmul.f32 %v15772_v33, %v2908_v17  ;;  %v15914_v33 = vld [vmem:[#allocation207_spill] sm:$0xff]  ;;  %v15921_v1 = vld [vmem:[#allocation112_spill] sm:$0xff] }
 0x30d   : > { %v2914_v27 = vadd.f32 %v2913_v4, %v15903_v24  ;;  %v12241_v14 = vmul.f32 %v15768_v11, %v2912_v53  ;;  %v12243_v46 = vpop.f32.mrf.mxu0  ;;  %15907 = vst [vmem:[#allocation177_spill] sm:$0xff] %v12248_v22  ;;  %v12254_v4 = vmul.f32 %v15891_v13, %v2626_v7  ;;  %v12274_v17 = vmul.f32 %v15914_v33, %v2634_v62 }
 0x30e   : > { %v2917_v29 = vpop.f32.mrf.mxu1  ;;  %4514 = vmatmul.mubr.bf16.gmra.mxu1 %v3570_v38  ;;  %15910 = vst [vmem:[#allocation107_spill] sm:$0xff] %v12257_v48  ;;  %v15911_v38 = vld [vmem:[#allocation105_spill] sm:$0xff]  ;;  %v12267_v51 = vmul.f32 %v15895_v61, %v2622_v37  ;;  %v2636_v37 = vadd.f32 %v12023_v6, %v15918_v35 }
 0x30f   : > { %15905 = vst [vmem:[#allocation205_spill] sm:$0xff] %v12241_v14  ;;  %v12251_v0 = vmul.f32 %v15768_v11, %v2914_v27  ;;  %4523 = vmatprep.mubr.bf16.mxu1 %v3577_v42  ;;  %15909 = vst [vmem:[#allocation184_spill] sm:$0xff] %v12254_v4  ;;  %v12259_v24 = vpop.f32.mrf.mxu0  ;;  %v12262_v47 = vmul.f32 %v15911_v38, %v2638_v12  ;;  %v3518_v27 = vpack.c.bf16 %v12241_v14, %v12257_v48  ;;  %v15916_v42 = vld [vmem:[#allocation111_spill] sm:$0xff]  ;;  %v15920_v14 = vld [vmem:[#allocation190_spill] sm:$0xff] }
 0x310   : > { %v2919_v53 = vpop.f32.mrf.mxu1  ;;  %15913 = vst [vmem:[#allocation100_spill] sm:$0xff] %v12267_v51  ;;  %15915 = vst [vmem:[#allocation105_spill] sm:$0xff] %v12274_v17  ;;  %v3576_v20 = vpack.c.bf16 %v12254_v4, %v12267_v51  ;;  %v2648_v62 = vadd.f32 %v12074_v2, %v15920_v14  ;;  %v12306_v14 = vmul.f32 %v15911_v38, %v2636_v37 }
 0x311   : > { %15908 = vst [vmem:[#allocation108_spill] sm:$0xff] %v12251_v0  ;;  %15912 = vst [vmem:[#allocation109_spill] sm:$0xff] %v12262_v47  ;;  %v3519_v40 = vpack.c.bf16 %v12251_v0, %v12248_v22  ;;  %v12271_v7 = vpop.f32.mrf.mxu0  ;;  %v2920_v25 = vadd.f32 %v2919_v53, %v15916_v42  ;;  %v2918_v22 = vadd.f32 %v2917_v29, %v15919_v45  ;;  %v15924_v45 = vld [vmem:[#allocation66_spill] sm:$0xff] }
 0x312   : > { %v2921_v11 = vpop.f32.mrf.mxu1  ;;  %v2644_v29 = vadd.f32 %v12053_v23, %v15924_v45  ;;  %15927 = vst [vmem:[#allocation182_spill] sm:$0xff] %v12306_v14 }
 0x313   : > { %v2922_v12 = vadd.f32 %v2921_v11, %v15917_v54  ;;  %4616 = vmatprep.mubr.bf16.mxu0 %v3519_v40  ;;  %v12283_v0 = vpop.f32.mrf.mxu0  ;;  %v3583_v54 = vpack.c.bf16 %v12262_v47, %v12274_v17  ;;  %v15922_v40 = vld [vmem:[#allocation179_spill] sm:$0xff]  ;;  %v12300_v2 = vmul.f32 %v15787_v34, %v2920_v25  ;;  %v15935_v17 = vld [vmem:[#allocation188_spill] sm:$0xff]  ;;  %v15936_v47 = vld [vmem:[#allocation117_spill] sm:$0xff] }
 0x314   : > { %v2923_v48 = vpop.f32.mrf.mxu1  ;;  %4617 = vmatmul.mubr.bf16.vlgmr.msra.gmra.mxu0 %v3518_v27  ;;  %v2632_v11 = vadd.f32 %v12004_v10, %v15922_v40  ;;  %v12309_v10 = vmul.f32 %v15787_v34, %v2918_v22  ;;  %v15931_v34 = vld [vmem:[#allocation61_spill] sm:$0xff]  ;;  %v15934_v40 = vld [vmem:[#allocation212_spill] sm:$0xff] }
 0x315   : > { %v2924_v53 = vadd.f32 %v2923_v48, %v15921_v1  ;;  %v12293_v42 = vmul.f32 %v15783_v52, %v2922_v12  ;;  %v12295_v35 = vpop.f32.mrf.mxu0  ;;  %15925 = vst [vmem:[#allocation111_spill] sm:$0xff] %v12300_v2  ;;  %v12326_v22 = vmul.f32 %v15931_v34, %v2644_v29 }
 0x316   : > { %v2927_v6 = vpop.f32.mrf.mxu1  ;;  %4524 = vmatmul.mubr.bf16.gmra.mxu1 %v3576_v20  ;;  %15928 = vst [vmem:[#allocation113_spill] sm:$0xff] %v12309_v10  ;;  %v12314_v20 = vmul.f32 %v11607_v55, %v2648_v62  ;;  %v12319_v25 = vmul.f32 %v15914_v33, %v2632_v11  ;;  %v2646_v11 = vadd.f32 %v12063_v9, %v15935_v17  ;;  %v15941_v17 = vld [vmem:[#allocation73_spill] sm:$0xff] }
 0x317   : > { %15923 = vst [vmem:[#allocation207_spill] sm:$0xff] %v12293_v42  ;;  %v12303_v1 = vmul.f32 %v15783_v52, %v2924_v53  ;;  %4533 = vmatprep.mubr.bf16.mxu1 %v3583_v54  ;;  %v12311_v27 = vpop.f32.mrf.mxu0  ;;  %v3524_v52 = vpack.c.bf16 %v12293_v42, %v12309_v10  ;;  %15932 = vst [vmem:[#allocation179_spill] sm:$0xff] %v12326_v22  ;;  %v15933_v53 = vld [vmem:[#allocation86_spill] sm:$0xff]  ;;  %v2928_v51 = vadd.f32 %v2927_v6, %v15936_v47  ;;  %v15937_v10 = vld [vmem:[#allocation196_spill] sm:$0xff] }
 0x318   : > { %v2929_v48 = vpop.f32.mrf.mxu1  ;;  %15929 = vst [vmem:[#allocation190_spill] sm:$0xff] %v12314_v20  ;;  %15930 = vst [vmem:[#allocation112_spill] sm:$0xff] %v12319_v25  ;;  %v3582_v45 = vpack.c.bf16 %v12306_v14, %v12319_v25  ;;  %v2658_v29 = vadd.f32 %v12114_v30, %v15937_v10  ;;  %v2654_v6 = vadd.f32 %v12093_v56, %v15941_v17  ;;  %v15952_v17 = vld [vmem:[#allocation216_spill] sm:$0xff]  ;;  %v15954_v25 = vld [vmem:[#allocation121_spill] sm:$0xff] }
 0x319   : > { %15926 = vst [vmem:[#allocation209_spill] sm:$0xff] %v12303_v1  ;;  %v3525_v23 = vpack.c.bf16 %v12303_v1, %v12300_v2  ;;  %v12323_v37 = vpop.f32.mrf.mxu0  ;;  %v2930_v54 = vadd.f32 %v2929_v48, %v15933_v53  ;;  %v15938_v1 = vld [vmem:[#allocation116_spill] sm:$0xff]  ;;  %v16088_v42 = vld [vmem:[#allocation173_spill] sm:$0xff] }
 0x31a   : > { %v2931_v12 = vpop.f32.mrf.mxu1 }
 0x31b   : > { %v2932_v62 = vadd.f32 %v2931_v12, %v15934_v40  ;;  %4626 = vmatprep.mubr.bf16.mxu0 %v3525_v23  ;;  %v12335_v2 = vpop.f32.mrf.mxu0  ;;  %v3589_v23 = vpack.c.bf16 %v12314_v20, %v12326_v22  ;;  %v15939_v12 = vld [vmem:[#allocation185_spill] sm:$0xff]  ;;  %v12352_v30 = vmul.f32 %v11119_v36, %v2930_v54  ;;  %v15953_v20 = vld [vmem:[#allocation194_spill] sm:$0xff] }
 0x31c   : > { %v2933_v4 = vpop.f32.mrf.mxu1  ;;  %4627 = vmatmul.mubr.bf16.gmra.mxu0 %v3524_v52  ;;  %v2642_v53 = vadd.f32 %v12044_v58, %v15939_v12  ;;  %v12361_v58 = vmul.f32 %v11119_v36, %v2928_v51  ;;  %v15949_v36 = vld [vmem:[#allocation214_spill] sm:$0xff] }
 0x31d   : > { %v2934_v48 = vadd.f32 %v2933_v4, %v15938_v1  ;;  %v12345_v40 = vmul.f32 %v11107_v63, %v2932_v62  ;;  %v12347_v47 = vpop.f32.mrf.mxu0  ;;  %15942 = vst [vmem:[#allocation61_spill] sm:$0xff] %v12352_v30  ;;  %v12358_v1 = vmul.f32 %v11607_v55, %v2646_v11  ;;  %v15946_v62 = vld [vmem:[#allocation114_spill] sm:$0xff]  ;;  %v12378_v51 = vmul.f32 %v15949_v36, %v2654_v6 }
 0x31e   : > { %v2937_v9 = vpop.f32.mrf.mxu1  ;;  %4534 = vmatmul.mubr.bf16.gmra.mxu1 %v3582_v45  ;;  %15945 = vst [vmem:[#allocation188_spill] sm:$0xff] %v12361_v58  ;;  %v12366_v45 = vmul.f32 %v15946_v62, %v2658_v29  ;;  %v12371_v54 = vmul.f32 %v15931_v34, %v2642_v53  ;;  %v2656_v53 = vadd.f32 %v12103_v8, %v15953_v20 }
 0x31f   : > { %15940 = vst [vmem:[#allocation66_spill] sm:$0xff] %v12345_v40  ;;  %v12355_v4 = vmul.f32 %v11107_v63, %v2934_v48  ;;  %4543 = vmatprep.mubr.bf16.mxu1 %v3589_v23  ;;  %15944 = vst [vmem:[#allocation212_spill] sm:$0xff] %v12358_v1  ;;  %v12363_v52 = vpop.f32.mrf.mxu0  ;;  %v3530_v63 = vpack.c.bf16 %v12345_v40, %v12361_v58  ;;  %v15951_v23 = vld [vmem:[#allocation119_spill] sm:$0xff]  ;;  %v2938_v14 = vadd.f32 %v2937_v9, %v15954_v25  ;;  %v15957_v40 = vld [vmem:[#allocation120_spill] sm:$0xff] }
 0x320   : > { %v2939_v10 = vpop.f32.mrf.mxu1  ;;  %15947 = vst [vmem:[#allocation117_spill] sm:$0xff] %v12366_v45  ;;  %15948 = vst [vmem:[#allocation196_spill] sm:$0xff] %v12371_v54  ;;  %v3588_v22 = vpack.c.bf16 %v12358_v1, %v12371_v54  ;;  %v15961_v25 = vld [vmem:[#allocation75_spill] sm:$0xff]  ;;  %v15976_v54 = vld [vmem:[#allocation125_spill] sm:$0xff] }
 0x321   : > { %15943 = vst [vmem:[#allocation86_spill] sm:$0xff] %v12355_v4  ;;  %v3531_v56 = vpack.c.bf16 %v12355_v4, %v12352_v30  ;;  %v12375_v48 = vpop.f32.mrf.mxu0  ;;  %15950 = vst [vmem:[#allocation116_spill] sm:$0xff] %v12378_v51  ;;  %v2940_v12 = vadd.f32 %v2939_v10, %v15951_v23  ;;  %v15956_v4 = vld [vmem:[#allocation87_spill] sm:$0xff]  ;;  %v2664_v9 = vadd.f32 %v12133_v59, %v15961_v25  ;;  %v15974_v25 = vld [vmem:[#allocation220_spill] sm:$0xff] }
 0x322   : > { %v2941_v11 = vpop.f32.mrf.mxu1  ;;  %v2668_v6 = vadd.f32 %v12154_v26, %v15956_v4 }
 0x323   : > { %v2942_v29 = vadd.f32 %v2941_v11, %v15952_v17  ;;  %4636 = vmatprep.mubr.bf16.mxu0 %v3531_v56  ;;  %v12387_v58 = vpop.f32.mrf.mxu0  ;;  %v3595_v56 = vpack.c.bf16 %v12366_v45, %v12378_v51  ;;  %v15958_v11 = vld [vmem:[#allocation191_spill] sm:$0xff]  ;;  %v12404_v26 = vmul.f32 %v11169_v3, %v2940_v12  ;;  %v15975_v45 = vld [vmem:[#allocation197_spill] sm:$0xff] }
 0x324   : > { %v2943_v30 = vpop.f32.mrf.mxu1  ;;  %15955 = vst [vmem:[#allocation185_spill] sm:$0xff] %v12387_v58  ;;  %4637 = vmatmul.mubr.bf16.gmra.mxu0 %v3530_v63  ;;  %v2652_v23 = vadd.f32 %v12084_v15, %v15958_v11  ;;  %v12413_v15 = vmul.f32 %v11169_v3, %v2938_v14  ;;  %v15971_v3 = vld [vmem:[#allocation218_spill] sm:$0xff] }
 0x325   : > { %v2944_v10 = vadd.f32 %v2943_v30, %v15957_v40  ;;  %v12397_v17 = vmul.f32 %v11157_v57, %v2942_v29  ;;  %v12399_v20 = vpop.f32.mrf.mxu0  ;;  %15962 = vst [vmem:[#allocation214_spill] sm:$0xff] %v12404_v26  ;;  %v12410_v30 = vmul.f32 %v15946_v62, %v2656_v53  ;;  %v12430_v14 = vmul.f32 %v15971_v3, %v2664_v9 }
 0x326   : > { %v2947_v8 = vpop.f32.mrf.mxu1  ;;  %15960 = vst [vmem:[#allocation114_spill] sm:$0xff] %v12399_v20  ;;  %4544 = vmatmul.mubr.bf16.gmra.mxu1 %v3588_v22  ;;  %15965 = vst [vmem:[#allocation194_spill] sm:$0xff] %v12413_v15  ;;  %v15967_v22 = vld [vmem:[#allocation118_spill] sm:$0xff]  ;;  %v12423_v12 = vmul.f32 %v15949_v36, %v2652_v23  ;;  %v2666_v23 = vadd.f32 %v12143_v39, %v15975_v45 }
 0x327   : > { %15959 = vst [vmem:[#allocation73_spill] sm:$0xff] %v12397_v17  ;;  %v12407_v40 = vmul.f32 %v11157_v57, %v2944_v10  ;;  %4553 = vmatprep.mubr.bf16.mxu1 %v3595_v56  ;;  %15964 = vst [vmem:[#allocation216_spill] sm:$0xff] %v12410_v30  ;;  %v12415_v63 = vpop.f32.mrf.mxu0  ;;  %v12418_v29 = vmul.f32 %v15967_v22, %v2668_v6  ;;  %v3536_v57 = vpack.c.bf16 %v12397_v17, %v12413_v15  ;;  %v15973_v56 = vld [vmem:[#allocation123_spill] sm:$0xff]  ;;  %v15979_v17 = vld [vmem:[#allocation124_spill] sm:$0xff] }
 0x328   : > { %v2949_v4 = vpop.f32.mrf.mxu1  ;;  %15966 = vst [vmem:[#allocation121_spill] sm:$0xff] %v12415_v63  ;;  %15969 = vst [vmem:[#allocation120_spill] sm:$0xff] %v12423_v12  ;;  %v3594_v51 = vpack.c.bf16 %v12410_v30, %v12423_v12  ;;  %v2948_v1 = vadd.f32 %v2947_v8, %v15976_v54  ;;  %v15983_v54 = vld [vmem:[#allocation64_spill] sm:$0xff]  ;;  %v15998_v12 = vld [vmem:[#allocation130_spill] sm:$0xff] }
 0x329   : > { %15963 = vst [vmem:[#allocation119_spill] sm:$0xff] %v12407_v40  ;;  %15968 = vst [vmem:[#allocation87_spill] sm:$0xff] %v12418_v29  ;;  %v3537_v59 = vpack.c.bf16 %v12407_v40, %v12404_v26  ;;  %v12427_v10 = vpop.f32.mrf.mxu0  ;;  %v2950_v11 = vadd.f32 %v2949_v4, %v15973_v56  ;;  %v15978_v40 = vld [vmem:[#allocation102_spill] sm:$0xff]  ;;  %v2674_v8 = vadd.f32 %v12173_v49, %v15983_v54  ;;  %v15996_v54 = vld [vmem:[#allocation224_spill] sm:$0xff] }
 0x32a   : > { %v2951_v53 = vpop.f32.mrf.mxu1  ;;  %15970 = vst [vmem:[#allocation191_spill] sm:$0xff] %v12427_v10  ;;  %15972 = vst [vmem:[#allocation75_spill] sm:$0xff] %v12430_v14  ;;  %v2678_v9 = vadd.f32 %v12194_v32, %v15978_v40 }
 0x32b   : > { %v2952_v6 = vadd.f32 %v2951_v53, %v15974_v25  ;;  %4646 = vmatprep.mubr.bf16.mxu0 %v3537_v59  ;;  %v12439_v15 = vpop.f32.mrf.mxu0  ;;  %v3601_v59 = vpack.c.bf16 %v12418_v29, %v12430_v14  ;;  %v15980_v53 = vld [vmem:[#allocation88_spill] sm:$0xff]  ;;  %v12456_v32 = vmul.f32 %v11219_v16, %v2950_v11  ;;  %v15997_v29 = vld [vmem:[#allocation201_spill] sm:$0xff] }
 0x32c   : > { %v2953_v26 = vpop.f32.mrf.mxu1  ;;  %15977 = vst [vmem:[#allocation118_spill] sm:$0xff] %v12439_v15  ;;  %4647 = vmatmul.mubr.bf16.gmra.mxu0 %v3536_v57  ;;  %v2662_v56 = vadd.f32 %v12124_v18, %v15980_v53  ;;  %v12465_v18 = vmul.f32 %v11219_v16, %v2948_v1  ;;  %v15993_v16 = vld [vmem:[#allocation222_spill] sm:$0xff] }
 0x32d   : > { %v2954_v4 = vadd.f32 %v2953_v26, %v15979_v17  ;;  %v12449_v25 = vmul.f32 %v11207_v43, %v2952_v6  ;;  %v12451_v45 = vpop.f32.mrf.mxu0  ;;  %15984 = vst [vmem:[#allocation220_spill] sm:$0xff] %v12456_v32  ;;  %v12462_v26 = vmul.f32 %v15967_v22, %v2666_v23  ;;  %v12482_v1 = vmul.f32 %v15993_v16, %v2674_v8 }
 0x32e   : > { %v2957_v39 = vpop.f32.mrf.mxu1  ;;  %15982 = vst [vmem:[#allocation123_spill] sm:$0xff] %v12451_v45  ;;  %4554 = vmatmul.mubr.bf16.gmra.mxu1 %v3594_v51  ;;  %15987 = vst [vmem:[#allocation102_spill] sm:$0xff] %v12465_v18  ;;  %v15989_v51 = vld [vmem:[#allocation122_spill] sm:$0xff]  ;;  %v12475_v11 = vmul.f32 %v15971_v3, %v2662_v56  ;;  %v2676_v56 = vadd.f32 %v12183_v41, %v15997_v29 }
 0x32f   : > { %15981 = vst [vmem:[#allocation218_spill] sm:$0xff] %v12449_v25  ;;  %v12459_v17 = vmul.f32 %v11207_v43, %v2954_v4  ;;  %4563 = vmatprep.mubr.bf16.mxu1 %v3601_v59  ;;  %15986 = vst [vmem:[#allocation125_spill] sm:$0xff] %v12462_v26  ;;  %v12467_v57 = vpop.f32.mrf.mxu0  ;;  %v12470_v6 = vmul.f32 %v15989_v51, %v2678_v9  ;;  %v3542_v43 = vpack.c.bf16 %v12449_v25, %v12465_v18  ;;  %v15995_v59 = vld [vmem:[#allocation128_spill] sm:$0xff] }
 0x330   : > { %v2959_v40 = vpop.f32.mrf.mxu1  ;;  %15988 = vst [vmem:[#allocation124_spill] sm:$0xff] %v12467_v57  ;;  %15991 = vst [vmem:[#allocation64_spill] sm:$0xff] %v12475_v11  ;;  %v3600_v14 = vpack.c.bf16 %v12462_v26, %v12475_v11  ;;  %v2958_v30 = vadd.f32 %v2957_v39, %v15998_v12  ;;  %v12510_v12 = vmul.f32 %v15989_v51, %v2676_v56  ;;  %v16008_v56 = vld [vmem:[#allocation92_spill] sm:$0xff] }
 0x331   : > { %15985 = vst [vmem:[#allocation197_spill] sm:$0xff] %v12459_v17  ;;  %15990 = vst [vmem:[#allocation88_spill] sm:$0xff] %v12470_v6  ;;  %v3543_v49 = vpack.c.bf16 %v12459_v17, %v12456_v32  ;;  %v12479_v4 = vpop.f32.mrf.mxu0  ;;  %v2960_v53 = vadd.f32 %v2959_v40, %v15995_v59  ;;  %v15999_v17 = vld [vmem:[#allocation129_spill] sm:$0xff]  ;;  %v3607_v40 = vpack.c.bf16 %v12470_v6, %v12482_v1  ;;  %v16000_v59 = vld [vmem:[#allocation103_spill] sm:$0xff] }
 0x332   : > { %v2961_v23 = vpop.f32.mrf.mxu1  ;;  %15992 = vst [vmem:[#allocation122_spill] sm:$0xff] %v12479_v4  ;;  %15994 = vst [vmem:[#allocation222_spill] sm:$0xff] %v12482_v1  ;;  %v12513_v39 = vmul.f32 %v11269_v5, %v2958_v30  ;;  %v16009_v30 = vld [vmem:[#allocation134_spill] sm:$0xff] }
 0x333   : > { %v2962_v9 = vadd.f32 %v2961_v23, %v15996_v54  ;;  %4656 = vmatprep.mubr.bf16.mxu0 %v3543_v49  ;;  %v12491_v18 = vpop.f32.mrf.mxu0  ;;  %v2672_v49 = vadd.f32 %v12164_v60, %v16000_v59  ;;  %v12504_v41 = vmul.f32 %v11269_v5, %v2960_v53  ;;  %16004 = vst [vmem:[#allocation130_spill] sm:$0xff] %v12510_v12  ;;  %v16007_v53 = vld [vmem:[#allocation95_spill] sm:$0xff] }
 0x334   : > { %v2963_v32 = vpop.f32.mrf.mxu1  ;;  %4657 = vmatmul.mubr.bf16.gmra.mxu0 %v3542_v43  ;;  %16005 = vst [vmem:[#allocation129_spill] sm:$0xff] %v12513_v39 }
 0x335   : > { %v2964_v8 = vadd.f32 %v2963_v32, %v15999_v17  ;;  %v12499_v23 = vmul.f32 %v11257_v44, %v2962_v9  ;;  %v12501_v11 = vpop.f32.mrf.mxu0  ;;  %16002 = vst [vmem:[#allocation224_spill] sm:$0xff] %v12504_v41  ;;  %v12518_v17 = vmul.f32 %v15993_v16, %v2672_v49  ;;  %v16010_v49 = vld [vmem:[#allocation133_spill] sm:$0xff] }
 0x336   : > { %v2967_v54 = vpop.f32.mrf.mxu1  ;;  %4564 = vmatmul.mubr.bf16.gmra.mxu1 %v3600_v14 }
 0x337   : > { %16001 = vst [vmem:[#allocation128_spill] sm:$0xff] %v12499_v23  ;;  %v12507_v29 = vmul.f32 %v11257_v44, %v2964_v8  ;;  %4573 = vmatprep.mubr.bf16.mxu1 %v3607_v40  ;;  %16006 = vst [vmem:[#allocation103_spill] sm:$0xff] %v12518_v17  ;;  %v3548_v14 = vpack.c.bf16 %v12499_v23, %v12513_v39  ;;  %v12522_v43 = vpop.f32.mrf.mxu0  ;;  %v3606_v5 = vpack.c.bf16 %v12510_v12, %v12518_v17 }
 0x338   : > { %v2969_v60 = vpop.f32.mrf.mxu1  ;;  %v2968_v40 = vadd.f32 %v2967_v54, %v16009_v30 }
 0x339   : > { %16003 = vst [vmem:[#allocation201_spill] sm:$0xff] %v12507_v29  ;;  %v3549_v32 = vpack.c.bf16 %v12507_v29, %v12504_v41  ;;  %v2970_v9 = vadd.f32 %v2969_v60, %v16007_v53  ;;  %v12533_v26 = vpop.f32.mrf.mxu0  ;;  %v16038_v29 = vld [vmem:[#allocation199_spill] sm:$0xff] }
 0x33a   : > { %v2971_v44 = vpop.f32.mrf.mxu1 }
 0x33b   : > { %v2972_v8 = vadd.f32 %v2971_v44, %v16008_v56  ;;  %4666 = vmatprep.mubr.bf16.mxu0 %v3549_v32  ;;  %v12536_v60 = vmul.f32 %v11319_v19, %v2970_v9  ;;  %v12542_v44 = vmul.f32 %v11319_v19, %v2968_v40  ;;  %v12548_v56 = vpop.f32.mrf.mxu0  ;;  %v16016_v9 = vld [vmem:[#allocation226_spill] sm:$0xff]  ;;  %v16018_v19 = vld [vmem:[#allocation137_spill] sm:$0xff] }
 0x33c   : > { %v2973_v59 = vpop.f32.mrf.mxu1  ;;  %4667 = vmatmul.mubr.bf16.gmra.mxu0 %v3548_v14 }
 0x33d   : > { %v2974_v1 = vadd.f32 %v2973_v59, %v16010_v49  ;;  %v12531_v6 = vmul.f32 %v11307_v28, %v2972_v8  ;;  %16012 = vst [vmem:[#allocation92_spill] sm:$0xff] %v12536_v60  ;;  %16014 = vst [vmem:[#allocation133_spill] sm:$0xff] %v12542_v44  ;;  %v12554_v17 = vpop.f32.mrf.mxu0 }
 0x33e   : > { %v2977_v41 = vpop.f32.mrf.mxu1  ;;  %4574 = vmatmul.mubr.bf16.gmra.mxu1 %v3606_v5  ;;  %v16015_v5 = vld [vmem:[#allocation97_spill] sm:$0xff] }
 0x33f   : > { %16011 = vst [vmem:[#allocation95_spill] sm:$0xff] %v12531_v6  ;;  %v12539_v32 = vmul.f32 %v11307_v28, %v2974_v1  ;;  %v3554_v53 = vpack.c.bf16 %v12531_v6, %v12542_v44  ;;  %v16017_v28 = vld [vmem:[#allocation138_spill] sm:$0xff]  ;;  %v16028_v6 = vld [vmem:[#allocation83_spill] sm:$0xff] }
 0x340   : > { %v2979_v54 = vpop.f32.mrf.mxu1  ;;  %v2978_v1 = vadd.f32 %v2977_v41, %v16017_v28 }
 0x341   : > { %16013 = vst [vmem:[#allocation134_spill] sm:$0xff] %v12539_v32  ;;  %v3555_v14 = vpack.c.bf16 %v12539_v32, %v12536_v60  ;;  %v2980_v30 = vadd.f32 %v2979_v54, %v16015_v5 }
 0x342   : > { %v2981_v8 = vpop.f32.mrf.mxu1 }
 0x343   : > { %v2982_v59 = vadd.f32 %v2981_v8, %v16016_v9  ;;  %4676 = vmatprep.mubr.bf16.mxu0 %v3555_v14  ;;  %v12560_v44 = vmul.f32 %v11369_v31, %v2980_v30  ;;  %v12566_v14 = vmul.f32 %v11369_v31, %v2978_v1  ;;  %v12570_v8 = vpop.f32.mrf.mxu0  ;;  %v16024_v30 = vld [vmem:[#allocation229_spill] sm:$0xff] }
 0x344   : > { %v2983_v49 = vpop.f32.mrf.mxu1  ;;  %4677 = vmatmul.mubr.bf16.gmra.mxu0 %v3554_v53  ;;  %v16026_v31 = vld [vmem:[#allocation141_spill] sm:$0xff] }
 0x345   : > { %v2984_v40 = vadd.f32 %v2983_v49, %v16018_v19  ;;  %v12557_v12 = vmul.f32 %v11357_v50, %v2982_v59  ;;  %16020 = vst [vmem:[#allocation226_spill] sm:$0xff] %v12560_v44  ;;  %16022 = vst [vmem:[#allocation137_spill] sm:$0xff] %v12566_v14  ;;  %v16023_v59 = vld [vmem:[#allocation140_spill] sm:$0xff]  ;;  %v12578_v32 = vpop.f32.mrf.mxu0 }
 0x346   : > { %v2987_v60 = vpop.f32.mrf.mxu1 }
 0x347   : > { %16019 = vst [vmem:[#allocation97_spill] sm:$0xff] %v12557_v12  ;;  %v12563_v54 = vmul.f32 %v11357_v50, %v2984_v40  ;;  %v3560_v5 = vpack.c.bf16 %v12557_v12, %v12566_v14  ;;  %v16025_v50 = vld [vmem:[#allocation142_spill] sm:$0xff] }
 0x348   : > { %v2989_v41 = vpop.f32.mrf.mxu1  ;;  %v2988_v19 = vadd.f32 %v2987_v60, %v16025_v50 }
 0x349   : > { %16021 = vst [vmem:[#allocation138_spill] sm:$0xff] %v12563_v54  ;;  %v3561_v53 = vpack.c.bf16 %v12563_v54, %v12560_v44  ;;  %v2990_v28 = vadd.f32 %v2989_v41, %v16023_v59 }
 0x34a   : > { %v2991_v9 = vpop.f32.mrf.mxu1 }
 0x34b   : > { %v2992_v49 = vadd.f32 %v2991_v9, %v16024_v30  ;;  %4686 = vmatprep.mubr.bf16.mxu0 %v3561_v53  ;;  %v12584_v14 = vmul.f32 %v16028_v6, %v2990_v28  ;;  %v12590_v53 = vmul.f32 %v16028_v6, %v2988_v19  ;;  %v12594_v9 = vpop.f32.mrf.mxu0  ;;  %v16033_v28 = vld [vmem:[#allocation233_spill] sm:$0xff] }
 0x34c   : > { %v2993_v40 = vpop.f32.mrf.mxu1  ;;  %4687 = vmatmul.mubr.bf16.gmra.mxu0 %v3560_v5  ;;  %v16035_v6 = vld [vmem:[#allocation145_spill] sm:$0xff] }
 0x34d   : > { %v2994_v1 = vadd.f32 %v2993_v40, %v16026_v31  ;;  %v12581_v44 = vmul.f32 %v11407_v21, %v2992_v49  ;;  %16029 = vst [vmem:[#allocation229_spill] sm:$0xff] %v12584_v14  ;;  %16031 = vst [vmem:[#allocation141_spill] sm:$0xff] %v12590_v53  ;;  %v16032_v49 = vld [vmem:[#allocation144_spill] sm:$0xff]  ;;  %v12602_v12 = vpop.f32.mrf.mxu0 }
 0x34e   : > { %v2997_v54 = vpop.f32.mrf.mxu1 }
 0x34f   : > { %16027 = vst [vmem:[#allocation140_spill] sm:$0xff] %v12581_v44  ;;  %v12587_v41 = vmul.f32 %v11407_v21, %v2994_v1  ;;  %v3566_v59 = vpack.c.bf16 %v12581_v44, %v12590_v53  ;;  %v16034_v21 = vld [vmem:[#allocation146_spill] sm:$0xff] }
 0x350   : > { %v2999_v60 = vpop.f32.mrf.mxu1  ;;  %v2998_v31 = vadd.f32 %v2997_v54, %v16034_v21 }
 0x351   : > { %16030 = vst [vmem:[#allocation142_spill] sm:$0xff] %v12587_v41  ;;  %v3567_v5 = vpack.c.bf16 %v12587_v41, %v12584_v14  ;;  %v3000_v50 = vadd.f32 %v2999_v60, %v16032_v49  ;;  %v16036_v14 = vld [vmem:[#allocation79_spill] sm:$0xff] }
 0x352   : > { %v3001_v30 = vpop.f32.mrf.mxu1 }
 0x353   : > { %v3002_v40 = vadd.f32 %v3001_v30, %v16033_v28  ;;  %4696 = vmatprep.mubr.bf16.mxu0 %v3567_v5  ;;  %v12608_v53 = vmul.f32 %v16038_v29, %v3000_v50  ;;  %v12614_v5 = vmul.f32 %v16038_v29, %v2998_v31  ;;  %v12618_v30 = vpop.f32.mrf.mxu0  ;;  %v16043_v50 = vld [vmem:[#allocation237_spill] sm:$0xff] }
 0x354   : > { %v3003_v1 = vpop.f32.mrf.mxu1  ;;  %4697 = vmatmul.mubr.bf16.gmra.mxu0 %v3566_v59  ;;  %v16045_v29 = vld [vmem:[#allocation149_spill] sm:$0xff] }
 0x355   : > { %v3004_v19 = vadd.f32 %v3003_v1, %v16035_v6  ;;  %v12605_v41 = vmul.f32 %v16036_v14, %v3002_v40  ;;  %16039 = vst [vmem:[#allocation144_spill] sm:$0xff] %v12608_v53  ;;  %16041 = vst [vmem:[#allocation146_spill] sm:$0xff] %v12614_v5  ;;  %v16042_v40 = vld [vmem:[#allocation148_spill] sm:$0xff]  ;;  %v12626_v44 = vpop.f32.mrf.mxu0 }
 0x356   : > { %v3007_v39 = vpop.f32.mrf.mxu1 }
 0x357   : > { %16037 = vst [vmem:[#allocation83_spill] sm:$0xff] %v12605_v41  ;;  %v12611_v60 = vmul.f32 %v16036_v14, %v3004_v19  ;;  %v3572_v49 = vpack.c.bf16 %v12605_v41, %v12614_v5  ;;  %v16044_v14 = vld [vmem:[#allocation150_spill] sm:$0xff] }
 0x358   : > { %v3009_v54 = vpop.f32.mrf.mxu1  ;;  %v3008_v6 = vadd.f32 %v3007_v39, %v16044_v14 }
 0x359   : > { %16040 = vst [vmem:[#allocation233_spill] sm:$0xff] %v12611_v60  ;;  %v3573_v59 = vpack.c.bf16 %v12611_v60, %v12608_v53  ;;  %v3010_v21 = vadd.f32 %v3009_v54, %v16042_v40 }
 0x35a   : > { %v3011_v28 = vpop.f32.mrf.mxu1 }
 0x35b   : > { %v3012_v1 = vadd.f32 %v3011_v28, %v16043_v50  ;;  %4706 = vmatprep.mubr.bf16.mxu0 %v3573_v59  ;;  %v12632_v5 = vmul.f32 %v15895_v61, %v3010_v21  ;;  %v12638_v59 = vmul.f32 %v15895_v61, %v3008_v6  ;;  %v12642_v28 = vpop.f32.mrf.mxu0  ;;  %v16051_v21 = vld [vmem:[#allocation241_spill] sm:$0xff] }
 0x35c   : > { %v3013_v19 = vpop.f32.mrf.mxu1  ;;  %4707 = vmatmul.mubr.bf16.gmra.mxu0 %v3572_v49  ;;  %v16053_v61 = vld [vmem:[#allocation153_spill] sm:$0xff] }
 0x35d   : > { %v3014_v31 = vadd.f32 %v3013_v19, %v16045_v29  ;;  %v12629_v53 = vmul.f32 %v15891_v13, %v3012_v1  ;;  %16047 = vst [vmem:[#allocation79_spill] sm:$0xff] %v12632_v5  ;;  %16049 = vst [vmem:[#allocation148_spill] sm:$0xff] %v12638_v59  ;;  %v16050_v1 = vld [vmem:[#allocation152_spill] sm:$0xff]  ;;  %v12650_v41 = vpop.f32.mrf.mxu0 }
 0x35e   : > { %v3017_v60 = vpop.f32.mrf.mxu1 }
 0x35f   : > { %16046 = vst [vmem:[#allocation145_spill] sm:$0xff] %v12629_v53  ;;  %v12635_v54 = vmul.f32 %v15891_v13, %v3014_v31  ;;  %v3578_v40 = vpack.c.bf16 %v12629_v53, %v12638_v59  ;;  %v16052_v13 = vld [vmem:[#allocation154_spill] sm:$0xff] }
 0x360   : > { %v3019_v39 = vpop.f32.mrf.mxu1  ;;  %v3018_v29 = vadd.f32 %v3017_v60, %v16052_v13 }
 0x361   : > { %16048 = vst [vmem:[#allocation199_spill] sm:$0xff] %v12635_v54  ;;  %v3579_v49 = vpack.c.bf16 %v12635_v54, %v12632_v5  ;;  %v3020_v14 = vadd.f32 %v3019_v39, %v16050_v1 }
 0x362   : > { %v3021_v50 = vpop.f32.mrf.mxu1 }
 0x363   : > { %v3022_v19 = vadd.f32 %v3021_v50, %v16051_v21  ;;  %4716 = vmatprep.mubr.bf16.mxu0 %v3579_v49  ;;  %v12656_v59 = vmul.f32 %v15914_v33, %v3020_v14  ;;  %v12662_v49 = vmul.f32 %v15914_v33, %v3018_v29  ;;  %v12666_v50 = vpop.f32.mrf.mxu0  ;;  %v16059_v14 = vld [vmem:[#allocation245_spill] sm:$0xff]  ;;  %v16061_v33 = vld [vmem:[#allocation159_spill] sm:$0xff] }
 0x364   : > { %v3023_v31 = vpop.f32.mrf.mxu1  ;;  %4717 = vmatmul.mubr.bf16.gmra.mxu0 %v3578_v40 }
 0x365   : > { %v3024_v6 = vadd.f32 %v3023_v31, %v16053_v61  ;;  %v12653_v5 = vmul.f32 %v15911_v38, %v3022_v19  ;;  %16055 = vst [vmem:[#allocation150_spill] sm:$0xff] %v12656_v59  ;;  %16057 = vst [vmem:[#allocation152_spill] sm:$0xff] %v12662_v49  ;;  %v16058_v19 = vld [vmem:[#allocation156_spill] sm:$0xff]  ;;  %v12674_v53 = vpop.f32.mrf.mxu0 }
 0x366   : > { %v3027_v54 = vpop.f32.mrf.mxu1 }
 0x367   : > { %16054 = vst [vmem:[#allocation237_spill] sm:$0xff] %v12653_v5  ;;  %v12659_v39 = vmul.f32 %v15911_v38, %v3024_v6  ;;  %v3584_v1 = vpack.c.bf16 %v12653_v5, %v12662_v49  ;;  %v16060_v38 = vld [vmem:[#allocation85_spill] sm:$0xff] }
 0x368   : > { %v3029_v60 = vpop.f32.mrf.mxu1  ;;  %v3028_v61 = vadd.f32 %v3027_v54, %v16060_v38 }
 0x369   : > { %16056 = vst [vmem:[#allocation149_spill] sm:$0xff] %v12659_v39  ;;  %v3585_v40 = vpack.c.bf16 %v12659_v39, %v12656_v59  ;;  %v3030_v13 = vadd.f32 %v3029_v60, %v16058_v19 }
 0x36a   : > { %v3031_v21 = vpop.f32.mrf.mxu1 }
 0x36b   : > { %v3032_v31 = vadd.f32 %v3031_v21, %v16059_v14  ;;  %4726 = vmatprep.mubr.bf16.mxu0 %v3585_v40  ;;  %v12680_v49 = vmul.f32 %v15931_v34, %v3030_v13  ;;  %v12686_v40 = vmul.f32 %v15931_v34, %v3028_v61  ;;  %v12690_v21 = vpop.f32.mrf.mxu0  ;;  %v16067_v13 = vld [vmem:[#allocation249_spill] sm:$0xff] }
 0x36c   : > { %v3033_v6 = vpop.f32.mrf.mxu1  ;;  %4727 = vmatmul.mubr.bf16.gmra.mxu0 %v3584_v1  ;;  %v16069_v34 = vld [vmem:[#allocation165_spill] sm:$0xff] }
 0x36d   : > { %v3034_v29 = vadd.f32 %v3033_v6, %v16061_v33  ;;  %v12677_v59 = vmul.f32 %v11607_v55, %v3032_v31  ;;  %16063 = vst [vmem:[#allocation154_spill] sm:$0xff] %v12680_v49  ;;  %16065 = vst [vmem:[#allocation156_spill] sm:$0xff] %v12686_v40  ;;  %v16066_v31 = vld [vmem:[#allocation96_spill] sm:$0xff]  ;;  %v12698_v5 = vpop.f32.mrf.mxu0 }
 0x36e   : > { %v3037_v39 = vpop.f32.mrf.mxu1 }
 0x36f   : > { %16062 = vst [vmem:[#allocation241_spill] sm:$0xff] %v12677_v59  ;;  %v12683_v60 = vmul.f32 %v11607_v55, %v3034_v29  ;;  %v3590_v19 = vpack.c.bf16 %v12677_v59, %v12686_v40  ;;  %v16068_v55 = vld [vmem:[#allocation167_spill] sm:$0xff]  ;;  %v3706_v59 = vld [vmem:[#allocation10] sm:$0x3] }
 0x370   : > { %v3039_v54 = vpop.f32.mrf.mxu1  ;;  %v3038_v33 = vadd.f32 %v3037_v39, %v16068_v55 }
 0x371   : > { %16064 = vst [vmem:[#allocation153_spill] sm:$0xff] %v12683_v60  ;;  %v3591_v1 = vpack.c.bf16 %v12683_v60, %v12680_v49  ;;  %v3040_v38 = vadd.f32 %v3039_v54, %v16066_v31 }
 0x372   : > { %v3041_v14 = vpop.f32.mrf.mxu1 }
 0x373   : > { %v3042_v6 = vadd.f32 %v3041_v14, %v16067_v13  ;;  %4736 = vmatprep.mubr.bf16.mxu0 %v3591_v1  ;;  %v12704_v40 = vmul.f32 %v15949_v36, %v3040_v38  ;;  %v12710_v1 = vmul.f32 %v15949_v36, %v3038_v33  ;;  %v12714_v14 = vpop.f32.mrf.mxu0  ;;  %v16075_v38 = vld [vmem:[#allocation253_spill] sm:$0xff] }
 0x374   : > { %v3043_v29 = vpop.f32.mrf.mxu1  ;;  %4737 = vmatmul.mubr.bf16.gmra.mxu0 %v3590_v19  ;;  %v16077_v36 = vld [vmem:[#allocation169_spill] sm:$0xff] }
 0x375   : > { %v3044_v61 = vadd.f32 %v3043_v29, %v16069_v34  ;;  %v12701_v49 = vmul.f32 %v15946_v62, %v3042_v6  ;;  %16071 = vst [vmem:[#allocation85_spill] sm:$0xff] %v12704_v40  ;;  %16073 = vst [vmem:[#allocation96_spill] sm:$0xff] %v12710_v1  ;;  %v16074_v6 = vld [vmem:[#allocation69_spill] sm:$0xff]  ;;  %v12722_v23 = vpop.f32.mrf.mxu0 }
 0x376   : > { %v3047_v60 = vpop.f32.mrf.mxu1 }
 0x377   : > { %16070 = vst [vmem:[#allocation245_spill] sm:$0xff] %v12701_v49  ;;  %v12707_v54 = vmul.f32 %v15946_v62, %v3044_v61  ;;  %v3596_v31 = vpack.c.bf16 %v12701_v49, %v12710_v1  ;;  %v16076_v62 = vld [vmem:[#allocation171_spill] sm:$0xff] }
 0x378   : > { %v3049_v39 = vpop.f32.mrf.mxu1  ;;  %v3048_v34 = vadd.f32 %v3047_v60, %v16076_v62  ;;  %v16083_v62 = vld [vmem:[#allocation23_spill] sm:$0xff] }
 0x379   : > { %16072 = vst [vmem:[#allocation159_spill] sm:$0xff] %v12707_v54  ;;  %v3597_v19 = vpack.c.bf16 %v12707_v54, %v12704_v40  ;;  %v3050_v55 = vadd.f32 %v3049_v39, %v16074_v6 }
 0x37a   : > { %v3051_v13 = vpop.f32.mrf.mxu1 }
 0x37b   : > { %v3052_v29 = vadd.f32 %v3051_v13, %v16075_v38  ;;  %4746 = vmatprep.mubr.bf16.mxu0 %v3597_v19  ;;  %v12728_v1 = vmul.f32 %v15971_v3, %v3050_v55  ;;  %v12734_v19 = vmul.f32 %v15971_v3, %v3048_v34  ;;  %v12741_v38 = vpop.f32.mrf.mxu0  ;;  %v16085_v3 = vld [vmem:[#allocation257_spill] sm:$0xff] }
 0x37c   : > { %v3053_v61 = vpop.f32.mrf.mxu1  ;;  %4747 = vmatmul.mubr.bf16.gmra.mxu0 %v3596_v31  ;;  %v16082_v31 = vld [vmem:[#allocation29_spill] sm:$0xff] }
 0x37d   : > { %v3054_v33 = vadd.f32 %v3053_v61, %v16077_v36  ;;  %v12725_v40 = vmul.f32 %v15967_v22, %v3052_v29  ;;  %16079 = vst [vmem:[#allocation167_spill] sm:$0xff] %v12728_v1  ;;  %16081 = vst [vmem:[#allocation69_spill] sm:$0xff] %v12734_v19  ;;  %v12737_v13 = vrot.slane %v3706_v59, %v16082_v31  ;;  %v12754_v58 = vpop.f32.mrf.mxu0 }
 0x37e   : > { %v3057_v54 = vpop.f32.mrf.mxu1  ;;  %v12746_v61 = vrot.slane %v3706_v59, %v16083_v62 }
 0x37f   : > { %16078 = vst [vmem:[#allocation249_spill] sm:$0xff] %v12725_v40  ;;  %v12731_v39 = vmul.f32 %v15967_v22, %v3054_v33  ;;  %v3602_v29 = vpack.c.bf16 %v12725_v40, %v12734_v19  ;;  %v16084_v22 = vld [vmem:[#allocation77_spill] sm:$0xff]  ;;  %v16086_v33 = vld [vmem:[#allocation175_spill] sm:$0xff] }
 0x380   : > { %v3059_v60 = vpop.f32.mrf.mxu1  ;;  %v3058_v49 = vadd.f32 %v3057_v54, %v16086_v33  ;;  %v12778_v33 = vpop.f32.mrf.mxu0  ;;  %v4315_v15 = vadd.f32 %v12618_v30, %v12746_v61  ;;  %v4323_v30 = vadd.f32 %v12650_v41, %v12737_v13  ;;  %v4329_v41 = vadd.f32 %v12690_v21, %v12746_v61 }
 0x381   : > { %16080 = vst [vmem:[#allocation165_spill] sm:$0xff] %v12731_v39  ;;  %v3603_v6 = vpack.c.bf16 %v12731_v39, %v12728_v1  ;;  %v3060_v36 = vadd.f32 %v3059_v60, %v16084_v22  ;;  %v16087_v1 = vld [vmem:[#allocation104_spill] sm:$0xff]  ;;  %v4335_v21 = vadd.f32 %v12714_v14, %v12746_v61  ;;  %v4339_v14 = vadd.f32 %v12741_v38, %v12746_v61 }
 0x382   : > { %v3061_v55 = vpop.f32.mrf.mxu1  ;;  %v4233_v39 = vadd.f32 %v16087_v1, %v12737_v13  ;;  %v16090_v60 = vld [vmem:[#allocation260_spill] sm:$0xff]  ;;  %v12770_v1 = vmul.f32 %v15993_v16, %v3058_v49  ;;  %v4243_v49 = vadd.f32 %v12243_v46, %v12737_v13  ;;  %v4345_v38 = vadd.f32 %v12778_v33, %v12746_v61 }
 0x383   : > { %v3062_v34 = vadd.f32 %v3061_v55, %v16085_v3  ;;  %4756 = vmatprep.mubr.bf16.mxu0 %v3603_v6  ;;  %v4235_v22 = vadd.f32 %v16090_v60, %v12746_v61  ;;  %v12762_v6 = vmul.f32 %v15993_v16, %v3060_v36  ;;  %v12788_v36 = vpop.f32.mrf.mxu0  ;;  %v4245_v60 = vadd.f32 %v12259_v24, %v12746_v61 }
 0x384   : > { %v3063_v25 = vpop.f32.mrf.mxu1  ;;  %4757 = vmatmul.mubr.bf16.gmra.mxu0 %v3602_v29  ;;  %16093 = vst [vmem:[#allocation77_spill] sm:$0xff] %v12770_v1 }
 0x385   : > { %v3064_v31 = vadd.f32 %v3063_v25, %v16088_v42  ;;  %v12757_v19 = vmul.f32 %v15989_v51, %v3062_v34  ;;  %16091 = vst [vmem:[#allocation171_spill] sm:$0xff] %v12762_v6  ;;  %v16094_v25 = vld [vmem:[#allocation262_spill] sm:$0xff] }
 0x386   : > { %v4425_v59 = vpop.f32.mrf.mxu1  ;;  %v4237_v55 = vadd.f32 %v16094_v25, %v12737_v13  ;;  %v4247_v25 = vadd.f32 %v12271_v7, %v12737_v13 }
 0x387   : > { %16089 = vst [vmem:[#allocation253_spill] sm:$0xff] %v12757_v19  ;;  %v12765_v54 = vmul.f32 %v15989_v51, %v3064_v31  ;;  %v12767_v29 = vadd.f32 %v4425_v59, %v4233_v39  ;;  %v3608_v51 = vpack.c.bf16 %v12757_v19, %v12770_v1  ;;  %v4263_v19 = vadd.f32 %v12347_v47, %v12737_v13 }
 0x388   : > { %v4427_v42 = vpop.f32.mrf.mxu1 }
 0x389   : > { %16092 = vst [vmem:[#allocation169_spill] sm:$0xff] %v12765_v54  ;;  %v12774_v3 = vadd.f32 %v4427_v42, %v4235_v22  ;;  %v3609_v34 = vpack.c.bf16 %v12765_v54, %v12762_v6  ;;  %v4253_v6 = vadd.f32 %v12295_v35, %v12737_v13 }
 0x38a   : > { %v4429_v31 = vpop.f32.mrf.mxu1 }
 0x38b   : > { %v12782_v39 = vadd.f32 %v4429_v31, %v4237_v55  ;;  %4766 = vmatprep.mubr.bf16.mxu0 %v3609_v34  ;;  %v12798_v34 = vpop.f32.mrf.mxu0 }
 0x38c   : > { %v12784_v16 = vpop.f32.mrf.mxu1  ;;  %4767 = vmatmul.mubr.bf16.gmra.mxu0 %v3608_v51  ;;  %16095 = vst [vmem:[#allocation257_spill] sm:$0xff] %v12798_v34 }
 0x38d   : > { %v12806_v1 = vpop.f32.mrf.mxu0 }
 0x38e   : > { %v4435_v59 = vpop.f32.mrf.mxu1  ;;  %16096 = vst [vmem:[#allocation175_spill] sm:$0xff] %v12806_v1 }
 0x38f   : > { %v12792_v22 = vadd.f32 %v4435_v59, %v4243_v49  ;;  %v4255_v49 = vadd.f32 %v12311_v27, %v12746_v61 }
 0x390   : > { %v4437_v42 = vpop.f32.mrf.mxu1 }
 0x391   : > { %v12796_v55 = vadd.f32 %v4437_v42, %v4245_v60  ;;  %v4257_v60 = vadd.f32 %v12323_v37, %v12737_v13 }
 0x392   : > { %v4439_v51 = vpop.f32.mrf.mxu1 }
 0x393   : > { %v12800_v31 = vadd.f32 %v4439_v51, %v4247_v25  ;;  %v12816_v25 = vpop.f32.mrf.mxu0 }
 0x394   : > { %v12802_v46 = vpop.f32.mrf.mxu1  ;;  %16097 = vst [vmem:[#allocation104_spill] sm:$0xff] %v12816_v25 }
 0x395   : > { %v12824_v40 = vpop.f32.mrf.mxu0 }
 0x396   : > { %v4445_v24 = vpop.f32.mrf.mxu1  ;;  %16098 = vst [vmem:[#allocation173_spill] sm:$0xff] %v12824_v40 }
 0x397   : > { %v12810_v59 = vadd.f32 %v4445_v24, %v4253_v6  ;;  %v4265_v6 = vadd.f32 %v12363_v52, %v12746_v61 }
 0x398   : > { %v4447_v7 = vpop.f32.mrf.mxu1 }
 0x399   : > { %v12814_v42 = vadd.f32 %v4447_v7, %v4255_v49  ;;  %v4267_v49 = vadd.f32 %v12375_v48, %v12737_v13 }
 0x39a   : > { %v4449_v51 = vpop.f32.mrf.mxu1 }
 0x39b   : > { %v12818_v54 = vadd.f32 %v4449_v51, %v4257_v60  ;;  %v12834_v60 = vpop.f32.mrf.mxu0 }
 0x39c   : > { %v12820_v35 = vpop.f32.mrf.mxu1  ;;  %16099 = vst [vmem:[#allocation260_spill] sm:$0xff] %v12834_v60 }
 0x39d   : > { %v12840_v1 = vpop.f32.mrf.mxu0 }
 0x39e   : > { %v4455_v27 = vpop.f32.mrf.mxu1  ;;  %16101 = vst [vmem:[#allocation263_spill] sm:$0xff] %v12840_v1 }
 0x39f   : > { %v12828_v24 = vadd.f32 %v4455_v27, %v4263_v19  ;;  %v12846_v19 = vpop.f32.mrf.mxu0 }
 0x3a0   : > { %v4457_v37 = vpop.f32.mrf.mxu1  ;;  %16104 = vst [vmem:[#allocation266_spill] sm:$0xff] %v12846_v19 }
 0x3a1   : > { %v12832_v7 = vadd.f32 %v4457_v37, %v4265_v6  ;;  %v12852_v6 = vpop.f32.mrf.mxu0 }
 0x3a2   : > { %v4459_v51 = vpop.f32.mrf.mxu1  ;;  %16107 = vst [vmem:[#allocation269_spill] sm:$0xff] %v12852_v6 }
 0x3a3   : > { %v12836_v34 = vadd.f32 %v4459_v51, %v4267_v49  ;;  %v12858_v51 = vpop.f32.mrf.mxu0 }
 0x3a4   : > { %v12838_v47 = vpop.f32.mrf.mxu1  ;;  %16110 = vst [vmem:[#allocation272_spill] sm:$0xff] %v12858_v51 }
 0x3a5   : > { %16100 = vst [vmem:[#allocation262_spill] sm:$0xff] %v12838_v47  ;;  %v12864_v1 = vpop.f32.mrf.mxu0 }
 0x3a6   : > { %v12842_v25 = vpop.f32.mrf.mxu1  ;;  %16112 = vst [vmem:[#allocation274_spill] sm:$0xff] %v12864_v1 }
 0x3a7   : > { %16102 = vst [vmem:[#allocation264_spill] sm:$0xff] %v12842_v25  ;;  %v12870_v25 = vpop.f32.mrf.mxu0 }
 0x3a8   : > { %v12844_v52 = vpop.f32.mrf.mxu1  ;;  %16113 = vst [vmem:[#allocation275_spill] sm:$0xff] %v12870_v25 }
 0x3a9   : > { %16103 = vst [vmem:[#allocation265_spill] sm:$0xff] %v12844_v52  ;;  %v12876_v52 = vpop.f32.mrf.mxu0 }
 0x3aa   : > { %v12848_v27 = vpop.f32.mrf.mxu1  ;;  %16114 = vst [vmem:[#allocation276_spill] sm:$0xff] %v12876_v52 }
 0x3ab   : > { %16105 = vst [vmem:[#allocation267_spill] sm:$0xff] %v12848_v27  ;;  %v12882_v63 = vpop.f32.mrf.mxu0 }
 0x3ac   : > { %v12850_v48 = vpop.f32.mrf.mxu1  ;;  %16115 = vst [vmem:[#allocation277_spill] sm:$0xff] %v12882_v63 }
 0x3ad   : > { %16106 = vst [vmem:[#allocation268_spill] sm:$0xff] %v12850_v48  ;;  %v4313_v48 = vadd.f32 %v12602_v12, %v12737_v13  ;;  %v12890_v25 = vpop.f32.mrf.mxu0  ;;  %v4319_v12 = vadd.f32 %v12642_v28, %v12746_v61  ;;  %v4327_v28 = vadd.f32 %v12674_v53, %v12737_v13 }
 0x3ae   : > { %v12854_v37 = vpop.f32.mrf.mxu1  ;;  %16116 = vst [vmem:[#allocation278_spill] sm:$0xff] %v12890_v25 }
 0x3af   : > { %16108 = vst [vmem:[#allocation270_spill] sm:$0xff] %v12854_v37  ;;  %v12900_v62 = vpop.f32.mrf.mxu0 }
 0x3b0   : > { %v12856_v49 = vpop.f32.mrf.mxu1  ;;  %16117 = vst [vmem:[#allocation279_spill] sm:$0xff] %v12900_v62 }
 0x3b1   : > { %16109 = vst [vmem:[#allocation271_spill] sm:$0xff] %v12856_v49  ;;  %v4317_v49 = vadd.f32 %v12626_v44, %v12737_v13 }
 0x3b2   : > { %v12860_v40 = vpop.f32.mrf.mxu1 }
 0x3b3   : > { %16111 = vst [vmem:[#allocation273_spill] sm:$0xff] %v12860_v40 }
 0x3b4   : > { %v12862_v60 = vpop.f32.mrf.mxu1 }
 0x3b6   : > { %v12866_v47 = vpop.f32.mrf.mxu1 }
 0x3b8   : > { %v12868_v19 = vpop.f32.mrf.mxu1 }
 0x3ba   : > { %v12872_v20 = vpop.f32.mrf.mxu1 }
 0x3bc   : > { %v12874_v6 = vpop.f32.mrf.mxu1 }
 0x3be   : > { %v12878_v27 = vpop.f32.mrf.mxu1 }
 0x3c0   : > { %v12880_v51 = vpop.f32.mrf.mxu1 }
 0x3c2   : > { %v12884_v10 = vpop.f32.mrf.mxu1 }
 0x3c4   : > { %v12886_v1 = vpop.f32.mrf.mxu1 }
 0x3c6   : > { %v4505_v37 = vpop.f32.mrf.mxu1 }
 0x3c7   : > { %v12894_v52 = vadd.f32 %v4505_v37, %v4313_v48  ;;  %v12910_v37 = vpop.f32.mrf.mxu0 }
 0x3c8   : > { %v4507_v45 = vpop.f32.mrf.mxu1  ;;  %16118 = vst [vmem:[#allocation280_spill] sm:$0xff] %v12910_v37 }
 0x3c9   : > { %v12898_v63 = vadd.f32 %v4507_v45, %v4315_v15  ;;  %v4325_v15 = vadd.f32 %v12666_v50, %v12746_v61 }
 0x3ca   : > { %v4509_v40 = vpop.f32.mrf.mxu1 }
 0x3cb   : > { %v12904_v57 = vadd.f32 %v4509_v40, %v4317_v49  ;;  %v12920_v49 = vpop.f32.mrf.mxu0 }
 0x3cc   : > { %v4511_v25 = vpop.f32.mrf.mxu1  ;;  %16119 = vst [vmem:[#allocation281_spill] sm:$0xff] %v12920_v49 }
 0x3cd   : > { %v12908_v48 = vadd.f32 %v4511_v25, %v4319_v12 }
 0x3ce   : > { %v4515_v4 = vpop.f32.mrf.mxu1 }
 0x3cf   : > { %v12914_v45 = vadd.f32 %v4515_v4, %v4323_v30  ;;  %v4333_v4 = vadd.f32 %v12698_v5, %v12737_v13 }
 0x3d0   : > { %v4517_v44 = vpop.f32.mrf.mxu1 }
 0x3d1   : > { %v12918_v40 = vadd.f32 %v4517_v44, %v4325_v15  ;;  %v16122_v44 = vld [vmem:[#allocation106_spill] sm:$0xff] }
 0x3d2   : > { %v4519_v62 = vpop.f32.mrf.mxu1  ;;  %v4239_v49 = vadd.f32 %v16122_v44, %v12746_v61 }
 0x3d3   : > { %v12924_v25 = vadd.f32 %v4519_v62, %v4327_v28 }
 0x3d4   : > { %v4521_v12 = vpop.f32.mrf.mxu1  ;;  %v4618_v37 = vpop.f32.mrf.mxu0 }
 0x3d5   : > { %16120 = vst [vmem:[#allocation282_spill] sm:$0xff] %v12924_v25  ;;  %v12928_v50 = vadd.f32 %v4521_v12, %v4329_v41  ;;  %v12931_v30 = vadd.f32 %v4618_v37, %v12767_v29  ;;  %v4337_v41 = vadd.f32 %v12722_v23, %v12737_v13  ;;  %v4432_v29 = vadd.f32 %v12784_v16, %v4239_v49 }
 0x3d6   : > { %v4525_v53 = vpop.f32.mrf.mxu1  ;;  %v4620_v15 = vpop.f32.mrf.mxu0  ;;  %v4343_v23 = vadd.f32 %v12754_v58, %v12737_v13 }
 0x3d7   : > { %16121 = vst [vmem:[#allocation283_spill] sm:$0xff] %v12931_v30  ;;  %v12937_v62 = vadd.f32 %v4525_v53, %v4333_v4  ;;  %v12940_v28 = vadd.f32 %v4620_v15, %v12774_v3 }
 0x3d8   : > { %v4527_v25 = vpop.f32.mrf.mxu1  ;;  %v4622_v5 = vpop.f32.mrf.mxu0 }
 0x3d9   : > { %16123 = vst [vmem:[#allocation106_spill] sm:$0xff] %v12940_v28  ;;  %v12945_v37 = vadd.f32 %v4527_v25, %v4335_v21  ;;  %v12948_v12 = vadd.f32 %v4622_v5, %v12782_v39  ;;  %v4249_v21 = vadd.f32 %v12283_v0, %v12746_v61 }
 0x3da   : > { %v4529_v44 = vpop.f32.mrf.mxu1  ;;  %v4624_v30 = vpop.f32.mrf.mxu0 }
 0x3db   : > { %16124 = vst [vmem:[#allocation284_spill] sm:$0xff] %v12948_v12  ;;  %v12952_v4 = vadd.f32 %v4529_v44, %v4337_v41  ;;  %v12954_v3 = vadd.f32 %v4624_v30, %v4432_v29  ;;  %v4347_v29 = vadd.f32 %v12788_v36, %v12737_v13  ;;  %v4259_v36 = vadd.f32 %v12335_v2, %v12746_v61 }
 0x3dc   : > { %v4531_v53 = vpop.f32.mrf.mxu1  ;;  %v4628_v15 = vpop.f32.mrf.mxu0  ;;  %v4305_v12 = vadd.f32 %v12570_v8, %v12746_v61  ;;  %v4299_v8 = vadd.f32 %v12548_v56, %v12746_v61  ;;  %v4295_v56 = vadd.f32 %v12522_v43, %v12746_v61 }
 0x3dd   : > { %16125 = vst [vmem:[#allocation285_spill] sm:$0xff] %v12954_v3  ;;  %v12958_v16 = vadd.f32 %v4531_v53, %v4339_v14  ;;  %v12961_v49 = vadd.f32 %v4628_v15, %v12792_v22  ;;  %v4442_v22 = vadd.f32 %v12802_v46, %v4249_v21  ;;  %v4309_v3 = vadd.f32 %v12594_v9, %v12746_v61 }
 0x3de   : > { %v4535_v39 = vpop.f32.mrf.mxu1  ;;  %v4630_v25 = vpop.f32.mrf.mxu0 }
 0x3df   : > { %16126 = vst [vmem:[#allocation286_spill] sm:$0xff] %v12961_v49  ;;  %v12967_v30 = vadd.f32 %v4535_v39, %v4343_v23  ;;  %v12970_v5 = vadd.f32 %v4630_v25, %v12796_v55 }
 0x3e0   : > { %v4537_v41 = vpop.f32.mrf.mxu1  ;;  %v4632_v58 = vpop.f32.mrf.mxu0 }
 0x3e1   : > { %16127 = vst [vmem:[#allocation287_spill] sm:$0xff] %v12970_v5  ;;  %v12975_v44 = vadd.f32 %v4537_v41, %v4345_v38  ;;  %v12978_v14 = vadd.f32 %v4632_v58, %v12800_v31  ;;  %v4452_v31 = vadd.f32 %v12820_v35, %v4259_v36 }
 0x3e2   : > { %v4539_v0 = vpop.f32.mrf.mxu1  ;;  %v4634_v53 = vpop.f32.mrf.mxu0 }
 0x3e3   : > { %16128 = vst [vmem:[#allocation288_spill] sm:$0xff] %v12978_v14  ;;  %v12980_v33 = vadd.f32 %v4539_v0, %v4347_v29  ;;  %v12982_v15 = vadd.f32 %v4634_v53, %v4442_v22  ;;  %v4498_v14 = vadd.f32 %v12880_v51, %v4305_v12 }
 0x3e4   : > { %v4638_v55 = vpop.f32.mrf.mxu0 }
 0x3e5   : > { %16129 = vst [vmem:[#allocation289_spill] sm:$0xff] %v12982_v15  ;;  %v12985_v23 = vadd.f32 %v4638_v55, %v12810_v59  ;;  %v4502_v15 = vadd.f32 %v12886_v1, %v4309_v3 }
 0x3e6   : > { %v4640_v39 = vpop.f32.mrf.mxu0 }
 0x3e7   : > { %16130 = vst [vmem:[#allocation290_spill] sm:$0xff] %v12985_v23  ;;  %v12990_v46 = vadd.f32 %v4640_v39, %v12814_v42  ;;  %v4303_v23 = vadd.f32 %v12554_v17, %v12737_v13  ;;  %v4297_v17 = vadd.f32 %v12533_v26, %v12737_v13 }
 0x3e8   : > { %v4642_v25 = vpop.f32.mrf.mxu0 }
 0x3e9   : > { %16131 = vst [vmem:[#allocation291_spill] sm:$0xff] %v12990_v46  ;;  %v12994_v21 = vadd.f32 %v4642_v25, %v12818_v54  ;;  %v4496_v9 = vadd.f32 %v12878_v27, %v4303_v23 }
 0x3ea   : > { %v4644_v38 = vpop.f32.mrf.mxu0 }
 0x3eb   : > { %16132 = vst [vmem:[#allocation292_spill] sm:$0xff] %v12994_v21  ;;  %v12996_v41 = vadd.f32 %v4644_v38, %v4452_v31 }
 0x3ec   : > { %v4648_v58 = vpop.f32.mrf.mxu0 }
 0x3ed   : > { %16133 = vst [vmem:[#allocation293_spill] sm:$0xff] %v12996_v41  ;;  %v12999_v59 = vadd.f32 %v4648_v58, %v12828_v24 }
 0x3ee   : > { %v4650_v29 = vpop.f32.mrf.mxu0 }
 0x3ef   : > { %v13002_v22 = vadd.f32 %v4650_v29, %v12832_v7  ;;  %v4307_v29 = vadd.f32 %v12578_v32, %v12737_v13 }
 0x3f0   : > { %v4652_v2 = vpop.f32.mrf.mxu0 }
 0x3f1   : > { %v13005_v42 = vadd.f32 %v4652_v2, %v12836_v34  ;;  %v13025_v2 = vpop.f32.mrf.mxu1  ;;  %v4500_v49 = vadd.f32 %v12884_v10, %v4307_v29  ;;  %v4492_v29 = vadd.f32 %v12874_v6, %v4299_v8  ;;  %v4490_v6 = vadd.f32 %v12872_v20, %v4297_v17  ;;  %v16145_v17 = vld [vmem:[#allocation282_spill] sm:$0xff] }
 0x3f2   : > { %v13007_v0 = vpop.f32.mrf.mxu0  ;;  %16134 = vst [vmem:[#allocation294_spill] sm:$0xff] %v13025_v2 }
 0x3f3   : > { %v13036_v32 = vpop.f32.mrf.mxu1 }
 0x3f4   : > { %v13009_v35 = vpop.f32.mrf.mxu0 }
 0x3f5   : > { %v13047_v51 = vpop.f32.mrf.mxu1 }
 0x3f6   : > { %v13011_v54 = vpop.f32.mrf.mxu0 }
 0x3f8   : > { %v13013_v53 = vpop.f32.mrf.mxu0 }
 0x3fa   : > { %v13015_v55 = vpop.f32.mrf.mxu0 }
 0x3fc   : > { %v13017_v24 = vpop.f32.mrf.mxu0 }
 0x3fe   : > { %v13019_v39 = vpop.f32.mrf.mxu0 }
 0x400   : > { %v13021_v7 = vpop.f32.mrf.mxu0 }
 0x402   : > { %v4674_v36 = vpop.f32.mrf.mxu0 }
 0x404   : > { %v4678_v25 = vpop.f32.mrf.mxu0 }
 0x406   : > { %v4680_v34 = vpop.f32.mrf.mxu0 }
 0x408   : > { %v4682_v31 = vpop.f32.mrf.mxu0 }
 0x40a   : > { %v4684_v38 = vpop.f32.mrf.mxu0 }
 0x40c   : > { %v4688_v58 = vpop.f32.mrf.mxu0 }
 0x40d   : > { %v4689_v12 = vadd.f32 %v4688_v58, %v4496_v9  ;;  %v16143_v9 = vld [vmem:[#allocation23_spill] sm:$0xff] }
 0x40e   : > { %v4690_v28 = vpop.f32.mrf.mxu0 }
 0x40f   : > { %v4691_v21 = vadd.f32 %v4690_v28, %v4498_v14  ;;  %v4685_v28 = vadd.f32 %v4684_v38, %v4492_v29  ;;  %v13061_v14 = vpop.f32.mrf.mxu1  ;;  %v16144_v29 = vld [vmem:[#allocation271_spill] sm:$0xff] }
 0x410   : > { %v4692_v5 = vpop.f32.mrf.mxu0 }
 0x411   : > { %v4693_v2 = vadd.f32 %v4692_v5, %v4500_v49  ;;  %v4488_v49 = vadd.f32 %v12868_v19, %v4295_v56  ;;  %v4293_v5 = vadd.f32 %v12501_v11, %v12737_v13 }
 0x412   : > { %v4694_v46 = vpop.f32.mrf.mxu0 }
 0x413   : > { %v4695_v41 = vadd.f32 %v4694_v46, %v4502_v15  ;;  %v4683_v15 = vadd.f32 %v4682_v31, %v4490_v6  ;;  %v4681_v23 = vadd.f32 %v4680_v34, %v4488_v49  ;;  %v4486_v19 = vadd.f32 %v12866_v47, %v4293_v5  ;;  %v13075_v31 = vpop.f32.mrf.mxu1  ;;  %v16140_v34 = vld [vmem:[#allocation124_spill] sm:$0xff]  ;;  %v16147_v49 = vld [vmem:[#allocation118_spill] sm:$0xff] }
 0x414   : > { %v4698_v10 = vpop.f32.mrf.mxu0  ;;  %v4279_v5 = vadd.f32 %v16147_v49, %v12746_v61 }
 0x415   : > { %7665 = vtanh.f32 %v4695_v41  ;;  %v13043_v1 = vadd.f32 %v4698_v10, %v12894_v52  ;;  %v4679_v38 = vadd.f32 %v4678_v25, %v4486_v19 }
 0x416   : > { %7667 = vtanh.f32 %v4693_v2  ;;  %v4700_v3 = vpop.f32.mrf.mxu0 }
 0x417   : > { %16135 = vst [vmem:[#allocation295_spill] sm:$0xff] %v13043_v1  ;;  %7669 = vtanh.f32 %v4691_v21  ;;  %v13052_v27 = vadd.f32 %v4700_v3, %v12898_v63  ;;  %v4289_v63 = vadd.f32 %v12491_v18, %v12746_v61  ;;  %v16139_v21 = vld [vmem:[#allocation122_spill] sm:$0xff] }
 0x418   : > { %v4702_v52 = vpop.f32.mrf.mxu0  ;;  %7671 = vtanh.f32 %v4689_v12  ;;  %v4287_v41 = vadd.f32 %v16139_v21, %v12737_v13 }
 0x419   : > { %16136 = vst [vmem:[#allocation296_spill] sm:$0xff] %v13052_v27  ;;  %v13057_v26 = vadd.f32 %v4702_v52, %v12904_v57  ;;  %7673 = vtanh.f32 %v4685_v28  ;;  %v4482_v46 = vadd.f32 %v12862_v60, %v4289_v63  ;;  %v13082_v60 = vld [vmem:[#allocation11] sm:$0x3]  ;;  %v13093_v28 = vpop.f32.mrf.mxu1 }
 0x41a   : > { %v4704_v43 = vpop.f32.mrf.mxu0  ;;  %7675 = vtanh.f32 %v4683_v15  ;;  %16141 = vst [vmem:[#allocation122_spill] sm:$0xff] %v13082_v60  ;;  %v4850_v10 = vrot.slane %v13082_v60, %v16143_v9  ;;  %v16173_v9 = vld [vmem:[#allocation283_spill] sm:$0xff]  ;;  %v16174_v27 = vld [vmem:[#allocation277_spill] sm:$0xff] }
 0x41b   : > { %16137 = vst [vmem:[#allocation297_spill] sm:$0xff] %v13057_v26  ;;  %v13066_v20 = vadd.f32 %v4704_v43, %v12908_v48  ;;  %v4285_v48 = vadd.f32 %v16140_v34, %v12746_v61  ;;  %v4675_v58 = vadd.f32 %v4674_v36, %v4482_v46  ;;  %7677 = vtanh.f32 %v4681_v23  ;;  %v16146_v36 = vld [vmem:[#allocation123_spill] sm:$0xff]  ;;  %v16148_v23 = vld [vmem:[#allocation270_spill] sm:$0xff] }
 0x41c   : > { %v4708_v57 = vpop.f32.mrf.mxu0  ;;  %v4283_v56 = vadd.f32 %v16146_v36, %v12737_v13  ;;  %7679 = vtanh.f32 %v4679_v38  ;;  %4917 = vmatprep.mubr.f32.mxu1 %v4850_v10 }
 0x41d   : > { %16138 = vst [vmem:[#allocation298_spill] sm:$0xff] %v13066_v20  ;;  %v13071_v11 = vadd.f32 %v4708_v57, %v12914_v45  ;;  %v16142_v45 = vld [vmem:[#allocation273_spill] sm:$0xff]  ;;  %v4478_v25 = vadd.f32 %v16144_v29, %v4285_v48  ;;  %7681 = vtanh.f32 %v4675_v58 }
 0x41e   : > { %v4710_v18 = vpop.f32.mrf.mxu0  ;;  %v4480_v2 = vadd.f32 %v16142_v45, %v4287_v41  ;;  %v4476_v19 = vadd.f32 %v16148_v23, %v4283_v56  ;;  %v16150_v41 = vld [vmem:[#allocation191_spill] sm:$0xff]  ;;  %v16151_v48 = vld [vmem:[#allocation121_spill] sm:$0xff] }
 0x41f   : > { %v13080_v47 = vadd.f32 %v4710_v18, %v12918_v40  ;;  %v4671_v15 = vadd.f32 %v13019_v39, %v4478_v25  ;;  %v4277_v38 = vadd.f32 %v16150_v41, %v12737_v13  ;;  %v13109_v39 = vpop.f32.mrf.mxu1  ;;  %v4275_v58 = vadd.f32 %v16151_v48, %v12746_v61  ;;  %v16153_v25 = vld [vmem:[#allocation265_spill] sm:$0xff] }
 0x420   : > { %v4712_v8 = vpop.f32.mrf.mxu0  ;;  %v4673_v40 = vadd.f32 %v13021_v7, %v4480_v2  ;;  %v16149_v7 = vld [vmem:[#allocation268_spill] sm:$0xff] }
 0x421   : > { %v13089_v12 = vadd.f32 %v4712_v8, %v16145_v17  ;;  %v4472_v46 = vadd.f32 %v16149_v7, %v4279_v5  ;;  %v16152_v8 = vld [vmem:[#allocation267_spill] sm:$0xff]  ;;  %v4468_v17 = vadd.f32 %v16153_v25, %v4275_v58  ;;  %v13125_v56 = vpop.f32.mrf.mxu1 }
 0x422   : > { %v7666_v3 = vpop.eup %7665  ;;  %v4714_v6 = vpop.f32.mrf.mxu0  ;;  %7683 = vtanh.f32 %v4673_v40  ;;  %v4470_v10 = vadd.f32 %v16152_v8, %v4277_v38 }
 0x423   : > { %v7668_v52 = vpop.eup %7667  ;;  %v13100_v43 = vadd.f32 %v4714_v6, %v12928_v50  ;;  %4853 = vmatprep.subr.mxu1 %v7666_v3  ;;  %v4669_v50 = vadd.f32 %v13017_v24, %v4476_v19  ;;  %v4665_v45 = vadd.f32 %v13015_v55, %v4472_v46  ;;  %7685 = vtanh.f32 %v4671_v15  ;;  %v16154_v3 = vld [vmem:[#allocation114_spill] sm:$0xff]  ;;  %v16155_v6 = vld [vmem:[#allocation185_spill] sm:$0xff]  ;;  %v16156_v15 = vld [vmem:[#allocation264_spill] sm:$0xff]  ;;  %v13139_v7 = vpop.f32.mrf.mxu1 }
 0x424   : > { %v7670_v63 = vpop.eup %7669  ;;  %v4718_v57 = vpop.f32.mrf.mxu0  ;;  %4854 = vmatpush1.xpose.msra.mxu1 %v7668_v52  ;;  %v4273_v36 = vadd.f32 %v16154_v3, %v12737_v13  ;;  %v4663_v55 = vadd.f32 %v13013_v53, %v4470_v10  ;;  %v4269_v52 = vadd.f32 %v16155_v6, %v12746_v61  ;;  %v4661_v49 = vadd.f32 %v13011_v54, %v4468_v17  ;;  %v16157_v19 = vld [vmem:[#allocation262_spill] sm:$0xff] }
 0x425   : > { %v13105_v21 = vadd.f32 %v4718_v57, %v12937_v62  ;;  %4855 = vmatprep.subr.mxu1 %v7670_v63  ;;  %v7672_v34 = vpop.eup %7671  ;;  %7687 = vtanh.f32 %v4669_v50 }
 0x426   : > { %v4720_v18 = vpop.f32.mrf.mxu0  ;;  %v7674_v2 = vpop.eup %7673  ;;  %7689 = vtanh.f32 %v4665_v45  ;;  %v4466_v63 = vadd.f32 %v16156_v15, %v4273_v36  ;;  %v4462_v57 = vadd.f32 %v16157_v19, %v4269_v52  ;;  %v16161_v52 = vld [vmem:[#allocation290_spill] sm:$0xff] }
 0x427   : > { %v13116_v62 = vadd.f32 %v4720_v18, %v12945_v37  ;;  %v7676_v40 = vpop.eup %7675  ;;  %7691 = vtanh.f32 %v4663_v55 }
 0x428   : > { %v4722_v29 = vpop.f32.mrf.mxu0  ;;  %4856 = vmatpush1.xpose.msra.mxu1 %v7672_v34  ;;  %v7678_v5 = vpop.eup %7677  ;;  %v4659_v46 = vadd.f32 %v13009_v35, %v4466_v63  ;;  %7693 = vtanh.f32 %v4661_v49  ;;  %v16162_v63 = vld [vmem:[#allocation289_spill] sm:$0xff] }
 0x429   : > { %v13121_v24 = vadd.f32 %v4722_v29, %v12952_v4  ;;  %4857 = vmatprep.subr.mxu1 %v7674_v2  ;;  %v7680_v41 = vpop.eup %7679  ;;  %v13149_v34 = vpop.f32.mrf.mxu1 }
 0x42a   : > { %v4724_v37 = vpop.f32.mrf.mxu0  ;;  %v7682_v50 = vpop.eup %7681  ;;  %7695 = vtanh.f32 %v4659_v46 }
 0x42b   : > { %v13132_v4 = vadd.f32 %v4724_v37, %v12958_v16  ;;  %v4655_v16 = vadd.f32 %v13007_v0, %v4462_v57  ;;  %v16163_v57 = vld [vmem:[#allocation288_spill] sm:$0xff] }
 0x42c   : > { %v4728_v23 = vpop.f32.mrf.mxu0  ;;  %4858 = vmatpush1.xpose.msra.mxu1 %v7676_v40  ;;  %v16160_v40 = vld [vmem:[#allocation291_spill] sm:$0xff] }
 0x42d   : > { %v13137_v53 = vadd.f32 %v4728_v23, %v12967_v30  ;;  %4859 = vmatprep.subr.mxu1 %v7678_v5  ;;  %7697 = vtanh.f32 %v4655_v16  ;;  %v16164_v16 = vld [vmem:[#allocation287_spill] sm:$0xff] }
 0x42e   : > { %v4730_v54 = vpop.f32.mrf.mxu0  ;;  %7699 = vtanh.f32 %v13005_v42  ;;  %v16158_v42 = vld [vmem:[#allocation293_spill] sm:$0xff] }
 0x42f   : > { %v13144_v38 = vadd.f32 %v4730_v54, %v12975_v44  ;;  %v7684_v48 = vpop.eup %7683  ;;  %v13156_v44 = vpop.f32.mrf.mxu1  ;;  %7701 = vtanh.f32 %v13002_v22  ;;  %v16159_v22 = vld [vmem:[#allocation292_spill] sm:$0xff] }
 0x430   : > { %v4732_v18 = vpop.f32.mrf.mxu0  ;;  %4860 = vmatpush1.xpose.msra.mxu1 %v7680_v41  ;;  %v7686_v58 = vpop.eup %7685  ;;  %7703 = vtanh.f32 %v12999_v59 }
 0x431   : > { %v13147_v30 = vadd.f32 %v4732_v18, %v12980_v33  ;;  %4861 = vmatprep.subr.mxu1 %v7682_v50  ;;  %v13164_v10 = vpop.f32.mrf.mxu1  ;;  %7705 = vtanh.f32 %v16158_v42 }
 0x432   : > { %v13151_v35 = vpop.f32.mrf.mxu0  ;;  %v7688_v33 = vpop.eup %7687  ;;  %7707 = vtanh.f32 %v16159_v22  ;;  %v16167_v22 = vld [vmem:[#allocation280_spill] sm:$0xff] }
 0x433   : > { %v7690_v2 = vpop.eup %7689  ;;  %v4571_v36 = vpop.f32.mrf.mxu1  ;;  %7709 = vtanh.f32 %v16160_v40  ;;  %v16168_v40 = vld [vmem:[#allocation284_spill] sm:$0xff] }
 0x434   : > { %v13153_v0 = vpop.f32.mrf.mxu0  ;;  %4862 = vmatpush1.xpose.msra.mxu1 %v7684_v48  ;;  %v7692_v25 = vpop.eup %7691  ;;  %7711 = vtanh.f32 %v16161_v52  ;;  %v16165_v48 = vld [vmem:[#allocation286_spill] sm:$0xff] }
 0x435   : > { %4863 = vmatprep.subr.mxu1 %v7686_v58  ;;  %v7694_v17 = vpop.eup %7693  ;;  %v4575_v49 = vpop.f32.mrf.mxu1  ;;  %7713 = vtanh.f32 %v16162_v63  ;;  %v16169_v63 = vld [vmem:[#allocation279_spill] sm:$0xff] }
 0x436   : > { %v13158_v45 = vpop.f32.mrf.mxu0  ;;  %7715 = vtanh.f32 %v16163_v57  ;;  %v16170_v57 = vld [vmem:[#allocation281_spill] sm:$0xff] }
 0x437   : > { %v7696_v37 = vpop.eup %7695  ;;  %v4577_v46 = vpop.f32.mrf.mxu1  ;;  %7717 = vtanh.f32 %v16164_v16  ;;  %v16171_v16 = vld [vmem:[#allocation106_spill] sm:$0xff] }
 0x438   : > { %v13161_v8 = vpop.f32.mrf.mxu0  ;;  %4864 = vmatpush1.xpose.msra.mxu1 %v7688_v33  ;;  %7719 = vtanh.f32 %v16165_v48 }
 0x439   : > { %4865 = vmatprep.subr.mxu1 %v7690_v2  ;;  %v4579_v58 = vpop.f32.mrf.mxu1 }
 0x43a   : > { %v13166_v29 = vpop.f32.mrf.mxu0  ;;  %v7698_v59 = vpop.eup %7697 }
 0x43b   : > { %v7700_v15 = vpop.eup %7699 }
 0x43c   : > { %v13169_v3 = vpop.f32.mrf.mxu0  ;;  %4866 = vmatpush1.xpose.msra.mxu1 %v7692_v25  ;;  %v7702_v23 = vpop.eup %7701  ;;  %v16166_v25 = vld [vmem:[#allocation285_spill] sm:$0xff] }
 0x43d   : > { %4867 = vmatprep.subr.mxu1 %v7694_v17  ;;  %v7704_v41 = vpop.eup %7703  ;;  %7721 = vtanh.f32 %v16166_v25 }
 0x43e   : > { %v13172_v55 = vpop.f32.mrf.mxu0  ;;  %v7706_v50 = vpop.eup %7705  ;;  %7723 = vtanh.f32 %v16168_v40 }
 0x43f   : > { %v7708_v2 = vpop.eup %7707  ;;  %7725 = vtanh.f32 %v16171_v16 }
 0x440   : > { %v13175_v6 = vpop.f32.mrf.mxu0  ;;  %4868 = vmatpush1.xpose.msra.mxu1 %v7696_v37  ;;  %v7710_v42 = vpop.eup %7709  ;;  %v4387_v37 = vadd.f32 %v16167_v22, %v12737_v13  ;;  %v16172_v22 = vld [vmem:[#allocation278_spill] sm:$0xff]  ;;  %7727 = vtanh.f32 %v16173_v9 }
 0x441   : > { %4869 = vmatprep.subr.mxu1 %v7698_v59  ;;  %v4581_v59 = vpop.f32.mrf.mxu1  ;;  %v4383_v40 = vadd.f32 %v16172_v22, %v12737_v13  ;;  %v16180_v22 = vld [vmem:[#allocation266_spill] sm:$0xff] }
 0x442   : > { %v13178_v5 = vpop.f32.mrf.mxu0  ;;  %v4580_v48 = vadd.f32 %v4579_v58, %v4387_v37 }
 0x443   : > { %v4576_v58 = vadd.f32 %v4575_v49, %v4383_v40  ;;  %v4365_v40 = vadd.f32 %v16180_v22, %v12746_v61 }
 0x444   : > { %v13181_v19 = vpop.f32.mrf.mxu0  ;;  %4870 = vmatpush1.xpose.msra.mxu1 %v7700_v15  ;;  %v7712_v15 = vpop.eup %7711 }
 0x445   : > { %4871 = vmatprep.subr.mxu1 %v7702_v23  ;;  %v4385_v23 = vadd.f32 %v16169_v63, %v12746_v61 }
 0x446   : > { %v4760_v54 = vpop.f32.mrf.mxu0 }
 0x447   : > { %v4578_v25 = vadd.f32 %v4577_v46, %v4385_v23  ;;  %v16175_v46 = vld [vmem:[#allocation276_spill] sm:$0xff]  ;;  %v16176_v23 = vld [vmem:[#allocation275_spill] sm:$0xff] }
 0x448   : > { %v4762_v18 = vpop.f32.mrf.mxu0  ;;  %4872 = vmatpush1.xpose.msra.mxu1 %v7704_v41  ;;  %v4389_v41 = vadd.f32 %v16170_v57, %v12746_v61  ;;  %v4379_v57 = vadd.f32 %v16174_v27, %v12746_v61 }
 0x449   : > { %4873 = vmatprep.subr.mxu1 %v7706_v50  ;;  %v7714_v50 = vpop.eup %7713 }
 0x44a   : > { %v4764_v33 = vpop.f32.mrf.mxu0  ;;  %v7716_v63 = vpop.eup %7715  ;;  %v4572_v37 = vadd.f32 %v4571_v36, %v4379_v57  ;;  %v16181_v57 = vld [vmem:[#allocation263_spill] sm:$0xff] }
 0x44b   : > { %v7718_v20 = vpop.eup %7717 }
 0x44c   : > { %v4768_v17 = vpop.f32.mrf.mxu0  ;;  %4874 = vmatpush1.xpose.msra.mxu1 %v7708_v2  ;;  %v7720_v9 = vpop.eup %7719 }
 0x44d   : > { %4875 = vmatprep.subr.mxu1 %v7710_v42  ;;  %v4582_v42 = vadd.f32 %v4581_v59, %v4389_v41  ;;  %v4377_v59 = vadd.f32 %v16175_v46, %v12737_v13  ;;  %v4375_v41 = vadd.f32 %v16176_v23, %v12746_v61  ;;  %v7722_v27 = vpop.eup %7721 }
 0x44e   : > { %v4770_v52 = vpop.f32.mrf.mxu0 }
 0x44f   : > { %v4771_v26 = vadd.f32 %v4770_v52, %v4578_v25  ;;  %v4568_v49 = vadd.f32 %v13156_v44, %v4375_v41  ;;  %v16179_v44 = vld [vmem:[#allocation269_spill] sm:$0xff]  ;;  %v16184_v41 = vld [vmem:[#allocation104_spill] sm:$0xff] }
 0x450   : > { %v4772_v2 = vpop.f32.mrf.mxu0  ;;  %4876 = vmatpush1.xpose.msra.mxu1 %v7712_v15  ;;  %v4769_v15 = vadd.f32 %v4768_v17, %v4576_v58  ;;  %v7724_v17 = vpop.eup %7723  ;;  %v4367_v25 = vadd.f32 %v16179_v44, %v12737_v13 }
 0x451   : > { %4877 = vmatprep.subr.mxu1 %v7714_v50  ;;  %v4773_v60 = vadd.f32 %v4772_v2, %v4580_v48  ;;  %v4765_v50 = vadd.f32 %v4764_v33, %v4572_v37  ;;  %v4761_v2 = vadd.f32 %v4760_v54, %v4568_v49  ;;  %v7726_v33 = vpop.eup %7725  ;;  %v16182_v37 = vld [vmem:[#allocation260_spill] sm:$0xff] }
 0x452   : > { %v4774_v1 = vpop.f32.mrf.mxu0  ;;  %v4359_v46 = vadd.f32 %v16182_v37, %v12746_v61 }
 0x453   : > { %v4775_v16 = vadd.f32 %v4774_v1, %v4582_v42  ;;  %v4570_v1 = vadd.f32 %v13164_v10, %v4377_v59 }
 0x454   : > { %4878 = vmatpush1.xpose.msra.mxu1 %v7716_v63  ;;  %v4560_v63 = vadd.f32 %v13125_v56, %v4367_v25  ;;  %v16190_v25 = vld [vmem:[#allocation296_spill] sm:$0xff] }
 0x455   : > { %7729 = vtanh.f32 %v4775_v16  ;;  %4879 = vmatprep.subr.mxu1 %v7718_v20  ;;  %v16177_v20 = vld [vmem:[#allocation274_spill] sm:$0xff]  ;;  %v4763_v52 = vadd.f32 %v4762_v18, %v4570_v1  ;;  %v7728_v18 = vpop.eup %7727  ;;  %v4363_v16 = vadd.f32 %v16181_v57, %v12737_v13  ;;  %v16185_v1 = vld [vmem:[#allocation175_spill] sm:$0xff] }
 0x456   : > { %7731 = vtanh.f32 %v4773_v60  ;;  %v4373_v36 = vadd.f32 %v16177_v20, %v12737_v13  ;;  %v16178_v60 = vld [vmem:[#allocation272_spill] sm:$0xff]  ;;  %v4753_v58 = vadd.f32 %v13175_v6, %v4560_v63  ;;  %v4353_v49 = vadd.f32 %v16185_v1, %v12737_v13  ;;  %v16198_v1 = vld [vmem:[#allocation30_spill] sm:$0xff] }
 0x457   : > { %7733 = vtanh.f32 %v4771_v26  ;;  %v4369_v48 = vadd.f32 %v16178_v60, %v12746_v61  ;;  %v4556_v56 = vadd.f32 %v13093_v28, %v4363_v16  ;;  %v16187_v60 = vld [vmem:[#allocation294_spill] sm:$0xff]  ;;  %v8237_v16 = vmov 1966171168  }
 0x458   : > { %4880 = vmatpush1.xpose.msra.mxu1 %v7720_v9  ;;  %7735 = vtanh.f32 %v4769_v15  ;;  %v4566_v26 = vadd.f32 %v13149_v34, %v4373_v36  ;;  %v4558_v34 = vadd.f32 %v13109_v39, %v4365_v40  ;;  %v4552_v39 = vadd.f32 %v13075_v31, %v4359_v46  ;;  %v16183_v15 = vld [vmem:[#allocation173_spill] sm:$0xff]  ;;  %v16194_v46 = vld [vmem:[#allocation22_spill] sm:$0xff] }
 0x459   : > { %4881 = vmatprep.subr.mxu1 %v7722_v27  ;;  %7737 = vtanh.f32 %v4765_v50  ;;  %v4562_v10 = vadd.f32 %v13139_v7, %v4369_v48  ;;  %v4357_v9 = vadd.f32 %v16183_v15, %v12737_v13  ;;  %v4749_v6 = vadd.f32 %v13169_v3, %v4556_v56  ;;  %v16186_v36 = vld [vmem:[#allocation257_spill] sm:$0xff] }
 0x45a   : > { %v4759_v42 = vadd.f32 %v13181_v19, %v4566_v26  ;;  %7739 = vtanh.f32 %v4763_v52  ;;  %v4751_v59 = vadd.f32 %v13172_v55, %v4558_v34  ;;  %v4355_v50 = vadd.f32 %v16184_v41, %v12746_v61  ;;  %v16192_v34 = vld [vmem:[#allocation29_spill] sm:$0xff] }
 0x45b   : > { %v4755_v54 = vadd.f32 %v13178_v5, %v4562_v10  ;;  %7741 = vtanh.f32 %v4761_v2  ;;  %v4745_v55 = vadd.f32 %v13166_v29, %v4552_v39  ;;  %v4550_v28 = vadd.f32 %v13061_v14, %v4357_v9  ;;  %v16188_v10 = vld [vmem:[#allocation298_spill] sm:$0xff]  ;;  %v4924_v56 = vld [vmem:[%s8485_s14] sm:$0x3] }
 0x45c   : > { %4882 = vmatpush1.xpose.msra.mxu1 %v7724_v17  ;;  %7743 = vtanh.f32 %v4759_v42  ;;  %v4548_v31 = vadd.f32 %v13047_v51, %v4355_v50  ;;  %v4349_v52 = vadd.f32 %v16186_v36, %v12746_v61  ;;  %v4546_v14 = vadd.f32 %v13036_v32, %v4353_v49  ;;  %v16199_v36 = vld [vmem:[#allocation35_spill] sm:$0xff] }
 0x45d   : > { %4883 = vmatprep.subr.mxu1 %v7726_v33  ;;  %7745 = vtanh.f32 %v4755_v54  ;;  %v4743_v3 = vadd.f32 %v13161_v8, %v4550_v28  ;;  %v16195_v15 = vlaneseq  ;;  %vm4925_vm8 = vcmp.gt.s32.totalorder %v4924_v56, 0  ;;  %v16197_v28 = vld [vmem:[#allocation31_spill] sm:$0xff] }
 0x45e   : > { %7747 = vtanh.f32 %v4753_v58  ;;  %v4741_v29 = vadd.f32 %v13158_v45, %v4548_v31  ;;  %v4542_v51 = vadd.f32 %v16187_v60, %v4349_v52  ;;  %v4739_v48 = vadd.f32 %v13153_v0, %v4546_v14 }
 0x45f   : > { %7749 = vtanh.f32 %v4751_v59  ;;  %v4930_v58 = vunpack.c.l.s4 %v8237_v16  ;;  %v13266_v9 = vand.u32 127, %v16195_v15  ;;  %v4951_v31 = vand.u32 4294967280, %v16197_v28 }
 0x460   : > { %4884 = vmatpush1.xpose.msra.mxu1 %v7728_v18  ;;  %7751 = vtanh.f32 %v4749_v6  ;;  %v4735_v8 = vadd.f32 %v13151_v35, %v4542_v51  ;;  %v4950_v49 = vand.u32 4294967280, %v16198_v1  ;;  %v4953_v52 = vand.u32 4294967280, %v16199_v36 }
 0x461   : > { %7753 = vtanh.f32 %v4745_v55  ;;  %v13270_v50 = vand.u32 4294967280, %v13266_v9  ;;  %v4948_v55 = vand.u32 4294967280, %v16194_v46 }
 0x462   : > { %v7730_v7 = vpop.eup %7729  ;;  %7755 = vtanh.f32 %v4743_v3 }
 0x463   : > { %v7732_v19 = vpop.eup %7731  ;;  %4885 = vmatprep.subr.mxu1 %v7730_v7  ;;  %7757 = vtanh.f32 %v4741_v29  ;;  %v16193_v7 = vld [vmem:[#allocation122_spill] sm:$0xff]  ;;  %vm4982_vm11 = vcmp.eq.s32.totalorder %v4948_v55, %v13270_v50  ;;  %vm4988_vm7 = vcmp.eq.s32.totalorder %v4951_v31, %v13270_v50  ;;  %vm4986_vm3 = vcmp.eq.s32.totalorder %v4950_v49, %v13270_v50  ;;  %v16212_v31 = vld [vmem:[#allocation25_spill] sm:$0xff] }
 0x464   : > { %v7734_v5 = vpop.eup %7733  ;;  %4886 = vmatpush2.xpose.msra.mxu1 %v7732_v19  ;;  %7759 = vtanh.f32 %v4739_v48  ;;  %v4846_v57 = vrot.slane %v16193_v7, %v16192_v34  ;;  %v4931_v19 = vunpack.c.0.s8 %v4930_v58  ;;  %v16200_v29 = vld [vmem:[#allocation34_spill] sm:$0xff]  ;;  %vm4992_vm6 = vcmp.eq.s32.totalorder %v4953_v52, %v13270_v50  ;;  %v16209_v58 = vld [vmem:[#allocation55_spill] sm:$0xff] }
 0x465   : > { %4887 = vmatprep.subr.mxu1 %v7734_v5  ;;  %v7736_v23 = vpop.eup %7735  ;;  %7761 = vtanh.f32 %v4735_v8  ;;  %v4964_v49 = vand.u32 4294967280, %v16212_v31 }
 0x466   : > { %v7738_v27 = vpop.eup %7737  ;;  %7763 = vtanh.f32 %v13147_v30  ;;  %v4934_v59 = vsub.s32 %v4931_v19, %v16194_v46  ;;  %v4963_v19 = vand.u32 4294967280, %v16209_v58 }
 0x467   : > { %v7740_v20 = vpop.eup %7739  ;;  %7765 = vtanh.f32 %v13144_v38 }
 0x468   : > { %4888 = vmatpush2.xpose.msra.mxu1 %v7736_v23  ;;  %v7742_v17 = vpop.eup %7741  ;;  %7767 = vtanh.f32 %v13137_v53  ;;  %v16196_v23 = vld [vmem:[#allocation24_spill] sm:$0xff]  ;;  %vm5012_vm4 = vcmp.eq.s32.totalorder %v4963_v19, %v13270_v50 }
 0x469   : > { %4889 = vmatprep.subr.mxu1 %v7738_v27  ;;  %v7744_v13 = vpop.eup %7743  ;;  %7769 = vtanh.f32 %v13132_v4  ;;  %v4949_v41 = vand.u32 4294967280, %v16196_v23 }
 0x46a   : > { %v7746_v2 = vpop.eup %7745  ;;  %7771 = vtanh.f32 %v13121_v24 }
 0x46b   : > { %v7748_v61 = vpop.eup %7747  ;;  %7773 = vtanh.f32 %v13116_v62  ;;  %vm4984_vm12 = vcmp.eq.s32.totalorder %v4949_v41, %v13270_v50  ;;  %v16211_v41 = vld [vmem:[#allocation26_spill] sm:$0xff] }
 0x46c   : > { %4890 = vmatpush2.xpose.msra.mxu1 %v7740_v20  ;;  %v7750_v45 = vpop.eup %7749  ;;  %7775 = vtanh.f32 %v13105_v21  ;;  %v4965_v55 = vand.u32 4294967280, %v16211_v41 }
 0x46d   : > { %4891 = vmatprep.subr.mxu1 %v7742_v17  ;;  %v7752_v32 = vpop.eup %7751  ;;  %7777 = vtanh.f32 %v13100_v43  ;;  %v16189_v43 = vld [vmem:[#allocation297_spill] sm:$0xff]  ;;  %v4952_v17 = vand.u32 4294967280, %v16200_v29 }
 0x46e   : > { %v7754_v0 = vpop.eup %7753  ;;  %7779 = vtanh.f32 %v13089_v12 }
 0x46f   : > { %v7756_v35 = vpop.eup %7755  ;;  %7781 = vtanh.f32 %v13080_v47  ;;  %v16191_v47 = vld [vmem:[#allocation295_spill] sm:$0xff]  ;;  %vm4990_vm13 = vcmp.eq.s32.totalorder %v4952_v17, %v13270_v50 }
 0x470   : > { %4892 = vmatpush2.xpose.msra.mxu1 %v7744_v13  ;;  %v7758_v33 = vpop.eup %7757  ;;  %7783 = vtanh.f32 %v13071_v11 }
 0x471   : > { %4893 = vmatprep.subr.mxu1 %v7746_v2  ;;  %v7760_v26 = vpop.eup %7759  ;;  %7785 = vtanh.f32 %v16188_v10  ;;  %v16201_v2 = vld [vmem:[#allocation39_spill] sm:$0xff] }
 0x472   : > { %v7762_v30 = vpop.eup %7761  ;;  %7787 = vtanh.f32 %v16189_v43  ;;  %v16205_v43 = vld [vmem:[#allocation47_spill] sm:$0xff] }
 0x473   : > { %v7764_v38 = vpop.eup %7763  ;;  %7789 = vtanh.f32 %v16190_v25  ;;  %v16206_v25 = vld [vmem:[#allocation46_spill] sm:$0xff] }
 0x474   : > { %4894 = vmatpush2.xpose.msra.mxu1 %v7748_v61  ;;  %v7766_v53 = vpop.eup %7765  ;;  %7791 = vtanh.f32 %v16191_v47  ;;  %v4955_v61 = vand.u32 4294967280, %v16201_v2 }
 0x475   : > { %4895 = vmatprep.subr.mxu1 %v7750_v45  ;;  %v7768_v4 = vpop.eup %7767  ;;  %v16202_v45 = vld [vmem:[#allocation38_spill] sm:$0xff] }
 0x476   : > { %v7770_v24 = vpop.eup %7769  ;;  %vm4996_vm15 = vcmp.eq.s32.totalorder %v4955_v61, %v13270_v50 }
 0x477   : > { %v7772_v62 = vpop.eup %7771 }
 0x478   : > { %4896 = vmatpush2.xpose.msra.mxu1 %v7752_v32  ;;  %v7774_v21 = vpop.eup %7773  ;;  %v4954_v32 = vand.u32 4294967280, %v16202_v45 }
 0x479   : > { %4897 = vmatprep.subr.mxu1 %v7754_v0  ;;  %v7776_v44 = vpop.eup %7775 }
 0x47a   : > { %v7778_v12 = vpop.eup %7777  ;;  %vm4994_vm2 = vcmp.eq.s32.totalorder %v4954_v32, %v13270_v50  ;;  %v16214_v32 = vld [vmem:[#allocation33_spill] sm:$0xff] }
 0x47b   : > { %v7780_v42 = vpop.eup %7779 }
 0x47c   : > { %4898 = vmatpush2.xpose.msra.mxu1 %v7756_v35  ;;  %v7782_v18 = vpop.eup %7781 }
 0x47d   : > { %4899 = vmatprep.subr.mxu1 %v7758_v33  ;;  %v7784_v11 = vpop.eup %7783 }
 0x47e   : > { %v7786_v22 = vpop.eup %7785 }
 0x47f   : > { %v7788_v40 = vpop.eup %7787 }
 0x480   : > { %4900 = vmatpush2.xpose.msra.mxu1 %v7760_v26  ;;  %v7790_v54 = vpop.eup %7789 }
 0x481   : > { %4901 = vmatprep.subr.mxu1 %v7762_v30  ;;  %v7792_v63 = vpop.eup %7791  ;;  %v16203_v30 = vld [vmem:[#allocation43_spill] sm:$0xff] }
 0x484   : > { %4902 = vmatpush2.xpose.msra.mxu1 %v7764_v38  ;;  %v4957_v38 = vand.u32 4294967280, %v16203_v30 }
 0x485   : > { %4903 = vmatprep.subr.mxu1 %v7766_v53  ;;  %v16204_v53 = vld [vmem:[#allocation42_spill] sm:$0xff] }
 0x486   : > { %vm5000_vm9 = vcmp.eq.s32.totalorder %v4957_v38, %v13270_v50 }
 0x488   : > { %4904 = vmatpush2.xpose.msra.mxu1 %v7768_v4  ;;  %v4956_v4 = vand.u32 4294967280, %v16204_v53 }
 0x489   : > { %4905 = vmatprep.subr.mxu1 %v7770_v24 }
 0x48a   : > { %vm4998_vm1 = vcmp.eq.s32.totalorder %v4956_v4, %v13270_v50 }
 0x48c   : > { %4906 = vmatpush2.xpose.msra.mxu1 %v7772_v62 }
 0x48d   : > { %4907 = vmatprep.subr.mxu1 %v7774_v21 }
 0x490   : > { %4908 = vmatpush2.xpose.msra.mxu1 %v7776_v44  ;;  %v4959_v44 = vand.u32 4294967280, %v16205_v43 }
 0x491   : > { %4909 = vmatprep.subr.mxu1 %v7778_v12  ;;  %v4958_v12 = vand.u32 4294967280, %v16206_v25 }
 0x492   : > { %vm5004_vm10 = vcmp.eq.s32.totalorder %v4959_v44, %v13270_v50 }
 0x493   : > { %vm5002_vm14 = vcmp.eq.s32.totalorder %v4958_v12, %v13270_v50  ;;  %v16217_v12 = vld [vmem:[#allocation36_spill] sm:$0xff] }
 0x494   : > { %4910 = vmatpush2.xpose.msra.mxu1 %v7780_v42 }
 0x495   : > { %4911 = vmatprep.subr.mxu1 %v7782_v18 }
 0x498   : > { %4912 = vmatpush2.xpose.msra.mxu1 %v7784_v11 }
 0x499   : > { %4913 = vmatprep.subr.mxu1 %v7786_v22  ;;  %v16207_v22 = vld [vmem:[#allocation51_spill] sm:$0xff] }
 0x49c   : > { %4914 = vmatpush2.xpose.msra.mxu1 %v7788_v40  ;;  %v4961_v40 = vand.u32 4294967280, %v16207_v22 }
 0x49d   : > { %4915 = vmatprep.subr.mxu1 %v7790_v54  ;;  %v16208_v54 = vld [vmem:[#allocation50_spill] sm:$0xff] }
 0x49e   : > { %vm5008_vm5 = vcmp.eq.s32.totalorder %v4961_v40, %v13270_v50 }
 0x4a0   : > { %4916 = vmatpush2.xpose.msra.mxu1 %v7792_v63  ;;  %v4960_v63 = vand.u32 4294967280, %v16208_v54 }
 0x4a2   : > { %vm5006_vm0 = vcmp.eq.s32.totalorder %v4960_v63, %v13270_v50 }
 0x4a3   : > { %4918 = vmatmul.mubr.f32.vlgmr.msra.gmra.mxu1 %v4846_v57 }
 0x563   : > { %v4919_v37 = vpop.f32.mrf.mxu1 }
 0x565   : > { %v4921_v5 = vpop.f32.mrf.mxu1 }
 0x566   : > { %v4928_v39 = vcombine.low %v4919_v37, %v4921_v5  ;;  %v16210_v37 = vld [vmem:[#allocation54_spill] sm:$0xff]  ;;  %v13354_v5 = vadd.s32 128, %v13266_v9 }
 0x568   : > { %v4935_v6 = vrot.slane %v4928_v39, %v4934_v59 }
 0x56a   : > { %v4942_v27 = vrot.slane %v4935_v6, %v4934_v59  ;;  %v4962_v59 = vand.u32 4294967280, %v16210_v37 }
 0x56c   : > { %v13275_v3 = vsel %vm4925_vm8, %v4942_v27, -1e+30  ;;  %vm5010_vm8 = vcmp.eq.s32.totalorder %v4962_v59, %v13270_v50  ;;  %v13368_v27 = vand.u32 4294967280, %v13354_v5  ;;  %v16219_v59 = vld [vmem:[#allocation40_spill] sm:$0xff] }
 0x56d   : > { %v13281_v20 = vrot.slane %v13275_v3, %v16192_v34 }
 0x56f   : > { %v13288_v14 = vsel %vm4984_vm12, %v13281_v20, -1e+30  ;;  %v13291_v60 = vsel %vm4982_vm11, %v13281_v20, -1e+30  ;;  %v13296_v13 = vsel %vm4988_vm7, %v13281_v20, -1e+30  ;;  %vm5017_vm12 = vcmp.eq.s32.totalorder %v4965_v55, %v13368_v27 }
 0x570   : > { %v5124_v51 = vmax.f32 %v13288_v14, -1e+30  ;;  %v5121_v48 = vmax.f32 %v13291_v60, -1e+30  ;;  %v13299_v8 = vsel %vm4986_vm3, %v13281_v20, -1e+30  ;;  %vm5015_vm11 = vcmp.eq.s32.totalorder %v4964_v49, %v13368_v27 }
 0x571   : > { %v5130_v0 = vmax.f32 %v13296_v13, -1e+30  ;;  %v5127_v35 = vmax.f32 %v13299_v8, -1e+30  ;;  %v13308_v33 = vsel %vm4992_vm6, %v13281_v20, -1e+30 }
 0x572   : > { %5125 = vmax.xlane.f32.xlu1 %v5124_v51  ;;  %5122 = vmax.xlane.f32.xlu0 %v5121_v48  ;;  %v13311_v26 = vsel %vm4990_vm13, %v13281_v20, -1e+30  ;;  %v5136_v24 = vmax.f32 %v13308_v33, -1e+30  ;;  %v13320_v10 = vsel %vm4996_vm15, %v13281_v20, -1e+30 }
 0x573   : > { %v5133_v62 = vmax.f32 %v13311_v26, -1e+30  ;;  %v13323_v21 = vsel %vm4994_vm2, %v13281_v20, -1e+30  ;;  %v5142_v47 = vmax.f32 %v13320_v10, -1e+30 }
 0x574   : > { %v5139_v42 = vmax.f32 %v13323_v21, -1e+30  ;;  %v13332_v18 = vsel %vm5000_vm9, %v13281_v20, -1e+30  ;;  %v13335_v11 = vsel %vm4998_vm1, %v13281_v20, -1e+30 }
 0x575   : > { %v5148_v34 = vmax.f32 %v13332_v18, -1e+30  ;;  %v5145_v7 = vmax.f32 %v13335_v11, -1e+30  ;;  %v13344_v57 = vsel %vm5004_vm10, %v13281_v20, -1e+30 }
 0x576   : > { %5131 = vmax.xlane.f32.xlu1 %v5130_v0  ;;  %5128 = vmax.xlane.f32.xlu0 %v5127_v35  ;;  %v13347_v16 = vsel %vm5002_vm14, %v13281_v20, -1e+30  ;;  %v5154_v56 = vmax.f32 %v13344_v57, -1e+30  ;;  %v13359_v15 = vsel %vm5008_vm5, %v13281_v20, -1e+30 }
 0x577   : > { %v5151_v39 = vmax.f32 %v13347_v16, -1e+30  ;;  %v13362_v6 = vsel %vm5006_vm0, %v13281_v20, -1e+30  ;;  %v5160_v52 = vmax.f32 %v13359_v15, -1e+30 }
 0x578   : > { %v5157_v17 = vmax.f32 %v13362_v6, -1e+30  ;;  %v16213_v51 = vld [vmem:[#allocation23_spill] sm:$0xff]  ;;  %v13378_v61 = vsel %vm5012_vm4, %v13281_v20, -1e+30  ;;  %v4967_v0 = vand.u32 4294967280, %v16214_v32 }
 0x579   : > { %v13375_v48 = vrot.slane %v13275_v3, %v16213_v51  ;;  %v13381_v50 = vsel %vm5010_vm8, %v13281_v20, -1e+30  ;;  %v16215_v35 = vld [vmem:[#allocation32_spill] sm:$0xff]  ;;  %v5166_v4 = vmax.f32 %v13378_v61, -1e+30 }
 0x57a   : > { %5137 = vmax.xlane.f32.xlu1 %v5136_v24  ;;  %5134 = vmax.xlane.f32.xlu0 %v5133_v62  ;;  %v4966_v38 = vand.u32 4294967280, %v16215_v35  ;;  %v5163_v3 = vmax.f32 %v13381_v50, -1e+30  ;;  %vm5021_vm7 = vcmp.eq.s32.totalorder %v4967_v0, %v13368_v27  ;;  %v16216_v62 = vld [vmem:[#allocation37_spill] sm:$0xff]  ;;  %v16221_v0 = vld [vmem:[#allocation44_spill] sm:$0xff] }
 0x57b   : > { %v13390_v24 = vsel %vm5017_vm12, %v13375_v48, -1e+30  ;;  %v13393_v20 = vsel %vm5015_vm11, %v13375_v48, -1e+30  ;;  %v4969_v44 = vand.u32 4294967280, %v16216_v62  ;;  %vm5507_vm12 = vcmp.eq.s32.totalorder %v16196_v23, %v13266_v9 }
 0x57c   : > { %vm5019_vm3 = vcmp.eq.s32.totalorder %v4966_v38, %v13368_v27  ;;  %v5169_v40 = vmax.f32 %v13393_v20, -1e+30  ;;  %v13402_v63 = vsel %vm5021_vm7, %v13375_v48, -1e+30  ;;  %v4972_v38 = vand.u32 4294967280, %v16221_v0 }
 0x57d   : > { %vm5025_vm6 = vcmp.eq.s32.totalorder %v4969_v44, %v13368_v27  ;;  %vm5505_vm11 = vcmp.eq.s32.totalorder %v16194_v46, %v13266_v9  ;;  %vm5511_vm7 = vcmp.eq.s32.totalorder %v16197_v28, %v13266_v9 }
 0x57e   : > { %5143 = vmax.xlane.f32.xlu1 %v5142_v47  ;;  %5140 = vmax.xlane.f32.xlu0 %v5139_v42  ;;  %v4968_v47 = vand.u32 4294967280, %v16217_v12  ;;  %v5172_v42 = vmax.f32 %v13390_v24, -1e+30  ;;  %v13414_v49 = vsel %vm5025_vm6, %v13375_v48, -1e+30  ;;  %vm5031_vm1 = vcmp.eq.s32.totalorder %v4972_v38, %v13368_v27 }
 0x57f   : > { %vm5515_vm6 = vcmp.eq.s32.totalorder %v16199_v36, %v13266_v9 }
 0x580   : > { %vm5023_vm13 = vcmp.eq.s32.totalorder %v4968_v47, %v13368_v27 }
 0x582   : > { %5149 = vmax.xlane.f32.xlu1 %v5148_v34  ;;  %5146 = vmax.xlane.f32.xlu0 %v5145_v7  ;;  %v13405_v34 = vsel %vm5019_vm3, %v13375_v48, -1e+30  ;;  %v16218_v7 = vld [vmem:[#allocation41_spill] sm:$0xff]  ;;  %vm5509_vm3 = vcmp.eq.s32.totalorder %v16198_v1, %v13266_v9 }
 0x583   : > { %v4971_v19 = vand.u32 4294967280, %v16218_v7  ;;  %v5175_v55 = vmax.f32 %v13405_v34, -1e+30 }
 0x585   : > { %vm5029_vm15 = vcmp.eq.s32.totalorder %v4971_v19, %v13368_v27  ;;  %v16223_v19 = vld [vmem:[#allocation48_spill] sm:$0xff] }
 0x586   : > { %5155 = vmax.xlane.f32.xlu1 %v5154_v56  ;;  %5152 = vmax.xlane.f32.xlu0 %v5151_v39  ;;  %v4970_v56 = vand.u32 4294967280, %v16219_v59  ;;  %v5178_v39 = vmax.f32 %v13402_v63, -1e+30  ;;  %v13426_v44 = vsel %vm5029_vm15, %v13375_v48, -1e+30  ;;  %vm5519_vm15 = vcmp.eq.s32.totalorder %v16201_v2, %v13266_v9 }
 0x588   : > { %vm5027_vm2 = vcmp.eq.s32.totalorder %v4970_v56, %v13368_v27  ;;  %v4974_v56 = vand.u32 4294967280, %v16223_v19 }
 0x589   : > { %v13429_v47 = vsel %vm5027_vm2, %v13375_v48, -1e+30  ;;  %vm5517_vm2 = vcmp.eq.s32.totalorder %v16202_v45, %v13266_v9 }
 0x58a   : > { %5161 = vmax.xlane.f32.xlu1 %v5160_v52  ;;  %5158 = vmax.xlane.f32.xlu0 %v5157_v17  ;;  %v13417_v52 = vsel %vm5023_vm13, %v13375_v48, -1e+30  ;;  %v16220_v17 = vld [vmem:[#allocation45_spill] sm:$0xff]  ;;  %vm5035_vm14 = vcmp.eq.s32.totalorder %v4974_v56, %v13368_v27  ;;  %vm5513_vm13 = vcmp.eq.s32.totalorder %v16200_v29, %v13266_v9 }
 0x58b   : > { %v4973_v51 = vand.u32 4294967280, %v16220_v17  ;;  %v13441_v17 = vsel %vm5031_vm1, %v13375_v48, -1e+30  ;;  %v13453_v7 = vsel %vm5035_vm14, %v13375_v48, -1e+30  ;;  %vm5521_vm1 = vcmp.eq.s32.totalorder %v16204_v53, %v13266_v9 }
 0x58c   : > { %16225 = vst [vmem:[#allocation273_spill] sm:$0xff] %v13441_v17  ;;  %vm5525_vm14 = vcmp.eq.s32.totalorder %v16206_v25, %v13266_v9 }
 0x58d   : > { %vm5033_vm9 = vcmp.eq.s32.totalorder %v4973_v51, %v13368_v27  ;;  %v16226_v51 = vld [vmem:[#allocation53_spill] sm:$0xff] }
 0x58e   : > { %5167 = vmax.xlane.f32.xlu1 %v5166_v4  ;;  %5164 = vmax.xlane.f32.xlu0 %v5163_v3  ;;  %v5184_v4 = vmax.f32 %v13414_v49, -1e+30  ;;  %v5181_v3 = vmax.f32 %v13417_v52, -1e+30  ;;  %v13438_v0 = vsel %vm5033_vm9, %v13375_v48, -1e+30  ;;  %vm5523_vm9 = vcmp.eq.s32.totalorder %v16203_v30, %v13266_v9 }
 0x58f   : > { %16224 = vst [vmem:[#allocation124_spill] sm:$0xff] %v13438_v0  ;;  %v4977_v38 = vand.u32 4294967280, %v16226_v51  ;;  %v5196_v19 = vmax.f32 %v13438_v0, -1e+30  ;;  %v5199_v51 = vmax.f32 %v13453_v7, -1e+30 }
 0x591   : > { %vm5041_vm5 = vcmp.eq.s32.totalorder %v4977_v38, %v13368_v27 }
 0x592   : > { %5173 = vmax.xlane.f32.xlu1 %v5172_v42  ;;  %5170 = vmax.xlane.f32.xlu0 %v5169_v40  ;;  %v16222_v42 = vld [vmem:[#allocation49_spill] sm:$0xff] }
 0x593   : > { %v4975_v40 = vand.u32 4294967280, %v16222_v42  ;;  %v5193_v42 = vmax.f32 %v13441_v17, -1e+30  ;;  %v13462_v17 = vsel %vm5041_vm5, %v13375_v48, -1e+30  ;;  %vm5531_vm5 = vcmp.eq.s32.totalorder %v16207_v22, %v13266_v9 }
 0x595   : > { %vm5037_vm10 = vcmp.eq.s32.totalorder %v4975_v40, %v13368_v27  ;;  %v16228_v40 = vld [vmem:[#allocation57_spill] sm:$0xff] }
 0x596   : > { %5179 = vmax.xlane.f32.xlu1 %v5178_v39  ;;  %5176 = vmax.xlane.f32.xlu0 %v5175_v55  ;;  %v5190_v39 = vmax.f32 %v13426_v44, -1e+30  ;;  %v5187_v55 = vmax.f32 %v13429_v47, -1e+30  ;;  %v13450_v59 = vsel %vm5037_vm10, %v13375_v48, -1e+30  ;;  %vm5527_vm10 = vcmp.eq.s32.totalorder %v16205_v43, %v13266_v9 }
 0x597   : > { %v4979_v56 = vand.u32 4294967280, %v16228_v40 }
 0x599   : > { %vm5045_vm4 = vcmp.eq.s32.totalorder %v4979_v56, %v13368_v27 }
 0x59a   : > { %5185 = vmax.xlane.f32.xlu1 %v5184_v4  ;;  %5182 = vmax.xlane.f32.xlu0 %v5181_v3  ;;  %v16227_v4 = vld [vmem:[#allocation52_spill] sm:$0xff]  ;;  %v13472_v38 = vsel %vm5045_vm4, %v13375_v48, -1e+30  ;;  %vm5535_vm4 = vcmp.eq.s32.totalorder %v16209_v58, %v13266_v9 }
 0x59b   : > { %v4976_v3 = vand.u32 4294967280, %v16227_v4  ;;  %v5202_v4 = vmax.f32 %v13450_v59, -1e+30  ;;  %16231 = vst [vmem:[#allocation282_spill] sm:$0xff] %v13472_v38 }
 0x59d   : > { %vm5039_vm0 = vcmp.eq.s32.totalorder %v4976_v3, %v13368_v27 }
 0x59e   : > { %5191 = vmax.xlane.f32.xlu1 %v5190_v39  ;;  %5188 = vmax.xlane.f32.xlu0 %v5187_v55  ;;  %v16229_v39 = vld [vmem:[#allocation56_spill] sm:$0xff]  ;;  %v13465_v0 = vsel %vm5039_vm0, %v13375_v48, -1e+30  ;;  %vm5529_vm0 = vcmp.eq.s32.totalorder %v16208_v54, %v13266_v9 }
 0x59f   : > { %v4978_v55 = vand.u32 4294967280, %v16229_v39  ;;  %16230 = vst [vmem:[#allocation271_spill] sm:$0xff] %v13465_v0  ;;  %v5214_v39 = vmax.f32 %v13472_v38, -1e+30 }
 0x5a1   : > { %vm5043_vm8 = vcmp.eq.s32.totalorder %v4978_v55, %v13368_v27 }
 0x5a2   : > { %5197 = vmax.xlane.f32.xlu1 %v5196_v19  ;;  %5194 = vmax.xlane.f32.xlu0 %v5193_v42  ;;  %v5208_v42 = vmax.f32 %v13462_v17, -1e+30  ;;  %v5205_v19 = vmax.f32 %v13465_v0, -1e+30  ;;  %v13475_v3 = vsel %vm5043_vm8, %v13375_v48, -1e+30  ;;  %vm5533_vm8 = vcmp.eq.s32.totalorder %v16210_v37, %v13266_v9 }
 0x5a3   : > { %16232 = vst [vmem:[#allocation123_spill] sm:$0xff] %v13475_v3 }
 0x5a6   : > { %5203 = vmax.xlane.f32.xlu1 %v5202_v4  ;;  %5200 = vmax.xlane.f32.xlu0 %v5199_v51  ;;  %v5211_v51 = vmax.f32 %v13475_v3, -1e+30 }
 0x5aa   : > { %5209 = vmax.xlane.f32.xlu1 %v5208_v42  ;;  %5206 = vmax.xlane.f32.xlu0 %v5205_v19 }
 0x5ae   : > { %5215 = vmax.xlane.f32.xlu1 %v5214_v39  ;;  %5212 = vmax.xlane.f32.xlu0 %v5211_v51 }
 0x5fb   : > { %v13479_v4 = vpop.xlane.xlu1 %5125  ;;  %v13481_v27 = vpop.xlane.xlu0 %5122 }
 0x5fc   : > { %v5219_v56 = vsub.f32 %v13288_v14, %v13479_v4  ;;  %v5217_v55 = vsub.f32 %v13291_v60, %v13481_v27 }
 0x5fe   : > { %v5285_v48 = vmul.f32 1.442695, %v5219_v56  ;;  %v5281_v40 = vmul.f32 1.442695, %v5217_v55 }
 0x5ff   : > { %v13487_v42 = vpop.xlane.xlu1 %5131  ;;  %v13489_v19 = vpop.xlane.xlu0 %5128 }
 0x600   : > { %7793 = vpow2.f32 %v5285_v48  ;;  %v5223_v39 = vsub.f32 %v13296_v13, %v13487_v42  ;;  %v5221_v51 = vsub.f32 %v13299_v8, %v13489_v19  ;;  %v5224_v58 = vsub.f32 -1e+30, %v13487_v42 }
 0x601   : > { %7795 = vpow2.f32 %v5281_v40 }
 0x602   : > { %v5293_v3 = vmul.f32 1.442695, %v5223_v39  ;;  %v5289_v38 = vmul.f32 1.442695, %v5221_v51  ;;  %v5295_v37 = vmul.f32 1.442695, %v5224_v58 }
 0x603   : > { %v13495_v14 = vpop.xlane.xlu1 %5137  ;;  %v13497_v0 = vpop.xlane.xlu0 %5134 }
 0x604   : > { %7797 = vpow2.f32 %v5293_v3  ;;  %v5227_v60 = vsub.f32 %v13308_v33, %v13495_v14  ;;  %v5225_v56 = vsub.f32 %v13311_v26, %v13497_v0 }
 0x605   : > { %7799 = vpow2.f32 %v5289_v38 }
 0x606   : > { %v5301_v55 = vmul.f32 1.442695, %v5227_v60  ;;  %v5297_v13 = vmul.f32 1.442695, %v5225_v56 }
 0x607   : > { %v13503_v48 = vpop.xlane.xlu1 %5143  ;;  %v13505_v8 = vpop.xlane.xlu0 %5140 }
 0x608   : > { %7801 = vpow2.f32 %v5301_v55  ;;  %v5231_v40 = vsub.f32 %v13320_v10, %v13503_v48  ;;  %v5229_v3 = vsub.f32 %v13323_v21, %v13505_v8 }
 0x609   : > { %7803 = vpow2.f32 %v5297_v13 }
 0x60a   : > { %v5309_v39 = vmul.f32 1.442695, %v5231_v40  ;;  %v5305_v33 = vmul.f32 1.442695, %v5229_v3 }
 0x60b   : > { %v13511_v51 = vpop.xlane.xlu1 %5149  ;;  %v13513_v26 = vpop.xlane.xlu0 %5146 }
 0x60c   : > { %7805 = vpow2.f32 %v5309_v39  ;;  %v5235_v38 = vsub.f32 %v13332_v18, %v13511_v51  ;;  %v5233_v60 = vsub.f32 %v13335_v11, %v13513_v26 }
 0x60d   : > { %v13521_v10 = vpop.eup %7793  ;;  %7807 = vpow2.f32 %v5305_v33 }
 0x60e   : > { %v5317_v21 = vmul.f32 1.442695, %v5235_v38  ;;  %v5313_v56 = vmul.f32 1.442695, %v5233_v60  ;;  %v13525_v55 = vpop.eup %7795  ;;  %v5571_v13 = vsel %vm5507_vm12, %v13521_v10, 0.0  ;;  %vm5540_vm12 = vcmp.eq.s32.totalorder %v16211_v41, %v13354_v5 }
 0x60f   : > { %v13528_v40 = vpop.xlane.xlu1 %5155  ;;  %v13530_v18 = vpop.xlane.xlu0 %5152  ;;  %5637 = vadd.xlane.f32.xlu1 %v5571_v13  ;;  %v5569_v46 = vsel %vm5505_vm11, %v13525_v55, 0.0  ;;  %vm5538_vm11 = vcmp.eq.s32.totalorder %v16212_v31, %v13354_v5  ;;  %v5226_v41 = vsub.f32 -1e+30, %v13497_v0  ;;  %v5232_v31 = vsub.f32 -1e+30, %v13503_v48 }
 0x610   : > { %7809 = vpow2.f32 %v5317_v21  ;;  %v5239_v23 = vsub.f32 %v13344_v57, %v13528_v40  ;;  %5634 = vadd.xlane.f32.xlu0 %v5569_v46  ;;  %v5237_v3 = vsub.f32 %v13347_v16, %v13530_v18 }
 0x611   : > { %v13537_v11 = vpop.eup %7797  ;;  %7811 = vpow2.f32 %v5313_v56  ;;  %v5299_v0 = vmul.f32 1.442695, %v5226_v41  ;;  %v5311_v48 = vmul.f32 1.442695, %v5232_v31 }
 0x612   : > { %v5325_v39 = vmul.f32 1.442695, %v5239_v23  ;;  %v5575_v28 = vsel %vm5511_vm7, %v13537_v11, 0.0  ;;  %v13544_v33 = vpop.eup %7799  ;;  %v5321_v38 = vmul.f32 1.442695, %v5237_v3  ;;  %vm5544_vm7 = vcmp.eq.s32.totalorder %v16214_v32, %v13354_v5 }
 0x613   : > { %v13546_v60 = vpop.xlane.xlu1 %5161  ;;  %v13548_v57 = vpop.xlane.xlu0 %5158  ;;  %5643 = vadd.xlane.f32.xlu1 %v5575_v28  ;;  %v5573_v1 = vsel %vm5509_vm3, %v13544_v33, 0.0  ;;  %vm5542_vm3 = vcmp.eq.s32.totalorder %v16215_v35, %v13354_v5  ;;  %v5230_v32 = vsub.f32 -1e+30, %v13505_v8  ;;  %v5236_v35 = vsub.f32 -1e+30, %v13511_v51 }
 0x614   : > { %7813 = vpow2.f32 %v5325_v39  ;;  %v5243_v16 = vsub.f32 %v13359_v15, %v13546_v60  ;;  %5640 = vadd.xlane.f32.xlu0 %v5573_v1  ;;  %v5241_v56 = vsub.f32 %v13362_v6, %v13548_v57 }
 0x615   : > { %v13555_v21 = vpop.eup %7801  ;;  %7815 = vpow2.f32 %v5321_v38  ;;  %v5307_v8 = vmul.f32 1.442695, %v5230_v32  ;;  %v5319_v51 = vmul.f32 1.442695, %v5236_v35  ;;  %v5242_v32 = vsub.f32 -1e+30, %v13548_v57 }
 0x616   : > { %v5333_v13 = vmul.f32 1.442695, %v5243_v16  ;;  %v5579_v36 = vsel %vm5515_vm6, %v13555_v21, 0.0  ;;  %v13562_v23 = vpop.eup %7803  ;;  %v5329_v46 = vmul.f32 1.442695, %v5241_v56  ;;  %vm5548_vm6 = vcmp.eq.s32.totalorder %v16216_v62, %v13354_v5 }
 0x617   : > { %v13564_v3 = vpop.xlane.xlu1 %5167  ;;  %v13566_v15 = vpop.xlane.xlu0 %5164  ;;  %5649 = vadd.xlane.f32.xlu1 %v5579_v36  ;;  %v5577_v29 = vsel %vm5513_vm13, %v13562_v23, 0.0  ;;  %vm5546_vm13 = vcmp.eq.s32.totalorder %v16217_v12, %v13354_v5  ;;  %v5234_v62 = vsub.f32 -1e+30, %v13513_v26  ;;  %v5240_v12 = vsub.f32 -1e+30, %v13528_v40 }
 0x618   : > { %7817 = vpow2.f32 %v5333_v13  ;;  %v5247_v6 = vsub.f32 %v13378_v61, %v13564_v3  ;;  %5646 = vadd.xlane.f32.xlu0 %v5577_v29  ;;  %v5245_v28 = vsub.f32 %v13381_v50, %v13566_v15  ;;  %v5244_v40 = vsub.f32 -1e+30, %v13546_v60 }
 0x619   : > { %v13573_v39 = vpop.eup %7805  ;;  %7819 = vpow2.f32 %v5329_v46  ;;  %v5248_v35 = vsub.f32 -1e+30, %v13564_v3 }
 0x61a   : > { %v5341_v38 = vmul.f32 1.442695, %v5247_v6  ;;  %v5583_v2 = vsel %vm5519_vm15, %v13573_v39, 0.0  ;;  %v13580_v16 = vpop.eup %7807  ;;  %v5337_v1 = vmul.f32 1.442695, %v5245_v28 }
 0x61b   : > { %v13582_v56 = vpop.xlane.xlu1 %5173  ;;  %v13584_v61 = vpop.xlane.xlu0 %5170  ;;  %5655 = vadd.xlane.f32.xlu1 %v5583_v2  ;;  %v5581_v45 = vsel %vm5517_vm2, %v13580_v16, 0.0 }
 0x61c   : > { %7821 = vpow2.f32 %v5341_v38  ;;  %v5252_v50 = vsub.f32 %v13390_v24, %v13582_v56  ;;  %5652 = vadd.xlane.f32.xlu0 %v5581_v45  ;;  %v5250_v36 = vsub.f32 %v13393_v20, %v13584_v61 }
 0x61d   : > { %v13591_v13 = vpop.eup %7809  ;;  %7823 = vpow2.f32 %v5337_v1 }
 0x61e   : > { %v5351_v46 = vmul.f32 1.442695, %v5252_v50  ;;  %v5587_v30 = vsel %vm5523_vm9, %v13591_v13, 0.0  ;;  %v13598_v6 = vpop.eup %7811  ;;  %v5347_v29 = vmul.f32 1.442695, %v5250_v36 }
 0x61f   : > { %v13600_v28 = vpop.xlane.xlu1 %5179  ;;  %v13602_v24 = vpop.xlane.xlu0 %5176  ;;  %5661 = vadd.xlane.f32.xlu1 %v5587_v30  ;;  %v5585_v53 = vsel %vm5521_vm1, %v13598_v6, 0.0  ;;  %v5220_v30 = vsub.f32 -1e+30, %v13479_v4  ;;  %v5218_v4 = vsub.f32 -1e+30, %v13481_v27 }
 0x620   : > { %v5256_v20 = vsub.f32 %v13402_v63, %v13600_v28  ;;  %7825 = vpow2.f32 %v5351_v46  ;;  %5658 = vadd.xlane.f32.xlu0 %v5585_v53  ;;  %v5254_v2 = vsub.f32 %v13405_v34, %v13602_v24 }
 0x621   : > { %v13609_v38 = vpop.eup %7813  ;;  %7827 = vpow2.f32 %v5347_v29 }
 0x622   : > { %v5359_v1 = vmul.f32 1.442695, %v5256_v20  ;;  %v5591_v50 = vsel %vm5527_vm10, %v13609_v38, 0.0  ;;  %v13616_v43 = vpop.eup %7815  ;;  %v5355_v45 = vmul.f32 1.442695, %v5254_v2 }
 0x623   : > { %v13618_v63 = vpop.xlane.xlu1 %5185  ;;  %v13620_v36 = vpop.xlane.xlu0 %5182  ;;  %5667 = vadd.xlane.f32.xlu1 %v5591_v50  ;;  %v5589_v25 = vsel %vm5525_vm14, %v13616_v43, 0.0 }
 0x624   : > { %v5260_v34 = vsub.f32 %v13414_v49, %v13618_v63  ;;  %7829 = vpow2.f32 %v5359_v1  ;;  %5664 = vadd.xlane.f32.xlu0 %v5589_v25  ;;  %v5258_v29 = vsub.f32 %v13417_v52, %v13620_v36 }
 0x625   : > { %v13627_v46 = vpop.eup %7817  ;;  %7831 = vpow2.f32 %v5355_v45 }
 0x626   : > { %v5367_v20 = vmul.f32 1.442695, %v5260_v34  ;;  %v5595_v22 = vsel %vm5531_vm5, %v13627_v46, 0.0  ;;  %v13635_v53 = vpop.eup %7819  ;;  %v5363_v49 = vmul.f32 1.442695, %v5258_v29 }
 0x627   : > { %v13637_v2 = vpop.xlane.xlu1 %5191  ;;  %v13639_v50 = vpop.xlane.xlu0 %5188  ;;  %5673 = vadd.xlane.f32.xlu1 %v5595_v22  ;;  %v5593_v52 = vsel %vm5529_vm0, %v13635_v53, 0.0  ;;  %v5287_v34 = vmul.f32 1.442695, %v5220_v30  ;;  %v5283_v22 = vmul.f32 1.442695, %v5218_v4 }
 0x628   : > { %v5264_v54 = vsub.f32 %v13426_v44, %v13637_v2  ;;  %7833 = vpow2.f32 %v5367_v20  ;;  %5670 = vadd.xlane.f32.xlu0 %v5593_v52  ;;  %v5262_v45 = vsub.f32 %v13429_v47, %v13639_v50  ;;  %v5222_v30 = vsub.f32 -1e+30, %v13489_v19 }
 0x629   : > { %v13647_v1 = vpop.eup %7821  ;;  %7835 = vpow2.f32 %v5363_v49  ;;  %v5228_v47 = vsub.f32 -1e+30, %v13495_v14 }
 0x62a   : > { %v5375_v27 = vmul.f32 1.442695, %v5264_v54  ;;  %v5599_v25 = vsel %vm5535_vm4, %v13647_v1, 0.0  ;;  %v13655_v29 = vpop.eup %7823  ;;  %v5371_v44 = vmul.f32 1.442695, %v5262_v45 }
 0x62b   : > { %5679 = vadd.xlane.f32.xlu1 %v5599_v25  ;;  %v5597_v20 = vsel %vm5533_vm8, %v13655_v29, 0.0  ;;  %v5291_v49 = vmul.f32 1.442695, %v5222_v30  ;;  %v5303_v14 = vmul.f32 1.442695, %v5228_v47 }
 0x62c   : > { %7837 = vpow2.f32 %v5375_v27  ;;  %5676 = vadd.xlane.f32.xlu0 %v5597_v20  ;;  %v16234_v20 = vld [vmem:[#allocation40_spill] sm:$0xff] }
 0x62d   : > { %v13661_v9 = vpop.eup %7825  ;;  %7839 = vpow2.f32 %v5287_v34  ;;  %vm5550_vm2 = vcmp.eq.s32.totalorder %v16234_v20, %v13354_v5 }
 0x62e   : > { %7841 = vpow2.f32 %v5371_v44  ;;  %v5604_v42 = vsel %vm5540_vm12, %v13661_v9, 0.0  ;;  %v13667_v19 = vpop.eup %7827  ;;  %v16233_v44 = vld [vmem:[#allocation41_spill] sm:$0xff] }
 0x62f   : > { %7843 = vpow2.f32 %v5283_v22  ;;  %5685 = vadd.xlane.f32.xlu1 %v5604_v42  ;;  %v5602_v4 = vsel %vm5538_vm11, %v13667_v19, 0.0  ;;  %vm5552_vm15 = vcmp.eq.s32.totalorder %v16233_v44, %v13354_v5  ;;  %v5315_v42 = vmul.f32 1.442695, %v5234_v62 }
 0x630   : > { %7845 = vpow2.f32 %v5295_v37  ;;  %5682 = vadd.xlane.f32.xlu0 %v5602_v4  ;;  %v5343_v44 = vmul.f32 1.442695, %v5248_v35 }
 0x631   : > { %v13673_v54 = vpop.eup %7829  ;;  %7847 = vpow2.f32 %v5291_v49  ;;  %v5238_v49 = vsub.f32 -1e+30, %v13530_v18 }
 0x632   : > { %v5608_v52 = vsel %vm5544_vm7, %v13673_v54, 0.0  ;;  %v13679_v34 = vpop.eup %7831  ;;  %7849 = vpow2.f32 %v5303_v14  ;;  %v5327_v14 = vmul.f32 1.442695, %v5240_v12 }
 0x633   : > { %5691 = vadd.xlane.f32.xlu1 %v5608_v52  ;;  %v5606_v45 = vsel %vm5542_vm3, %v13679_v34, 0.0  ;;  %7851 = vpow2.f32 %v5299_v0  ;;  %v5323_v0 = vmul.f32 1.442695, %v5238_v49 }
 0x634   : > { %5688 = vadd.xlane.f32.xlu0 %v5606_v45  ;;  %7853 = vpow2.f32 %v5311_v48  ;;  %v5335_v48 = vmul.f32 1.442695, %v5244_v40  ;;  %v5257_v40 = vsub.f32 -1e+30, %v13620_v36 }
 0x635   : > { %v13685_v58 = vpop.eup %7833  ;;  %7855 = vpow2.f32 %v5307_v8  ;;  %v5331_v8 = vmul.f32 1.442695, %v5242_v32 }
 0x636   : > { %v5612_v27 = vsel %vm5548_vm6, %v13685_v58, 0.0  ;;  %v13691_v25 = vpop.eup %7835  ;;  %7857 = vpow2.f32 %v5319_v51 }
 0x637   : > { %5697 = vadd.xlane.f32.xlu1 %v5612_v27  ;;  %v5610_v22 = vsel %vm5546_vm13, %v13691_v25, 0.0  ;;  %7859 = vpow2.f32 %v5315_v42  ;;  %v5198_v42 = vpop.xlane.xlu1 %5197 }
 0x638   : > { %5694 = vadd.xlane.f32.xlu0 %v5610_v22  ;;  %7861 = vpow2.f32 %v5327_v14 }
 0x639   : > { %v13697_v30 = vpop.eup %7837  ;;  %7863 = vpow2.f32 %v5323_v0 }
 0x63a   : > { %v7840_v37 = vpop.eup %7839  ;;  %v5616_v47 = vsel %vm5552_vm15, %v13697_v30, 0.0  ;;  %7865 = vpow2.f32 %v5335_v48 }
 0x63b   : > { %v13703_v26 = vpop.eup %7841  ;;  %5703 = vadd.xlane.f32.xlu1 %v5616_v47  ;;  %v5412_v31 = vadd.f32 %v7840_v37, %v13521_v10  ;;  %v5246_v10 = vsub.f32 -1e+30, %v13566_v15  ;;  %7867 = vpow2.f32 %v5331_v8  ;;  %v5204_v0 = vpop.xlane.xlu1 %5203 }
 0x63c   : > { %v7844_v41 = vpop.eup %7843  ;;  %v5614_v4 = vsel %vm5550_vm2, %v13703_v26, 0.0  ;;  %7869 = vpow2.f32 %v5343_v44 }
 0x63d   : > { %5700 = vadd.xlane.f32.xlu0 %v5614_v4  ;;  %v7846_v52 = vpop.eup %7845  ;;  %v5409_v45 = vadd.f32 %v7844_v41, %v13525_v55  ;;  %v5251_v55 = vsub.f32 -1e+30, %v13582_v56  ;;  %v5339_v51 = vmul.f32 1.442695, %v5246_v10  ;;  %v5259_v41 = vsub.f32 -1e+30, %v13618_v63  ;;  %v5195_v4 = vpop.xlane.xlu0 %5194 }
 0x63e   : > { %v7848_v18 = vpop.eup %7847  ;;  %v5418_v27 = vadd.f32 %v7846_v52, %v13537_v11  ;;  %v5249_v11 = vsub.f32 -1e+30, %v13584_v61  ;;  %v5263_v52 = vsub.f32 -1e+30, %v13637_v2 }
 0x63f   : > { %5413 = vadd.xlane.f32.xlu1 %v5412_v31  ;;  %v7850_v60 = vpop.eup %7849  ;;  %v5415_v62 = vadd.f32 %v7848_v18, %v13544_v33  ;;  %v5349_v20 = vmul.f32 1.442695, %v5251_v55  ;;  %v5255_v33 = vsub.f32 -1e+30, %v13600_v28  ;;  %7871 = vpow2.f32 %v5339_v51 }
 0x640   : > { %v7852_v57 = vpop.eup %7851  ;;  %v5424_v22 = vadd.f32 %v7850_v60, %v13555_v21  ;;  %v5345_v47 = vmul.f32 1.442695, %v5249_v11  ;;  %v5253_v21 = vsub.f32 -1e+30, %v13602_v24  ;;  %v5373_v35 = vmul.f32 1.442695, %v5263_v52 }
 0x641   : > { %5410 = vadd.xlane.f32.xlu0 %v5409_v45  ;;  %v7854_v3 = vpop.eup %7853  ;;  %v5421_v12 = vadd.f32 %v7852_v57, %v13562_v23  ;;  %7873 = vpow2.f32 %v5349_v20  ;;  %v5357_v23 = vmul.f32 1.442695, %v5255_v33  ;;  %v5261_v45 = vsub.f32 -1e+30, %v13639_v50  ;;  %v5201_v18 = vpop.xlane.xlu0 %5200 }
 0x642   : > { %v7856_v15 = vpop.eup %7855  ;;  %v5430_v37 = vadd.f32 %v7854_v3, %v13573_v39  ;;  %7875 = vpow2.f32 %v5345_v47  ;;  %v5353_v39 = vmul.f32 1.442695, %v5253_v21  ;;  %v5210_v50 = vpop.xlane.xlu1 %5209  ;;  %v5272_v51 = vsub.f32 %v13450_v59, %v5204_v0 }
 0x643   : > { %5419 = vadd.xlane.f32.xlu1 %v5418_v27  ;;  %v7858_v56 = vpop.eup %7857  ;;  %v5427_v61 = vadd.f32 %v7856_v15, %v13580_v16  ;;  %7877 = vpow2.f32 %v5357_v23  ;;  %v5365_v16 = vmul.f32 1.442695, %v5259_v41  ;;  %v16235_v27 = vld [vmem:[#allocation124_spill] sm:$0xff]  ;;  %v5369_v10 = vmul.f32 1.442695, %v5261_v45 }
 0x644   : > { %v7860_v49 = vpop.eup %7859  ;;  %v5436_v28 = vadd.f32 %v7858_v56, %v13591_v13  ;;  %7879 = vpow2.f32 %v5353_v39  ;;  %v5361_v13 = vmul.f32 1.442695, %v5257_v40  ;;  %v5268_v60 = vsub.f32 %v16235_v27, %v5198_v42 }
 0x645   : > { %5416 = vadd.xlane.f32.xlu0 %v5415_v62  ;;  %v7862_v14 = vpop.eup %7861  ;;  %v5433_v24 = vadd.f32 %v7860_v49, %v13598_v6  ;;  %v5267_v6 = vsub.f32 -1e+30, %v5198_v42  ;;  %7881 = vpow2.f32 %v5365_v16  ;;  %v16236_v62 = vld [vmem:[#allocation273_spill] sm:$0xff]  ;;  %v5207_v11 = vpop.xlane.xlu0 %5206  ;;  %v5269_v20 = vsub.f32 -1e+30, %v5201_v18 }
 0x646   : > { %v7864_v31 = vpop.eup %7863  ;;  %v5442_v63 = vadd.f32 %v7862_v14, %v13609_v38  ;;  %v5265_v38 = vsub.f32 -1e+30, %v5195_v4  ;;  %7883 = vpow2.f32 %v5361_v13  ;;  %v5266_v57 = vsub.f32 %v16236_v62, %v5195_v4  ;;  %v16237_v4 = vld [vmem:[#allocation271_spill] sm:$0xff] }
 0x647   : > { %5425 = vadd.xlane.f32.xlu1 %v5424_v22  ;;  %v7866_v32 = vpop.eup %7865  ;;  %v5439_v36 = vadd.f32 %v7864_v31, %v13616_v43  ;;  %v5381_v55 = vmul.f32 1.442695, %v5267_v6  ;;  %v5271_v22 = vsub.f32 -1e+30, %v5204_v0  ;;  %7885 = vpow2.f32 %v5373_v35  ;;  %v16238_v31 = vld [vmem:[#allocation282_spill] sm:$0xff]  ;;  %v16239_v13 = vld [vmem:[#allocation123_spill] sm:$0xff] }
 0x648   : > { %v7868_v48 = vpop.eup %7867  ;;  %v5448_v2 = vadd.f32 %v7866_v32, %v13627_v46  ;;  %v5383_v3 = vmul.f32 1.442695, %v5268_v60  ;;  %v5377_v15 = vmul.f32 1.442695, %v5265_v38  ;;  %7887 = vpow2.f32 %v5369_v10 }
 0x649   : > { %5422 = vadd.xlane.f32.xlu0 %v5421_v12  ;;  %v7870_v8 = vpop.eup %7869  ;;  %v5445_v44 = vadd.f32 %v7868_v48, %v13635_v53  ;;  %v5379_v33 = vmul.f32 1.442695, %v5266_v57  ;;  %7889 = vpow2.f32 %v5381_v55  ;;  %v5389_v47 = vmul.f32 1.442695, %v5271_v22 }
 0x64a   : > { %v5454_v46 = vadd.f32 %v7870_v8, %v13647_v1  ;;  %v5275_v21 = vsub.f32 -1e+30, %v5210_v50  ;;  %7891 = vpow2.f32 %v5383_v3  ;;  %v5391_v59 = vmul.f32 1.442695, %v5272_v51 }
 0x64b   : > { %5431 = vadd.xlane.f32.xlu1 %v5430_v37  ;;  %v5270_v37 = vsub.f32 %v13453_v7, %v5201_v18  ;;  %v5276_v42 = vsub.f32 %v13462_v17, %v5210_v50  ;;  %7893 = vpow2.f32 %v5377_v15  ;;  %v5385_v23 = vmul.f32 1.442695, %v5269_v20 }
 0x64c   : > { %v7872_v43 = vpop.eup %7871  ;;  %v5273_v41 = vsub.f32 -1e+30, %v5207_v11  ;;  %7895 = vpow2.f32 %v5379_v33  ;;  %v5397_v40 = vmul.f32 1.442695, %v5275_v21  ;;  %v16241_v21 = vld [vmem:[#allocation44_spill] sm:$0xff] }
 0x64d   : > { %5428 = vadd.xlane.f32.xlu0 %v5427_v61  ;;  %v5451_v53 = vadd.f32 %v7872_v43, %v13655_v29  ;;  %v5216_v61 = vpop.xlane.xlu1 %5215  ;;  %v5387_v7 = vmul.f32 1.442695, %v5270_v37  ;;  %v5274_v29 = vsub.f32 %v16237_v4, %v5207_v11  ;;  %7897 = vpow2.f32 %v5389_v47  ;;  %v16240_v47 = vld [vmem:[#allocation45_spill] sm:$0xff] }
 0x64e   : > { %v7874_v12 = vpop.eup %7873  ;;  %v5279_v17 = vsub.f32 -1e+30, %v5216_v61  ;;  %7899 = vpow2.f32 %v5391_v59  ;;  %v5393_v0 = vmul.f32 1.442695, %v5273_v41  ;;  %vm5556_vm9 = vcmp.eq.s32.totalorder %v16240_v47, %v13354_v5 }
 0x64f   : > { %5437 = vadd.xlane.f32.xlu1 %v5436_v28  ;;  %v7876_v56 = vpop.eup %7875  ;;  %v5460_v1 = vadd.f32 %v7874_v12, %v13661_v9  ;;  %v5213_v28 = vpop.xlane.xlu0 %5212  ;;  %v5280_v9 = vsub.f32 %v16238_v31, %v5216_v61  ;;  %7901 = vpow2.f32 %v5385_v23  ;;  %v5395_v32 = vmul.f32 1.442695, %v5274_v29  ;;  %v16244_v23 = vld [vmem:[#allocation53_spill] sm:$0xff] }
 0x650   : > { %v7878_v49 = vpop.eup %7877  ;;  %v5457_v14 = vadd.f32 %v7876_v56, %v13667_v19  ;;  %7903 = vpow2.f32 %v5387_v7  ;;  %v5278_v45 = vsub.f32 %v16239_v13, %v5213_v28  ;;  %vm5554_vm1 = vcmp.eq.s32.totalorder %v16241_v21, %v13354_v5  ;;  %v16245_v7 = vld [vmem:[#allocation52_spill] sm:$0xff]  ;;  %v16246_v29 = vld [vmem:[#allocation57_spill] sm:$0xff] }
 0x651   : > { %5434 = vadd.xlane.f32.xlu0 %v5433_v24  ;;  %v7880_v39 = vpop.eup %7879  ;;  %v5399_v24 = vmul.f32 1.442695, %v5276_v42  ;;  %v5466_v16 = vadd.f32 %v7878_v49, %v13673_v54  ;;  %7905 = vpow2.f32 %v5397_v40  ;;  %v5407_v48 = vmul.f32 1.442695, %v5280_v9  ;;  %v16242_v42 = vld [vmem:[#allocation49_spill] sm:$0xff] }
 0x652   : > { %v7882_v52 = vpop.eup %7881  ;;  %v5463_v19 = vadd.f32 %v7880_v39, %v13679_v34  ;;  %v5403_v27 = vmul.f32 1.442695, %v5278_v45  ;;  %vm5560_vm10 = vcmp.eq.s32.totalorder %v16242_v42, %v13354_v5  ;;  %vm5564_vm5 = vcmp.eq.s32.totalorder %v16244_v23, %v13354_v5  ;;  %v16255_v23 = vld [vmem:[#allocation160_spill] sm:$0xff] }
 0x653   : > { %5443 = vadd.xlane.f32.xlu1 %v5442_v63  ;;  %v5277_v63 = vsub.f32 -1e+30, %v5213_v28  ;;  %v7884_v18 = vpop.eup %7883  ;;  %7907 = vpow2.f32 %v5399_v24  ;;  %v5472_v6 = vadd.f32 %v7882_v52, %v13685_v58  ;;  %vm5562_vm0 = vcmp.eq.s32.totalorder %v16245_v7, %v13354_v5  ;;  %v16256_v7 = vld [vmem:[#allocation94_spill] sm:$0xff] }
 0x654   : > { %v7886_v54 = vpop.eup %7885  ;;  %7909 = vpow2.f32 %v5393_v0  ;;  %v5469_v60 = vadd.f32 %v7884_v18, %v13691_v25  ;;  %vm5568_vm4 = vcmp.eq.s32.totalorder %v16246_v29, %v13354_v5  ;;  %v16257_v29 = vld [vmem:[#allocation158_spill] sm:$0xff] }
 0x655   : > { %5440 = vadd.xlane.f32.xlu0 %v5439_v36  ;;  %v5405_v36 = vmul.f32 1.442695, %v5279_v17  ;;  %v5401_v35 = vmul.f32 1.442695, %v5277_v63  ;;  %7911 = vpow2.f32 %v5395_v32  ;;  %v5478_v34 = vadd.f32 %v7886_v54, %v13697_v30 }
 0x657   : > { %5449 = vadd.xlane.f32.xlu1 %v5448_v2  ;;  %v7888_v2 = vpop.eup %7887  ;;  %7913 = vpow2.f32 %v5405_v36 }
 0x658   : > { %v7890_v8 = vpop.eup %7889  ;;  %7915 = vpow2.f32 %v5407_v48  ;;  %v5475_v58 = vadd.f32 %v7888_v2, %v13703_v26 }
 0x659   : > { %5446 = vadd.xlane.f32.xlu0 %v5445_v44  ;;  %v7892_v38 = vpop.eup %7891  ;;  %7917 = vpow2.f32 %v5401_v35 }
 0x65a   : > { %v7894_v10 = vpop.eup %7893  ;;  %7919 = vpow2.f32 %v5403_v27  ;;  %v5484_v50 = vadd.f32 %v7892_v38, %v7890_v8  ;;  %v5620_v59 = vsel %vm5556_vm9, %v7892_v38, 0.0 }
 0x65b   : > { %5455 = vadd.xlane.f32.xlu1 %v5454_v46  ;;  %v7896_v62 = vpop.eup %7895 }
 0x65c   : > { %v7898_v57 = vpop.eup %7897  ;;  %v5481_v43 = vadd.f32 %v7896_v62, %v7894_v10  ;;  %v5618_v61 = vsel %vm5554_vm1, %v7896_v62, 0.0 }
 0x65d   : > { %5452 = vadd.xlane.f32.xlu0 %v5451_v53  ;;  %v7900_v44 = vpop.eup %7899 }
 0x65e   : > { %v7902_v25 = vpop.eup %7901  ;;  %v5490_v3 = vadd.f32 %v7900_v44, %v7898_v57  ;;  %v5624_v49 = vsel %vm5560_vm10, %v7900_v44, 0.0 }
 0x65f   : > { %5461 = vadd.xlane.f32.xlu1 %v5460_v1  ;;  %v7904_v55 = vpop.eup %7903  ;;  %v16243_v1 = vld [vmem:[#allocation48_spill] sm:$0xff] }
 0x660   : > { %v7906_v22 = vpop.eup %7905  ;;  %v5487_v11 = vadd.f32 %v7904_v55, %v7902_v25  ;;  %vm5558_vm14 = vcmp.eq.s32.totalorder %v16243_v1, %v13354_v5  ;;  %v16254_v1 = vld [vmem:[#allocation164_spill] sm:$0xff] }
 0x661   : > { %5458 = vadd.xlane.f32.xlu0 %v5457_v14  ;;  %v7908_v30 = vpop.eup %7907  ;;  %v5622_v41 = vsel %vm5558_vm14, %v7904_v55, 0.0  ;;  %v16247_v14 = vld [vmem:[#allocation56_spill] sm:$0xff] }
 0x662   : > { %v7910_v51 = vpop.eup %7909  ;;  %v5496_v26 = vadd.f32 %v7908_v30, %v7906_v22  ;;  %v5628_v4 = vsel %vm5564_vm5, %v7908_v30, 0.0  ;;  %vm5566_vm8 = vcmp.eq.s32.totalorder %v16247_v14, %v13354_v5  ;;  %v16248_v30 = vld [vmem:[#allocation62_spill] sm:$0xff] }
 0x663   : > { %5467 = vadd.xlane.f32.xlu1 %v5466_v16  ;;  %v7912_v46 = vpop.eup %7911 }
 0x664   : > { %v7914_v12 = vpop.eup %7913  ;;  %v5493_v33 = vadd.f32 %v7912_v46, %v7910_v51  ;;  %v5626_v28 = vsel %vm5562_vm0, %v7912_v46, 0.0 }
 0x665   : > { %5464 = vadd.xlane.f32.xlu0 %v5463_v19  ;;  %v7916_v15 = vpop.eup %7915 }
 0x666   : > { %v7918_v20 = vpop.eup %7917  ;;  %v5502_v53 = vadd.f32 %v7916_v15, %v7914_v12  ;;  %v5632_v39 = vsel %vm5568_vm4, %v7916_v15, 0.0  ;;  %v16250_v12 = vld [vmem:[#allocation131_spill] sm:$0xff]  ;;  %v16251_v15 = vld [vmem:[#allocation132_spill] sm:$0xff] }
 0x667   : > { %5473 = vadd.xlane.f32.xlu1 %v5472_v6  ;;  %v7920_v37 = vpop.eup %7919 }
 0x668   : > { %v5499_v56 = vadd.f32 %v7920_v37, %v7918_v20  ;;  %v5630_v40 = vsel %vm5566_vm8, %v7920_v37, 0.0  ;;  %v16252_v37 = vld [vmem:[#allocation205_spill] sm:$0xff] }
 0x669   : > { %5470 = vadd.xlane.f32.xlu0 %v5469_v60 }
 0x66b   : > { %5479 = vadd.xlane.f32.xlu1 %v5478_v34 }
 0x66d   : > { %5476 = vadd.xlane.f32.xlu0 %v5475_v58 }
 0x66f   : > { %5485 = vadd.xlane.f32.xlu1 %v5484_v50 }
 0x671   : > { %5482 = vadd.xlane.f32.xlu0 %v5481_v43 }
 0x673   : > { %5491 = vadd.xlane.f32.xlu1 %v5490_v3 }
 0x675   : > { %5488 = vadd.xlane.f32.xlu0 %v5487_v11  ;;  %v16249_v11 = vld [vmem:[#allocation157_spill] sm:$0xff] }
 0x677   : > { %5497 = vadd.xlane.f32.xlu1 %v5496_v26 }
 0x679   : > { %5494 = vadd.xlane.f32.xlu0 %v5493_v33 }
 0x67b   : > { %5503 = vadd.xlane.f32.xlu1 %v5502_v53 }
 0x67d   : > { %5500 = vadd.xlane.f32.xlu0 %v5499_v56  ;;  %v16253_v56 = vld [vmem:[#allocation108_spill] sm:$0xff] }
 0x67f   : > { %5709 = vadd.xlane.f32.xlu1 %v5620_v59 }
 0x681   : > { %5706 = vadd.xlane.f32.xlu0 %v5618_v61 }
 0x683   : > { %5715 = vadd.xlane.f32.xlu1 %v5624_v49 }
 0x685   : > { %5712 = vadd.xlane.f32.xlu0 %v5622_v41 }
 0x687   : > { %5721 = vadd.xlane.f32.xlu1 %v5628_v4 }
 0x689   : > { %5718 = vadd.xlane.f32.xlu0 %v5626_v28 }
 0x68b   : > { %5727 = vadd.xlane.f32.xlu1 %v5632_v39  ;;  %v16258_v39 = vld [vmem:[#allocation107_spill] sm:$0xff] }
 0x68d   : > { %5724 = vadd.xlane.f32.xlu0 %v5630_v40 }
 0x698   : > { %v5638_v17 = vpop.xlane.xlu1 %5637 }
 0x699   : > { %v5635_v24 = vpop.xlane.xlu0 %5634 }
 0x69c   : > { %v5644_v31 = vpop.xlane.xlu1 %5643 }
 0x69d   : > { %v13767_v9 = vpop.xlane.xlu0 %5640 }
 0x6a0   : > { %v13769_v16 = vpop.xlane.xlu1 %5649 }
 0x6a1   : > { %v13771_v52 = vpop.xlane.xlu0 %5646 }
 0x6a4   : > { %v13773_v0 = vpop.xlane.xlu1 %5655 }
 0x6a5   : > { %v13775_v63 = vpop.xlane.xlu0 %5652 }
 0x6a8   : > { %v13777_v32 = vpop.xlane.xlu1 %5661 }
 0x6a9   : > { %v13779_v5 = vpop.xlane.xlu0 %5658 }
 0x6ac   : > { %v13781_v13 = vpop.xlane.xlu1 %5667 }
 0x6ad   : > { %v13783_v45 = vpop.xlane.xlu0 %5664 }
 0x6b0   : > { %v13785_v19 = vpop.xlane.xlu1 %5673 }
 0x6b1   : > { %v13787_v18 = vpop.xlane.xlu0 %5670 }
 0x6b4   : > { %v13789_v36 = vpop.xlane.xlu1 %5679 }
 0x6b5   : > { %v13791_v48 = vpop.xlane.xlu0 %5676 }
 0x6b8   : > { %v13793_v6 = vpop.xlane.xlu1 %5685 }
 0x6b9   : > { %v13795_v54 = vpop.xlane.xlu0 %5682 }
 0x6bc   : > { %v13797_v35 = vpop.xlane.xlu1 %5691 }
 0x6bd   : > { %v13799_v27 = vpop.xlane.xlu0 %5688 }
 0x6c0   : > { %v13801_v60 = vpop.xlane.xlu1 %5697 }
 0x6c1   : > { %v13803_v2 = vpop.xlane.xlu0 %5694 }
 0x6c4   : > { %v13805_v8 = vpop.xlane.xlu1 %5703 }
 0x6c6   : > { %v13807_v34 = vpop.xlane.xlu0 %5700 }
 0x6c8   : > { %v5414_v38 = vpop.xlane.xlu1 %5413 }
 0x6c9   : > { %7921 = vrcp.f32 %v5414_v38 }
 0x6ca   : > { %v5411_v10 = vpop.xlane.xlu0 %5410 }
 0x6cb   : > { %7923 = vrcp.f32 %v5411_v10  ;;  %v16261_v10 = vld [vmem:[#allocation162_spill] sm:$0xff] }
 0x6cc   : > { %v5420_v58 = vpop.xlane.xlu1 %5419 }
 0x6cd   : > { %7925 = vrcp.f32 %v5420_v58 }
 0x6ce   : > { %v5417_v62 = vpop.xlane.xlu0 %5416 }
 0x6cf   : > { %7927 = vrcp.f32 %v5417_v62 }
 0x6d0   : > { %v5426_v57 = vpop.xlane.xlu1 %5425 }
 0x6d1   : > { %7929 = vrcp.f32 %v5426_v57  ;;  %v16262_v57 = vld [vmem:[#allocation135_spill] sm:$0xff] }
 0x6d2   : > { %v5423_v50 = vpop.xlane.xlu0 %5422 }
 0x6d3   : > { %7931 = vrcp.f32 %v5423_v50 }
 0x6d4   : > { %v5432_v44 = vpop.xlane.xlu1 %5431 }
 0x6d5   : > { %7933 = vrcp.f32 %v5432_v44  ;;  %v16263_v44 = vld [vmem:[#allocation136_spill] sm:$0xff] }
 0x6d6   : > { %v7922_v25 = vpop.eup %7921  ;;  %v5429_v43 = vpop.xlane.xlu0 %5428 }
 0x6d7   : > { %v5762_v55 = vmul.f32 %v7922_v25, %v5638_v17  ;;  %7935 = vrcp.f32 %v5429_v43  ;;  %v16259_v17 = vld [vmem:[#allocation177_spill] sm:$0xff]  ;;  %v16264_v43 = vld [vmem:[#allocation207_spill] sm:$0xff] }
 0x6d8   : > { %v7924_v22 = vpop.eup %7923  ;;  %v5438_v3 = vpop.xlane.xlu1 %5437 }
 0x6d9   : > { %v5799_v51 = vmul.f32 %v5762_v55, %v16248_v30  ;;  %v5800_v46 = vmul.f32 %v5762_v55, %v16249_v11  ;;  %v5801_v26 = vmul.f32 %v5762_v55, %v16250_v12  ;;  %v5802_v20 = vmul.f32 %v5762_v55, %v16251_v15 }
 0x6da   : > { %v7926_v33 = vpop.eup %7925  ;;  %v5803_v53 = vmul.f32 %v5762_v55, %v16252_v37  ;;  %v5804_v47 = vmul.f32 %v5762_v55, %v16253_v56  ;;  %v5761_v21 = vmul.f32 %v7924_v22, %v5635_v24  ;;  %7937 = vrcp.f32 %v5438_v3  ;;  %v5435_v59 = vpop.xlane.xlu0 %5434  ;;  %v16265_v22 = vld [vmem:[#allocation209_spill] sm:$0xff]  ;;  %v16268_v37 = vld [vmem:[#allocation228_spill] sm:$0xff] }
 0x6db   : > { %5991 = vst [vmem:[%s13817_s27 + $0x30] sm:$0xff] %v5799_v51  ;;  %5992 = vst [vmem:[%s13817_s27 + $0x38] sm:$0xff] %v5800_v46  ;;  %v5764_v42 = vmul.f32 %v7926_v33, %v5644_v31  ;;  %7939 = vrcp.f32 %v5435_v59  ;;  %v16260_v31 = vld [vmem:[#allocation27_spill] sm:$0xff] }
 0x6dc   : > { %5993 = vst [vmem:[%s13817_s27 + $0x40] sm:$0xff] %v5801_v26  ;;  %5994 = vst [vmem:[%s13817_s27 + $0x48] sm:$0xff] %v5802_v20  ;;  %v7928_v61 = vpop.eup %7927  ;;  %v5793_v49 = vmul.f32 %v5761_v21, %v16254_v1  ;;  %v5794_v41 = vmul.f32 %v5761_v21, %v16255_v23  ;;  %v5795_v4 = vmul.f32 %v5761_v21, %v16256_v7  ;;  %v5444_v14 = vpop.xlane.xlu1 %5443  ;;  %v16266_v26 = vld [vmem:[#allocation168_spill] sm:$0xff]  ;;  %v16267_v20 = vld [vmem:[#allocation166_spill] sm:$0xff] }
 0x6dd   : > { %5995 = vst [vmem:[%s13817_s27 + $0x50] sm:$0xff] %v5803_v53  ;;  %5996 = vst [vmem:[%s13817_s27 + $0x58] sm:$0xff] %v5804_v47  ;;  %v5796_v28 = vmul.f32 %v5761_v21, %v16257_v29  ;;  %v5797_v40 = vmul.f32 %v5761_v21, %v16258_v39  ;;  %v5798_v24 = vmul.f32 %v5761_v21, %v16259_v17  ;;  %7941 = vrcp.f32 %v5444_v14  ;;  %v16269_v53 = vld [vmem:[#allocation163_spill] sm:$0xff]  ;;  %v16270_v47 = vld [vmem:[#allocation113_spill] sm:$0xff] }
 0x6de   : > { %v5811_v38 = vmul.f32 %v5764_v42, %v16260_v31  ;;  %v5812_v58 = vmul.f32 %v5764_v42, %v16261_v10  ;;  %v7930_v62 = vpop.eup %7929  ;;  %5985 = vst [vmem:[%s13817_s27] sm:$0xff] %v5793_v49  ;;  %5986 = vst [vmem:[%s13817_s27 + $0x8] sm:$0xff] %v5794_v41  ;;  %v5813_v50 = vmul.f32 %v5764_v42, %v16262_v57  ;;  %v5441_v30 = vpop.xlane.xlu0 %5440  ;;  %v16271_v59 = vld [vmem:[#allocation111_spill] sm:$0xff]  ;;  %v16273_v49 = vld [vmem:[#allocation98_spill] sm:$0xff] }
 0x6df   : > { %5987 = vst [vmem:[%s13817_s27 + $0x10] sm:$0xff] %v5795_v4  ;;  %5988 = vst [vmem:[%s13817_s27 + $0x18] sm:$0xff] %v5796_v28  ;;  %v5814_v25 = vmul.f32 %v5764_v42, %v16263_v44  ;;  %v5815_v55 = vmul.f32 %v5764_v42, %v16264_v43  ;;  %v5816_v3 = vmul.f32 %v5764_v42, %v16265_v22  ;;  %7943 = vrcp.f32 %v5441_v30  ;;  %v16274_v7 = vld [vmem:[#allocation139_spill] sm:$0xff]  ;;  %v16276_v14 = vld [vmem:[#allocation66_spill] sm:$0xff] }
 0x6e0   : > { %5989 = vst [vmem:[%s13817_s27 + $0x20] sm:$0xff] %v5797_v40  ;;  %5990 = vst [vmem:[%s13817_s27 + $0x28] sm:$0xff] %v5798_v24  ;;  %v5763_v51 = vmul.f32 %v7928_v61, %v13767_v9  ;;  %v5766_v11 = vmul.f32 %v7930_v62, %v13769_v16  ;;  %v5450_v46 = vpop.xlane.xlu1 %5449  ;;  %v7932_v12 = vpop.eup %7931  ;;  %v16272_v61 = vld [vmem:[#allocation68_spill] sm:$0xff]  ;;  %v16275_v29 = vld [vmem:[#allocation227_spill] sm:$0xff] }
 0x6e1   : > { %6003 = vst [vmem:[%s13817_s27 + $0x90] sm:$0xff] %v5811_v38  ;;  %6004 = vst [vmem:[%s13817_s27 + $0x98] sm:$0xff] %v5812_v58  ;;  %v16277_v40 = vld [vmem:[#allocation86_spill] sm:$0xff]  ;;  %v5765_v31 = vmul.f32 %v7932_v12, %v13771_v52  ;;  %7945 = vrcp.f32 %v5450_v46  ;;  %v16278_v62 = vld [vmem:[#allocation172_spill] sm:$0xff] }
 0x6e2   : > { %6005 = vst [vmem:[%s13817_s27 + $0xa0] sm:$0xff] %v5813_v50  ;;  %6006 = vst [vmem:[%s13817_s27 + $0xa8] sm:$0xff] %v5814_v25  ;;  %v5805_v15 = vmul.f32 %v5763_v51, %v16266_v26  ;;  %v5806_v33 = vmul.f32 %v5763_v51, %v16267_v20  ;;  %v5807_v9 = vmul.f32 %v5763_v51, %v16268_v37  ;;  %v7934_v56 = vpop.eup %7933  ;;  %v5447_v41 = vpop.xlane.xlu0 %5446  ;;  %v16279_v50 = vld [vmem:[#allocation170_spill] sm:$0xff]  ;;  %v16280_v52 = vld [vmem:[#allocation232_spill] sm:$0xff] }
 0x6e3   : > { %6007 = vst [vmem:[%s13817_s27 + $0xb0] sm:$0xff] %v5815_v55  ;;  %6008 = vst [vmem:[%s13817_s27 + $0xb8] sm:$0xff] %v5816_v3  ;;  %v5808_v16 = vmul.f32 %v5763_v51, %v16269_v53  ;;  %v5809_v21 = vmul.f32 %v5763_v51, %v16270_v47  ;;  %v5810_v42 = vmul.f32 %v5763_v51, %v16271_v59  ;;  %7947 = vrcp.f32 %v5447_v41  ;;  %v16282_v3 = vld [vmem:[#allocation188_spill] sm:$0xff]  ;;  %v16283_v51 = vld [vmem:[#allocation61_spill] sm:$0xff] }
 0x6e4   : > { %v5823_v1 = vmul.f32 %v5766_v11, %v16272_v61  ;;  %v5824_v23 = vmul.f32 %v5766_v11, %v16273_v49  ;;  %5997 = vst [vmem:[%s13817_s27 + $0x60] sm:$0xff] %v5805_v15  ;;  %5998 = vst [vmem:[%s13817_s27 + $0x68] sm:$0xff] %v5806_v33  ;;  %v5825_v4 = vmul.f32 %v5766_v11, %v16274_v7  ;;  %v7936_v24 = vpop.eup %7935  ;;  %v5456_v10 = vpop.xlane.xlu1 %5455  ;;  %v16285_v12 = vld [vmem:[#allocation99_spill] sm:$0xff]  ;;  %v16288_v53 = vld [vmem:[#allocation73_spill] sm:$0xff] }
 0x6e5   : > { %5999 = vst [vmem:[%s13817_s27 + $0x70] sm:$0xff] %v5807_v9  ;;  %6000 = vst [vmem:[%s13817_s27 + $0x78] sm:$0xff] %v5808_v16  ;;  %v5826_v28 = vmul.f32 %v5766_v11, %v16275_v29  ;;  %v5827_v39 = vmul.f32 %v5766_v11, %v16276_v14  ;;  %v5828_v17 = vmul.f32 %v5766_v11, %v16277_v40  ;;  %v16284_v11 = vld [vmem:[#allocation70_spill] sm:$0xff]  ;;  %v16286_v20 = vld [vmem:[#allocation143_spill] sm:$0xff]  ;;  %7949 = vrcp.f32 %v5456_v10 }
 0x6e6   : > { %6001 = vst [vmem:[%s13817_s27 + $0x80] sm:$0xff] %v5809_v21  ;;  %6002 = vst [vmem:[%s13817_s27 + $0x88] sm:$0xff] %v5810_v42  ;;  %v5768_v38 = vmul.f32 %v7934_v56, %v13773_v0  ;;  %v5767_v58 = vmul.f32 %v7936_v24, %v13775_v63  ;;  %v5817_v57 = vmul.f32 %v5765_v31, %v16278_v62  ;;  %v16281_v0 = vld [vmem:[#allocation230_spill] sm:$0xff]  ;;  %v13882_v55 = vpop.xlane.xlu0 %5452  ;;  %v16287_v37 = vld [vmem:[#allocation231_spill] sm:$0xff] }
 0x6e7   : > { %6015 = vst [vmem:[%s13817_s27 + $0xf0] sm:$0xff] %v5823_v1  ;;  %6016 = vst [vmem:[%s13817_s27 + $0xf8] sm:$0xff] %v5824_v23  ;;  %v5818_v44 = vmul.f32 %v5765_v31, %v16279_v50  ;;  %v5819_v25 = vmul.f32 %v5765_v31, %v16280_v52  ;;  %v5820_v43 = vmul.f32 %v5765_v31, %v16281_v0  ;;  %v7938_v22 = vpop.eup %7937  ;;  %v16289_v56 = vld [vmem:[#allocation119_spill] sm:$0xff]  ;;  %v16290_v59 = vld [vmem:[#allocation176_spill] sm:$0xff]  ;;  %7951 = vrcp.f32 %v13882_v55 }
 0x6e8   : > { %6017 = vst [vmem:[%s13817_s27 + $0x100] sm:$0xff] %v5825_v4  ;;  %6018 = vst [vmem:[%s13817_s27 + $0x108] sm:$0xff] %v5826_v28  ;;  %v5821_v30 = vmul.f32 %v5765_v31, %v16282_v3  ;;  %v5822_v63 = vmul.f32 %v5765_v31, %v16283_v51  ;;  %v5835_v46 = vmul.f32 %v5768_v38, %v16284_v11  ;;  %v7940_v15 = vpop.eup %7939  ;;  %v5462_v21 = vpop.xlane.xlu1 %5461  ;;  %v16291_v61 = vld [vmem:[#allocation174_spill] sm:$0xff]  ;;  %v16292_v49 = vld [vmem:[#allocation236_spill] sm:$0xff] }
 0x6e9   : > { %6019 = vst [vmem:[%s13817_s27 + $0x110] sm:$0xff] %v5827_v39  ;;  %6020 = vst [vmem:[%s13817_s27 + $0x118] sm:$0xff] %v5828_v17  ;;  %v5836_v26 = vmul.f32 %v5768_v38, %v16285_v12  ;;  %v5837_v33 = vmul.f32 %v5768_v38, %v16286_v20  ;;  %v5838_v9 = vmul.f32 %v5768_v38, %v16287_v37  ;;  %v16293_v41 = vld [vmem:[#allocation234_spill] sm:$0xff]  ;;  %v16296_v31 = vld [vmem:[#allocation72_spill] sm:$0xff]  ;;  %7953 = vrcp.f32 %v5462_v21 }
 0x6ea   : > { %6009 = vst [vmem:[%s13817_s27 + $0xc0] sm:$0xff] %v5817_v57  ;;  %6010 = vst [vmem:[%s13817_s27 + $0xc8] sm:$0xff] %v5818_v44  ;;  %v5839_v16 = vmul.f32 %v5768_v38, %v16288_v53  ;;  %v5840_v47 = vmul.f32 %v5768_v38, %v16289_v56  ;;  %v5829_v42 = vmul.f32 %v5767_v58, %v16290_v59  ;;  %v16294_v4 = vld [vmem:[#allocation194_spill] sm:$0xff]  ;;  %v13912_v17 = vpop.xlane.xlu0 %5458  ;;  %v7942_v24 = vpop.eup %7941  ;;  %v16298_v62 = vld [vmem:[#allocation147_spill] sm:$0xff] }
 0x6eb   : > { %6011 = vst [vmem:[%s13817_s27 + $0xd0] sm:$0xff] %v5819_v25  ;;  %6012 = vst [vmem:[%s13817_s27 + $0xd8] sm:$0xff] %v5820_v43  ;;  %v5830_v1 = vmul.f32 %v5767_v58, %v16291_v61  ;;  %v5831_v23 = vmul.f32 %v5767_v58, %v16292_v49  ;;  %v5832_v7 = vmul.f32 %v5767_v58, %v16293_v41  ;;  %v16295_v28 = vld [vmem:[#allocation214_spill] sm:$0xff]  ;;  %v16299_v57 = vld [vmem:[#allocation235_spill] sm:$0xff]  ;;  %7955 = vrcp.f32 %v13912_v17 }
 0x6ec   : > { %6013 = vst [vmem:[%s13817_s27 + $0xe0] sm:$0xff] %v5821_v30  ;;  %6014 = vst [vmem:[%s13817_s27 + $0xe8] sm:$0xff] %v5822_v63  ;;  %v5833_v29 = vmul.f32 %v5767_v58, %v16294_v4  ;;  %v5834_v14 = vmul.f32 %v5767_v58, %v16295_v28  ;;  %v5770_v39 = vmul.f32 %v7938_v22, %v13777_v32  ;;  %v16297_v58 = vld [vmem:[#allocation58_spill] sm:$0xff]  ;;  %v5468_v44 = vpop.xlane.xlu1 %5467  ;;  %v7944_v52 = vpop.eup %7943  ;;  %v16301_v0 = vld [vmem:[#allocation197_spill] sm:$0xff] }
 0x6ed   : > { %6027 = vst [vmem:[%s13817_s27 + $0x150] sm:$0xff] %v5835_v46  ;;  %6028 = vst [vmem:[%s13817_s27 + $0x158] sm:$0xff] %v5836_v26  ;;  %v5769_v40 = vmul.f32 %v7940_v15, %v13779_v5  ;;  %v16300_v25 = vld [vmem:[#allocation218_spill] sm:$0xff]  ;;  %v16302_v22 = vld [vmem:[#allocation181_spill] sm:$0xff]  ;;  %v5771_v53 = vmul.f32 %v7944_v52, %v13783_v45  ;;  %7957 = vrcp.f32 %v5468_v44 }
 0x6ee   : > { %6029 = vst [vmem:[%s13817_s27 + $0x160] sm:$0xff] %v5837_v33  ;;  %6030 = vst [vmem:[%s13817_s27 + $0x168] sm:$0xff] %v5838_v9  ;;  %v5847_v38 = vmul.f32 %v5770_v39, %v16296_v31  ;;  %v5848_v32 = vmul.f32 %v5770_v39, %v16297_v58  ;;  %v5849_v5 = vmul.f32 %v5770_v39, %v16298_v62  ;;  %v16303_v30 = vld [vmem:[#allocation178_spill] sm:$0xff]  ;;  %v16304_v63 = vld [vmem:[#allocation240_spill] sm:$0xff]  ;;  %v13936_v37 = vpop.xlane.xlu0 %5464  ;;  %v7946_v56 = vpop.eup %7945 }
 0x6ef   : > { %6031 = vst [vmem:[%s13817_s27 + $0x170] sm:$0xff] %v5839_v16  ;;  %6032 = vst [vmem:[%s13817_s27 + $0x178] sm:$0xff] %v5840_v47  ;;  %v5850_v50 = vmul.f32 %v5770_v39, %v16299_v57  ;;  %v5851_v10 = vmul.f32 %v5770_v39, %v16300_v25  ;;  %v5852_v43 = vmul.f32 %v5770_v39, %v16301_v0  ;;  %v16305_v46 = vld [vmem:[#allocation238_spill] sm:$0xff]  ;;  %v16307_v20 = vld [vmem:[#allocation220_spill] sm:$0xff]  ;;  %7959 = vrcp.f32 %v13936_v37 }
 0x6f0   : > { %6021 = vst [vmem:[%s13817_s27 + $0x120] sm:$0xff] %v5829_v42  ;;  %6022 = vst [vmem:[%s13817_s27 + $0x128] sm:$0xff] %v5830_v1  ;;  %v5841_v3 = vmul.f32 %v5769_v40, %v16302_v22  ;;  %v5842_v51 = vmul.f32 %v5769_v40, %v16303_v30  ;;  %v5843_v11 = vmul.f32 %v5769_v40, %v16304_v63  ;;  %v16306_v26 = vld [vmem:[#allocation102_spill] sm:$0xff]  ;;  %v5474_v16 = vpop.xlane.xlu1 %5473  ;;  %v16309_v42 = vld [vmem:[#allocation180_spill] sm:$0xff]  ;;  %v7948_v49 = vpop.eup %7947 }
 0x6f1   : > { %6023 = vst [vmem:[%s13817_s27 + $0x130] sm:$0xff] %v5831_v23  ;;  %6024 = vst [vmem:[%s13817_s27 + $0x138] sm:$0xff] %v5832_v7  ;;  %v5844_v12 = vmul.f32 %v5769_v40, %v16305_v46  ;;  %v5845_v15 = vmul.f32 %v5769_v40, %v16306_v26  ;;  %v5846_v33 = vmul.f32 %v5769_v40, %v16307_v20  ;;  %v16308_v47 = vld [vmem:[#allocation74_spill] sm:$0xff]  ;;  %v16311_v45 = vld [vmem:[#allocation239_spill] sm:$0xff]  ;;  %7961 = vrcp.f32 %v5474_v16 }
 0x6f2   : > { %6025 = vst [vmem:[%s13817_s27 + $0x140] sm:$0xff] %v5833_v29  ;;  %6026 = vst [vmem:[%s13817_s27 + $0x148] sm:$0xff] %v5834_v14  ;;  %v5772_v9 = vmul.f32 %v7942_v24, %v13781_v13  ;;  %v16310_v13 = vld [vmem:[#allocation151_spill] sm:$0xff]  ;;  %v16312_v23 = vld [vmem:[#allocation128_spill] sm:$0xff]  ;;  %v5471_v39 = vpop.xlane.xlu0 %5470  ;;  %v5774_v57 = vmul.f32 %v7946_v56, %v13785_v19 }
 0x6f3   : > { %6039 = vst [vmem:[%s13817_s27 + $0x1b0] sm:$0xff] %v5847_v38  ;;  %6040 = vst [vmem:[%s13817_s27 + $0x1b8] sm:$0xff] %v5848_v32  ;;  %v16313_v7 = vld [vmem:[#allocation201_spill] sm:$0xff]  ;;  %v16314_v4 = vld [vmem:[#allocation187_spill] sm:$0xff]  ;;  %7963 = vrcp.f32 %v5471_v39 }
 0x6f4   : > { %6041 = vst [vmem:[%s13817_s27 + $0x1c0] sm:$0xff] %v5849_v5  ;;  %6042 = vst [vmem:[%s13817_s27 + $0x1c8] sm:$0xff] %v5850_v50  ;;  %v5859_v59 = vmul.f32 %v5772_v9, %v16308_v47  ;;  %v5860_v61 = vmul.f32 %v5772_v9, %v16309_v42  ;;  %v5861_v1 = vmul.f32 %v5772_v9, %v16310_v13  ;;  %v16315_v28 = vld [vmem:[#allocation183_spill] sm:$0xff]  ;;  %v16316_v40 = vld [vmem:[#allocation244_spill] sm:$0xff]  ;;  %v5480_v52 = vpop.xlane.xlu1 %5479 }
 0x6f5   : > { %6043 = vst [vmem:[%s13817_s27 + $0x1d0] sm:$0xff] %v5851_v10  ;;  %6044 = vst [vmem:[%s13817_s27 + $0x1d8] sm:$0xff] %v5852_v43  ;;  %v5862_v55 = vmul.f32 %v5772_v9, %v16311_v45  ;;  %v5863_v41 = vmul.f32 %v5772_v9, %v16312_v23  ;;  %v5864_v21 = vmul.f32 %v5772_v9, %v16313_v7  ;;  %v16317_v31 = vld [vmem:[#allocation242_spill] sm:$0xff]  ;;  %v16318_v58 = vld [vmem:[#allocation129_spill] sm:$0xff]  ;;  %7965 = vrcp.f32 %v5480_v52 }
 0x6f6   : > { %6033 = vst [vmem:[%s13817_s27 + $0x180] sm:$0xff] %v5841_v3  ;;  %6034 = vst [vmem:[%s13817_s27 + $0x188] sm:$0xff] %v5842_v51  ;;  %v5853_v29 = vmul.f32 %v5771_v53, %v16314_v4  ;;  %v5854_v14 = vmul.f32 %v5771_v53, %v16315_v28  ;;  %v5855_v24 = vmul.f32 %v5771_v53, %v16316_v40  ;;  %v16319_v62 = vld [vmem:[#allocation224_spill] sm:$0xff]  ;;  %v16321_v0 = vld [vmem:[#allocation186_spill] sm:$0xff]  ;;  %v5477_v17 = vpop.xlane.xlu0 %5476 }
 0x6f7   : > { %6035 = vst [vmem:[%s13817_s27 + $0x190] sm:$0xff] %v5843_v11  ;;  %6036 = vst [vmem:[%s13817_s27 + $0x198] sm:$0xff] %v5844_v12  ;;  %v5856_v38 = vmul.f32 %v5771_v53, %v16317_v31  ;;  %v5857_v32 = vmul.f32 %v5771_v53, %v16318_v58  ;;  %v5858_v5 = vmul.f32 %v5771_v53, %v16319_v62  ;;  %v16320_v25 = vld [vmem:[#allocation76_spill] sm:$0xff]  ;;  %v16322_v22 = vld [vmem:[#allocation155_spill] sm:$0xff]  ;;  %7967 = vrcp.f32 %v5477_v17 }
 0x6f8   : > { %6037 = vst [vmem:[%s13817_s27 + $0x1a0] sm:$0xff] %v5845_v15  ;;  %6038 = vst [vmem:[%s13817_s27 + $0x1a8] sm:$0xff] %v5846_v33  ;;  %v5773_v50 = vmul.f32 %v7948_v49, %v13787_v18  ;;  %v5871_v10 = vmul.f32 %v5774_v57, %v16320_v25  ;;  %v5872_v43 = vmul.f32 %v5774_v57, %v16321_v0  ;;  %v16323_v3 = vld [vmem:[#allocation243_spill] sm:$0xff]  ;;  %v16325_v63 = vld [vmem:[#allocation134_spill] sm:$0xff]  ;;  %v7950_v15 = vpop.eup %7949 }
 0x6f9   : > { %6051 = vst [vmem:[%s13817_s27 + $0x210] sm:$0xff] %v5859_v59  ;;  %6052 = vst [vmem:[%s13817_s27 + $0x218] sm:$0xff] %v5860_v61  ;;  %v5873_v19 = vmul.f32 %v5774_v57, %v16322_v22  ;;  %v5874_v18 = vmul.f32 %v5774_v57, %v16323_v3  ;;  %v16324_v30 = vld [vmem:[#allocation95_spill] sm:$0xff]  ;;  %v5876_v11 = vmul.f32 %v5774_v57, %v16325_v63  ;;  %v16326_v46 = vld [vmem:[#allocation193_spill] sm:$0xff]  ;;  %v5486_v61 = vpop.xlane.xlu1 %5485 }
 0x6fa   : > { %6053 = vst [vmem:[%s13817_s27 + $0x220] sm:$0xff] %v5861_v1  ;;  %6054 = vst [vmem:[%s13817_s27 + $0x228] sm:$0xff] %v5862_v55  ;;  %v5875_v51 = vmul.f32 %v5774_v57, %v16324_v30  ;;  %v5865_v12 = vmul.f32 %v5773_v50, %v16326_v46  ;;  %v16327_v44 = vld [vmem:[#allocation189_spill] sm:$0xff]  ;;  %v16328_v20 = vld [vmem:[#allocation248_spill] sm:$0xff]  ;;  %v5776_v13 = vmul.f32 %v7950_v15, %v13789_v36  ;;  %v5483_v1 = vpop.xlane.xlu0 %5482  ;;  %7969 = vrcp.f32 %v5486_v61 }
 0x6fb   : > { %6055 = vst [vmem:[%s13817_s27 + $0x230] sm:$0xff] %v5863_v41  ;;  %6056 = vst [vmem:[%s13817_s27 + $0x238] sm:$0xff] %v5864_v21  ;;  %v5866_v26 = vmul.f32 %v5773_v50, %v16327_v44  ;;  %v5867_v33 = vmul.f32 %v5773_v50, %v16328_v20  ;;  %v16329_v9 = vld [vmem:[#allocation246_spill] sm:$0xff]  ;;  %v16330_v56 = vld [vmem:[#allocation133_spill] sm:$0xff]  ;;  %v7952_v21 = vpop.eup %7951  ;;  %7971 = vrcp.f32 %v5483_v1 }
 0x6fc   : > { %6045 = vst [vmem:[%s13817_s27 + $0x1e0] sm:$0xff] %v5853_v29  ;;  %6046 = vst [vmem:[%s13817_s27 + $0x1e8] sm:$0xff] %v5854_v14  ;;  %v5868_v53 = vmul.f32 %v5773_v50, %v16329_v9  ;;  %v5869_v47 = vmul.f32 %v5773_v50, %v16330_v56  ;;  %v16331_v59 = vld [vmem:[#allocation92_spill] sm:$0xff]  ;;  %v16332_v45 = vld [vmem:[#allocation126_spill] sm:$0xff]  ;;  %v7954_v16 = vpop.eup %7953 }
 0x6fd   : > { %6047 = vst [vmem:[%s13817_s27 + $0x1f0] sm:$0xff] %v5855_v24  ;;  %6048 = vst [vmem:[%s13817_s27 + $0x1f8] sm:$0xff] %v5856_v38  ;;  %v5870_v42 = vmul.f32 %v5773_v50, %v16331_v59  ;;  %v5883_v55 = vmul.f32 %v5776_v13, %v16332_v45  ;;  %v16333_v49 = vld [vmem:[#allocation192_spill] sm:$0xff]  ;;  %v16334_v41 = vld [vmem:[#allocation161_spill] sm:$0xff]  ;;  %v14008_v40 = vpop.xlane.xlu1 %5491  ;;  %v5775_v24 = vmul.f32 %v7952_v21, %v13791_v48 }
 0x6fe   : > { %6049 = vst [vmem:[%s13817_s27 + $0x200] sm:$0xff] %v5857_v32  ;;  %6050 = vst [vmem:[%s13817_s27 + $0x208] sm:$0xff] %v5858_v5  ;;  %v5884_v23 = vmul.f32 %v5776_v13, %v16333_v49  ;;  %v5885_v36 = vmul.f32 %v5776_v13, %v16334_v41  ;;  %v16335_v7 = vld [vmem:[#allocation247_spill] sm:$0xff]  ;;  %v16336_v4 = vld [vmem:[#allocation97_spill] sm:$0xff]  ;;  %v5778_v31 = vmul.f32 %v7954_v16, %v13793_v6  ;;  %v14018_v39 = vpop.xlane.xlu0 %5488  ;;  %7973 = vrcp.f32 %v14008_v40 }
 0x6ff   : > { %6063 = vst [vmem:[%s13817_s27 + $0x270] sm:$0xff] %v5871_v10  ;;  %6064 = vst [vmem:[%s13817_s27 + $0x278] sm:$0xff] %v5872_v43  ;;  %v5886_v37 = vmul.f32 %v5776_v13, %v16335_v7  ;;  %v5887_v29 = vmul.f32 %v5776_v13, %v16336_v4  ;;  %v16337_v28 = vld [vmem:[#allocation138_spill] sm:$0xff]  ;;  %v16339_v32 = vld [vmem:[#allocation195_spill] sm:$0xff]  ;;  %7975 = vrcp.f32 %v14018_v39 }
 0x700   : > { %6065 = vst [vmem:[%s13817_s27 + $0x280] sm:$0xff] %v5873_v19  ;;  %6066 = vst [vmem:[%s13817_s27 + $0x288] sm:$0xff] %v5874_v18  ;;  %v5888_v14 = vmul.f32 %v5776_v13, %v16337_v28  ;;  %v16338_v38 = vld [vmem:[#allocation82_spill] sm:$0xff]  ;;  %v5878_v62 = vmul.f32 %v5775_v24, %v16339_v32  ;;  %v16340_v5 = vld [vmem:[#allocation252_spill] sm:$0xff]  ;;  %v7956_v18 = vpop.eup %7955 }
 0x701   : > { %6067 = vst [vmem:[%s13817_s27 + $0x290] sm:$0xff] %v5875_v51  ;;  %6068 = vst [vmem:[%s13817_s27 + $0x298] sm:$0xff] %v5876_v11  ;;  %v5877_v58 = vmul.f32 %v5775_v24, %v16338_v38  ;;  %v5879_v57 = vmul.f32 %v5775_v24, %v16340_v5  ;;  %v16341_v50 = vld [vmem:[#allocation250_spill] sm:$0xff]  ;;  %v16342_v52 = vld [vmem:[#allocation137_spill] sm:$0xff]  ;;  %v14028_v3 = vpop.xlane.xlu1 %5497  ;;  %v5777_v15 = vmul.f32 %v7956_v18, %v13795_v54 }
 0x702   : > { %6057 = vst [vmem:[%s13817_s27 + $0x240] sm:$0xff] %v5865_v12  ;;  %6058 = vst [vmem:[%s13817_s27 + $0x248] sm:$0xff] %v5866_v26  ;;  %v5880_v48 = vmul.f32 %v5775_v24, %v16341_v50  ;;  %v5881_v25 = vmul.f32 %v5775_v24, %v16342_v52  ;;  %v16343_v10 = vld [vmem:[#allocation226_spill] sm:$0xff]  ;;  %v16344_v43 = vld [vmem:[#allocation80_spill] sm:$0xff]  ;;  %v7958_v26 = vpop.eup %7957  ;;  %v14043_v20 = vpop.xlane.xlu0 %5494  ;;  %7977 = vrcp.f32 %v14028_v3 }
 0x703   : > { %6059 = vst [vmem:[%s13817_s27 + $0x250] sm:$0xff] %v5867_v33  ;;  %6060 = vst [vmem:[%s13817_s27 + $0x258] sm:$0xff] %v5868_v53  ;;  %v5882_v0 = vmul.f32 %v5775_v24, %v16343_v10  ;;  %v5895_v6 = vmul.f32 %v5778_v31, %v16344_v43  ;;  %v16345_v22 = vld [vmem:[#allocation78_spill] sm:$0xff]  ;;  %v16346_v17 = vld [vmem:[#allocation91_spill] sm:$0xff]  ;;  %v5780_v33 = vmul.f32 %v7958_v26, %v13797_v35  ;;  %v7960_v1 = vpop.eup %7959  ;;  %7979 = vrcp.f32 %v14043_v20 }
 0x704   : > { %6061 = vst [vmem:[%s13817_s27 + $0x260] sm:$0xff] %v5869_v47  ;;  %6062 = vst [vmem:[%s13817_s27 + $0x268] sm:$0xff] %v5870_v42  ;;  %v5896_v19 = vmul.f32 %v5778_v31, %v16345_v22  ;;  %v5897_v30 = vmul.f32 %v5778_v31, %v16346_v17  ;;  %v16347_v51 = vld [vmem:[#allocation251_spill] sm:$0xff]  ;;  %v16348_v11 = vld [vmem:[#allocation140_spill] sm:$0xff]  ;;  %v7962_v38 = vpop.eup %7961 }
 0x705   : > { %6075 = vst [vmem:[%s13817_s27 + $0x2d0] sm:$0xff] %v5883_v55  ;;  %6076 = vst [vmem:[%s13817_s27 + $0x2d8] sm:$0xff] %v5884_v23  ;;  %v5898_v63 = vmul.f32 %v5778_v31, %v16347_v51  ;;  %v5899_v46 = vmul.f32 %v5778_v31, %v16348_v11  ;;  %v16349_v12 = vld [vmem:[#allocation142_spill] sm:$0xff]  ;;  %v16350_v9 = vld [vmem:[#allocation200_spill] sm:$0xff]  ;;  %v14066_v24 = vpop.xlane.xlu1 %5503  ;;  %v5782_v32 = vmul.f32 %v7962_v38, %v13801_v60 }
 0x706   : > { %6077 = vst [vmem:[%s13817_s27 + $0x2e0] sm:$0xff] %v5885_v36  ;;  %6078 = vst [vmem:[%s13817_s27 + $0x2e8] sm:$0xff] %v5886_v37  ;;  %v5900_v44 = vmul.f32 %v5778_v31, %v16349_v12  ;;  %v5889_v53 = vmul.f32 %v5777_v15, %v16350_v9  ;;  %v16351_v56 = vld [vmem:[#allocation198_spill] sm:$0xff]  ;;  %v16352_v59 = vld [vmem:[#allocation256_spill] sm:$0xff]  ;;  %v14068_v31 = vpop.xlane.xlu0 %5500  ;;  %7981 = vrcp.f32 %v14066_v24 }
 0x707   : > { %6079 = vst [vmem:[%s13817_s27 + $0x2f0] sm:$0xff] %v5887_v29  ;;  %6080 = vst [vmem:[%s13817_s27 + $0x2f8] sm:$0xff] %v5888_v14  ;;  %v5890_v47 = vmul.f32 %v5777_v15, %v16351_v56  ;;  %v5891_v54 = vmul.f32 %v5777_v15, %v16352_v59  ;;  %v16353_v42 = vld [vmem:[#allocation254_spill] sm:$0xff]  ;;  %v16354_v13 = vld [vmem:[#allocation141_spill] sm:$0xff]  ;;  %7983 = vrcp.f32 %v14068_v31 }
 0x708   : > { %6069 = vst [vmem:[%s13817_s27 + $0x2a0] sm:$0xff] %v5877_v58  ;;  %6070 = vst [vmem:[%s13817_s27 + $0x2a8] sm:$0xff] %v5878_v62  ;;  %v5892_v61 = vmul.f32 %v5777_v15, %v16353_v42  ;;  %v5893_v45 = vmul.f32 %v5777_v15, %v16354_v13  ;;  %v16355_v55 = vld [vmem:[#allocation229_spill] sm:$0xff]  ;;  %v16358_v7 = vld [vmem:[#allocation259_spill] sm:$0xff]  ;;  %v5779_v58 = vmul.f32 %v7960_v1, %v13799_v27  ;;  %v7964_v62 = vpop.eup %7963 }
 0x709   : > { %6071 = vst [vmem:[%s13817_s27 + $0x2b0] sm:$0xff] %v5879_v57  ;;  %6072 = vst [vmem:[%s13817_s27 + $0x2b8] sm:$0xff] %v5880_v48  ;;  %v5894_v49 = vmul.f32 %v5777_v15, %v16355_v55  ;;  %v16356_v23 = vld [vmem:[#allocation81_spill] sm:$0xff]  ;;  %v5909_v37 = vmul.f32 %v5780_v33, %v16358_v7  ;;  %v16359_v21 = vld [vmem:[#allocation255_spill] sm:$0xff]  ;;  %v7966_v10 = vpop.eup %7965  ;;  %v5781_v15 = vmul.f32 %v7964_v62, %v13803_v2  ;;  %v5710_v9 = vpop.xlane.xlu1 %5709 }
 0x70a   : > { %6073 = vst [vmem:[%s13817_s27 + $0x2c0] sm:$0xff] %v5881_v25  ;;  %6074 = vst [vmem:[%s13817_s27 + $0x2c8] sm:$0xff] %v5882_v0  ;;  %v5907_v41 = vmul.f32 %v5780_v33, %v16356_v23  ;;  %v16357_v36 = vld [vmem:[#allocation101_spill] sm:$0xff]  ;;  %v5910_v4 = vmul.f32 %v5780_v33, %v16359_v21  ;;  %v16360_v29 = vld [vmem:[#allocation83_spill] sm:$0xff]  ;;  %v7968_v17 = vpop.eup %7967 }
 0x70b   : > { %6087 = vst [vmem:[%s13817_s27 + $0x330] sm:$0xff] %v5895_v6  ;;  %6088 = vst [vmem:[%s13817_s27 + $0x338] sm:$0xff] %v5896_v19  ;;  %v5908_v35 = vmul.f32 %v5780_v33, %v16357_v36  ;;  %v5911_v28 = vmul.f32 %v5780_v33, %v16360_v29  ;;  %v16361_v14 = vld [vmem:[#allocation233_spill] sm:$0xff]  ;;  %v16362_v5 = vld [vmem:[#allocation204_spill] sm:$0xff]  ;;  %v5783_v56 = vmul.f32 %v7968_v17, %v13807_v34  ;;  %v7970_v13 = vpop.eup %7969 }
 0x70c   : > { %6089 = vst [vmem:[%s13817_s27 + $0x340] sm:$0xff] %v5897_v30  ;;  %6090 = vst [vmem:[%s13817_s27 + $0x348] sm:$0xff] %v5898_v63  ;;  %v5912_v16 = vmul.f32 %v5780_v33, %v16361_v14  ;;  %v5901_v57 = vmul.f32 %v5779_v58, %v16362_v5  ;;  %v16363_v50 = vld [vmem:[#allocation202_spill] sm:$0xff]  ;;  %v16364_v27 = vld [vmem:[#allocation261_spill] sm:$0xff]  ;;  %v5784_v33 = vmul.f32 %v7966_v10, %v13805_v8 }
 0x70d   : > { %6091 = vst [vmem:[%s13817_s27 + $0x350] sm:$0xff] %v5899_v46  ;;  %6092 = vst [vmem:[%s13817_s27 + $0x358] sm:$0xff] %v5900_v44  ;;  %v5902_v48 = vmul.f32 %v5779_v58, %v16363_v50  ;;  %v5903_v52 = vmul.f32 %v5779_v58, %v16364_v27  ;;  %v16365_v40 = vld [vmem:[#allocation258_spill] sm:$0xff]  ;;  %v16367_v6 = vld [vmem:[#allocation144_spill] sm:$0xff]  ;;  %v5716_v10 = vpop.xlane.xlu1 %5715 }
 0x70e   : > { %6081 = vst [vmem:[%s13817_s27 + $0x300] sm:$0xff] %v5889_v53  ;;  %6082 = vst [vmem:[%s13817_s27 + $0x308] sm:$0xff] %v5890_v47  ;;  %v5904_v25 = vmul.f32 %v5779_v58, %v16365_v40  ;;  %v16366_v0 = vld [vmem:[#allocation146_spill] sm:$0xff]  ;;  %v5906_v60 = vmul.f32 %v5779_v58, %v16367_v6  ;;  %v16368_v22 = vld [vmem:[#allocation84_spill] sm:$0xff]  ;;  %v5707_v53 = vpop.xlane.xlu0 %5706 }
 0x70f   : > { %6083 = vst [vmem:[%s13817_s27 + $0x310] sm:$0xff] %v5891_v54  ;;  %6084 = vst [vmem:[%s13817_s27 + $0x318] sm:$0xff] %v5892_v61  ;;  %v5905_v43 = vmul.f32 %v5779_v58, %v16366_v0  ;;  %v5919_v39 = vmul.f32 %v5782_v32, %v16368_v22  ;;  %v16369_v19 = vld [vmem:[#allocation28_spill] sm:$0xff]  ;;  %v16372_v46 = vld [vmem:[#allocation145_spill] sm:$0xff] }
 0x710   : > { %6085 = vst [vmem:[%s13817_s27 + $0x320] sm:$0xff] %v5893_v45  ;;  %6086 = vst [vmem:[%s13817_s27 + $0x328] sm:$0xff] %v5894_v49  ;;  %v5920_v18 = vmul.f32 %v5782_v32, %v16369_v19  ;;  %v16370_v30 = vld [vmem:[#allocation184_spill] sm:$0xff]  ;;  %v5923_v12 = vmul.f32 %v5782_v32, %v16372_v46  ;;  %v16373_v44 = vld [vmem:[#allocation199_spill] sm:$0xff] }
 0x711   : > { %6099 = vst [vmem:[%s13817_s27 + $0x390] sm:$0xff] %v5907_v41  ;;  %6100 = vst [vmem:[%s13817_s27 + $0x398] sm:$0xff] %v5908_v35  ;;  %v5921_v51 = vmul.f32 %v5782_v32, %v16370_v30  ;;  %v16371_v63 = vld [vmem:[#allocation60_spill] sm:$0xff]  ;;  %v5924_v26 = vmul.f32 %v5782_v32, %v16373_v44  ;;  %v16375_v59 = vld [vmem:[#allocation206_spill] sm:$0xff]  ;;  %v7972_v35 = vpop.eup %7971 }
 0x712   : > { %6101 = vst [vmem:[%s13817_s27 + $0x3a0] sm:$0xff] %v5909_v37  ;;  %6102 = vst [vmem:[%s13817_s27 + $0x3a8] sm:$0xff] %v5910_v4  ;;  %v5922_v11 = vmul.f32 %v5782_v32, %v16371_v63  ;;  %v16374_v47 = vld [vmem:[#allocation208_spill] sm:$0xff]  ;;  %v5914_v8 = vmul.f32 %v5781_v15, %v16375_v59  ;;  %v16377_v42 = vld [vmem:[#allocation203_spill] sm:$0xff]  ;;  %v5713_v0 = vpop.xlane.xlu0 %5712  ;;  %v7974_v6 = vpop.eup %7973 }
 0x713   : > { %6103 = vst [vmem:[%s13817_s27 + $0x3b0] sm:$0xff] %v5911_v28  ;;  %6104 = vst [vmem:[%s13817_s27 + $0x3b8] sm:$0xff] %v5912_v16  ;;  %v5913_v2 = vmul.f32 %v5781_v15, %v16374_v47  ;;  %v16376_v54 = vld [vmem:[#allocation100_spill] sm:$0xff]  ;;  %v5916_v61 = vmul.f32 %v5781_v15, %v16377_v42  ;;  %v16379_v49 = vld [vmem:[#allocation79_spill] sm:$0xff]  ;;  %v5722_v42 = vpop.xlane.xlu1 %5721 }
 0x714   : > { %6093 = vst [vmem:[%s13817_s27 + $0x360] sm:$0xff] %v5901_v57  ;;  %6094 = vst [vmem:[%s13817_s27 + $0x368] sm:$0xff] %v5902_v48  ;;  %v5915_v3 = vmul.f32 %v5781_v15, %v16376_v54  ;;  %v16378_v45 = vld [vmem:[#allocation148_spill] sm:$0xff]  ;;  %v5918_v23 = vmul.f32 %v5781_v15, %v16379_v49  ;;  %v16380_v34 = vld [vmem:[#allocation110_spill] sm:$0xff]  ;;  %v5788_v54 = vmul.f32 %v7974_v6, %v5716_v10 }
 0x715   : > { %6095 = vst [vmem:[%s13817_s27 + $0x370] sm:$0xff] %v5903_v52  ;;  %6096 = vst [vmem:[%s13817_s27 + $0x378] sm:$0xff] %v5904_v25  ;;  %v5917_v55 = vmul.f32 %v5781_v15, %v16378_v45  ;;  %v5931_v41 = vmul.f32 %v5784_v33, %v16380_v34  ;;  %v16381_v20 = vld [vmem:[#allocation59_spill] sm:$0xff]  ;;  %v16382_v1 = vld [vmem:[#allocation182_spill] sm:$0xff]  ;;  %v5786_v25 = vmul.f32 %v7970_v13, %v5710_v9 }
 0x716   : > { %6097 = vst [vmem:[%s13817_s27 + $0x380] sm:$0xff] %v5905_v43  ;;  %6098 = vst [vmem:[%s13817_s27 + $0x388] sm:$0xff] %v5906_v60  ;;  %v5932_v36 = vmul.f32 %v5784_v33, %v16381_v20  ;;  %v5933_v7 = vmul.f32 %v5784_v33, %v16382_v1  ;;  %v16383_v37 = vld [vmem:[#allocation109_spill] sm:$0xff]  ;;  %v16386_v16 = vld [vmem:[#allocation211_spill] sm:$0xff]  ;;  %v5785_v43 = vmul.f32 %v7972_v35, %v5707_v53 }
 0x717   : > { %6111 = vst [vmem:[%s13817_s27 + $0x3f0] sm:$0xff] %v5919_v39  ;;  %6112 = vst [vmem:[%s13817_s27 + $0x3f8] sm:$0xff] %v5920_v18  ;;  %v5934_v21 = vmul.f32 %v5784_v33, %v16383_v37  ;;  %v16384_v4 = vld [vmem:[#allocation237_spill] sm:$0xff]  ;;  %v5925_v38 = vmul.f32 %v5783_v56, %v16386_v16  ;;  %v16387_v58 = vld [vmem:[#allocation210_spill] sm:$0xff] }
 0x718   : > { %6113 = vst [vmem:[%s13817_s27 + $0x400] sm:$0xff] %v5921_v51  ;;  %6114 = vst [vmem:[%s13817_s27 + $0x408] sm:$0xff] %v5922_v11  ;;  %v5935_v29 = vmul.f32 %v5784_v33, %v16384_v4  ;;  %v16385_v28 = vld [vmem:[#allocation149_spill] sm:$0xff]  ;;  %v5926_v32 = vmul.f32 %v5783_v56, %v16387_v58  ;;  %v16388_v62 = vld [vmem:[#allocation112_spill] sm:$0xff]  ;;  %v7976_v51 = vpop.eup %7975 }
 0x719   : > { %6115 = vst [vmem:[%s13817_s27 + $0x410] sm:$0xff] %v5923_v12  ;;  %6116 = vst [vmem:[%s13817_s27 + $0x418] sm:$0xff] %v5924_v26  ;;  %v5936_v14 = vmul.f32 %v5784_v33, %v16385_v28  ;;  %v5927_v5 = vmul.f32 %v5783_v56, %v16388_v62  ;;  %v16389_v57 = vld [vmem:[#allocation105_spill] sm:$0xff]  ;;  %v16390_v48 = vld [vmem:[#allocation152_spill] sm:$0xff]  ;;  %v7978_v13 = vpop.eup %7977 }
 0x71a   : > { %6105 = vst [vmem:[%s13817_s27 + $0x3c0] sm:$0xff] %v5913_v2  ;;  %6106 = vst [vmem:[%s13817_s27 + $0x3c8] sm:$0xff] %v5914_v8  ;;  %v5928_v50 = vmul.f32 %v5783_v56, %v16389_v57  ;;  %v5929_v27 = vmul.f32 %v5783_v56, %v16390_v48  ;;  %v16391_v52 = vld [vmem:[#allocation150_spill] sm:$0xff]  ;;  %v16392_v60 = vld [vmem:[#allocation89_spill] sm:$0xff]  ;;  %v7980_v35 = vpop.eup %7979  ;;  %v5790_v48 = vmul.f32 %v7978_v13, %v5722_v42 }
 0x71b   : > { %6107 = vst [vmem:[%s13817_s27 + $0x3d0] sm:$0xff] %v5915_v3  ;;  %6108 = vst [vmem:[%s13817_s27 + $0x3d8] sm:$0xff] %v5916_v61  ;;  %v5930_v40 = vmul.f32 %v5783_v56, %v16391_v52  ;;  %v5943_v22 = vmul.f32 %v5786_v25, %v16392_v60  ;;  %v16393_v24 = vld [vmem:[#allocation115_spill] sm:$0xff]  ;;  %v16394_v19 = vld [vmem:[#allocation212_spill] sm:$0xff]  ;;  %v5787_v3 = vmul.f32 %v7976_v51, %v5713_v0  ;;  %v5719_v61 = vpop.xlane.xlu0 %5718 }
 0x71c   : > { %6109 = vst [vmem:[%s13817_s27 + $0x3e0] sm:$0xff] %v5917_v55  ;;  %6110 = vst [vmem:[%s13817_s27 + $0x3e8] sm:$0xff] %v5918_v23  ;;  %v5944_v39 = vmul.f32 %v5786_v25, %v16393_v24  ;;  %v5945_v18 = vmul.f32 %v5786_v25, %v16394_v19  ;;  %v16395_v17 = vld [vmem:[#allocation190_spill] sm:$0xff]  ;;  %v16396_v63 = vld [vmem:[#allocation241_spill] sm:$0xff] }
 0x71d   : > { %6123 = vst [vmem:[%s13817_s27 + $0x450] sm:$0xff] %v5931_v41  ;;  %6124 = vst [vmem:[%s13817_s27 + $0x458] sm:$0xff] %v5932_v36  ;;  %v5946_v30 = vmul.f32 %v5786_v25, %v16395_v17  ;;  %v5947_v31 = vmul.f32 %v5786_v25, %v16396_v63  ;;  %v16397_v11 = vld [vmem:[#allocation153_spill] sm:$0xff]  ;;  %v16398_v12 = vld [vmem:[#allocation215_spill] sm:$0xff] }
 0x71e   : > { %6125 = vst [vmem:[%s13817_s27 + $0x460] sm:$0xff] %v5933_v7  ;;  %6126 = vst [vmem:[%s13817_s27 + $0x468] sm:$0xff] %v5934_v21  ;;  %v5948_v46 = vmul.f32 %v5786_v25, %v16397_v11  ;;  %v5937_v44 = vmul.f32 %v5785_v43, %v16398_v12  ;;  %v16399_v26 = vld [vmem:[#allocation213_spill] sm:$0xff]  ;;  %v16400_v33 = vld [vmem:[#allocation196_spill] sm:$0xff] }
 0x71f   : > { %6127 = vst [vmem:[%s13817_s27 + $0x470] sm:$0xff] %v5935_v29  ;;  %6128 = vst [vmem:[%s13817_s27 + $0x478] sm:$0xff] %v5936_v14  ;;  %v5938_v15 = vmul.f32 %v5785_v43, %v16399_v26  ;;  %v5939_v9 = vmul.f32 %v5785_v43, %v16400_v33  ;;  %v16401_v53 = vld [vmem:[#allocation179_spill] sm:$0xff]  ;;  %v16402_v47 = vld [vmem:[#allocation156_spill] sm:$0xff]  ;;  %v5725_v24 = vpop.xlane.xlu0 %5724 }
 0x720   : > { %6117 = vst [vmem:[%s13817_s27 + $0x420] sm:$0xff] %v5925_v38  ;;  %6118 = vst [vmem:[%s13817_s27 + $0x428] sm:$0xff] %v5926_v32  ;;  %v5940_v56 = vmul.f32 %v5785_v43, %v16401_v53  ;;  %v5941_v2 = vmul.f32 %v5785_v43, %v16402_v47  ;;  %v16403_v59 = vld [vmem:[#allocation154_spill] sm:$0xff]  ;;  %v16405_v49 = vld [vmem:[#allocation63_spill] sm:$0xff] }
 0x721   : > { %6119 = vst [vmem:[%s13817_s27 + $0x430] sm:$0xff] %v5927_v5  ;;  %6120 = vst [vmem:[%s13817_s27 + $0x438] sm:$0xff] %v5928_v50  ;;  %v5942_v8 = vmul.f32 %v5785_v43, %v16403_v59  ;;  %v16404_v45 = vld [vmem:[#allocation90_spill] sm:$0xff]  ;;  %v5956_v23 = vmul.f32 %v5788_v54, %v16405_v49  ;;  %v16406_v34 = vld [vmem:[#allocation216_spill] sm:$0xff] }
 0x722   : > { %6121 = vst [vmem:[%s13817_s27 + $0x440] sm:$0xff] %v5929_v27  ;;  %6122 = vst [vmem:[%s13817_s27 + $0x448] sm:$0xff] %v5930_v40  ;;  %v5955_v55 = vmul.f32 %v5788_v54, %v16404_v45  ;;  %v5957_v41 = vmul.f32 %v5788_v54, %v16406_v34  ;;  %v16407_v20 = vld [vmem:[#allocation117_spill] sm:$0xff]  ;;  %v16409_v37 = vld [vmem:[#allocation159_spill] sm:$0xff]  ;;  %v5789_v27 = vmul.f32 %v7980_v35, %v5719_v61 }
 0x723   : > { %6135 = vst [vmem:[%s13817_s27 + $0x4b0] sm:$0xff] %v5943_v22  ;;  %6136 = vst [vmem:[%s13817_s27 + $0x4b8] sm:$0xff] %v5944_v39  ;;  %v5958_v36 = vmul.f32 %v5788_v54, %v16407_v20  ;;  %v16408_v1 = vld [vmem:[#allocation245_spill] sm:$0xff]  ;;  %v5960_v21 = vmul.f32 %v5788_v54, %v16409_v37  ;;  %v16410_v4 = vld [vmem:[#allocation219_spill] sm:$0xff]  ;;  %v5728_v22 = vpop.xlane.xlu1 %5727  ;;  %v7982_v39 = vpop.eup %7981 }
 0x724   : > { %6137 = vst [vmem:[%s13817_s27 + $0x4c0] sm:$0xff] %v5945_v18  ;;  %6138 = vst [vmem:[%s13817_s27 + $0x4c8] sm:$0xff] %v5946_v30  ;;  %v5959_v7 = vmul.f32 %v5788_v54, %v16408_v1  ;;  %v5949_v29 = vmul.f32 %v5787_v3, %v16410_v4  ;;  %v16411_v28 = vld [vmem:[#allocation217_spill] sm:$0xff]  ;;  %v16412_v16 = vld [vmem:[#allocation120_spill] sm:$0xff]  ;;  %v5792_v47 = vmul.f32 %v7982_v39, %v5728_v22 }
 0x725   : > { %6139 = vst [vmem:[%s13817_s27 + $0x4d0] sm:$0xff] %v5947_v31  ;;  %6140 = vst [vmem:[%s13817_s27 + $0x4d8] sm:$0xff] %v5948_v46  ;;  %v5950_v14 = vmul.f32 %v5787_v3, %v16411_v28  ;;  %v5951_v38 = vmul.f32 %v5787_v3, %v16412_v16  ;;  %v16413_v58 = vld [vmem:[#allocation116_spill] sm:$0xff]  ;;  %v16415_v57 = vld [vmem:[#allocation85_spill] sm:$0xff]  ;;  %v7984_v46 = vpop.eup %7983 }
 0x726   : > { %6129 = vst [vmem:[%s13817_s27 + $0x480] sm:$0xff] %v5937_v44  ;;  %6130 = vst [vmem:[%s13817_s27 + $0x488] sm:$0xff] %v5938_v15  ;;  %v5952_v32 = vmul.f32 %v5787_v3, %v16413_v58  ;;  %v16414_v62 = vld [vmem:[#allocation96_spill] sm:$0xff]  ;;  %v5954_v50 = vmul.f32 %v5787_v3, %v16415_v57  ;;  %v16416_v52 = vld [vmem:[#allocation93_spill] sm:$0xff] }
 0x727   : > { %6131 = vst [vmem:[%s13817_s27 + $0x490] sm:$0xff] %v5939_v9  ;;  %6132 = vst [vmem:[%s13817_s27 + $0x498] sm:$0xff] %v5940_v56  ;;  %v5953_v5 = vmul.f32 %v5787_v3, %v16414_v62  ;;  %v5967_v40 = vmul.f32 %v5790_v48, %v16416_v52  ;;  %v16417_v25 = vld [vmem:[#allocation65_spill] sm:$0xff]  ;;  %v16419_v6 = vld [vmem:[#allocation87_spill] sm:$0xff] }
 0x728   : > { %6133 = vst [vmem:[%s13817_s27 + $0x4a0] sm:$0xff] %v5941_v2  ;;  %6134 = vst [vmem:[%s13817_s27 + $0x4a8] sm:$0xff] %v5942_v8  ;;  %v5968_v10 = vmul.f32 %v5790_v48, %v16417_v25  ;;  %v16418_v0 = vld [vmem:[#allocation125_spill] sm:$0xff]  ;;  %v5970_v60 = vmul.f32 %v5790_v48, %v16419_v6  ;;  %v16422_v51 = vld [vmem:[#allocation223_spill] sm:$0xff]  ;;  %v5791_v2 = vmul.f32 %v7984_v46, %v5725_v24 }
 0x729   : > { %6147 = vst [vmem:[%s13817_s27 + $0x510] sm:$0xff] %v5955_v55  ;;  %6148 = vst [vmem:[%s13817_s27 + $0x518] sm:$0xff] %v5956_v23  ;;  %v5969_v43 = vmul.f32 %v5790_v48, %v16418_v0  ;;  %v16420_v19 = vld [vmem:[#allocation249_spill] sm:$0xff]  ;;  %v5961_v63 = vmul.f32 %v5789_v27, %v16422_v51  ;;  %v16424_v12 = vld [vmem:[#allocation64_spill] sm:$0xff] }
 0x72a   : > { %6149 = vst [vmem:[%s13817_s27 + $0x520] sm:$0xff] %v5957_v41  ;;  %6150 = vst [vmem:[%s13817_s27 + $0x528] sm:$0xff] %v5958_v36  ;;  %v5971_v18 = vmul.f32 %v5790_v48, %v16420_v19  ;;  %v16421_v17 = vld [vmem:[#allocation165_spill] sm:$0xff]  ;;  %v5963_v44 = vmul.f32 %v5789_v27, %v16424_v12  ;;  %v16425_v26 = vld [vmem:[#allocation75_spill] sm:$0xff] }
 0x72b   : > { %6151 = vst [vmem:[%s13817_s27 + $0x530] sm:$0xff] %v5959_v7  ;;  %6152 = vst [vmem:[%s13817_s27 + $0x538] sm:$0xff] %v5960_v21  ;;  %v5972_v30 = vmul.f32 %v5790_v48, %v16421_v17  ;;  %v16423_v31 = vld [vmem:[#allocation221_spill] sm:$0xff]  ;;  %v5964_v15 = vmul.f32 %v5789_v27, %v16425_v26  ;;  %v16427_v53 = vld [vmem:[#allocation167_spill] sm:$0xff] }
 0x72c   : > { %6141 = vst [vmem:[%s13817_s27 + $0x4e0] sm:$0xff] %v5949_v29  ;;  %6142 = vst [vmem:[%s13817_s27 + $0x4e8] sm:$0xff] %v5950_v14  ;;  %v5962_v11 = vmul.f32 %v5789_v27, %v16423_v31  ;;  %v16426_v33 = vld [vmem:[#allocation69_spill] sm:$0xff]  ;;  %v5966_v56 = vmul.f32 %v5789_v27, %v16427_v53  ;;  %v16428_v59 = vld [vmem:[#allocation127_spill] sm:$0xff] }
 0x72d   : > { %6143 = vst [vmem:[%s13817_s27 + $0x4f0] sm:$0xff] %v5951_v38  ;;  %6144 = vst [vmem:[%s13817_s27 + $0x4f8] sm:$0xff] %v5952_v32  ;;  %v5965_v9 = vmul.f32 %v5789_v27, %v16426_v33  ;;  %v5979_v8 = vmul.f32 %v5792_v47, %v16428_v59  ;;  %v16429_v54 = vld [vmem:[#allocation67_spill] sm:$0xff]  ;;  %v16430_v42 = vld [vmem:[#allocation130_spill] sm:$0xff] }
 0x72e   : > { %6145 = vst [vmem:[%s13817_s27 + $0x500] sm:$0xff] %v5953_v5  ;;  %6146 = vst [vmem:[%s13817_s27 + $0x508] sm:$0xff] %v5954_v50  ;;  %v5980_v3 = vmul.f32 %v5792_v47, %v16429_v54  ;;  %v5981_v61 = vmul.f32 %v5792_v47, %v16430_v42  ;;  %v16431_v13 = vld [vmem:[#allocation88_spill] sm:$0xff]  ;;  %v16432_v55 = vld [vmem:[#allocation253_spill] sm:$0xff] }
 0x72f   : > { %6159 = vst [vmem:[%s13817_s27 + $0x570] sm:$0xff] %v5967_v40  ;;  %6160 = vst [vmem:[%s13817_s27 + $0x578] sm:$0xff] %v5968_v10  ;;  %v5982_v45 = vmul.f32 %v5792_v47, %v16431_v13  ;;  %v5983_v49 = vmul.f32 %v5792_v47, %v16432_v55  ;;  %v16433_v23 = vld [vmem:[#allocation169_spill] sm:$0xff]  ;;  %v16434_v41 = vld [vmem:[#allocation71_spill] sm:$0xff] }
 0x730   : > { %6161 = vst [vmem:[%s13817_s27 + $0x580] sm:$0xff] %v5969_v43  ;;  %6162 = vst [vmem:[%s13817_s27 + $0x588] sm:$0xff] %v5970_v60  ;;  %v5984_v34 = vmul.f32 %v5792_v47, %v16433_v23  ;;  %v5973_v20 = vmul.f32 %v5791_v2, %v16434_v41  ;;  %v16435_v36 = vld [vmem:[#allocation225_spill] sm:$0xff]  ;;  %v16436_v1 = vld [vmem:[#allocation103_spill] sm:$0xff] }
 0x731   : > { %6163 = vst [vmem:[%s13817_s27 + $0x590] sm:$0xff] %v5971_v18  ;;  %6164 = vst [vmem:[%s13817_s27 + $0x598] sm:$0xff] %v5972_v30  ;;  %v5974_v35 = vmul.f32 %v5791_v2, %v16435_v36  ;;  %v5975_v7 = vmul.f32 %v5791_v2, %v16436_v1  ;;  %v16437_v37 = vld [vmem:[#allocation222_spill] sm:$0xff]  ;;  %v16438_v4 = vld [vmem:[#allocation77_spill] sm:$0xff] }
 0x732   : > { %6153 = vst [vmem:[%s13817_s27 + $0x540] sm:$0xff] %v5961_v63  ;;  %6154 = vst [vmem:[%s13817_s27 + $0x548] sm:$0xff] %v5962_v11  ;;  %v5976_v21 = vmul.f32 %v5791_v2, %v16437_v37  ;;  %v5977_v29 = vmul.f32 %v5791_v2, %v16438_v4  ;;  %v16439_v28 = vld [vmem:[#allocation171_spill] sm:$0xff] }
 0x733   : > { %6155 = vst [vmem:[%s13817_s27 + $0x550] sm:$0xff] %v5963_v44  ;;  %6156 = vst [vmem:[%s13817_s27 + $0x558] sm:$0xff] %v5964_v15  ;;  %v5978_v14 = vmul.f32 %v5791_v2, %v16439_v28 }
 0x734   : > { %6157 = vst [vmem:[%s13817_s27 + $0x560] sm:$0xff] %v5965_v9  ;;  %6158 = vst [vmem:[%s13817_s27 + $0x568] sm:$0xff] %v5966_v56 }
 0x735   : > { %6171 = vst [vmem:[%s13817_s27 + $0x5d0] sm:$0xff] %v5979_v8  ;;  %6172 = vst [vmem:[%s13817_s27 + $0x5d8] sm:$0xff] %v5980_v3 }
 0x736   : > { %6173 = vst [vmem:[%s13817_s27 + $0x5e0] sm:$0xff] %v5981_v61  ;;  %6174 = vst [vmem:[%s13817_s27 + $0x5e8] sm:$0xff] %v5982_v45 }
 0x737   : > { %6175 = vst [vmem:[%s13817_s27 + $0x5f0] sm:$0xff] %v5983_v49  ;;  %6176 = vst [vmem:[%s13817_s27 + $0x5f8] sm:$0xff] %v5984_v34 }
 0x738   : > { %6165 = vst [vmem:[%s13817_s27 + $0x5a0] sm:$0xff] %v5973_v20  ;;  %6166 = vst [vmem:[%s13817_s27 + $0x5a8] sm:$0xff] %v5974_v35 }
 0x739   : > { %6167 = vst [vmem:[%s13817_s27 + $0x5b0] sm:$0xff] %v5975_v7  ;;  %6168 = vst [vmem:[%s13817_s27 + $0x5b8] sm:$0xff] %v5976_v21 }
 0x73a   : > { %6169 = vst [vmem:[%s13817_s27 + $0x5c0] sm:$0xff] %v5977_v29  ;;  %6170 = vst [vmem:[%s13817_s27 + $0x5c8] sm:$0xff] %v5978_v14 }
 0x73b   : > { %8160 = shalt.err (!%p8157_p6)
}
 0x73c   : > { %s8161_s10 = scalar_lea.hbm %s14234_s9, 24576  ;;  %s8165_s26 = scalar_lea.hbm %s14301_s6, 49152 }
 0x73d   : > { %p8162_p13 = scmp.ne.s32.totalorder %s14234_s9, %s8161_s10  ;;  %p8166_p11 = scmp.lt.s32.totalorder %s14234_s9, %s14301_s6 }
 0x73e   : > { %p8167_p3 = scmp.lt.s32.totalorder %s8165_s26, %s8161_s10 }
 0x73f   : > { %p8163_p8 = pnand %p8162_p13, %p16440_p0 }
 0x740   : > { %p8168_p5 = por %p8167_p3, %p8166_p11 }
 0x741   : > { %p8164_p10 = pneg %p8163_p8 }
 0x743   : > { %p8169_p2 = pnand %p8168_p5, %p8164_p10 }
 0x745   : > { %8172 = shalt.err (!%p8169_p2)
}
 0x746   : > { %s8239_s13 = smov 768   ;;  %s8240_s19 = smov 48  }
 0x747   : > { %7091 = dma.vmem_to_hbm [thread:$0]  (%p16440_p0), %s14244_s7, 24576, %s14234_s9, %s6178_s30, %s8239_s13, %s8239_s13, %s8240_s19  }
 0x748 PF: > { %s6207_s27 = sand.u32 1, %s8211_s21   ;;  %p16441_p1 = scmp.ne.s32.totalorder %s14887_s28, 0 }
 0x749   : > { %p16442_p12 = scmp.ge.s32.totalorder %s8223_s24, 2  ;;  %s6208_s23 = scalar_lea.sflag [#allocation4], %s6207_s27 }
 0x74b   : > { %p7114_p7 = pnand %p16442_p12, %p16441_p1 }
 0x74d   : > { %p7115_p9 = pneg %p7114_p7 }
 0x74f   : > { %8206 = dma.done.wait (%p7115_p9), %s6208_s23, 24576  }
 0x750   : > { %8208 = vsyncadd (%p7115_p9), %s6208_s23, 4294942720  ;;  %s16443_s24 = sld [smem:[#allocation20_spill]]  ;;  %s16446_s21 = smov %s8215_s22 }
 0x751   : > { %s16444_s25 = sld [smem:[#allocation19_spill]] }
 0x752   : > { %s16445_s23 = sld [smem:[#allocation21_spill]] }
 0x756   : > { %p24_p4 = scmp.ge.s32.totalorder %s16443_s24, 4  }
 0x757   : > { %s16447_s22 = smov %s16444_s25 }
 0x758   :  { %26 = sbr.rel (!%p24_p4) target bundleno = 11 (0xb), region = 125 }
 0x75d   :  { %6213 = vsyncpa [#allocation3], 1 }
 0x75e   :  { %6215 = vsyncpa [#allocation3 + $0x1], 1 }
 0x75f   :  { %6216 = vsyncpa [#allocation6], 1 }
 0x760   :  { %6218 = vsyncpa [#allocation6 + $0x1], 1 }
 0x761   :  { %6219 = vsyncpa [#allocation9], 1 }
 0x762   :  { %6220 = vsyncpa [#allocation12], 1 }
 0x763   :  { %6221 = vsyncpa [#allocation4], 1 }
 0x764   :  { %6223 = vsyncpa [#allocation4 + $0x1], 1 }

</bundles_post_ra>
